<compile_context>
chip_gen: v7x
topology: tpu7x:2x2x1
jax: 0.10.0
libtpu: 0.0.40
codegen_flags: <defaults>
</compile_context>

<pallas_src>
import jax
import jax.numpy as jnp
from jax.experimental import pallas as pl
from jax.experimental.pallas import tpu as pltpu

# ----------------------------- config (small synthetic ViT) ------------------
B = 2                  # batch
C_IN = 3               # image channels
IMG = 32               # image H = W
PATCH = 8              # patch size
GRID = IMG // PATCH
N_PATCH = GRID * GRID          # 16
SEQ = N_PATCH + 1              # 17 = class token + patches
CPP = C_IN * PATCH * PATCH     # 192 flattened patch length
WIDTH = 64                     # transformer width (self.width)
HEADS = 4
HEAD_DIM = WIDTH // HEADS
MLP = 256
LAYERS = 2
EMBED = 32                     # output_dim (self.embed_dim)
N_CLASSES = 5                  # number of text prompts
EPS = 1e-5


# ----------------------------- fused kernel ----------------------------------
def _ln(x, g, b):
    mu = jnp.mean(x, axis=-1, keepdims=True)
    var = jnp.mean(jnp.square(x - mu), axis=-1, keepdims=True)
    return (x - mu) * jax.lax.rsqrt(var + EPS) * g + b


def _clip_forward_kernel(
        patches_ref, wpatch_ref, pos_ref,
        lnpre_g, lnpre_b,
        ln1_g, ln1_b, wqkv_ref, bqkv_ref, wo_ref, bo_ref,
        ln2_g, ln2_b, w1_ref, b1_ref, w2_ref, b2_ref,
        lnpost_g, lnpost_b, proj_ref, text_ref, scale_ref,
        tokens_ref, feat_ref, logits_ref,
        attn_buf):
    """Entire CLIP visual forward + scaled logits for the whole batch, fused."""
    wpatch = wpatch_ref[...]
    pos = pos_ref[...]
    inv_sqrt_d = 1.0 / jnp.sqrt(jnp.float32(HEAD_DIM))

    for b in range(B):                       # statically unrolled (B = 2)
        # --- patch embedding; class-token row is a zero patch row and its
        #     embedding is folded into row 0 of `pos` (done in JAX glue).
        x = jnp.dot(patches_ref[b], wpatch,
                    preferred_element_type=jnp.float32) + pos        # (SEQ, WIDTH)
        x = _ln(x, lnpre_g[...], lnpre_b[...])                        # ln_pre

        # --- pre-norm residual attention blocks (statically unrolled layers)
        for l in range(LAYERS):
            # attention branch
            h = _ln(x, ln1_g[l], ln1_b[l])
            qkv = jnp.dot(h, wqkv_ref[l],
                          preferred_element_type=jnp.float32) + bqkv_ref[l]
            q = qkv[:, :WIDTH]
            k = qkv[:, WIDTH:2 * WIDTH]
            v = qkv[:, 2 * WIDTH:]
            for hi in range(HEADS):
                sl = slice(hi * HEAD_DIM, (hi + 1) * HEAD_DIM)
                s = jax.lax.dot_general(
                    q[:, sl], k[:, sl], (((1,), (1,)), ((), ())),
                    preferred_element_type=jnp.float32) * inv_sqrt_d
                s = s - jnp.max(s, axis=-1, keepdims=True)
                p = jnp.exp(s)
                p = p * pl.reciprocal(jnp.sum(p, axis=-1, keepdims=True),
                                      approx=True)
                # pack this head's output into its lane slot of the concat buffer
                attn_buf[:, sl] = jnp.dot(p, v[:, sl],
                                          preferred_element_type=jnp.float32)
            # single K=WIDTH output projection over the concatenated heads
            x = x + jnp.dot(attn_buf[...], wo_ref[l],
                            preferred_element_type=jnp.float32) + bo_ref[l]

            # MLP branch
            h2 = _ln(x, ln2_g[l], ln2_b[l])
            f = jnp.dot(h2, w1_ref[l],
                        preferred_element_type=jnp.float32) + b1_ref[l]
            # TODO(synk): nn.GELU default is exact erf; tanh approximation here.
            f = jax.nn.gelu(f, approximate=True)
            x = x + jnp.dot(f, w2_ref[l],
                            preferred_element_type=jnp.float32) + b2_ref[l]

        # --- ln_post applied to ALL tokens (open_clip default: LN before pooling)
        tokens_ref[b] = _ln(x, lnpost_g[...], lnpost_b[...])

    # --- head: pool class token (both batch rows at once) -> proj -> L2 -> logits
    pooled = tokens_ref[...][:, 0, :]                                # (B, WIDTH)
    feat = jnp.dot(pooled, proj_ref[...], preferred_element_type=jnp.float32)
    feat = feat * jax.lax.rsqrt(
        jnp.sum(jnp.square(feat), axis=-1, keepdims=True))
    feat_ref[...] = feat
    logits_ref[...] = jnp.exp(scale_ref[0]) * jnp.dot(
        feat, text_ref[...], preferred_element_type=jnp.float32)


# ----------------------------- wrapper ----------------------------------------
def _full(shape):
    n = len(shape)
    return pl.BlockSpec(shape, lambda i, n=n: (0,) * n)


def open_clip_forward(image, params, text_features):
    # JAX glue: patch extraction (pure layout == stride-PATCH conv im2col) and
    # folding of the class-token embedding into the positional embedding.
    p = image.reshape(B, C_IN, GRID, PATCH, GRID, PATCH)
    p = p.transpose(0, 2, 4, 1, 3, 5).reshape(B, N_PATCH, CPP)
    patches = jnp.concatenate(
        [jnp.zeros((B, 1, CPP), jnp.float32), p], axis=1)            # (B, SEQ, CPP)
    wpatch = params['conv_w'].reshape(WIDTH, CPP).T                  # (CPP, WIDTH)
    pos_cls = params['pos'].at[0].add(params['cls'][0, 0])           # (SEQ, WIDTH)

    blk = params['blocks']
    ln_tokens, image_features, logits = pl.pallas_call(
        _clip_forward_kernel,
        grid=(1,),
        out_shape=(jax.ShapeDtypeStruct((B, SEQ, WIDTH), jnp.float32),
                   jax.ShapeDtypeStruct((B, EMBED), jnp.float32),
                   jax.ShapeDtypeStruct((B, N_CLASSES), jnp.float32)),
        in_specs=[
            _full((B, SEQ, CPP)), _full((CPP, WIDTH)), _full((SEQ, WIDTH)),
            _full((1, WIDTH)), _full((1, WIDTH)),
            _full((LAYERS, 1, WIDTH)), _full((LAYERS, 1, WIDTH)),
            _full((LAYERS, WIDTH, 3 * WIDTH)), _full((LAYERS, 1, 3 * WIDTH)),
            _full((LAYERS, WIDTH, WIDTH)), _full((LAYERS, 1, WIDTH)),
            _full((LAYERS, 1, WIDTH)), _full((LAYERS, 1, WIDTH)),
            _full((LAYERS, WIDTH, MLP)), _full((LAYERS, 1, MLP)),
            _full((LAYERS, MLP, WIDTH)), _full((LAYERS, 1, WIDTH)),
            _full((1, WIDTH)), _full((1, WIDTH)),
            _full((WIDTH, EMBED)), _full((EMBED, N_CLASSES)),
            pl.BlockSpec(memory_space=pltpu.MemorySpace.SMEM),
        ],
        out_specs=(_full((B, SEQ, WIDTH)),
                   _full((B, EMBED)),
                   _full((B, N_CLASSES))),
        scratch_shapes=[pltpu.VMEM((SEQ, WIDTH), jnp.float32)],
    )(patches, wpatch, pos_cls,
      params['ln_pre_g'], params['ln_pre_b'],
      blk['ln1_g'], blk['ln1_b'], blk['wqkv'], blk['bqkv'], blk['wo'], blk['bo'],
      blk['ln2_g'], blk['ln2_b'], blk['w1'], blk['b1'], blk['w2'], blk['b2'],
      params['ln_post_g'], params['ln_post_b'], params['proj'],
      text_features.T, params['logit_scale'])

    return {
        'image_features': image_features.astype(jnp.float32),
        'image_tokens': ln_tokens[:, 1:, :].astype(jnp.float32),
        'text_features': text_features.astype(jnp.float32),
        'logits': logits.astype(jnp.float32),
    }


# ----------------------------- params ------------------------------------------
def init_params(key):
    keys = jax.random.split(key, 4 + LAYERS)

    def nrm(k, shape, scale=0.02):
        return (scale * jax.random.normal(k, shape)).astype(jnp.float32)

    params = {
        'conv_w': nrm(keys[0], (WIDTH, C_IN, PATCH, PATCH)),
        'cls': nrm(keys[1], (1, 1, WIDTH)),
        'pos': nrm(keys[2], (SEQ, WIDTH)),
        'ln_pre_g': jnp.ones((1, WIDTH), jnp.float32),
        'ln_pre_b': jnp.zeros((1, WIDTH), jnp.float32),
        'ln_post_g': jnp.ones((1, WIDTH), jnp.float32),
        'ln_post_b': jnp.zeros((1, WIDTH), jnp.float32),
        'proj': nrm(keys[3], (WIDTH, EMBED)),
        'logit_scale': jnp.array([jnp.log(1.0 / 0.07)], jnp.float32),
    }
    wqkv, wo, w1, w2 = [], [], [], []
    for l in range(LAYERS):
        bk = jax.random.split(keys[4 + l], 4)
        wqkv.append(nrm(bk[0], (WIDTH, 3 * WIDTH)))
        wo.append(nrm(bk[1], (WIDTH, WIDTH)))
        w1.append(nrm(bk[2], (WIDTH, MLP)))
        w2.append(nrm(bk[3], (MLP, WIDTH)))
    params['blocks'] = {
        'ln1_g': jnp.ones((LAYERS, 1, WIDTH), jnp.float32),
        'ln1_b': jnp.zeros((LAYERS, 1, WIDTH), jnp.float32),
        'wqkv': jnp.stack(wqkv),
        'bqkv': jnp.zeros((LAYERS, 1, 3 * WIDTH), jnp.float32),
        'wo': jnp.stack(wo),
        'bo': jnp.zeros((LAYERS, 1, WIDTH), jnp.float32),
        'ln2_g': jnp.ones((LAYERS, 1, WIDTH), jnp.float32),
        'ln2_b': jnp.zeros((LAYERS, 1, WIDTH), jnp.float32),
        'w1': jnp.stack(w1),
        'b1': jnp.zeros((LAYERS, 1, MLP), jnp.float32),
        'w2': jnp.stack(w2),
        'b2': jnp.zeros((LAYERS, 1, WIDTH), jnp.float32),
    }
    return params


if __name__ == "__main__":
    key = jax.random.PRNGKey(0)
    k_img, k_txt, k_par = jax.random.split(key, 3)

    image = jax.random.normal(k_img, (B, C_IN, IMG, IMG), jnp.float32)   # NCHW
    text_features = jax.random.normal(k_txt, (N_CLASSES, EMBED), jnp.float32)
    text_features = text_features / jnp.linalg.norm(
        text_features, axis=-1, keepdims=True)        # encode_text() normalizes
    params = init_params(k_par)

    out = open_clip_forward(image, params, text_features)
    jax.block_until_ready(out)

    assert out['image_features'].shape == (B, EMBED)
    assert out['image_tokens'].shape == (B, N_PATCH, WIDTH)
    assert out['text_features'].shape == (N_CLASSES, EMBED)
    assert out['logits'].shape == (B, N_CLASSES)
    assert all(bool(jnp.all(jnp.isfinite(v))) for v in out.values())
    print("KERNEL_OK")
</pallas_src>

<mosaic_0001>
module attributes {stable_mosaic.version = 11 : i64} {
  func.func @_clip_forward_kernel(%arg0: i32, %arg1: memref<2x17x192xf32, #tpu.memory_space<vmem>>, %arg2: memref<192x64xf32, #tpu.memory_space<vmem>>, %arg3: memref<17x64xf32, #tpu.memory_space<vmem>>, %arg4: memref<1x64xf32, #tpu.memory_space<vmem>>, %arg5: memref<1x64xf32, #tpu.memory_space<vmem>>, %arg6: memref<2x1x64xf32, #tpu.memory_space<vmem>>, %arg7: memref<2x1x64xf32, #tpu.memory_space<vmem>>, %arg8: memref<2x64x192xf32, #tpu.memory_space<vmem>>, %arg9: memref<2x1x192xf32, #tpu.memory_space<vmem>>, %arg10: memref<2x64x64xf32, #tpu.memory_space<vmem>>, %arg11: memref<2x1x64xf32, #tpu.memory_space<vmem>>, %arg12: memref<2x1x64xf32, #tpu.memory_space<vmem>>, %arg13: memref<2x1x64xf32, #tpu.memory_space<vmem>>, %arg14: memref<2x64x256xf32, #tpu.memory_space<vmem>>, %arg15: memref<2x1x256xf32, #tpu.memory_space<vmem>>, %arg16: memref<2x256x64xf32, #tpu.memory_space<vmem>>, %arg17: memref<2x1x64xf32, #tpu.memory_space<vmem>>, %arg18: memref<1x64xf32, #tpu.memory_space<vmem>>, %arg19: memref<1x64xf32, #tpu.memory_space<vmem>>, %arg20: memref<64x32xf32, #tpu.memory_space<vmem>>, %arg21: memref<32x5xf32, #tpu.memory_space<vmem>>, %arg22: memref<1xf32, #tpu.memory_space<smem>>, %arg23: memref<2x17x64xf32, #tpu.memory_space<vmem>>, %arg24: memref<2x32xf32, #tpu.memory_space<vmem>>, %arg25: memref<2x5xf32, #tpu.memory_space<vmem>>, %arg26: memref<17x64xf32, #tpu.memory_space<vmem>>) attributes {dimension_semantics = [#tpu.dimension_semantics<arbitrary>], iteration_bounds = array<i64: 1>, scalar_prefetch = 0 : i64, scratch_operands = 1 : i64, tpu.core_type = #tpu.core_type<tc>, window_params = [{pipeline_mode = #tpu.pipeline_mode<synchronous>, transform_indices = @transform_0, window_bounds = array<i64: 2, 17, 192>}, {pipeline_mode = #tpu.pipeline_mode<synchronous>, transform_indices = @transform_1, window_bounds = array<i64: 192, 64>}, {pipeline_mode = #tpu.pipeline_mode<synchronous>, transform_indices = @transform_2, window_bounds = array<i64: 17, 64>}, {pipeline_mode = #tpu.pipeline_mode<synchronous>, transform_indices = @transform_3, window_bounds = array<i64: 1, 64>}, {pipeline_mode = #tpu.pipeline_mode<synchronous>, transform_indices = @transform_4, window_bounds = array<i64: 1, 64>}, {pipeline_mode = #tpu.pipeline_mode<synchronous>, transform_indices = @transform_5, window_bounds = array<i64: 2, 1, 64>}, {pipeline_mode = #tpu.pipeline_mode<synchronous>, transform_indices = @transform_6, window_bounds = array<i64: 2, 1, 64>}, {pipeline_mode = #tpu.pipeline_mode<synchronous>, transform_indices = @transform_7, window_bounds = array<i64: 2, 64, 192>}, {pipeline_mode = #tpu.pipeline_mode<synchronous>, transform_indices = @transform_8, window_bounds = array<i64: 2, 1, 192>}, {pipeline_mode = #tpu.pipeline_mode<synchronous>, transform_indices = @transform_9, window_bounds = array<i64: 2, 64, 64>}, {pipeline_mode = #tpu.pipeline_mode<synchronous>, transform_indices = @transform_10, window_bounds = array<i64: 2, 1, 64>}, {pipeline_mode = #tpu.pipeline_mode<synchronous>, transform_indices = @transform_11, window_bounds = array<i64: 2, 1, 64>}, {pipeline_mode = #tpu.pipeline_mode<synchronous>, transform_indices = @transform_12, window_bounds = array<i64: 2, 1, 64>}, {pipeline_mode = #tpu.pipeline_mode<synchronous>, transform_indices = @transform_13, window_bounds = array<i64: 2, 64, 256>}, {pipeline_mode = #tpu.pipeline_mode<synchronous>, transform_indices = @transform_14, window_bounds = array<i64: 2, 1, 256>}, {pipeline_mode = #tpu.pipeline_mode<synchronous>, transform_indices = @transform_15, window_bounds = array<i64: 2, 256, 64>}, {pipeline_mode = #tpu.pipeline_mode<synchronous>, transform_indices = @transform_16, window_bounds = array<i64: 2, 1, 64>}, {pipeline_mode = #tpu.pipeline_mode<synchronous>, transform_indices = @transform_17, window_bounds = array<i64: 1, 64>}, {pipeline_mode = #tpu.pipeline_mode<synchronous>, transform_indices = @transform_18, window_bounds = array<i64: 1, 64>}, {pipeline_mode = #tpu.pipeline_mode<synchronous>, transform_indices = @transform_19, window_bounds = array<i64: 64, 32>}, {pipeline_mode = #tpu.pipeline_mode<synchronous>, transform_indices = @transform_20, window_bounds = array<i64: 32, 5>}, {transform_indices = @transform_21, window_bounds = array<i64: 1>}, {pipeline_mode = #tpu.pipeline_mode<synchronous>, transform_indices = @transform_22, window_bounds = array<i64: 2, 17, 64>}, {pipeline_mode = #tpu.pipeline_mode<synchronous>, transform_indices = @transform_23, window_bounds = array<i64: 2, 32>}, {pipeline_mode = #tpu.pipeline_mode<synchronous>, transform_indices = @transform_24, window_bounds = array<i64: 2, 5>}]} {
    %c0 = arith.constant 0 : index
    %c0_0 = arith.constant 0 : index
    %0 = vector.load %arg2[%c0, %c0_0] : memref<192x64xf32, #tpu.memory_space<vmem>>, vector<192x64xf32>
    %c0_1 = arith.constant 0 : index
    %c0_2 = arith.constant 0 : index
    %1 = vector.load %arg3[%c0_1, %c0_2] : memref<17x64xf32, #tpu.memory_space<vmem>>, vector<17x64xf32>
    %cst = arith.constant 1.600000e+01 : f32
    %2 = math.sqrt %cst : f32
    %cst_3 = arith.constant 1.000000e+00 : f32
    %3 = arith.divf %cst_3, %2 : f32
    %c0_4 = arith.constant 0 : index
    %c0_5 = arith.constant 0 : index
    %c0_6 = arith.constant 0 : index
    %4 = vector.load %arg1[%c0_4, %c0_5, %c0_6] : memref<2x17x192xf32, #tpu.memory_space<vmem>>, vector<1x17x192xf32>
    %5 = vector.shape_cast %4 : vector<1x17x192xf32> to vector<17x192xf32>
    %cst_7 = arith.constant dense<0.000000e+00> : vector<17x64xf32>
    %6 = tpu.matmul %5, %0, %cst_7 {dimension_numbers = #tpu.dot_dimension_numbers<[1], [0], [0], [1], [0, 0, 1, 1], [], []>} : vector<17x192xf32>, vector<192x64xf32>, vector<17x64xf32> -> vector<17x64xf32>
    %7 = arith.addf %6, %1 : vector<17x64xf32>
    %c0_8 = arith.constant 0 : index
    %c0_9 = arith.constant 0 : index
    %8 = vector.load %arg4[%c0_8, %c0_9] : memref<1x64xf32, #tpu.memory_space<vmem>>, vector<1x64xf32>
    %c0_10 = arith.constant 0 : index
    %c0_11 = arith.constant 0 : index
    %9 = vector.load %arg5[%c0_10, %c0_11] : memref<1x64xf32, #tpu.memory_space<vmem>>, vector<1x64xf32>
    %cst_12 = arith.constant dense<0.000000e+00> : vector<17xf32>
    %10 = vector.multi_reduction <add>, %7, %cst_12 [1] : vector<17x64xf32> to vector<17xf32>
    %11 = vector.shape_cast %10 : vector<17xf32> to vector<17x1xf32>
    %cst_13 = arith.constant 6.400000e+01 : f32
    %12 = vector.broadcast %cst_13 : f32 to vector<17x1xf32>
    %13 = arith.divf %11, %12 : vector<17x1xf32>
    %14 = vector.broadcast %13 : vector<17x1xf32> to vector<17x64xf32>
    %15 = arith.subf %7, %14 : vector<17x64xf32>
    %16 = arith.mulf %15, %15 : vector<17x64xf32>
    %cst_14 = arith.constant dense<0.000000e+00> : vector<17xf32>
    %17 = vector.multi_reduction <add>, %16, %cst_14 [1] : vector<17x64xf32> to vector<17xf32>
    %18 = vector.shape_cast %17 : vector<17xf32> to vector<17x1xf32>
    %cst_15 = arith.constant 6.400000e+01 : f32
    %19 = vector.broadcast %cst_15 : f32 to vector<17x1xf32>
    %20 = arith.divf %18, %19 : vector<17x1xf32>
    %21 = vector.broadcast %13 : vector<17x1xf32> to vector<17x64xf32>
    %22 = arith.subf %7, %21 : vector<17x64xf32>
    %cst_16 = arith.constant 9.99999974E-6 : f32
    %23 = vector.broadcast %cst_16 : f32 to vector<17x1xf32>
    %24 = arith.addf %20, %23 : vector<17x1xf32>
    %25 = math.rsqrt %24 : vector<17x1xf32>
    %26 = vector.broadcast %25 : vector<17x1xf32> to vector<17x64xf32>
    %27 = arith.mulf %22, %26 : vector<17x64xf32>
    %28 = vector.broadcast %8 : vector<1x64xf32> to vector<17x64xf32>
    %29 = arith.mulf %27, %28 : vector<17x64xf32>
    %30 = vector.broadcast %9 : vector<1x64xf32> to vector<17x64xf32>
    %31 = arith.addf %29, %30 : vector<17x64xf32>
    %c0_17 = arith.constant 0 : index
    %c0_18 = arith.constant 0 : index
    %c0_19 = arith.constant 0 : index
    %32 = vector.load %arg6[%c0_17, %c0_18, %c0_19] : memref<2x1x64xf32, #tpu.memory_space<vmem>>, vector<1x1x64xf32>
    %33 = vector.shape_cast %32 : vector<1x1x64xf32> to vector<1x64xf32>
    %c0_20 = arith.constant 0 : index
    %c0_21 = arith.constant 0 : index
    %c0_22 = arith.constant 0 : index
    %34 = vector.load %arg7[%c0_20, %c0_21, %c0_22] : memref<2x1x64xf32, #tpu.memory_space<vmem>>, vector<1x1x64xf32>
    %35 = vector.shape_cast %34 : vector<1x1x64xf32> to vector<1x64xf32>
    %cst_23 = arith.constant dense<0.000000e+00> : vector<17xf32>
    %36 = vector.multi_reduction <add>, %31, %cst_23 [1] : vector<17x64xf32> to vector<17xf32>
    %37 = vector.shape_cast %36 : vector<17xf32> to vector<17x1xf32>
    %cst_24 = arith.constant 6.400000e+01 : f32
    %38 = vector.broadcast %cst_24 : f32 to vector<17x1xf32>
    %39 = arith.divf %37, %38 : vector<17x1xf32>
    %40 = vector.broadcast %39 : vector<17x1xf32> to vector<17x64xf32>
    %41 = arith.subf %31, %40 : vector<17x64xf32>
    %42 = arith.mulf %41, %41 : vector<17x64xf32>
    %cst_25 = arith.constant dense<0.000000e+00> : vector<17xf32>
    %43 = vector.multi_reduction <add>, %42, %cst_25 [1] : vector<17x64xf32> to vector<17xf32>
    %44 = vector.shape_cast %43 : vector<17xf32> to vector<17x1xf32>
    %cst_26 = arith.constant 6.400000e+01 : f32
    %45 = vector.broadcast %cst_26 : f32 to vector<17x1xf32>
    %46 = arith.divf %44, %45 : vector<17x1xf32>
    %47 = vector.broadcast %39 : vector<17x1xf32> to vector<17x64xf32>
    %48 = arith.subf %31, %47 : vector<17x64xf32>
    %cst_27 = arith.constant 9.99999974E-6 : f32
    %49 = vector.broadcast %cst_27 : f32 to vector<17x1xf32>
    %50 = arith.addf %46, %49 : vector<17x1xf32>
    %51 = math.rsqrt %50 : vector<17x1xf32>
    %52 = vector.broadcast %51 : vector<17x1xf32> to vector<17x64xf32>
    %53 = arith.mulf %48, %52 : vector<17x64xf32>
    %54 = vector.broadcast %33 : vector<1x64xf32> to vector<17x64xf32>
    %55 = arith.mulf %53, %54 : vector<17x64xf32>
    %56 = vector.broadcast %35 : vector<1x64xf32> to vector<17x64xf32>
    %57 = arith.addf %55, %56 : vector<17x64xf32>
    %c0_28 = arith.constant 0 : index
    %c0_29 = arith.constant 0 : index
    %c0_30 = arith.constant 0 : index
    %58 = vector.load %arg8[%c0_28, %c0_29, %c0_30] : memref<2x64x192xf32, #tpu.memory_space<vmem>>, vector<1x64x192xf32>
    %59 = vector.shape_cast %58 : vector<1x64x192xf32> to vector<64x192xf32>
    %cst_31 = arith.constant dense<0.000000e+00> : vector<17x192xf32>
    %60 = tpu.matmul %57, %59, %cst_31 {dimension_numbers = #tpu.dot_dimension_numbers<[1], [0], [0], [1], [0, 0, 1, 1], [], []>} : vector<17x64xf32>, vector<64x192xf32>, vector<17x192xf32> -> vector<17x192xf32>
    %c0_32 = arith.constant 0 : index
    %c0_33 = arith.constant 0 : index
    %c0_34 = arith.constant 0 : index
    %61 = vector.load %arg9[%c0_32, %c0_33, %c0_34] : memref<2x1x192xf32, #tpu.memory_space<vmem>>, vector<1x1x192xf32>
    %62 = vector.shape_cast %61 : vector<1x1x192xf32> to vector<1x192xf32>
    %63 = vector.broadcast %62 : vector<1x192xf32> to vector<17x192xf32>
    %64 = arith.addf %60, %63 : vector<17x192xf32>
    %65 = vector.extract_strided_slice %64 {offsets = [0, 0], sizes = [17, 64], strides = [1, 1]} : vector<17x192xf32> to vector<17x64xf32>
    %66 = vector.extract_strided_slice %64 {offsets = [0, 64], sizes = [17, 64], strides = [1, 1]} : vector<17x192xf32> to vector<17x64xf32>
    %67 = vector.extract_strided_slice %64 {offsets = [0, 128], sizes = [17, 64], strides = [1, 1]} : vector<17x192xf32> to vector<17x64xf32>
    %68 = vector.extract_strided_slice %65 {offsets = [0, 0], sizes = [17, 16], strides = [1, 1]} : vector<17x64xf32> to vector<17x16xf32>
    %69 = vector.extract_strided_slice %66 {offsets = [0, 0], sizes = [17, 16], strides = [1, 1]} : vector<17x64xf32> to vector<17x16xf32>
    %cst_35 = arith.constant dense<0.000000e+00> : vector<17x17xf32>
    %70 = tpu.matmul %68, %69, %cst_35 {dimension_numbers = #tpu.dot_dimension_numbers<[1], [1], [0], [0], [0, 0, 1, 0], [], []>} : vector<17x16xf32>, vector<17x16xf32>, vector<17x17xf32> -> vector<17x17xf32>
    %71 = vector.broadcast %3 : f32 to vector<17x17xf32>
    %72 = arith.mulf %70, %71 : vector<17x17xf32>
    %cst_36 = arith.constant dense<0xFF800000> : vector<17xf32>
    %73 = vector.multi_reduction <maximumf>, %72, %cst_36 [1] : vector<17x17xf32> to vector<17xf32>
    %74 = vector.shape_cast %73 : vector<17xf32> to vector<17x1xf32>
    %75 = vector.broadcast %74 : vector<17x1xf32> to vector<17x17xf32>
    %76 = arith.subf %72, %75 : vector<17x17xf32>
    %77 = math.exp %76 : vector<17x17xf32>
    %cst_37 = arith.constant dense<0.000000e+00> : vector<17xf32>
    %78 = vector.multi_reduction <add>, %77, %cst_37 [1] : vector<17x17xf32> to vector<17xf32>
    %79 = vector.shape_cast %78 : vector<17xf32> to vector<17x1xf32>
    %80 = tpu.reciprocal %79 {approx = true} : vector<17x1xf32> -> vector<17x1xf32>
    %81 = vector.broadcast %80 : vector<17x1xf32> to vector<17x17xf32>
    %82 = arith.mulf %77, %81 : vector<17x17xf32>
    %83 = vector.extract_strided_slice %67 {offsets = [0, 0], sizes = [17, 16], strides = [1, 1]} : vector<17x64xf32> to vector<17x16xf32>
    %cst_38 = arith.constant dense<0.000000e+00> : vector<17x16xf32>
    %84 = tpu.matmul %82, %83, %cst_38 {dimension_numbers = #tpu.dot_dimension_numbers<[1], [0], [0], [1], [0, 0, 1, 1], [], []>} : vector<17x17xf32>, vector<17x16xf32>, vector<17x16xf32> -> vector<17x16xf32>
    %c0_39 = arith.constant 0 : index
    %c0_40 = arith.constant 0 : index
    %85 = vector.load %arg26[%c0_39, %c0_40] : memref<17x64xf32, #tpu.memory_space<vmem>>, vector<17x16xf32>
    tpu.vector_store %arg26[%c0_39, %c0_40], %84 {strides = array<i32>} : memref<17x64xf32, #tpu.memory_space<vmem>>, vector<17x16xf32>,
    %86 = vector.extract_strided_slice %65 {offsets = [0, 16], sizes = [17, 16], strides = [1, 1]} : vector<17x64xf32> to vector<17x16xf32>
    %87 = vector.extract_strided_slice %66 {offsets = [0, 16], sizes = [17, 16], strides = [1, 1]} : vector<17x64xf32> to vector<17x16xf32>
    %cst_41 = arith.constant dense<0.000000e+00> : vector<17x17xf32>
    %88 = tpu.matmul %86, %87, %cst_41 {dimension_numbers = #tpu.dot_dimension_numbers<[1], [1], [0], [0], [0, 0, 1, 0], [], []>} : vector<17x16xf32>, vector<17x16xf32>, vector<17x17xf32> -> vector<17x17xf32>
    %89 = vector.broadcast %3 : f32 to vector<17x17xf32>
    %90 = arith.mulf %88, %89 : vector<17x17xf32>
    %cst_42 = arith.constant dense<0xFF800000> : vector<17xf32>
    %91 = vector.multi_reduction <maximumf>, %90, %cst_42 [1] : vector<17x17xf32> to vector<17xf32>
    %92 = vector.shape_cast %91 : vector<17xf32> to vector<17x1xf32>
    %93 = vector.broadcast %92 : vector<17x1xf32> to vector<17x17xf32>
    %94 = arith.subf %90, %93 : vector<17x17xf32>
    %95 = math.exp %94 : vector<17x17xf32>
    %cst_43 = arith.constant dense<0.000000e+00> : vector<17xf32>
    %96 = vector.multi_reduction <add>, %95, %cst_43 [1] : vector<17x17xf32> to vector<17xf32>
    %97 = vector.shape_cast %96 : vector<17xf32> to vector<17x1xf32>
    %98 = tpu.reciprocal %97 {approx = true} : vector<17x1xf32> -> vector<17x1xf32>
    %99 = vector.broadcast %98 : vector<17x1xf32> to vector<17x17xf32>
    %100 = arith.mulf %95, %99 : vector<17x17xf32>
    %101 = vector.extract_strided_slice %67 {offsets = [0, 16], sizes = [17, 16], strides = [1, 1]} : vector<17x64xf32> to vector<17x16xf32>
    %cst_44 = arith.constant dense<0.000000e+00> : vector<17x16xf32>
    %102 = tpu.matmul %100, %101, %cst_44 {dimension_numbers = #tpu.dot_dimension_numbers<[1], [0], [0], [1], [0, 0, 1, 1], [], []>} : vector<17x17xf32>, vector<17x16xf32>, vector<17x16xf32> -> vector<17x16xf32>
    %c0_45 = arith.constant 0 : index
    %c16 = arith.constant 16 : index
    %103 = vector.load %arg26[%c0_45, %c16] : memref<17x64xf32, #tpu.memory_space<vmem>>, vector<17x16xf32>
    tpu.vector_store %arg26[%c0_45, %c16], %102 {strides = array<i32>} : memref<17x64xf32, #tpu.memory_space<vmem>>, vector<17x16xf32>,
    %104 = vector.extract_strided_slice %65 {offsets = [0, 32], sizes = [17, 16], strides = [1, 1]} : vector<17x64xf32> to vector<17x16xf32>
    %105 = vector.extract_strided_slice %66 {offsets = [0, 32], sizes = [17, 16], strides = [1, 1]} : vector<17x64xf32> to vector<17x16xf32>
    %cst_46 = arith.constant dense<0.000000e+00> : vector<17x17xf32>
    %106 = tpu.matmul %104, %105, %cst_46 {dimension_numbers = #tpu.dot_dimension_numbers<[1], [1], [0], [0], [0, 0, 1, 0], [], []>} : vector<17x16xf32>, vector<17x16xf32>, vector<17x17xf32> -> vector<17x17xf32>
    %107 = vector.broadcast %3 : f32 to vector<17x17xf32>
    %108 = arith.mulf %106, %107 : vector<17x17xf32>
    %cst_47 = arith.constant dense<0xFF800000> : vector<17xf32>
    %109 = vector.multi_reduction <maximumf>, %108, %cst_47 [1] : vector<17x17xf32> to vector<17xf32>
    %110 = vector.shape_cast %109 : vector<17xf32> to vector<17x1xf32>
    %111 = vector.broadcast %110 : vector<17x1xf32> to vector<17x17xf32>
    %112 = arith.subf %108, %111 : vector<17x17xf32>
    %113 = math.exp %112 : vector<17x17xf32>
    %cst_48 = arith.constant dense<0.000000e+00> : vector<17xf32>
    %114 = vector.multi_reduction <add>, %113, %cst_48 [1] : vector<17x17xf32> to vector<17xf32>
    %115 = vector.shape_cast %114 : vector<17xf32> to vector<17x1xf32>
    %116 = tpu.reciprocal %115 {approx = true} : vector<17x1xf32> -> vector<17x1xf32>
    %117 = vector.broadcast %116 : vector<17x1xf32> to vector<17x17xf32>
    %118 = arith.mulf %113, %117 : vector<17x17xf32>
    %119 = vector.extract_strided_slice %67 {offsets = [0, 32], sizes = [17, 16], strides = [1, 1]} : vector<17x64xf32> to vector<17x16xf32>
    %cst_49 = arith.constant dense<0.000000e+00> : vector<17x16xf32>
    %120 = tpu.matmul %118, %119, %cst_49 {dimension_numbers = #tpu.dot_dimension_numbers<[1], [0], [0], [1], [0, 0, 1, 1], [], []>} : vector<17x17xf32>, vector<17x16xf32>, vector<17x16xf32> -> vector<17x16xf32>
    %c0_50 = arith.constant 0 : index
    %c32 = arith.constant 32 : index
    %121 = vector.load %arg26[%c0_50, %c32] : memref<17x64xf32, #tpu.memory_space<vmem>>, vector<17x16xf32>
    tpu.vector_store %arg26[%c0_50, %c32], %120 {strides = array<i32>} : memref<17x64xf32, #tpu.memory_space<vmem>>, vector<17x16xf32>,
    %122 = vector.extract_strided_slice %65 {offsets = [0, 48], sizes = [17, 16], strides = [1, 1]} : vector<17x64xf32> to vector<17x16xf32>
    %123 = vector.extract_strided_slice %66 {offsets = [0, 48], sizes = [17, 16], strides = [1, 1]} : vector<17x64xf32> to vector<17x16xf32>
    %cst_51 = arith.constant dense<0.000000e+00> : vector<17x17xf32>
    %124 = tpu.matmul %122, %123, %cst_51 {dimension_numbers = #tpu.dot_dimension_numbers<[1], [1], [0], [0], [0, 0, 1, 0], [], []>} : vector<17x16xf32>, vector<17x16xf32>, vector<17x17xf32> -> vector<17x17xf32>
    %125 = vector.broadcast %3 : f32 to vector<17x17xf32>
    %126 = arith.mulf %124, %125 : vector<17x17xf32>
    %cst_52 = arith.constant dense<0xFF800000> : vector<17xf32>
    %127 = vector.multi_reduction <maximumf>, %126, %cst_52 [1] : vector<17x17xf32> to vector<17xf32>
    %128 = vector.shape_cast %127 : vector<17xf32> to vector<17x1xf32>
    %129 = vector.broadcast %128 : vector<17x1xf32> to vector<17x17xf32>
    %130 = arith.subf %126, %129 : vector<17x17xf32>
    %131 = math.exp %130 : vector<17x17xf32>
    %cst_53 = arith.constant dense<0.000000e+00> : vector<17xf32>
    %132 = vector.multi_reduction <add>, %131, %cst_53 [1] : vector<17x17xf32> to vector<17xf32>
    %133 = vector.shape_cast %132 : vector<17xf32> to vector<17x1xf32>
    %134 = tpu.reciprocal %133 {approx = true} : vector<17x1xf32> -> vector<17x1xf32>
    %135 = vector.broadcast %134 : vector<17x1xf32> to vector<17x17xf32>
    %136 = arith.mulf %131, %135 : vector<17x17xf32>
    %137 = vector.extract_strided_slice %67 {offsets = [0, 48], sizes = [17, 16], strides = [1, 1]} : vector<17x64xf32> to vector<17x16xf32>
    %cst_54 = arith.constant dense<0.000000e+00> : vector<17x16xf32>
    %138 = tpu.matmul %136, %137, %cst_54 {dimension_numbers = #tpu.dot_dimension_numbers<[1], [0], [0], [1], [0, 0, 1, 1], [], []>} : vector<17x17xf32>, vector<17x16xf32>, vector<17x16xf32> -> vector<17x16xf32>
    %c0_55 = arith.constant 0 : index
    %c48 = arith.constant 48 : index
    %139 = vector.load %arg26[%c0_55, %c48] : memref<17x64xf32, #tpu.memory_space<vmem>>, vector<17x16xf32>
    tpu.vector_store %arg26[%c0_55, %c48], %138 {strides = array<i32>} : memref<17x64xf32, #tpu.memory_space<vmem>>, vector<17x16xf32>,
    %c0_56 = arith.constant 0 : index
    %c0_57 = arith.constant 0 : index
    %140 = vector.load %arg26[%c0_56, %c0_57] : memref<17x64xf32, #tpu.memory_space<vmem>>, vector<17x64xf32>
    %c0_58 = arith.constant 0 : index
    %c0_59 = arith.constant 0 : index
    %c0_60 = arith.constant 0 : index
    %141 = vector.load %arg10[%c0_58, %c0_59, %c0_60] : memref<2x64x64xf32, #tpu.memory_space<vmem>>, vector<1x64x64xf32>
    %142 = vector.shape_cast %141 : vector<1x64x64xf32> to vector<64x64xf32>
    %cst_61 = arith.constant dense<0.000000e+00> : vector<17x64xf32>
    %143 = tpu.matmul %140, %142, %cst_61 {dimension_numbers = #tpu.dot_dimension_numbers<[1], [0], [0], [1], [0, 0, 1, 1], [], []>} : vector<17x64xf32>, vector<64x64xf32>, vector<17x64xf32> -> vector<17x64xf32>
    %144 = arith.addf %31, %143 : vector<17x64xf32>
    %c0_62 = arith.constant 0 : index
    %c0_63 = arith.constant 0 : index
    %c0_64 = arith.constant 0 : index
    %145 = vector.load %arg11[%c0_62, %c0_63, %c0_64] : memref<2x1x64xf32, #tpu.memory_space<vmem>>, vector<1x1x64xf32>
    %146 = vector.shape_cast %145 : vector<1x1x64xf32> to vector<1x64xf32>
    %147 = vector.broadcast %146 : vector<1x64xf32> to vector<17x64xf32>
    %148 = arith.addf %144, %147 : vector<17x64xf32>
    %c0_65 = arith.constant 0 : index
    %c0_66 = arith.constant 0 : index
    %c0_67 = arith.constant 0 : index
    %149 = vector.load %arg12[%c0_65, %c0_66, %c0_67] : memref<2x1x64xf32, #tpu.memory_space<vmem>>, vector<1x1x64xf32>
    %150 = vector.shape_cast %149 : vector<1x1x64xf32> to vector<1x64xf32>
    %c0_68 = arith.constant 0 : index
    %c0_69 = arith.constant 0 : index
    %c0_70 = arith.constant 0 : index
    %151 = vector.load %arg13[%c0_68, %c0_69, %c0_70] : memref<2x1x64xf32, #tpu.memory_space<vmem>>, vector<1x1x64xf32>
    %152 = vector.shape_cast %151 : vector<1x1x64xf32> to vector<1x64xf32>
    %cst_71 = arith.constant dense<0.000000e+00> : vector<17xf32>
    %153 = vector.multi_reduction <add>, %148, %cst_71 [1] : vector<17x64xf32> to vector<17xf32>
    %154 = vector.shape_cast %153 : vector<17xf32> to vector<17x1xf32>
    %cst_72 = arith.constant 6.400000e+01 : f32
    %155 = vector.broadcast %cst_72 : f32 to vector<17x1xf32>
    %156 = arith.divf %154, %155 : vector<17x1xf32>
    %157 = vector.broadcast %156 : vector<17x1xf32> to vector<17x64xf32>
    %158 = arith.subf %148, %157 : vector<17x64xf32>
    %159 = arith.mulf %158, %158 : vector<17x64xf32>
    %cst_73 = arith.constant dense<0.000000e+00> : vector<17xf32>
    %160 = vector.multi_reduction <add>, %159, %cst_73 [1] : vector<17x64xf32> to vector<17xf32>
    %161 = vector.shape_cast %160 : vector<17xf32> to vector<17x1xf32>
    %cst_74 = arith.constant 6.400000e+01 : f32
    %162 = vector.broadcast %cst_74 : f32 to vector<17x1xf32>
    %163 = arith.divf %161, %162 : vector<17x1xf32>
    %164 = vector.broadcast %156 : vector<17x1xf32> to vector<17x64xf32>
    %165 = arith.subf %148, %164 : vector<17x64xf32>
    %cst_75 = arith.constant 9.99999974E-6 : f32
    %166 = vector.broadcast %cst_75 : f32 to vector<17x1xf32>
    %167 = arith.addf %163, %166 : vector<17x1xf32>
    %168 = math.rsqrt %167 : vector<17x1xf32>
    %169 = vector.broadcast %168 : vector<17x1xf32> to vector<17x64xf32>
    %170 = arith.mulf %165, %169 : vector<17x64xf32>
    %171 = vector.broadcast %150 : vector<1x64xf32> to vector<17x64xf32>
    %172 = arith.mulf %170, %171 : vector<17x64xf32>
    %173 = vector.broadcast %152 : vector<1x64xf32> to vector<17x64xf32>
    %174 = arith.addf %172, %173 : vector<17x64xf32>
    %c0_76 = arith.constant 0 : index
    %c0_77 = arith.constant 0 : index
    %c0_78 = arith.constant 0 : index
    %175 = vector.load %arg14[%c0_76, %c0_77, %c0_78] : memref<2x64x256xf32, #tpu.memory_space<vmem>>, vector<1x64x256xf32>
    %176 = vector.shape_cast %175 : vector<1x64x256xf32> to vector<64x256xf32>
    %cst_79 = arith.constant dense<0.000000e+00> : vector<17x256xf32>
    %177 = tpu.matmul %174, %176, %cst_79 {dimension_numbers = #tpu.dot_dimension_numbers<[1], [0], [0], [1], [0, 0, 1, 1], [], []>} : vector<17x64xf32>, vector<64x256xf32>, vector<17x256xf32> -> vector<17x256xf32>
    %c0_80 = arith.constant 0 : index
    %c0_81 = arith.constant 0 : index
    %c0_82 = arith.constant 0 : index
    %178 = vector.load %arg15[%c0_80, %c0_81, %c0_82] : memref<2x1x256xf32, #tpu.memory_space<vmem>>, vector<1x1x256xf32>
    %179 = vector.shape_cast %178 : vector<1x1x256xf32> to vector<1x256xf32>
    %180 = vector.broadcast %179 : vector<1x256xf32> to vector<17x256xf32>
    %181 = arith.addf %177, %180 : vector<17x256xf32>
    %182 = arith.mulf %181, %181 : vector<17x256xf32>
    %183 = arith.mulf %181, %182 : vector<17x256xf32>
    %cst_83 = arith.constant 4.471500e-02 : f32
    %184 = vector.broadcast %cst_83 : f32 to vector<17x256xf32>
    %185 = arith.mulf %184, %183 : vector<17x256xf32>
    %186 = arith.addf %181, %185 : vector<17x256xf32>
    %cst_84 = arith.constant 0.797884583 : f32
    %187 = vector.broadcast %cst_84 : f32 to vector<17x256xf32>
    %188 = arith.mulf %187, %186 : vector<17x256xf32>
    %189 = math.tanh %188 : vector<17x256xf32>
    %cst_85 = arith.constant 1.000000e+00 : f32
    %190 = vector.broadcast %cst_85 : f32 to vector<17x256xf32>
    %191 = arith.addf %190, %189 : vector<17x256xf32>
    %cst_86 = arith.constant 5.000000e-01 : f32
    %192 = vector.broadcast %cst_86 : f32 to vector<17x256xf32>
    %193 = arith.mulf %192, %191 : vector<17x256xf32>
    %194 = arith.mulf %181, %193 : vector<17x256xf32>
    %c0_87 = arith.constant 0 : index
    %c0_88 = arith.constant 0 : index
    %c0_89 = arith.constant 0 : index
    %195 = vector.load %arg16[%c0_87, %c0_88, %c0_89] : memref<2x256x64xf32, #tpu.memory_space<vmem>>, vector<1x256x64xf32>
    %196 = vector.shape_cast %195 : vector<1x256x64xf32> to vector<256x64xf32>
    %cst_90 = arith.constant dense<0.000000e+00> : vector<17x64xf32>
    %197 = tpu.matmul %194, %196, %cst_90 {dimension_numbers = #tpu.dot_dimension_numbers<[1], [0], [0], [1], [0, 0, 1, 1], [], []>} : vector<17x256xf32>, vector<256x64xf32>, vector<17x64xf32> -> vector<17x64xf32>
    %198 = arith.addf %148, %197 : vector<17x64xf32>
    %c0_91 = arith.constant 0 : index
    %c0_92 = arith.constant 0 : index
    %c0_93 = arith.constant 0 : index
    %199 = vector.load %arg17[%c0_91, %c0_92, %c0_93] : memref<2x1x64xf32, #tpu.memory_space<vmem>>, vector<1x1x64xf32>
    %200 = vector.shape_cast %199 : vector<1x1x64xf32> to vector<1x64xf32>
    %201 = vector.broadcast %200 : vector<1x64xf32> to vector<17x64xf32>
    %202 = arith.addf %198, %201 : vector<17x64xf32>
    %c1 = arith.constant 1 : index
    %c0_94 = arith.constant 0 : index
    %c0_95 = arith.constant 0 : index
    %203 = vector.load %arg6[%c1, %c0_94, %c0_95] : memref<2x1x64xf32, #tpu.memory_space<vmem>>, vector<1x1x64xf32>
    %204 = vector.shape_cast %203 : vector<1x1x64xf32> to vector<1x64xf32>
    %c1_96 = arith.constant 1 : index
    %c0_97 = arith.constant 0 : index
    %c0_98 = arith.constant 0 : index
    %205 = vector.load %arg7[%c1_96, %c0_97, %c0_98] : memref<2x1x64xf32, #tpu.memory_space<vmem>>, vector<1x1x64xf32>
    %206 = vector.shape_cast %205 : vector<1x1x64xf32> to vector<1x64xf32>
    %cst_99 = arith.constant dense<0.000000e+00> : vector<17xf32>
    %207 = vector.multi_reduction <add>, %202, %cst_99 [1] : vector<17x64xf32> to vector<17xf32>
    %208 = vector.shape_cast %207 : vector<17xf32> to vector<17x1xf32>
    %cst_100 = arith.constant 6.400000e+01 : f32
    %209 = vector.broadcast %cst_100 : f32 to vector<17x1xf32>
    %210 = arith.divf %208, %209 : vector<17x1xf32>
    %211 = vector.broadcast %210 : vector<17x1xf32> to vector<17x64xf32>
    %212 = arith.subf %202, %211 : vector<17x64xf32>
    %213 = arith.mulf %212, %212 : vector<17x64xf32>
    %cst_101 = arith.constant dense<0.000000e+00> : vector<17xf32>
    %214 = vector.multi_reduction <add>, %213, %cst_101 [1] : vector<17x64xf32> to vector<17xf32>
    %215 = vector.shape_cast %214 : vector<17xf32> to vector<17x1xf32>
    %cst_102 = arith.constant 6.400000e+01 : f32
    %216 = vector.broadcast %cst_102 : f32 to vector<17x1xf32>
    %217 = arith.divf %215, %216 : vector<17x1xf32>
    %218 = vector.broadcast %210 : vector<17x1xf32> to vector<17x64xf32>
    %219 = arith.subf %202, %218 : vector<17x64xf32>
    %cst_103 = arith.constant 9.99999974E-6 : f32
    %220 = vector.broadcast %cst_103 : f32 to vector<17x1xf32>
    %221 = arith.addf %217, %220 : vector<17x1xf32>
    %222 = math.rsqrt %221 : vector<17x1xf32>
    %223 = vector.broadcast %222 : vector<17x1xf32> to vector<17x64xf32>
    %224 = arith.mulf %219, %223 : vector<17x64xf32>
    %225 = vector.broadcast %204 : vector<1x64xf32> to vector<17x64xf32>
    %226 = arith.mulf %224, %225 : vector<17x64xf32>
    %227 = vector.broadcast %206 : vector<1x64xf32> to vector<17x64xf32>
    %228 = arith.addf %226, %227 : vector<17x64xf32>
    %c1_104 = arith.constant 1 : index
    %c0_105 = arith.constant 0 : index
    %c0_106 = arith.constant 0 : index
    %229 = vector.load %arg8[%c1_104, %c0_105, %c0_106] : memref<2x64x192xf32, #tpu.memory_space<vmem>>, vector<1x64x192xf32>
    %230 = vector.shape_cast %229 : vector<1x64x192xf32> to vector<64x192xf32>
    %cst_107 = arith.constant dense<0.000000e+00> : vector<17x192xf32>
    %231 = tpu.matmul %228, %230, %cst_107 {dimension_numbers = #tpu.dot_dimension_numbers<[1], [0], [0], [1], [0, 0, 1, 1], [], []>} : vector<17x64xf32>, vector<64x192xf32>, vector<17x192xf32> -> vector<17x192xf32>
    %c1_108 = arith.constant 1 : index
    %c0_109 = arith.constant 0 : index
    %c0_110 = arith.constant 0 : index
    %232 = vector.load %arg9[%c1_108, %c0_109, %c0_110] : memref<2x1x192xf32, #tpu.memory_space<vmem>>, vector<1x1x192xf32>
    %233 = vector.shape_cast %232 : vector<1x1x192xf32> to vector<1x192xf32>
    %234 = vector.broadcast %233 : vector<1x192xf32> to vector<17x192xf32>
    %235 = arith.addf %231, %234 : vector<17x192xf32>
    %236 = vector.extract_strided_slice %235 {offsets = [0, 0], sizes = [17, 64], strides = [1, 1]} : vector<17x192xf32> to vector<17x64xf32>
    %237 = vector.extract_strided_slice %235 {offsets = [0, 64], sizes = [17, 64], strides = [1, 1]} : vector<17x192xf32> to vector<17x64xf32>
    %238 = vector.extract_strided_slice %235 {offsets = [0, 128], sizes = [17, 64], strides = [1, 1]} : vector<17x192xf32> to vector<17x64xf32>
    %239 = vector.extract_strided_slice %236 {offsets = [0, 0], sizes = [17, 16], strides = [1, 1]} : vector<17x64xf32> to vector<17x16xf32>
    %240 = vector.extract_strided_slice %237 {offsets = [0, 0], sizes = [17, 16], strides = [1, 1]} : vector<17x64xf32> to vector<17x16xf32>
    %cst_111 = arith.constant dense<0.000000e+00> : vector<17x17xf32>
    %241 = tpu.matmul %239, %240, %cst_111 {dimension_numbers = #tpu.dot_dimension_numbers<[1], [1], [0], [0], [0, 0, 1, 0], [], []>} : vector<17x16xf32>, vector<17x16xf32>, vector<17x17xf32> -> vector<17x17xf32>
    %242 = vector.broadcast %3 : f32 to vector<17x17xf32>
    %243 = arith.mulf %241, %242 : vector<17x17xf32>
    %cst_112 = arith.constant dense<0xFF800000> : vector<17xf32>
    %244 = vector.multi_reduction <maximumf>, %243, %cst_112 [1] : vector<17x17xf32> to vector<17xf32>
    %245 = vector.shape_cast %244 : vector<17xf32> to vector<17x1xf32>
    %246 = vector.broadcast %245 : vector<17x1xf32> to vector<17x17xf32>
    %247 = arith.subf %243, %246 : vector<17x17xf32>
    %248 = math.exp %247 : vector<17x17xf32>
    %cst_113 = arith.constant dense<0.000000e+00> : vector<17xf32>
    %249 = vector.multi_reduction <add>, %248, %cst_113 [1] : vector<17x17xf32> to vector<17xf32>
    %250 = vector.shape_cast %249 : vector<17xf32> to vector<17x1xf32>
    %251 = tpu.reciprocal %250 {approx = true} : vector<17x1xf32> -> vector<17x1xf32>
    %252 = vector.broadcast %251 : vector<17x1xf32> to vector<17x17xf32>
    %253 = arith.mulf %248, %252 : vector<17x17xf32>
    %254 = vector.extract_strided_slice %238 {offsets = [0, 0], sizes = [17, 16], strides = [1, 1]} : vector<17x64xf32> to vector<17x16xf32>
    %cst_114 = arith.constant dense<0.000000e+00> : vector<17x16xf32>
    %255 = tpu.matmul %253, %254, %cst_114 {dimension_numbers = #tpu.dot_dimension_numbers<[1], [0], [0], [1], [0, 0, 1, 1], [], []>} : vector<17x17xf32>, vector<17x16xf32>, vector<17x16xf32> -> vector<17x16xf32>
    %c0_115 = arith.constant 0 : index
    %c0_116 = arith.constant 0 : index
    %256 = vector.load %arg26[%c0_115, %c0_116] : memref<17x64xf32, #tpu.memory_space<vmem>>, vector<17x16xf32>
    tpu.vector_store %arg26[%c0_115, %c0_116], %255 {strides = array<i32>} : memref<17x64xf32, #tpu.memory_space<vmem>>, vector<17x16xf32>,
    %257 = vector.extract_strided_slice %236 {offsets = [0, 16], sizes = [17, 16], strides = [1, 1]} : vector<17x64xf32> to vector<17x16xf32>
    %258 = vector.extract_strided_slice %237 {offsets = [0, 16], sizes = [17, 16], strides = [1, 1]} : vector<17x64xf32> to vector<17x16xf32>
    %cst_117 = arith.constant dense<0.000000e+00> : vector<17x17xf32>
    %259 = tpu.matmul %257, %258, %cst_117 {dimension_numbers = #tpu.dot_dimension_numbers<[1], [1], [0], [0], [0, 0, 1, 0], [], []>} : vector<17x16xf32>, vector<17x16xf32>, vector<17x17xf32> -> vector<17x17xf32>
    %260 = vector.broadcast %3 : f32 to vector<17x17xf32>
    %261 = arith.mulf %259, %260 : vector<17x17xf32>
    %cst_118 = arith.constant dense<0xFF800000> : vector<17xf32>
    %262 = vector.multi_reduction <maximumf>, %261, %cst_118 [1] : vector<17x17xf32> to vector<17xf32>
    %263 = vector.shape_cast %262 : vector<17xf32> to vector<17x1xf32>
    %264 = vector.broadcast %263 : vector<17x1xf32> to vector<17x17xf32>
    %265 = arith.subf %261, %264 : vector<17x17xf32>
    %266 = math.exp %265 : vector<17x17xf32>
    %cst_119 = arith.constant dense<0.000000e+00> : vector<17xf32>
    %267 = vector.multi_reduction <add>, %266, %cst_119 [1] : vector<17x17xf32> to vector<17xf32>
    %268 = vector.shape_cast %267 : vector<17xf32> to vector<17x1xf32>
    %269 = tpu.reciprocal %268 {approx = true} : vector<17x1xf32> -> vector<17x1xf32>
    %270 = vector.broadcast %269 : vector<17x1xf32> to vector<17x17xf32>
    %271 = arith.mulf %266, %270 : vector<17x17xf32>
    %272 = vector.extract_strided_slice %238 {offsets = [0, 16], sizes = [17, 16], strides = [1, 1]} : vector<17x64xf32> to vector<17x16xf32>
    %cst_120 = arith.constant dense<0.000000e+00> : vector<17x16xf32>
    %273 = tpu.matmul %271, %272, %cst_120 {dimension_numbers = #tpu.dot_dimension_numbers<[1], [0], [0], [1], [0, 0, 1, 1], [], []>} : vector<17x17xf32>, vector<17x16xf32>, vector<17x16xf32> -> vector<17x16xf32>
    %c0_121 = arith.constant 0 : index
    %c16_122 = arith.constant 16 : index
    %274 = vector.load %arg26[%c0_121, %c16_122] : memref<17x64xf32, #tpu.memory_space<vmem>>, vector<17x16xf32>
    tpu.vector_store %arg26[%c0_121, %c16_122], %273 {strides = array<i32>} : memref<17x64xf32, #tpu.memory_space<vmem>>, vector<17x16xf32>,
    %275 = vector.extract_strided_slice %236 {offsets = [0, 32], sizes = [17, 16], strides = [1, 1]} : vector<17x64xf32> to vector<17x16xf32>
    %276 = vector.extract_strided_slice %237 {offsets = [0, 32], sizes = [17, 16], strides = [1, 1]} : vector<17x64xf32> to vector<17x16xf32>
    %cst_123 = arith.constant dense<0.000000e+00> : vector<17x17xf32>
    %277 = tpu.matmul %275, %276, %cst_123 {dimension_numbers = #tpu.dot_dimension_numbers<[1], [1], [0], [0], [0, 0, 1, 0], [], []>} : vector<17x16xf32>, vector<17x16xf32>, vector<17x17xf32> -> vector<17x17xf32>
    %278 = vector.broadcast %3 : f32 to vector<17x17xf32>
    %279 = arith.mulf %277, %278 : vector<17x17xf32>
    %cst_124 = arith.constant dense<0xFF800000> : vector<17xf32>
    %280 = vector.multi_reduction <maximumf>, %279, %cst_124 [1] : vector<17x17xf32> to vector<17xf32>
    %281 = vector.shape_cast %280 : vector<17xf32> to vector<17x1xf32>
    %282 = vector.broadcast %281 : vector<17x1xf32> to vector<17x17xf32>
    %283 = arith.subf %279, %282 : vector<17x17xf32>
    %284 = math.exp %283 : vector<17x17xf32>
    %cst_125 = arith.constant dense<0.000000e+00> : vector<17xf32>
    %285 = vector.multi_reduction <add>, %284, %cst_125 [1] : vector<17x17xf32> to vector<17xf32>
    %286 = vector.shape_cast %285 : vector<17xf32> to vector<17x1xf32>
    %287 = tpu.reciprocal %286 {approx = true} : vector<17x1xf32> -> vector<17x1xf32>
    %288 = vector.broadcast %287 : vector<17x1xf32> to vector<17x17xf32>
    %289 = arith.mulf %284, %288 : vector<17x17xf32>
    %290 = vector.extract_strided_slice %238 {offsets = [0, 32], sizes = [17, 16], strides = [1, 1]} : vector<17x64xf32> to vector<17x16xf32>
    %cst_126 = arith.constant dense<0.000000e+00> : vector<17x16xf32>
    %291 = tpu.matmul %289, %290, %cst_126 {dimension_numbers = #tpu.dot_dimension_numbers<[1], [0], [0], [1], [0, 0, 1, 1], [], []>} : vector<17x17xf32>, vector<17x16xf32>, vector<17x16xf32> -> vector<17x16xf32>
    %c0_127 = arith.constant 0 : index
    %c32_128 = arith.constant 32 : index
    %292 = vector.load %arg26[%c0_127, %c32_128] : memref<17x64xf32, #tpu.memory_space<vmem>>, vector<17x16xf32>
    tpu.vector_store %arg26[%c0_127, %c32_128], %291 {strides = array<i32>} : memref<17x64xf32, #tpu.memory_space<vmem>>, vector<17x16xf32>,
    %293 = vector.extract_strided_slice %236 {offsets = [0, 48], sizes = [17, 16], strides = [1, 1]} : vector<17x64xf32> to vector<17x16xf32>
    %294 = vector.extract_strided_slice %237 {offsets = [0, 48], sizes = [17, 16], strides = [1, 1]} : vector<17x64xf32> to vector<17x16xf32>
    %cst_129 = arith.constant dense<0.000000e+00> : vector<17x17xf32>
    %295 = tpu.matmul %293, %294, %cst_129 {dimension_numbers = #tpu.dot_dimension_numbers<[1], [1], [0], [0], [0, 0, 1, 0], [], []>} : vector<17x16xf32>, vector<17x16xf32>, vector<17x17xf32> -> vector<17x17xf32>
    %296 = vector.broadcast %3 : f32 to vector<17x17xf32>
    %297 = arith.mulf %295, %296 : vector<17x17xf32>
    %cst_130 = arith.constant dense<0xFF800000> : vector<17xf32>
    %298 = vector.multi_reduction <maximumf>, %297, %cst_130 [1] : vector<17x17xf32> to vector<17xf32>
    %299 = vector.shape_cast %298 : vector<17xf32> to vector<17x1xf32>
    %300 = vector.broadcast %299 : vector<17x1xf32> to vector<17x17xf32>
    %301 = arith.subf %297, %300 : vector<17x17xf32>
    %302 = math.exp %301 : vector<17x17xf32>
    %cst_131 = arith.constant dense<0.000000e+00> : vector<17xf32>
    %303 = vector.multi_reduction <add>, %302, %cst_131 [1] : vector<17x17xf32> to vector<17xf32>
    %304 = vector.shape_cast %303 : vector<17xf32> to vector<17x1xf32>
    %305 = tpu.reciprocal %304 {approx = true} : vector<17x1xf32> -> vector<17x1xf32>
    %306 = vector.broadcast %305 : vector<17x1xf32> to vector<17x17xf32>
    %307 = arith.mulf %302, %306 : vector<17x17xf32>
    %308 = vector.extract_strided_slice %238 {offsets = [0, 48], sizes = [17, 16], strides = [1, 1]} : vector<17x64xf32> to vector<17x16xf32>
    %cst_132 = arith.constant dense<0.000000e+00> : vector<17x16xf32>
    %309 = tpu.matmul %307, %308, %cst_132 {dimension_numbers = #tpu.dot_dimension_numbers<[1], [0], [0], [1], [0, 0, 1, 1], [], []>} : vector<17x17xf32>, vector<17x16xf32>, vector<17x16xf32> -> vector<17x16xf32>
    %c0_133 = arith.constant 0 : index
    %c48_134 = arith.constant 48 : index
    %310 = vector.load %arg26[%c0_133, %c48_134] : memref<17x64xf32, #tpu.memory_space<vmem>>, vector<17x16xf32>
    tpu.vector_store %arg26[%c0_133, %c48_134], %309 {strides = array<i32>} : memref<17x64xf32, #tpu.memory_space<vmem>>, vector<17x16xf32>,
    %c0_135 = arith.constant 0 : index
    %c0_136 = arith.constant 0 : index
    %311 = vector.load %arg26[%c0_135, %c0_136] : memref<17x64xf32, #tpu.memory_space<vmem>>, vector<17x64xf32>
    %c1_137 = arith.constant 1 : index
    %c0_138 = arith.constant 0 : index
    %c0_139 = arith.constant 0 : index
    %312 = vector.load %arg10[%c1_137, %c0_138, %c0_139] : memref<2x64x64xf32, #tpu.memory_space<vmem>>, vector<1x64x64xf32>
    %313 = vector.shape_cast %312 : vector<1x64x64xf32> to vector<64x64xf32>
    %cst_140 = arith.constant dense<0.000000e+00> : vector<17x64xf32>
    %314 = tpu.matmul %311, %313, %cst_140 {dimension_numbers = #tpu.dot_dimension_numbers<[1], [0], [0], [1], [0, 0, 1, 1], [], []>} : vector<17x64xf32>, vector<64x64xf32>, vector<17x64xf32> -> vector<17x64xf32>
    %315 = arith.addf %202, %314 : vector<17x64xf32>
    %c1_141 = arith.constant 1 : index
    %c0_142 = arith.constant 0 : index
    %c0_143 = arith.constant 0 : index
    %316 = vector.load %arg11[%c1_141, %c0_142, %c0_143] : memref<2x1x64xf32, #tpu.memory_space<vmem>>, vector<1x1x64xf32>
    %317 = vector.shape_cast %316 : vector<1x1x64xf32> to vector<1x64xf32>
    %318 = vector.broadcast %317 : vector<1x64xf32> to vector<17x64xf32>
    %319 = arith.addf %315, %318 : vector<17x64xf32>
    %c1_144 = arith.constant 1 : index
    %c0_145 = arith.constant 0 : index
    %c0_146 = arith.constant 0 : index
    %320 = vector.load %arg12[%c1_144, %c0_145, %c0_146] : memref<2x1x64xf32, #tpu.memory_space<vmem>>, vector<1x1x64xf32>
    %321 = vector.shape_cast %320 : vector<1x1x64xf32> to vector<1x64xf32>
    %c1_147 = arith.constant 1 : index
    %c0_148 = arith.constant 0 : index
    %c0_149 = arith.constant 0 : index
    %322 = vector.load %arg13[%c1_147, %c0_148, %c0_149] : memref<2x1x64xf32, #tpu.memory_space<vmem>>, vector<1x1x64xf32>
    %323 = vector.shape_cast %322 : vector<1x1x64xf32> to vector<1x64xf32>
    %cst_150 = arith.constant dense<0.000000e+00> : vector<17xf32>
    %324 = vector.multi_reduction <add>, %319, %cst_150 [1] : vector<17x64xf32> to vector<17xf32>
    %325 = vector.shape_cast %324 : vector<17xf32> to vector<17x1xf32>
    %cst_151 = arith.constant 6.400000e+01 : f32
    %326 = vector.broadcast %cst_151 : f32 to vector<17x1xf32>
    %327 = arith.divf %325, %326 : vector<17x1xf32>
    %328 = vector.broadcast %327 : vector<17x1xf32> to vector<17x64xf32>
    %329 = arith.subf %319, %328 : vector<17x64xf32>
    %330 = arith.mulf %329, %329 : vector<17x64xf32>
    %cst_152 = arith.constant dense<0.000000e+00> : vector<17xf32>
    %331 = vector.multi_reduction <add>, %330, %cst_152 [1] : vector<17x64xf32> to vector<17xf32>
    %332 = vector.shape_cast %331 : vector<17xf32> to vector<17x1xf32>
    %cst_153 = arith.constant 6.400000e+01 : f32
    %333 = vector.broadcast %cst_153 : f32 to vector<17x1xf32>
    %334 = arith.divf %332, %333 : vector<17x1xf32>
    %335 = vector.broadcast %327 : vector<17x1xf32> to vector<17x64xf32>
    %336 = arith.subf %319, %335 : vector<17x64xf32>
    %cst_154 = arith.constant 9.99999974E-6 : f32
    %337 = vector.broadcast %cst_154 : f32 to vector<17x1xf32>
    %338 = arith.addf %334, %337 : vector<17x1xf32>
    %339 = math.rsqrt %338 : vector<17x1xf32>
    %340 = vector.broadcast %339 : vector<17x1xf32> to vector<17x64xf32>
    %341 = arith.mulf %336, %340 : vector<17x64xf32>
    %342 = vector.broadcast %321 : vector<1x64xf32> to vector<17x64xf32>
    %343 = arith.mulf %341, %342 : vector<17x64xf32>
    %344 = vector.broadcast %323 : vector<1x64xf32> to vector<17x64xf32>
    %345 = arith.addf %343, %344 : vector<17x64xf32>
    %c1_155 = arith.constant 1 : index
    %c0_156 = arith.constant 0 : index
    %c0_157 = arith.constant 0 : index
    %346 = vector.load %arg14[%c1_155, %c0_156, %c0_157] : memref<2x64x256xf32, #tpu.memory_space<vmem>>, vector<1x64x256xf32>
    %347 = vector.shape_cast %346 : vector<1x64x256xf32> to vector<64x256xf32>
    %cst_158 = arith.constant dense<0.000000e+00> : vector<17x256xf32>
    %348 = tpu.matmul %345, %347, %cst_158 {dimension_numbers = #tpu.dot_dimension_numbers<[1], [0], [0], [1], [0, 0, 1, 1], [], []>} : vector<17x64xf32>, vector<64x256xf32>, vector<17x256xf32> -> vector<17x256xf32>
    %c1_159 = arith.constant 1 : index
    %c0_160 = arith.constant 0 : index
    %c0_161 = arith.constant 0 : index
    %349 = vector.load %arg15[%c1_159, %c0_160, %c0_161] : memref<2x1x256xf32, #tpu.memory_space<vmem>>, vector<1x1x256xf32>
    %350 = vector.shape_cast %349 : vector<1x1x256xf32> to vector<1x256xf32>
    %351 = vector.broadcast %350 : vector<1x256xf32> to vector<17x256xf32>
    %352 = arith.addf %348, %351 : vector<17x256xf32>
    %353 = arith.mulf %352, %352 : vector<17x256xf32>
    %354 = arith.mulf %352, %353 : vector<17x256xf32>
    %cst_162 = arith.constant 4.471500e-02 : f32
    %355 = vector.broadcast %cst_162 : f32 to vector<17x256xf32>
    %356 = arith.mulf %355, %354 : vector<17x256xf32>
    %357 = arith.addf %352, %356 : vector<17x256xf32>
    %cst_163 = arith.constant 0.797884583 : f32
    %358 = vector.broadcast %cst_163 : f32 to vector<17x256xf32>
    %359 = arith.mulf %358, %357 : vector<17x256xf32>
    %360 = math.tanh %359 : vector<17x256xf32>
    %cst_164 = arith.constant 1.000000e+00 : f32
    %361 = vector.broadcast %cst_164 : f32 to vector<17x256xf32>
    %362 = arith.addf %361, %360 : vector<17x256xf32>
    %cst_165 = arith.constant 5.000000e-01 : f32
    %363 = vector.broadcast %cst_165 : f32 to vector<17x256xf32>
    %364 = arith.mulf %363, %362 : vector<17x256xf32>
    %365 = arith.mulf %352, %364 : vector<17x256xf32>
    %c1_166 = arith.constant 1 : index
    %c0_167 = arith.constant 0 : index
    %c0_168 = arith.constant 0 : index
    %366 = vector.load %arg16[%c1_166, %c0_167, %c0_168] : memref<2x256x64xf32, #tpu.memory_space<vmem>>, vector<1x256x64xf32>
    %367 = vector.shape_cast %366 : vector<1x256x64xf32> to vector<256x64xf32>
    %cst_169 = arith.constant dense<0.000000e+00> : vector<17x64xf32>
    %368 = tpu.matmul %365, %367, %cst_169 {dimension_numbers = #tpu.dot_dimension_numbers<[1], [0], [0], [1], [0, 0, 1, 1], [], []>} : vector<17x256xf32>, vector<256x64xf32>, vector<17x64xf32> -> vector<17x64xf32>
    %369 = arith.addf %319, %368 : vector<17x64xf32>
    %c1_170 = arith.constant 1 : index
    %c0_171 = arith.constant 0 : index
    %c0_172 = arith.constant 0 : index
    %370 = vector.load %arg17[%c1_170, %c0_171, %c0_172] : memref<2x1x64xf32, #tpu.memory_space<vmem>>, vector<1x1x64xf32>
    %371 = vector.shape_cast %370 : vector<1x1x64xf32> to vector<1x64xf32>
    %372 = vector.broadcast %371 : vector<1x64xf32> to vector<17x64xf32>
    %373 = arith.addf %369, %372 : vector<17x64xf32>
    %c0_173 = arith.constant 0 : index
    %c0_174 = arith.constant 0 : index
    %374 = vector.load %arg18[%c0_173, %c0_174] : memref<1x64xf32, #tpu.memory_space<vmem>>, vector<1x64xf32>
    %c0_175 = arith.constant 0 : index
    %c0_176 = arith.constant 0 : index
    %375 = vector.load %arg19[%c0_175, %c0_176] : memref<1x64xf32, #tpu.memory_space<vmem>>, vector<1x64xf32>
    %cst_177 = arith.constant dense<0.000000e+00> : vector<17xf32>
    %376 = vector.multi_reduction <add>, %373, %cst_177 [1] : vector<17x64xf32> to vector<17xf32>
    %377 = vector.shape_cast %376 : vector<17xf32> to vector<17x1xf32>
    %cst_178 = arith.constant 6.400000e+01 : f32
    %378 = vector.broadcast %cst_178 : f32 to vector<17x1xf32>
    %379 = arith.divf %377, %378 : vector<17x1xf32>
    %380 = vector.broadcast %379 : vector<17x1xf32> to vector<17x64xf32>
    %381 = arith.subf %373, %380 : vector<17x64xf32>
    %382 = arith.mulf %381, %381 : vector<17x64xf32>
    %cst_179 = arith.constant dense<0.000000e+00> : vector<17xf32>
    %383 = vector.multi_reduction <add>, %382, %cst_179 [1] : vector<17x64xf32> to vector<17xf32>
    %384 = vector.shape_cast %383 : vector<17xf32> to vector<17x1xf32>
    %cst_180 = arith.constant 6.400000e+01 : f32
    %385 = vector.broadcast %cst_180 : f32 to vector<17x1xf32>
    %386 = arith.divf %384, %385 : vector<17x1xf32>
    %387 = vector.broadcast %379 : vector<17x1xf32> to vector<17x64xf32>
    %388 = arith.subf %373, %387 : vector<17x64xf32>
    %cst_181 = arith.constant 9.99999974E-6 : f32
    %389 = vector.broadcast %cst_181 : f32 to vector<17x1xf32>
    %390 = arith.addf %386, %389 : vector<17x1xf32>
    %391 = math.rsqrt %390 : vector<17x1xf32>
    %392 = vector.broadcast %391 : vector<17x1xf32> to vector<17x64xf32>
    %393 = arith.mulf %388, %392 : vector<17x64xf32>
    %394 = vector.broadcast %374 : vector<1x64xf32> to vector<17x64xf32>
    %395 = arith.mulf %393, %394 : vector<17x64xf32>
    %396 = vector.broadcast %375 : vector<1x64xf32> to vector<17x64xf32>
    %397 = arith.addf %395, %396 : vector<17x64xf32>
    %c0_182 = arith.constant 0 : index
    %c0_183 = arith.constant 0 : index
    %c0_184 = arith.constant 0 : index
    %398 = vector.load %arg23[%c0_182, %c0_183, %c0_184] : memref<2x17x64xf32, #tpu.memory_space<vmem>>, vector<1x17x64xf32>
    %399 = vector.shape_cast %398 : vector<1x17x64xf32> to vector<17x64xf32>
    %400 = vector.shape_cast %397 : vector<17x64xf32> to vector<1x17x64xf32>
    tpu.vector_store %arg23[%c0_182, %c0_183, %c0_184], %400 {strides = array<i32>} : memref<2x17x64xf32, #tpu.memory_space<vmem>>, vector<1x17x64xf32>,
    %c1_185 = arith.constant 1 : index
    %c0_186 = arith.constant 0 : index
    %c0_187 = arith.constant 0 : index
    %401 = vector.load %arg1[%c1_185, %c0_186, %c0_187] : memref<2x17x192xf32, #tpu.memory_space<vmem>>, vector<1x17x192xf32>
    %402 = vector.shape_cast %401 : vector<1x17x192xf32> to vector<17x192xf32>
    %cst_188 = arith.constant dense<0.000000e+00> : vector<17x64xf32>
    %403 = tpu.matmul %402, %0, %cst_188 {dimension_numbers = #tpu.dot_dimension_numbers<[1], [0], [0], [1], [0, 0, 1, 1], [], []>} : vector<17x192xf32>, vector<192x64xf32>, vector<17x64xf32> -> vector<17x64xf32>
    %404 = arith.addf %403, %1 : vector<17x64xf32>
    %c0_189 = arith.constant 0 : index
    %c0_190 = arith.constant 0 : index
    %405 = vector.load %arg4[%c0_189, %c0_190] : memref<1x64xf32, #tpu.memory_space<vmem>>, vector<1x64xf32>
    %c0_191 = arith.constant 0 : index
    %c0_192 = arith.constant 0 : index
    %406 = vector.load %arg5[%c0_191, %c0_192] : memref<1x64xf32, #tpu.memory_space<vmem>>, vector<1x64xf32>
    %cst_193 = arith.constant dense<0.000000e+00> : vector<17xf32>
    %407 = vector.multi_reduction <add>, %404, %cst_193 [1] : vector<17x64xf32> to vector<17xf32>
    %408 = vector.shape_cast %407 : vector<17xf32> to vector<17x1xf32>
    %cst_194 = arith.constant 6.400000e+01 : f32
    %409 = vector.broadcast %cst_194 : f32 to vector<17x1xf32>
    %410 = arith.divf %408, %409 : vector<17x1xf32>
    %411 = vector.broadcast %410 : vector<17x1xf32> to vector<17x64xf32>
    %412 = arith.subf %404, %411 : vector<17x64xf32>
    %413 = arith.mulf %412, %412 : vector<17x64xf32>
    %cst_195 = arith.constant dense<0.000000e+00> : vector<17xf32>
    %414 = vector.multi_reduction <add>, %413, %cst_195 [1] : vector<17x64xf32> to vector<17xf32>
    %415 = vector.shape_cast %414 : vector<17xf32> to vector<17x1xf32>
    %cst_196 = arith.constant 6.400000e+01 : f32
    %416 = vector.broadcast %cst_196 : f32 to vector<17x1xf32>
    %417 = arith.divf %415, %416 : vector<17x1xf32>
    %418 = vector.broadcast %410 : vector<17x1xf32> to vector<17x64xf32>
    %419 = arith.subf %404, %418 : vector<17x64xf32>
    %cst_197 = arith.constant 9.99999974E-6 : f32
    %420 = vector.broadcast %cst_197 : f32 to vector<17x1xf32>
    %421 = arith.addf %417, %420 : vector<17x1xf32>
    %422 = math.rsqrt %421 : vector<17x1xf32>
    %423 = vector.broadcast %422 : vector<17x1xf32> to vector<17x64xf32>
    %424 = arith.mulf %419, %423 : vector<17x64xf32>
    %425 = vector.broadcast %405 : vector<1x64xf32> to vector<17x64xf32>
    %426 = arith.mulf %424, %425 : vector<17x64xf32>
    %427 = vector.broadcast %406 : vector<1x64xf32> to vector<17x64xf32>
    %428 = arith.addf %426, %427 : vector<17x64xf32>
    %c0_198 = arith.constant 0 : index
    %c0_199 = arith.constant 0 : index
    %c0_200 = arith.constant 0 : index
    %429 = vector.load %arg6[%c0_198, %c0_199, %c0_200] : memref<2x1x64xf32, #tpu.memory_space<vmem>>, vector<1x1x64xf32>
    %430 = vector.shape_cast %429 : vector<1x1x64xf32> to vector<1x64xf32>
    %c0_201 = arith.constant 0 : index
    %c0_202 = arith.constant 0 : index
    %c0_203 = arith.constant 0 : index
    %431 = vector.load %arg7[%c0_201, %c0_202, %c0_203] : memref<2x1x64xf32, #tpu.memory_space<vmem>>, vector<1x1x64xf32>
    %432 = vector.shape_cast %431 : vector<1x1x64xf32> to vector<1x64xf32>
    %cst_204 = arith.constant dense<0.000000e+00> : vector<17xf32>
    %433 = vector.multi_reduction <add>, %428, %cst_204 [1] : vector<17x64xf32> to vector<17xf32>
    %434 = vector.shape_cast %433 : vector<17xf32> to vector<17x1xf32>
    %cst_205 = arith.constant 6.400000e+01 : f32
    %435 = vector.broadcast %cst_205 : f32 to vector<17x1xf32>
    %436 = arith.divf %434, %435 : vector<17x1xf32>
    %437 = vector.broadcast %436 : vector<17x1xf32> to vector<17x64xf32>
    %438 = arith.subf %428, %437 : vector<17x64xf32>
    %439 = arith.mulf %438, %438 : vector<17x64xf32>
    %cst_206 = arith.constant dense<0.000000e+00> : vector<17xf32>
    %440 = vector.multi_reduction <add>, %439, %cst_206 [1] : vector<17x64xf32> to vector<17xf32>
    %441 = vector.shape_cast %440 : vector<17xf32> to vector<17x1xf32>
    %cst_207 = arith.constant 6.400000e+01 : f32
    %442 = vector.broadcast %cst_207 : f32 to vector<17x1xf32>
    %443 = arith.divf %441, %442 : vector<17x1xf32>
    %444 = vector.broadcast %436 : vector<17x1xf32> to vector<17x64xf32>
    %445 = arith.subf %428, %444 : vector<17x64xf32>
    %cst_208 = arith.constant 9.99999974E-6 : f32
    %446 = vector.broadcast %cst_208 : f32 to vector<17x1xf32>
    %447 = arith.addf %443, %446 : vector<17x1xf32>
    %448 = math.rsqrt %447 : vector<17x1xf32>
    %449 = vector.broadcast %448 : vector<17x1xf32> to vector<17x64xf32>
    %450 = arith.mulf %445, %449 : vector<17x64xf32>
    %451 = vector.broadcast %430 : vector<1x64xf32> to vector<17x64xf32>
    %452 = arith.mulf %450, %451 : vector<17x64xf32>
    %453 = vector.broadcast %432 : vector<1x64xf32> to vector<17x64xf32>
    %454 = arith.addf %452, %453 : vector<17x64xf32>
    %c0_209 = arith.constant 0 : index
    %c0_210 = arith.constant 0 : index
    %c0_211 = arith.constant 0 : index
    %455 = vector.load %arg8[%c0_209, %c0_210, %c0_211] : memref<2x64x192xf32, #tpu.memory_space<vmem>>, vector<1x64x192xf32>
    %456 = vector.shape_cast %455 : vector<1x64x192xf32> to vector<64x192xf32>
    %cst_212 = arith.constant dense<0.000000e+00> : vector<17x192xf32>
    %457 = tpu.matmul %454, %456, %cst_212 {dimension_numbers = #tpu.dot_dimension_numbers<[1], [0], [0], [1], [0, 0, 1, 1], [], []>} : vector<17x64xf32>, vector<64x192xf32>, vector<17x192xf32> -> vector<17x192xf32>
    %c0_213 = arith.constant 0 : index
    %c0_214 = arith.constant 0 : index
    %c0_215 = arith.constant 0 : index
    %458 = vector.load %arg9[%c0_213, %c0_214, %c0_215] : memref<2x1x192xf32, #tpu.memory_space<vmem>>, vector<1x1x192xf32>
    %459 = vector.shape_cast %458 : vector<1x1x192xf32> to vector<1x192xf32>
    %460 = vector.broadcast %459 : vector<1x192xf32> to vector<17x192xf32>
    %461 = arith.addf %457, %460 : vector<17x192xf32>
    %462 = vector.extract_strided_slice %461 {offsets = [0, 0], sizes = [17, 64], strides = [1, 1]} : vector<17x192xf32> to vector<17x64xf32>
    %463 = vector.extract_strided_slice %461 {offsets = [0, 64], sizes = [17, 64], strides = [1, 1]} : vector<17x192xf32> to vector<17x64xf32>
    %464 = vector.extract_strided_slice %461 {offsets = [0, 128], sizes = [17, 64], strides = [1, 1]} : vector<17x192xf32> to vector<17x64xf32>
    %465 = vector.extract_strided_slice %462 {offsets = [0, 0], sizes = [17, 16], strides = [1, 1]} : vector<17x64xf32> to vector<17x16xf32>
    %466 = vector.extract_strided_slice %463 {offsets = [0, 0], sizes = [17, 16], strides = [1, 1]} : vector<17x64xf32> to vector<17x16xf32>
    %cst_216 = arith.constant dense<0.000000e+00> : vector<17x17xf32>
    %467 = tpu.matmul %465, %466, %cst_216 {dimension_numbers = #tpu.dot_dimension_numbers<[1], [1], [0], [0], [0, 0, 1, 0], [], []>} : vector<17x16xf32>, vector<17x16xf32>, vector<17x17xf32> -> vector<17x17xf32>
    %468 = vector.broadcast %3 : f32 to vector<17x17xf32>
    %469 = arith.mulf %467, %468 : vector<17x17xf32>
    %cst_217 = arith.constant dense<0xFF800000> : vector<17xf32>
    %470 = vector.multi_reduction <maximumf>, %469, %cst_217 [1] : vector<17x17xf32> to vector<17xf32>
    %471 = vector.shape_cast %470 : vector<17xf32> to vector<17x1xf32>
    %472 = vector.broadcast %471 : vector<17x1xf32> to vector<17x17xf32>
    %473 = arith.subf %469, %472 : vector<17x17xf32>
    %474 = math.exp %473 : vector<17x17xf32>
    %cst_218 = arith.constant dense<0.000000e+00> : vector<17xf32>
    %475 = vector.multi_reduction <add>, %474, %cst_218 [1] : vector<17x17xf32> to vector<17xf32>
    %476 = vector.shape_cast %475 : vector<17xf32> to vector<17x1xf32>
    %477 = tpu.reciprocal %476 {approx = true} : vector<17x1xf32> -> vector<17x1xf32>
    %478 = vector.broadcast %477 : vector<17x1xf32> to vector<17x17xf32>
    %479 = arith.mulf %474, %478 : vector<17x17xf32>
    %480 = vector.extract_strided_slice %464 {offsets = [0, 0], sizes = [17, 16], strides = [1, 1]} : vector<17x64xf32> to vector<17x16xf32>
    %cst_219 = arith.constant dense<0.000000e+00> : vector<17x16xf32>
    %481 = tpu.matmul %479, %480, %cst_219 {dimension_numbers = #tpu.dot_dimension_numbers<[1], [0], [0], [1], [0, 0, 1, 1], [], []>} : vector<17x17xf32>, vector<17x16xf32>, vector<17x16xf32> -> vector<17x16xf32>
    %c0_220 = arith.constant 0 : index
    %c0_221 = arith.constant 0 : index
    %482 = vector.load %arg26[%c0_220, %c0_221] : memref<17x64xf32, #tpu.memory_space<vmem>>, vector<17x16xf32>
    tpu.vector_store %arg26[%c0_220, %c0_221], %481 {strides = array<i32>} : memref<17x64xf32, #tpu.memory_space<vmem>>, vector<17x16xf32>,
    %483 = vector.extract_strided_slice %462 {offsets = [0, 16], sizes = [17, 16], strides = [1, 1]} : vector<17x64xf32> to vector<17x16xf32>
    %484 = vector.extract_strided_slice %463 {offsets = [0, 16], sizes = [17, 16], strides = [1, 1]} : vector<17x64xf32> to vector<17x16xf32>
    %cst_222 = arith.constant dense<0.000000e+00> : vector<17x17xf32>
    %485 = tpu.matmul %483, %484, %cst_222 {dimension_numbers = #tpu.dot_dimension_numbers<[1], [1], [0], [0], [0, 0, 1, 0], [], []>} : vector<17x16xf32>, vector<17x16xf32>, vector<17x17xf32> -> vector<17x17xf32>
    %486 = vector.broadcast %3 : f32 to vector<17x17xf32>
    %487 = arith.mulf %485, %486 : vector<17x17xf32>
    %cst_223 = arith.constant dense<0xFF800000> : vector<17xf32>
    %488 = vector.multi_reduction <maximumf>, %487, %cst_223 [1] : vector<17x17xf32> to vector<17xf32>
    %489 = vector.shape_cast %488 : vector<17xf32> to vector<17x1xf32>
    %490 = vector.broadcast %489 : vector<17x1xf32> to vector<17x17xf32>
    %491 = arith.subf %487, %490 : vector<17x17xf32>
    %492 = math.exp %491 : vector<17x17xf32>
    %cst_224 = arith.constant dense<0.000000e+00> : vector<17xf32>
    %493 = vector.multi_reduction <add>, %492, %cst_224 [1] : vector<17x17xf32> to vector<17xf32>
    %494 = vector.shape_cast %493 : vector<17xf32> to vector<17x1xf32>
    %495 = tpu.reciprocal %494 {approx = true} : vector<17x1xf32> -> vector<17x1xf32>
    %496 = vector.broadcast %495 : vector<17x1xf32> to vector<17x17xf32>
    %497 = arith.mulf %492, %496 : vector<17x17xf32>
    %498 = vector.extract_strided_slice %464 {offsets = [0, 16], sizes = [17, 16], strides = [1, 1]} : vector<17x64xf32> to vector<17x16xf32>
    %cst_225 = arith.constant dense<0.000000e+00> : vector<17x16xf32>
    %499 = tpu.matmul %497, %498, %cst_225 {dimension_numbers = #tpu.dot_dimension_numbers<[1], [0], [0], [1], [0, 0, 1, 1], [], []>} : vector<17x17xf32>, vector<17x16xf32>, vector<17x16xf32> -> vector<17x16xf32>
    %c0_226 = arith.constant 0 : index
    %c16_227 = arith.constant 16 : index
    %500 = vector.load %arg26[%c0_226, %c16_227] : memref<17x64xf32, #tpu.memory_space<vmem>>, vector<17x16xf32>
    tpu.vector_store %arg26[%c0_226, %c16_227], %499 {strides = array<i32>} : memref<17x64xf32, #tpu.memory_space<vmem>>, vector<17x16xf32>,
    %501 = vector.extract_strided_slice %462 {offsets = [0, 32], sizes = [17, 16], strides = [1, 1]} : vector<17x64xf32> to vector<17x16xf32>
    %502 = vector.extract_strided_slice %463 {offsets = [0, 32], sizes = [17, 16], strides = [1, 1]} : vector<17x64xf32> to vector<17x16xf32>
    %cst_228 = arith.constant dense<0.000000e+00> : vector<17x17xf32>
    %503 = tpu.matmul %501, %502, %cst_228 {dimension_numbers = #tpu.dot_dimension_numbers<[1], [1], [0], [0], [0, 0, 1, 0], [], []>} : vector<17x16xf32>, vector<17x16xf32>, vector<17x17xf32> -> vector<17x17xf32>
    %504 = vector.broadcast %3 : f32 to vector<17x17xf32>
    %505 = arith.mulf %503, %504 : vector<17x17xf32>
    %cst_229 = arith.constant dense<0xFF800000> : vector<17xf32>
    %506 = vector.multi_reduction <maximumf>, %505, %cst_229 [1] : vector<17x17xf32> to vector<17xf32>
    %507 = vector.shape_cast %506 : vector<17xf32> to vector<17x1xf32>
    %508 = vector.broadcast %507 : vector<17x1xf32> to vector<17x17xf32>
    %509 = arith.subf %505, %508 : vector<17x17xf32>
    %510 = math.exp %509 : vector<17x17xf32>
    %cst_230 = arith.constant dense<0.000000e+00> : vector<17xf32>
    %511 = vector.multi_reduction <add>, %510, %cst_230 [1] : vector<17x17xf32> to vector<17xf32>
    %512 = vector.shape_cast %511 : vector<17xf32> to vector<17x1xf32>
    %513 = tpu.reciprocal %512 {approx = true} : vector<17x1xf32> -> vector<17x1xf32>
    %514 = vector.broadcast %513 : vector<17x1xf32> to vector<17x17xf32>
    %515 = arith.mulf %510, %514 : vector<17x17xf32>
    %516 = vector.extract_strided_slice %464 {offsets = [0, 32], sizes = [17, 16], strides = [1, 1]} : vector<17x64xf32> to vector<17x16xf32>
    %cst_231 = arith.constant dense<0.000000e+00> : vector<17x16xf32>
    %517 = tpu.matmul %515, %516, %cst_231 {dimension_numbers = #tpu.dot_dimension_numbers<[1], [0], [0], [1], [0, 0, 1, 1], [], []>} : vector<17x17xf32>, vector<17x16xf32>, vector<17x16xf32> -> vector<17x16xf32>
    %c0_232 = arith.constant 0 : index
    %c32_233 = arith.constant 32 : index
    %518 = vector.load %arg26[%c0_232, %c32_233] : memref<17x64xf32, #tpu.memory_space<vmem>>, vector<17x16xf32>
    tpu.vector_store %arg26[%c0_232, %c32_233], %517 {strides = array<i32>} : memref<17x64xf32, #tpu.memory_space<vmem>>, vector<17x16xf32>,
    %519 = vector.extract_strided_slice %462 {offsets = [0, 48], sizes = [17, 16], strides = [1, 1]} : vector<17x64xf32> to vector<17x16xf32>
    %520 = vector.extract_strided_slice %463 {offsets = [0, 48], sizes = [17, 16], strides = [1, 1]} : vector<17x64xf32> to vector<17x16xf32>
    %cst_234 = arith.constant dense<0.000000e+00> : vector<17x17xf32>
    %521 = tpu.matmul %519, %520, %cst_234 {dimension_numbers = #tpu.dot_dimension_numbers<[1], [1], [0], [0], [0, 0, 1, 0], [], []>} : vector<17x16xf32>, vector<17x16xf32>, vector<17x17xf32> -> vector<17x17xf32>
    %522 = vector.broadcast %3 : f32 to vector<17x17xf32>
    %523 = arith.mulf %521, %522 : vector<17x17xf32>
    %cst_235 = arith.constant dense<0xFF800000> : vector<17xf32>
    %524 = vector.multi_reduction <maximumf>, %523, %cst_235 [1] : vector<17x17xf32> to vector<17xf32>
    %525 = vector.shape_cast %524 : vector<17xf32> to vector<17x1xf32>
    %526 = vector.broadcast %525 : vector<17x1xf32> to vector<17x17xf32>
    %527 = arith.subf %523, %526 : vector<17x17xf32>
    %528 = math.exp %527 : vector<17x17xf32>
    %cst_236 = arith.constant dense<0.000000e+00> : vector<17xf32>
    %529 = vector.multi_reduction <add>, %528, %cst_236 [1] : vector<17x17xf32> to vector<17xf32>
    %530 = vector.shape_cast %529 : vector<17xf32> to vector<17x1xf32>
    %531 = tpu.reciprocal %530 {approx = true} : vector<17x1xf32> -> vector<17x1xf32>
    %532 = vector.broadcast %531 : vector<17x1xf32> to vector<17x17xf32>
    %533 = arith.mulf %528, %532 : vector<17x17xf32>
    %534 = vector.extract_strided_slice %464 {offsets = [0, 48], sizes = [17, 16], strides = [1, 1]} : vector<17x64xf32> to vector<17x16xf32>
    %cst_237 = arith.constant dense<0.000000e+00> : vector<17x16xf32>
    %535 = tpu.matmul %533, %534, %cst_237 {dimension_numbers = #tpu.dot_dimension_numbers<[1], [0], [0], [1], [0, 0, 1, 1], [], []>} : vector<17x17xf32>, vector<17x16xf32>, vector<17x16xf32> -> vector<17x16xf32>
    %c0_238 = arith.constant 0 : index
    %c48_239 = arith.constant 48 : index
    %536 = vector.load %arg26[%c0_238, %c48_239] : memref<17x64xf32, #tpu.memory_space<vmem>>, vector<17x16xf32>
    tpu.vector_store %arg26[%c0_238, %c48_239], %535 {strides = array<i32>} : memref<17x64xf32, #tpu.memory_space<vmem>>, vector<17x16xf32>,
    %c0_240 = arith.constant 0 : index
    %c0_241 = arith.constant 0 : index
    %537 = vector.load %arg26[%c0_240, %c0_241] : memref<17x64xf32, #tpu.memory_space<vmem>>, vector<17x64xf32>
    %c0_242 = arith.constant 0 : index
    %c0_243 = arith.constant 0 : index
    %c0_244 = arith.constant 0 : index
    %538 = vector.load %arg10[%c0_242, %c0_243, %c0_244] : memref<2x64x64xf32, #tpu.memory_space<vmem>>, vector<1x64x64xf32>
    %539 = vector.shape_cast %538 : vector<1x64x64xf32> to vector<64x64xf32>
    %cst_245 = arith.constant dense<0.000000e+00> : vector<17x64xf32>
    %540 = tpu.matmul %537, %539, %cst_245 {dimension_numbers = #tpu.dot_dimension_numbers<[1], [0], [0], [1], [0, 0, 1, 1], [], []>} : vector<17x64xf32>, vector<64x64xf32>, vector<17x64xf32> -> vector<17x64xf32>
    %541 = arith.addf %428, %540 : vector<17x64xf32>
    %c0_246 = arith.constant 0 : index
    %c0_247 = arith.constant 0 : index
    %c0_248 = arith.constant 0 : index
    %542 = vector.load %arg11[%c0_246, %c0_247, %c0_248] : memref<2x1x64xf32, #tpu.memory_space<vmem>>, vector<1x1x64xf32>
    %543 = vector.shape_cast %542 : vector<1x1x64xf32> to vector<1x64xf32>
    %544 = vector.broadcast %543 : vector<1x64xf32> to vector<17x64xf32>
    %545 = arith.addf %541, %544 : vector<17x64xf32>
    %c0_249 = arith.constant 0 : index
    %c0_250 = arith.constant 0 : index
    %c0_251 = arith.constant 0 : index
    %546 = vector.load %arg12[%c0_249, %c0_250, %c0_251] : memref<2x1x64xf32, #tpu.memory_space<vmem>>, vector<1x1x64xf32>
    %547 = vector.shape_cast %546 : vector<1x1x64xf32> to vector<1x64xf32>
    %c0_252 = arith.constant 0 : index
    %c0_253 = arith.constant 0 : index
    %c0_254 = arith.constant 0 : index
    %548 = vector.load %arg13[%c0_252, %c0_253, %c0_254] : memref<2x1x64xf32, #tpu.memory_space<vmem>>, vector<1x1x64xf32>
    %549 = vector.shape_cast %548 : vector<1x1x64xf32> to vector<1x64xf32>
    %cst_255 = arith.constant dense<0.000000e+00> : vector<17xf32>
    %550 = vector.multi_reduction <add>, %545, %cst_255 [1] : vector<17x64xf32> to vector<17xf32>
    %551 = vector.shape_cast %550 : vector<17xf32> to vector<17x1xf32>
    %cst_256 = arith.constant 6.400000e+01 : f32
    %552 = vector.broadcast %cst_256 : f32 to vector<17x1xf32>
    %553 = arith.divf %551, %552 : vector<17x1xf32>
    %554 = vector.broadcast %553 : vector<17x1xf32> to vector<17x64xf32>
    %555 = arith.subf %545, %554 : vector<17x64xf32>
    %556 = arith.mulf %555, %555 : vector<17x64xf32>
    %cst_257 = arith.constant dense<0.000000e+00> : vector<17xf32>
    %557 = vector.multi_reduction <add>, %556, %cst_257 [1] : vector<17x64xf32> to vector<17xf32>
    %558 = vector.shape_cast %557 : vector<17xf32> to vector<17x1xf32>
    %cst_258 = arith.constant 6.400000e+01 : f32
    %559 = vector.broadcast %cst_258 : f32 to vector<17x1xf32>
    %560 = arith.divf %558, %559 : vector<17x1xf32>
    %561 = vector.broadcast %553 : vector<17x1xf32> to vector<17x64xf32>
    %562 = arith.subf %545, %561 : vector<17x64xf32>
    %cst_259 = arith.constant 9.99999974E-6 : f32
    %563 = vector.broadcast %cst_259 : f32 to vector<17x1xf32>
    %564 = arith.addf %560, %563 : vector<17x1xf32>
    %565 = math.rsqrt %564 : vector<17x1xf32>
    %566 = vector.broadcast %565 : vector<17x1xf32> to vector<17x64xf32>
    %567 = arith.mulf %562, %566 : vector<17x64xf32>
    %568 = vector.broadcast %547 : vector<1x64xf32> to vector<17x64xf32>
    %569 = arith.mulf %567, %568 : vector<17x64xf32>
    %570 = vector.broadcast %549 : vector<1x64xf32> to vector<17x64xf32>
    %571 = arith.addf %569, %570 : vector<17x64xf32>
    %c0_260 = arith.constant 0 : index
    %c0_261 = arith.constant 0 : index
    %c0_262 = arith.constant 0 : index
    %572 = vector.load %arg14[%c0_260, %c0_261, %c0_262] : memref<2x64x256xf32, #tpu.memory_space<vmem>>, vector<1x64x256xf32>
    %573 = vector.shape_cast %572 : vector<1x64x256xf32> to vector<64x256xf32>
    %cst_263 = arith.constant dense<0.000000e+00> : vector<17x256xf32>
    %574 = tpu.matmul %571, %573, %cst_263 {dimension_numbers = #tpu.dot_dimension_numbers<[1], [0], [0], [1], [0, 0, 1, 1], [], []>} : vector<17x64xf32>, vector<64x256xf32>, vector<17x256xf32> -> vector<17x256xf32>
    %c0_264 = arith.constant 0 : index
    %c0_265 = arith.constant 0 : index
    %c0_266 = arith.constant 0 : index
    %575 = vector.load %arg15[%c0_264, %c0_265, %c0_266] : memref<2x1x256xf32, #tpu.memory_space<vmem>>, vector<1x1x256xf32>
    %576 = vector.shape_cast %575 : vector<1x1x256xf32> to vector<1x256xf32>
    %577 = vector.broadcast %576 : vector<1x256xf32> to vector<17x256xf32>
    %578 = arith.addf %574, %577 : vector<17x256xf32>
    %579 = arith.mulf %578, %578 : vector<17x256xf32>
    %580 = arith.mulf %578, %579 : vector<17x256xf32>
    %cst_267 = arith.constant 4.471500e-02 : f32
    %581 = vector.broadcast %cst_267 : f32 to vector<17x256xf32>
    %582 = arith.mulf %581, %580 : vector<17x256xf32>
    %583 = arith.addf %578, %582 : vector<17x256xf32>
    %cst_268 = arith.constant 0.797884583 : f32
    %584 = vector.broadcast %cst_268 : f32 to vector<17x256xf32>
    %585 = arith.mulf %584, %583 : vector<17x256xf32>
    %586 = math.tanh %585 : vector<17x256xf32>
    %cst_269 = arith.constant 1.000000e+00 : f32
    %587 = vector.broadcast %cst_269 : f32 to vector<17x256xf32>
    %588 = arith.addf %587, %586 : vector<17x256xf32>
    %cst_270 = arith.constant 5.000000e-01 : f32
    %589 = vector.broadcast %cst_270 : f32 to vector<17x256xf32>
    %590 = arith.mulf %589, %588 : vector<17x256xf32>
    %591 = arith.mulf %578, %590 : vector<17x256xf32>
    %c0_271 = arith.constant 0 : index
    %c0_272 = arith.constant 0 : index
    %c0_273 = arith.constant 0 : index
    %592 = vector.load %arg16[%c0_271, %c0_272, %c0_273] : memref<2x256x64xf32, #tpu.memory_space<vmem>>, vector<1x256x64xf32>
    %593 = vector.shape_cast %592 : vector<1x256x64xf32> to vector<256x64xf32>
    %cst_274 = arith.constant dense<0.000000e+00> : vector<17x64xf32>
    %594 = tpu.matmul %591, %593, %cst_274 {dimension_numbers = #tpu.dot_dimension_numbers<[1], [0], [0], [1], [0, 0, 1, 1], [], []>} : vector<17x256xf32>, vector<256x64xf32>, vector<17x64xf32> -> vector<17x64xf32>
    %595 = arith.addf %545, %594 : vector<17x64xf32>
    %c0_275 = arith.constant 0 : index
    %c0_276 = arith.constant 0 : index
    %c0_277 = arith.constant 0 : index
    %596 = vector.load %arg17[%c0_275, %c0_276, %c0_277] : memref<2x1x64xf32, #tpu.memory_space<vmem>>, vector<1x1x64xf32>
    %597 = vector.shape_cast %596 : vector<1x1x64xf32> to vector<1x64xf32>
    %598 = vector.broadcast %597 : vector<1x64xf32> to vector<17x64xf32>
    %599 = arith.addf %595, %598 : vector<17x64xf32>
    %c1_278 = arith.constant 1 : index
    %c0_279 = arith.constant 0 : index
    %c0_280 = arith.constant 0 : index
    %600 = vector.load %arg6[%c1_278, %c0_279, %c0_280] : memref<2x1x64xf32, #tpu.memory_space<vmem>>, vector<1x1x64xf32>
    %601 = vector.shape_cast %600 : vector<1x1x64xf32> to vector<1x64xf32>
    %c1_281 = arith.constant 1 : index
    %c0_282 = arith.constant 0 : index
    %c0_283 = arith.constant 0 : index
    %602 = vector.load %arg7[%c1_281, %c0_282, %c0_283] : memref<2x1x64xf32, #tpu.memory_space<vmem>>, vector<1x1x64xf32>
    %603 = vector.shape_cast %602 : vector<1x1x64xf32> to vector<1x64xf32>
    %cst_284 = arith.constant dense<0.000000e+00> : vector<17xf32>
    %604 = vector.multi_reduction <add>, %599, %cst_284 [1] : vector<17x64xf32> to vector<17xf32>
    %605 = vector.shape_cast %604 : vector<17xf32> to vector<17x1xf32>
    %cst_285 = arith.constant 6.400000e+01 : f32
    %606 = vector.broadcast %cst_285 : f32 to vector<17x1xf32>
    %607 = arith.divf %605, %606 : vector<17x1xf32>
    %608 = vector.broadcast %607 : vector<17x1xf32> to vector<17x64xf32>
    %609 = arith.subf %599, %608 : vector<17x64xf32>
    %610 = arith.mulf %609, %609 : vector<17x64xf32>
    %cst_286 = arith.constant dense<0.000000e+00> : vector<17xf32>
    %611 = vector.multi_reduction <add>, %610, %cst_286 [1] : vector<17x64xf32> to vector<17xf32>
    %612 = vector.shape_cast %611 : vector<17xf32> to vector<17x1xf32>
    %cst_287 = arith.constant 6.400000e+01 : f32
    %613 = vector.broadcast %cst_287 : f32 to vector<17x1xf32>
    %614 = arith.divf %612, %613 : vector<17x1xf32>
    %615 = vector.broadcast %607 : vector<17x1xf32> to vector<17x64xf32>
    %616 = arith.subf %599, %615 : vector<17x64xf32>
    %cst_288 = arith.constant 9.99999974E-6 : f32
    %617 = vector.broadcast %cst_288 : f32 to vector<17x1xf32>
    %618 = arith.addf %614, %617 : vector<17x1xf32>
    %619 = math.rsqrt %618 : vector<17x1xf32>
    %620 = vector.broadcast %619 : vector<17x1xf32> to vector<17x64xf32>
    %621 = arith.mulf %616, %620 : vector<17x64xf32>
    %622 = vector.broadcast %601 : vector<1x64xf32> to vector<17x64xf32>
    %623 = arith.mulf %621, %622 : vector<17x64xf32>
    %624 = vector.broadcast %603 : vector<1x64xf32> to vector<17x64xf32>
    %625 = arith.addf %623, %624 : vector<17x64xf32>
    %c1_289 = arith.constant 1 : index
    %c0_290 = arith.constant 0 : index
    %c0_291 = arith.constant 0 : index
    %626 = vector.load %arg8[%c1_289, %c0_290, %c0_291] : memref<2x64x192xf32, #tpu.memory_space<vmem>>, vector<1x64x192xf32>
    %627 = vector.shape_cast %626 : vector<1x64x192xf32> to vector<64x192xf32>
    %cst_292 = arith.constant dense<0.000000e+00> : vector<17x192xf32>
    %628 = tpu.matmul %625, %627, %cst_292 {dimension_numbers = #tpu.dot_dimension_numbers<[1], [0], [0], [1], [0, 0, 1, 1], [], []>} : vector<17x64xf32>, vector<64x192xf32>, vector<17x192xf32> -> vector<17x192xf32>
    %c1_293 = arith.constant 1 : index
    %c0_294 = arith.constant 0 : index
    %c0_295 = arith.constant 0 : index
    %629 = vector.load %arg9[%c1_293, %c0_294, %c0_295] : memref<2x1x192xf32, #tpu.memory_space<vmem>>, vector<1x1x192xf32>
    %630 = vector.shape_cast %629 : vector<1x1x192xf32> to vector<1x192xf32>
    %631 = vector.broadcast %630 : vector<1x192xf32> to vector<17x192xf32>
    %632 = arith.addf %628, %631 : vector<17x192xf32>
    %633 = vector.extract_strided_slice %632 {offsets = [0, 0], sizes = [17, 64], strides = [1, 1]} : vector<17x192xf32> to vector<17x64xf32>
    %634 = vector.extract_strided_slice %632 {offsets = [0, 64], sizes = [17, 64], strides = [1, 1]} : vector<17x192xf32> to vector<17x64xf32>
    %635 = vector.extract_strided_slice %632 {offsets = [0, 128], sizes = [17, 64], strides = [1, 1]} : vector<17x192xf32> to vector<17x64xf32>
    %636 = vector.extract_strided_slice %633 {offsets = [0, 0], sizes = [17, 16], strides = [1, 1]} : vector<17x64xf32> to vector<17x16xf32>
    %637 = vector.extract_strided_slice %634 {offsets = [0, 0], sizes = [17, 16], strides = [1, 1]} : vector<17x64xf32> to vector<17x16xf32>
    %cst_296 = arith.constant dense<0.000000e+00> : vector<17x17xf32>
    %638 = tpu.matmul %636, %637, %cst_296 {dimension_numbers = #tpu.dot_dimension_numbers<[1], [1], [0], [0], [0, 0, 1, 0], [], []>} : vector<17x16xf32>, vector<17x16xf32>, vector<17x17xf32> -> vector<17x17xf32>
    %639 = vector.broadcast %3 : f32 to vector<17x17xf32>
    %640 = arith.mulf %638, %639 : vector<17x17xf32>
    %cst_297 = arith.constant dense<0xFF800000> : vector<17xf32>
    %641 = vector.multi_reduction <maximumf>, %640, %cst_297 [1] : vector<17x17xf32> to vector<17xf32>
    %642 = vector.shape_cast %641 : vector<17xf32> to vector<17x1xf32>
    %643 = vector.broadcast %642 : vector<17x1xf32> to vector<17x17xf32>
    %644 = arith.subf %640, %643 : vector<17x17xf32>
    %645 = math.exp %644 : vector<17x17xf32>
    %cst_298 = arith.constant dense<0.000000e+00> : vector<17xf32>
    %646 = vector.multi_reduction <add>, %645, %cst_298 [1] : vector<17x17xf32> to vector<17xf32>
    %647 = vector.shape_cast %646 : vector<17xf32> to vector<17x1xf32>
    %648 = tpu.reciprocal %647 {approx = true} : vector<17x1xf32> -> vector<17x1xf32>
    %649 = vector.broadcast %648 : vector<17x1xf32> to vector<17x17xf32>
    %650 = arith.mulf %645, %649 : vector<17x17xf32>
    %651 = vector.extract_strided_slice %635 {offsets = [0, 0], sizes = [17, 16], strides = [1, 1]} : vector<17x64xf32> to vector<17x16xf32>
    %cst_299 = arith.constant dense<0.000000e+00> : vector<17x16xf32>
    %652 = tpu.matmul %650, %651, %cst_299 {dimension_numbers = #tpu.dot_dimension_numbers<[1], [0], [0], [1], [0, 0, 1, 1], [], []>} : vector<17x17xf32>, vector<17x16xf32>, vector<17x16xf32> -> vector<17x16xf32>
    %c0_300 = arith.constant 0 : index
    %c0_301 = arith.constant 0 : index
    %653 = vector.load %arg26[%c0_300, %c0_301] : memref<17x64xf32, #tpu.memory_space<vmem>>, vector<17x16xf32>
    tpu.vector_store %arg26[%c0_300, %c0_301], %652 {strides = array<i32>} : memref<17x64xf32, #tpu.memory_space<vmem>>, vector<17x16xf32>,
    %654 = vector.extract_strided_slice %633 {offsets = [0, 16], sizes = [17, 16], strides = [1, 1]} : vector<17x64xf32> to vector<17x16xf32>
    %655 = vector.extract_strided_slice %634 {offsets = [0, 16], sizes = [17, 16], strides = [1, 1]} : vector<17x64xf32> to vector<17x16xf32>
    %cst_302 = arith.constant dense<0.000000e+00> : vector<17x17xf32>
    %656 = tpu.matmul %654, %655, %cst_302 {dimension_numbers = #tpu.dot_dimension_numbers<[1], [1], [0], [0], [0, 0, 1, 0], [], []>} : vector<17x16xf32>, vector<17x16xf32>, vector<17x17xf32> -> vector<17x17xf32>
    %657 = vector.broadcast %3 : f32 to vector<17x17xf32>
    %658 = arith.mulf %656, %657 : vector<17x17xf32>
    %cst_303 = arith.constant dense<0xFF800000> : vector<17xf32>
    %659 = vector.multi_reduction <maximumf>, %658, %cst_303 [1] : vector<17x17xf32> to vector<17xf32>
    %660 = vector.shape_cast %659 : vector<17xf32> to vector<17x1xf32>
    %661 = vector.broadcast %660 : vector<17x1xf32> to vector<17x17xf32>
    %662 = arith.subf %658, %661 : vector<17x17xf32>
    %663 = math.exp %662 : vector<17x17xf32>
    %cst_304 = arith.constant dense<0.000000e+00> : vector<17xf32>
    %664 = vector.multi_reduction <add>, %663, %cst_304 [1] : vector<17x17xf32> to vector<17xf32>
    %665 = vector.shape_cast %664 : vector<17xf32> to vector<17x1xf32>
    %666 = tpu.reciprocal %665 {approx = true} : vector<17x1xf32> -> vector<17x1xf32>
    %667 = vector.broadcast %666 : vector<17x1xf32> to vector<17x17xf32>
    %668 = arith.mulf %663, %667 : vector<17x17xf32>
    %669 = vector.extract_strided_slice %635 {offsets = [0, 16], sizes = [17, 16], strides = [1, 1]} : vector<17x64xf32> to vector<17x16xf32>
    %cst_305 = arith.constant dense<0.000000e+00> : vector<17x16xf32>
    %670 = tpu.matmul %668, %669, %cst_305 {dimension_numbers = #tpu.dot_dimension_numbers<[1], [0], [0], [1], [0, 0, 1, 1], [], []>} : vector<17x17xf32>, vector<17x16xf32>, vector<17x16xf32> -> vector<17x16xf32>
    %c0_306 = arith.constant 0 : index
    %c16_307 = arith.constant 16 : index
    %671 = vector.load %arg26[%c0_306, %c16_307] : memref<17x64xf32, #tpu.memory_space<vmem>>, vector<17x16xf32>
    tpu.vector_store %arg26[%c0_306, %c16_307], %670 {strides = array<i32>} : memref<17x64xf32, #tpu.memory_space<vmem>>, vector<17x16xf32>,
    %672 = vector.extract_strided_slice %633 {offsets = [0, 32], sizes = [17, 16], strides = [1, 1]} : vector<17x64xf32> to vector<17x16xf32>
    %673 = vector.extract_strided_slice %634 {offsets = [0, 32], sizes = [17, 16], strides = [1, 1]} : vector<17x64xf32> to vector<17x16xf32>
    %cst_308 = arith.constant dense<0.000000e+00> : vector<17x17xf32>
    %674 = tpu.matmul %672, %673, %cst_308 {dimension_numbers = #tpu.dot_dimension_numbers<[1], [1], [0], [0], [0, 0, 1, 0], [], []>} : vector<17x16xf32>, vector<17x16xf32>, vector<17x17xf32> -> vector<17x17xf32>
    %675 = vector.broadcast %3 : f32 to vector<17x17xf32>
    %676 = arith.mulf %674, %675 : vector<17x17xf32>
    %cst_309 = arith.constant dense<0xFF800000> : vector<17xf32>
    %677 = vector.multi_reduction <maximumf>, %676, %cst_309 [1] : vector<17x17xf32> to vector<17xf32>
    %678 = vector.shape_cast %677 : vector<17xf32> to vector<17x1xf32>
    %679 = vector.broadcast %678 : vector<17x1xf32> to vector<17x17xf32>
    %680 = arith.subf %676, %679 : vector<17x17xf32>
    %681 = math.exp %680 : vector<17x17xf32>
    %cst_310 = arith.constant dense<0.000000e+00> : vector<17xf32>
    %682 = vector.multi_reduction <add>, %681, %cst_310 [1] : vector<17x17xf32> to vector<17xf32>
    %683 = vector.shape_cast %682 : vector<17xf32> to vector<17x1xf32>
    %684 = tpu.reciprocal %683 {approx = true} : vector<17x1xf32> -> vector<17x1xf32>
    %685 = vector.broadcast %684 : vector<17x1xf32> to vector<17x17xf32>
    %686 = arith.mulf %681, %685 : vector<17x17xf32>
    %687 = vector.extract_strided_slice %635 {offsets = [0, 32], sizes = [17, 16], strides = [1, 1]} : vector<17x64xf32> to vector<17x16xf32>
    %cst_311 = arith.constant dense<0.000000e+00> : vector<17x16xf32>
    %688 = tpu.matmul %686, %687, %cst_311 {dimension_numbers = #tpu.dot_dimension_numbers<[1], [0], [0], [1], [0, 0, 1, 1], [], []>} : vector<17x17xf32>, vector<17x16xf32>, vector<17x16xf32> -> vector<17x16xf32>
    %c0_312 = arith.constant 0 : index
    %c32_313 = arith.constant 32 : index
    %689 = vector.load %arg26[%c0_312, %c32_313] : memref<17x64xf32, #tpu.memory_space<vmem>>, vector<17x16xf32>
    tpu.vector_store %arg26[%c0_312, %c32_313], %688 {strides = array<i32>} : memref<17x64xf32, #tpu.memory_space<vmem>>, vector<17x16xf32>,
    %690 = vector.extract_strided_slice %633 {offsets = [0, 48], sizes = [17, 16], strides = [1, 1]} : vector<17x64xf32> to vector<17x16xf32>
    %691 = vector.extract_strided_slice %634 {offsets = [0, 48], sizes = [17, 16], strides = [1, 1]} : vector<17x64xf32> to vector<17x16xf32>
    %cst_314 = arith.constant dense<0.000000e+00> : vector<17x17xf32>
    %692 = tpu.matmul %690, %691, %cst_314 {dimension_numbers = #tpu.dot_dimension_numbers<[1], [1], [0], [0], [0, 0, 1, 0], [], []>} : vector<17x16xf32>, vector<17x16xf32>, vector<17x17xf32> -> vector<17x17xf32>
    %693 = vector.broadcast %3 : f32 to vector<17x17xf32>
    %694 = arith.mulf %692, %693 : vector<17x17xf32>
    %cst_315 = arith.constant dense<0xFF800000> : vector<17xf32>
    %695 = vector.multi_reduction <maximumf>, %694, %cst_315 [1] : vector<17x17xf32> to vector<17xf32>
    %696 = vector.shape_cast %695 : vector<17xf32> to vector<17x1xf32>
    %697 = vector.broadcast %696 : vector<17x1xf32> to vector<17x17xf32>
    %698 = arith.subf %694, %697 : vector<17x17xf32>
    %699 = math.exp %698 : vector<17x17xf32>
    %cst_316 = arith.constant dense<0.000000e+00> : vector<17xf32>
    %700 = vector.multi_reduction <add>, %699, %cst_316 [1] : vector<17x17xf32> to vector<17xf32>
    %701 = vector.shape_cast %700 : vector<17xf32> to vector<17x1xf32>
    %702 = tpu.reciprocal %701 {approx = true} : vector<17x1xf32> -> vector<17x1xf32>
    %703 = vector.broadcast %702 : vector<17x1xf32> to vector<17x17xf32>
    %704 = arith.mulf %699, %703 : vector<17x17xf32>
    %705 = vector.extract_strided_slice %635 {offsets = [0, 48], sizes = [17, 16], strides = [1, 1]} : vector<17x64xf32> to vector<17x16xf32>
    %cst_317 = arith.constant dense<0.000000e+00> : vector<17x16xf32>
    %706 = tpu.matmul %704, %705, %cst_317 {dimension_numbers = #tpu.dot_dimension_numbers<[1], [0], [0], [1], [0, 0, 1, 1], [], []>} : vector<17x17xf32>, vector<17x16xf32>, vector<17x16xf32> -> vector<17x16xf32>
    %c0_318 = arith.constant 0 : index
    %c48_319 = arith.constant 48 : index
    %707 = vector.load %arg26[%c0_318, %c48_319] : memref<17x64xf32, #tpu.memory_space<vmem>>, vector<17x16xf32>
    tpu.vector_store %arg26[%c0_318, %c48_319], %706 {strides = array<i32>} : memref<17x64xf32, #tpu.memory_space<vmem>>, vector<17x16xf32>,
    %c0_320 = arith.constant 0 : index
    %c0_321 = arith.constant 0 : index
    %708 = vector.load %arg26[%c0_320, %c0_321] : memref<17x64xf32, #tpu.memory_space<vmem>>, vector<17x64xf32>
    %c1_322 = arith.constant 1 : index
    %c0_323 = arith.constant 0 : index
    %c0_324 = arith.constant 0 : index
    %709 = vector.load %arg10[%c1_322, %c0_323, %c0_324] : memref<2x64x64xf32, #tpu.memory_space<vmem>>, vector<1x64x64xf32>
    %710 = vector.shape_cast %709 : vector<1x64x64xf32> to vector<64x64xf32>
    %cst_325 = arith.constant dense<0.000000e+00> : vector<17x64xf32>
    %711 = tpu.matmul %708, %710, %cst_325 {dimension_numbers = #tpu.dot_dimension_numbers<[1], [0], [0], [1], [0, 0, 1, 1], [], []>} : vector<17x64xf32>, vector<64x64xf32>, vector<17x64xf32> -> vector<17x64xf32>
    %712 = arith.addf %599, %711 : vector<17x64xf32>
    %c1_326 = arith.constant 1 : index
    %c0_327 = arith.constant 0 : index
    %c0_328 = arith.constant 0 : index
    %713 = vector.load %arg11[%c1_326, %c0_327, %c0_328] : memref<2x1x64xf32, #tpu.memory_space<vmem>>, vector<1x1x64xf32>
    %714 = vector.shape_cast %713 : vector<1x1x64xf32> to vector<1x64xf32>
    %715 = vector.broadcast %714 : vector<1x64xf32> to vector<17x64xf32>
    %716 = arith.addf %712, %715 : vector<17x64xf32>
    %c1_329 = arith.constant 1 : index
    %c0_330 = arith.constant 0 : index
    %c0_331 = arith.constant 0 : index
    %717 = vector.load %arg12[%c1_329, %c0_330, %c0_331] : memref<2x1x64xf32, #tpu.memory_space<vmem>>, vector<1x1x64xf32>
    %718 = vector.shape_cast %717 : vector<1x1x64xf32> to vector<1x64xf32>
    %c1_332 = arith.constant 1 : index
    %c0_333 = arith.constant 0 : index
    %c0_334 = arith.constant 0 : index
    %719 = vector.load %arg13[%c1_332, %c0_333, %c0_334] : memref<2x1x64xf32, #tpu.memory_space<vmem>>, vector<1x1x64xf32>
    %720 = vector.shape_cast %719 : vector<1x1x64xf32> to vector<1x64xf32>
    %cst_335 = arith.constant dense<0.000000e+00> : vector<17xf32>
    %721 = vector.multi_reduction <add>, %716, %cst_335 [1] : vector<17x64xf32> to vector<17xf32>
    %722 = vector.shape_cast %721 : vector<17xf32> to vector<17x1xf32>
    %cst_336 = arith.constant 6.400000e+01 : f32
    %723 = vector.broadcast %cst_336 : f32 to vector<17x1xf32>
    %724 = arith.divf %722, %723 : vector<17x1xf32>
    %725 = vector.broadcast %724 : vector<17x1xf32> to vector<17x64xf32>
    %726 = arith.subf %716, %725 : vector<17x64xf32>
    %727 = arith.mulf %726, %726 : vector<17x64xf32>
    %cst_337 = arith.constant dense<0.000000e+00> : vector<17xf32>
    %728 = vector.multi_reduction <add>, %727, %cst_337 [1] : vector<17x64xf32> to vector<17xf32>
    %729 = vector.shape_cast %728 : vector<17xf32> to vector<17x1xf32>
    %cst_338 = arith.constant 6.400000e+01 : f32
    %730 = vector.broadcast %cst_338 : f32 to vector<17x1xf32>
    %731 = arith.divf %729, %730 : vector<17x1xf32>
    %732 = vector.broadcast %724 : vector<17x1xf32> to vector<17x64xf32>
    %733 = arith.subf %716, %732 : vector<17x64xf32>
    %cst_339 = arith.constant 9.99999974E-6 : f32
    %734 = vector.broadcast %cst_339 : f32 to vector<17x1xf32>
    %735 = arith.addf %731, %734 : vector<17x1xf32>
    %736 = math.rsqrt %735 : vector<17x1xf32>
    %737 = vector.broadcast %736 : vector<17x1xf32> to vector<17x64xf32>
    %738 = arith.mulf %733, %737 : vector<17x64xf32>
    %739 = vector.broadcast %718 : vector<1x64xf32> to vector<17x64xf32>
    %740 = arith.mulf %738, %739 : vector<17x64xf32>
    %741 = vector.broadcast %720 : vector<1x64xf32> to vector<17x64xf32>
    %742 = arith.addf %740, %741 : vector<17x64xf32>
    %c1_340 = arith.constant 1 : index
    %c0_341 = arith.constant 0 : index
    %c0_342 = arith.constant 0 : index
    %743 = vector.load %arg14[%c1_340, %c0_341, %c0_342] : memref<2x64x256xf32, #tpu.memory_space<vmem>>, vector<1x64x256xf32>
    %744 = vector.shape_cast %743 : vector<1x64x256xf32> to vector<64x256xf32>
    %cst_343 = arith.constant dense<0.000000e+00> : vector<17x256xf32>
    %745 = tpu.matmul %742, %744, %cst_343 {dimension_numbers = #tpu.dot_dimension_numbers<[1], [0], [0], [1], [0, 0, 1, 1], [], []>} : vector<17x64xf32>, vector<64x256xf32>, vector<17x256xf32> -> vector<17x256xf32>
    %c1_344 = arith.constant 1 : index
    %c0_345 = arith.constant 0 : index
    %c0_346 = arith.constant 0 : index
    %746 = vector.load %arg15[%c1_344, %c0_345, %c0_346] : memref<2x1x256xf32, #tpu.memory_space<vmem>>, vector<1x1x256xf32>
    %747 = vector.shape_cast %746 : vector<1x1x256xf32> to vector<1x256xf32>
    %748 = vector.broadcast %747 : vector<1x256xf32> to vector<17x256xf32>
    %749 = arith.addf %745, %748 : vector<17x256xf32>
    %750 = arith.mulf %749, %749 : vector<17x256xf32>
    %751 = arith.mulf %749, %750 : vector<17x256xf32>
    %cst_347 = arith.constant 4.471500e-02 : f32
    %752 = vector.broadcast %cst_347 : f32 to vector<17x256xf32>
    %753 = arith.mulf %752, %751 : vector<17x256xf32>
    %754 = arith.addf %749, %753 : vector<17x256xf32>
    %cst_348 = arith.constant 0.797884583 : f32
    %755 = vector.broadcast %cst_348 : f32 to vector<17x256xf32>
    %756 = arith.mulf %755, %754 : vector<17x256xf32>
    %757 = math.tanh %756 : vector<17x256xf32>
    %cst_349 = arith.constant 1.000000e+00 : f32
    %758 = vector.broadcast %cst_349 : f32 to vector<17x256xf32>
    %759 = arith.addf %758, %757 : vector<17x256xf32>
    %cst_350 = arith.constant 5.000000e-01 : f32
    %760 = vector.broadcast %cst_350 : f32 to vector<17x256xf32>
    %761 = arith.mulf %760, %759 : vector<17x256xf32>
    %762 = arith.mulf %749, %761 : vector<17x256xf32>
    %c1_351 = arith.constant 1 : index
    %c0_352 = arith.constant 0 : index
    %c0_353 = arith.constant 0 : index
    %763 = vector.load %arg16[%c1_351, %c0_352, %c0_353] : memref<2x256x64xf32, #tpu.memory_space<vmem>>, vector<1x256x64xf32>
    %764 = vector.shape_cast %763 : vector<1x256x64xf32> to vector<256x64xf32>
    %cst_354 = arith.constant dense<0.000000e+00> : vector<17x64xf32>
    %765 = tpu.matmul %762, %764, %cst_354 {dimension_numbers = #tpu.dot_dimension_numbers<[1], [0], [0], [1], [0, 0, 1, 1], [], []>} : vector<17x256xf32>, vector<256x64xf32>, vector<17x64xf32> -> vector<17x64xf32>
    %766 = arith.addf %716, %765 : vector<17x64xf32>
    %c1_355 = arith.constant 1 : index
    %c0_356 = arith.constant 0 : index
    %c0_357 = arith.constant 0 : index
    %767 = vector.load %arg17[%c1_355, %c0_356, %c0_357] : memref<2x1x64xf32, #tpu.memory_space<vmem>>, vector<1x1x64xf32>
    %768 = vector.shape_cast %767 : vector<1x1x64xf32> to vector<1x64xf32>
    %769 = vector.broadcast %768 : vector<1x64xf32> to vector<17x64xf32>
    %770 = arith.addf %766, %769 : vector<17x64xf32>
    %c0_358 = arith.constant 0 : index
    %c0_359 = arith.constant 0 : index
    %771 = vector.load %arg18[%c0_358, %c0_359] : memref<1x64xf32, #tpu.memory_space<vmem>>, vector<1x64xf32>
    %c0_360 = arith.constant 0 : index
    %c0_361 = arith.constant 0 : index
    %772 = vector.load %arg19[%c0_360, %c0_361] : memref<1x64xf32, #tpu.memory_space<vmem>>, vector<1x64xf32>
    %cst_362 = arith.constant dense<0.000000e+00> : vector<17xf32>
    %773 = vector.multi_reduction <add>, %770, %cst_362 [1] : vector<17x64xf32> to vector<17xf32>
    %774 = vector.shape_cast %773 : vector<17xf32> to vector<17x1xf32>
    %cst_363 = arith.constant 6.400000e+01 : f32
    %775 = vector.broadcast %cst_363 : f32 to vector<17x1xf32>
    %776 = arith.divf %774, %775 : vector<17x1xf32>
    %777 = vector.broadcast %776 : vector<17x1xf32> to vector<17x64xf32>
    %778 = arith.subf %770, %777 : vector<17x64xf32>
    %779 = arith.mulf %778, %778 : vector<17x64xf32>
    %cst_364 = arith.constant dense<0.000000e+00> : vector<17xf32>
    %780 = vector.multi_reduction <add>, %779, %cst_364 [1] : vector<17x64xf32> to vector<17xf32>
    %781 = vector.shape_cast %780 : vector<17xf32> to vector<17x1xf32>
    %cst_365 = arith.constant 6.400000e+01 : f32
    %782 = vector.broadcast %cst_365 : f32 to vector<17x1xf32>
    %783 = arith.divf %781, %782 : vector<17x1xf32>
    %784 = vector.broadcast %776 : vector<17x1xf32> to vector<17x64xf32>
    %785 = arith.subf %770, %784 : vector<17x64xf32>
    %cst_366 = arith.constant 9.99999974E-6 : f32
    %786 = vector.broadcast %cst_366 : f32 to vector<17x1xf32>
    %787 = arith.addf %783, %786 : vector<17x1xf32>
    %788 = math.rsqrt %787 : vector<17x1xf32>
    %789 = vector.broadcast %788 : vector<17x1xf32> to vector<17x64xf32>
    %790 = arith.mulf %785, %789 : vector<17x64xf32>
    %791 = vector.broadcast %771 : vector<1x64xf32> to vector<17x64xf32>
    %792 = arith.mulf %790, %791 : vector<17x64xf32>
    %793 = vector.broadcast %772 : vector<1x64xf32> to vector<17x64xf32>
    %794 = arith.addf %792, %793 : vector<17x64xf32>
    %c1_367 = arith.constant 1 : index
    %c0_368 = arith.constant 0 : index
    %c0_369 = arith.constant 0 : index
    %795 = vector.load %arg23[%c1_367, %c0_368, %c0_369] : memref<2x17x64xf32, #tpu.memory_space<vmem>>, vector<1x17x64xf32>
    %796 = vector.shape_cast %795 : vector<1x17x64xf32> to vector<17x64xf32>
    %797 = vector.shape_cast %794 : vector<17x64xf32> to vector<1x17x64xf32>
    tpu.vector_store %arg23[%c1_367, %c0_368, %c0_369], %797 {strides = array<i32>} : memref<2x17x64xf32, #tpu.memory_space<vmem>>, vector<1x17x64xf32>,
    %c0_370 = arith.constant 0 : index
    %c0_371 = arith.constant 0 : index
    %c0_372 = arith.constant 0 : index
    %798 = vector.load %arg23[%c0_370, %c0_371, %c0_372] : memref<2x17x64xf32, #tpu.memory_space<vmem>>, vector<2x17x64xf32>
    %799 = vector.extract_strided_slice %798 {offsets = [0, 0, 0], sizes = [2, 1, 64], strides = [1, 1, 1]} : vector<2x17x64xf32> to vector<2x1x64xf32>
    %800 = vector.shape_cast %799 : vector<2x1x64xf32> to vector<2x64xf32>
    %c0_373 = arith.constant 0 : index
    %c0_374 = arith.constant 0 : index
    %801 = vector.load %arg20[%c0_373, %c0_374] : memref<64x32xf32, #tpu.memory_space<vmem>>, vector<64x32xf32>
    %cst_375 = arith.constant dense<0.000000e+00> : vector<2x32xf32>
    %802 = tpu.matmul %800, %801, %cst_375 {dimension_numbers = #tpu.dot_dimension_numbers<[1], [0], [0], [1], [0, 0, 1, 1], [], []>} : vector<2x64xf32>, vector<64x32xf32>, vector<2x32xf32> -> vector<2x32xf32>
    %803 = arith.mulf %802, %802 : vector<2x32xf32>
    %cst_376 = arith.constant dense<0.000000e+00> : vector<2xf32>
    %804 = vector.multi_reduction <add>, %803, %cst_376 [1] : vector<2x32xf32> to vector<2xf32>
    %805 = vector.shape_cast %804 : vector<2xf32> to vector<2x1xf32>
    %806 = math.rsqrt %805 : vector<2x1xf32>
    %807 = vector.broadcast %806 : vector<2x1xf32> to vector<2x32xf32>
    %808 = arith.mulf %802, %807 : vector<2x32xf32>
    %c0_377 = arith.constant 0 : index
    %c0_378 = arith.constant 0 : index
    %809 = vector.load %arg24[%c0_377, %c0_378] : memref<2x32xf32, #tpu.memory_space<vmem>>, vector<2x32xf32>
    tpu.vector_store %arg24[%c0_377, %c0_378], %808 {strides = array<i32>} : memref<2x32xf32, #tpu.memory_space<vmem>>, vector<2x32xf32>,
    %c0_379 = arith.constant 0 : index
    %810 = memref.load %arg22[%c0_379] : memref<1xf32, #tpu.memory_space<smem>>
    %811 = math.exp %810 : f32
    %c0_380 = arith.constant 0 : index
    %c0_381 = arith.constant 0 : index
    %812 = vector.load %arg21[%c0_380, %c0_381] : memref<32x5xf32, #tpu.memory_space<vmem>>, vector<32x5xf32>
    %cst_382 = arith.constant dense<0.000000e+00> : vector<2x5xf32>
    %813 = tpu.matmul %808, %812, %cst_382 {dimension_numbers = #tpu.dot_dimension_numbers<[1], [0], [0], [1], [0, 0, 1, 1], [], []>} : vector<2x32xf32>, vector<32x5xf32>, vector<2x5xf32> -> vector<2x5xf32>
    %814 = vector.broadcast %811 : f32 to vector<2x5xf32>
    %815 = arith.mulf %814, %813 : vector<2x5xf32>
    %c0_383 = arith.constant 0 : index
    %c0_384 = arith.constant 0 : index
    %816 = vector.load %arg25[%c0_383, %c0_384] : memref<2x5xf32, #tpu.memory_space<vmem>>, vector<2x5xf32>
    tpu.vector_store %arg25[%c0_383, %c0_384], %815 {strides = array<i32>} : memref<2x5xf32, #tpu.memory_space<vmem>>, vector<2x5xf32>,
    return
  }
  func.func @transform_0(%arg0: i32) -> (i32, i32, i32) {
    %c0_i32 = arith.constant 0 : i32
    %c0_i32_0 = arith.constant 0 : i32
    %c0_i32_1 = arith.constant 0 : i32
    %c0_i32_2 = arith.constant 0 : i32
    return %c0_i32, %c0_i32_0, %c0_i32_1 : i32, i32, i32
  }
  func.func @transform_1(%arg0: i32) -> (i32, i32) {
    %c0_i32 = arith.constant 0 : i32
    %c0_i32_0 = arith.constant 0 : i32
    %c0_i32_1 = arith.constant 0 : i32
    return %c0_i32, %c0_i32_0 : i32, i32
  }
  func.func @transform_2(%arg0: i32) -> (i32, i32) {
    %c0_i32 = arith.constant 0 : i32
    %c0_i32_0 = arith.constant 0 : i32
    %c0_i32_1 = arith.constant 0 : i32
    return %c0_i32, %c0_i32_0 : i32, i32
  }
  func.func @transform_3(%arg0: i32) -> (i32, i32) {
    %c0_i32 = arith.constant 0 : i32
    %c0_i32_0 = arith.constant 0 : i32
    %c0_i32_1 = arith.constant 0 : i32
    return %c0_i32, %c0_i32_0 : i32, i32
  }
  func.func @transform_4(%arg0: i32) -> (i32, i32) {
    %c0_i32 = arith.constant 0 : i32
    %c0_i32_0 = arith.constant 0 : i32
    %c0_i32_1 = arith.constant 0 : i32
    return %c0_i32, %c0_i32_0 : i32, i32
  }
  func.func @transform_5(%arg0: i32) -> (i32, i32, i32) {
    %c0_i32 = arith.constant 0 : i32
    %c0_i32_0 = arith.constant 0 : i32
    %c0_i32_1 = arith.constant 0 : i32
    %c0_i32_2 = arith.constant 0 : i32
    return %c0_i32, %c0_i32_0, %c0_i32_1 : i32, i32, i32
  }
  func.func @transform_6(%arg0: i32) -> (i32, i32, i32) {
    %c0_i32 = arith.constant 0 : i32
    %c0_i32_0 = arith.constant 0 : i32
    %c0_i32_1 = arith.constant 0 : i32
    %c0_i32_2 = arith.constant 0 : i32
    return %c0_i32, %c0_i32_0, %c0_i32_1 : i32, i32, i32
  }
  func.func @transform_7(%arg0: i32) -> (i32, i32, i32) {
    %c0_i32 = arith.constant 0 : i32
    %c0_i32_0 = arith.constant 0 : i32
    %c0_i32_1 = arith.constant 0 : i32
    %c0_i32_2 = arith.constant 0 : i32
    return %c0_i32, %c0_i32_0, %c0_i32_1 : i32, i32, i32
  }
  func.func @transform_8(%arg0: i32) -> (i32, i32, i32) {
    %c0_i32 = arith.constant 0 : i32
    %c0_i32_0 = arith.constant 0 : i32
    %c0_i32_1 = arith.constant 0 : i32
    %c0_i32_2 = arith.constant 0 : i32
    return %c0_i32, %c0_i32_0, %c0_i32_1 : i32, i32, i32
  }
  func.func @transform_9(%arg0: i32) -> (i32, i32, i32) {
    %c0_i32 = arith.constant 0 : i32
    %c0_i32_0 = arith.constant 0 : i32
    %c0_i32_1 = arith.constant 0 : i32
    %c0_i32_2 = arith.constant 0 : i32
    return %c0_i32, %c0_i32_0, %c0_i32_1 : i32, i32, i32
  }
  func.func @transform_10(%arg0: i32) -> (i32, i32, i32) {
    %c0_i32 = arith.constant 0 : i32
    %c0_i32_0 = arith.constant 0 : i32
    %c0_i32_1 = arith.constant 0 : i32
    %c0_i32_2 = arith.constant 0 : i32
    return %c0_i32, %c0_i32_0, %c0_i32_1 : i32, i32, i32
  }
  func.func @transform_11(%arg0: i32) -> (i32, i32, i32) {
    %c0_i32 = arith.constant 0 : i32
    %c0_i32_0 = arith.constant 0 : i32
    %c0_i32_1 = arith.constant 0 : i32
    %c0_i32_2 = arith.constant 0 : i32
    return %c0_i32, %c0_i32_0, %c0_i32_1 : i32, i32, i32
  }
  func.func @transform_12(%arg0: i32) -> (i32, i32, i32) {
    %c0_i32 = arith.constant 0 : i32
    %c0_i32_0 = arith.constant 0 : i32
    %c0_i32_1 = arith.constant 0 : i32
    %c0_i32_2 = arith.constant 0 : i32
    return %c0_i32, %c0_i32_0, %c0_i32_1 : i32, i32, i32
  }
  func.func @transform_13(%arg0: i32) -> (i32, i32, i32) {
    %c0_i32 = arith.constant 0 : i32
    %c0_i32_0 = arith.constant 0 : i32
    %c0_i32_1 = arith.constant 0 : i32
    %c0_i32_2 = arith.constant 0 : i32
    return %c0_i32, %c0_i32_0, %c0_i32_1 : i32, i32, i32
  }
  func.func @transform_14(%arg0: i32) -> (i32, i32, i32) {
    %c0_i32 = arith.constant 0 : i32
    %c0_i32_0 = arith.constant 0 : i32
    %c0_i32_1 = arith.constant 0 : i32
    %c0_i32_2 = arith.constant 0 : i32
    return %c0_i32, %c0_i32_0, %c0_i32_1 : i32, i32, i32
  }
  func.func @transform_15(%arg0: i32) -> (i32, i32, i32) {
    %c0_i32 = arith.constant 0 : i32
    %c0_i32_0 = arith.constant 0 : i32
    %c0_i32_1 = arith.constant 0 : i32
    %c0_i32_2 = arith.constant 0 : i32
    return %c0_i32, %c0_i32_0, %c0_i32_1 : i32, i32, i32
  }
  func.func @transform_16(%arg0: i32) -> (i32, i32, i32) {
    %c0_i32 = arith.constant 0 : i32
    %c0_i32_0 = arith.constant 0 : i32
    %c0_i32_1 = arith.constant 0 : i32
    %c0_i32_2 = arith.constant 0 : i32
    return %c0_i32, %c0_i32_0, %c0_i32_1 : i32, i32, i32
  }
  func.func @transform_17(%arg0: i32) -> (i32, i32) {
    %c0_i32 = arith.constant 0 : i32
    %c0_i32_0 = arith.constant 0 : i32
    %c0_i32_1 = arith.constant 0 : i32
    return %c0_i32, %c0_i32_0 : i32, i32
  }
  func.func @transform_18(%arg0: i32) -> (i32, i32) {
    %c0_i32 = arith.constant 0 : i32
    %c0_i32_0 = arith.constant 0 : i32
    %c0_i32_1 = arith.constant 0 : i32
    return %c0_i32, %c0_i32_0 : i32, i32
  }
  func.func @transform_19(%arg0: i32) -> (i32, i32) {
    %c0_i32 = arith.constant 0 : i32
    %c0_i32_0 = arith.constant 0 : i32
    %c0_i32_1 = arith.constant 0 : i32
    return %c0_i32, %c0_i32_0 : i32, i32
  }
  func.func @transform_20(%arg0: i32) -> (i32, i32) {
    %c0_i32 = arith.constant 0 : i32
    %c0_i32_0 = arith.constant 0 : i32
    %c0_i32_1 = arith.constant 0 : i32
    return %c0_i32, %c0_i32_0 : i32, i32
  }
  func.func @transform_21(%arg0: i32) -> i32 {
    %c0_i32 = arith.constant 0 : i32
    %c0_i32_0 = arith.constant 0 : i32
    return %c0_i32 : i32
  }
  func.func @transform_22(%arg0: i32) -> (i32, i32, i32) {
    %c0_i32 = arith.constant 0 : i32
    %c0_i32_0 = arith.constant 0 : i32
    %c0_i32_1 = arith.constant 0 : i32
    %c0_i32_2 = arith.constant 0 : i32
    return %c0_i32, %c0_i32_0, %c0_i32_1 : i32, i32, i32
  }
  func.func @transform_23(%arg0: i32) -> (i32, i32) {
    %c0_i32 = arith.constant 0 : i32
    %c0_i32_0 = arith.constant 0 : i32
    %c0_i32_1 = arith.constant 0 : i32
    return %c0_i32, %c0_i32_0 : i32, i32
  }
  func.func @transform_24(%arg0: i32) -> (i32, i32) {
    %c0_i32 = arith.constant 0 : i32
    %c0_i32_0 = arith.constant 0 : i32
    %c0_i32_1 = arith.constant 0 : i32
    return %c0_i32, %c0_i32_0 : i32, i32
  }
}

</mosaic_0001>

<bundles_post_ra>
// kernel: tpu_custom_call.1
= control target key start
LH: loop header
LB: loop body
LE: loop exit
PB: predicated region body
PF: predicated region fallthrough
CT: control target
= control target key end

     0   :  { %s12699_s0 = inlined_call_operand.vmem [shape: f32[2,17,192], index: 0, kind: input, shape index: {}]   ;;  %s12700_s1 = inlined_call_operand.vmem [shape: f32[192,64], index: 1, kind: input, shape index: {}]   ;;  %s12701_s2 = inlined_call_operand.vmem [shape: f32[17,64], index: 2, kind: input, shape index: {}]   ;;  %s12702_s3 = inlined_call_operand.vmem [shape: f32[1,64], index: 3, kind: input, shape index: {}]   ;;  %s12703_s4 = inlined_call_operand.vmem [shape: f32[1,64], index: 4, kind: input, shape index: {}]   ;;  %s12704_s5 = inlined_call_operand.vmem [shape: f32[2,1,64], index: 5, kind: input, shape index: {}]   ;;  %s12705_s6 = inlined_call_operand.vmem [shape: f32[2,1,64], index: 6, kind: input, shape index: {}]   ;;  %s12706_s7 = inlined_call_operand.vmem [shape: f32[2,64,192], index: 7, kind: input, shape index: {}]   ;;  %s12707_s8 = inlined_call_operand.vmem [shape: f32[2,1,192], index: 8, kind: input, shape index: {}]   ;;  %s12708_s9 = inlined_call_operand.vmem [shape: f32[2,64,64], index: 9, kind: input, shape index: {}]   ;;  %s12709_s10 = inlined_call_operand.vmem [shape: f32[2,1,64], index: 10, kind: input, shape index: {}]   ;;  %s12710_s11 = inlined_call_operand.vmem [shape: f32[2,1,64], index: 11, kind: input, shape index: {}]   ;;  %s12711_s12 = inlined_call_operand.vmem [shape: f32[2,1,64], index: 12, kind: input, shape index: {}]   ;;  %s12712_s13 = inlined_call_operand.vmem [shape: f32[2,64,256], index: 13, kind: input, shape index: {}]   ;;  %s12713_s14 = inlined_call_operand.vmem [shape: f32[2,1,256], index: 14, kind: input, shape index: {}]   ;;  %s12714_s15 = inlined_call_operand.vmem [shape: f32[2,256,64], index: 15, kind: input, shape index: {}]   ;;  %s12715_s16 = inlined_call_operand.vmem [shape: f32[2,1,64], index: 16, kind: input, shape index: {}]   ;;  %s12716_s17 = inlined_call_operand.vmem [shape: f32[1,64], index: 17, kind: input, shape index: {}]   ;;  %s12717_s18 = inlined_call_operand.vmem [shape: f32[1,64], index: 18, kind: input, shape index: {}]   ;;  %s12718_s19 = inlined_call_operand.vmem [shape: f32[64,32], index: 19, kind: input, shape index: {}]   ;;  %s12719_s20 = inlined_call_operand.vmem [shape: f32[32,5], index: 20, kind: input, shape index: {}]   ;;  %s12720_s21 = inlined_call_operand.<no memory space> [shape: f32[1], index: 21, kind: input, shape index: {}]   ;;  %s12721_s22 = inlined_call_operand.vmem [shape: f32[2,17,64], index: 22, kind: output, shape index: {0}]   ;;  %s12722_s23 = inlined_call_operand.hbm [shape: f32[2,32], index: 23, kind: output, shape index: {1}]   ;;  %s12723_s24 = inlined_call_operand.hbm [shape: f32[2,5], index: 24, kind: output, shape index: {2}]  }
   0x1   :  { %12756 = sst [smem:[#allocation10_spill]] %s12699_s0 }
   0x2   :  { %12757 = sst [smem:[#allocation11_spill]] %s12700_s1 }
   0x3   :  { %12758 = sst [smem:[#allocation12_spill]] %s12701_s2 }
   0x4   :  { %12759 = sst [smem:[#allocation13_spill]] %s12702_s3 }
   0x5   :  { %12760 = sst [smem:[#allocation14_spill]] %s12703_s4 }
   0x6   :  { %12761 = sst [smem:[#allocation15_spill]] %s12704_s5 }
   0x7   :  { %12762 = sst [smem:[#allocation16_spill]] %s12705_s6 }
   0x8   :  { %12763 = sst [smem:[#allocation17_spill]] %s12706_s7 }
   0x9   :  { %12764 = sst [smem:[#allocation18_spill]] %s12707_s8 }
   0xa   :  { %12765 = sst [smem:[#allocation19_spill]] %s12709_s10 }
   0xb   :  { %12766 = sst [smem:[#allocation20_spill]] %s12715_s16 }
   0xc   :  { %12767 = sst [smem:[#allocation21_spill]] %s12716_s17 }
   0xd   :  { %12768 = sst [smem:[#allocation22_spill]] %s12717_s18 }
   0xe   :  { %12769 = sst [smem:[#allocation23_spill]] %s12718_s19 }
   0xf   :  { %12770 = sst [smem:[#allocation24_spill]] %s12719_s20 }
  0x10   :  { %12771 = sst [smem:[#allocation25_spill]] %s12720_s21 }
  0x11   :  { %12772 = sst [smem:[#allocation26_spill]] %s12721_s22 }
  0x12   :  { %12773 = sst [smem:[#allocation27_spill]] %s12722_s23 }
  0x13   :  { %12774 = sst [smem:[#allocation28_spill]] %s12723_s24 }
  0x14   :  { %31 = vsyncpa [#allocation5], 0  ;;  %s12775_s27 = sld [smem:[#allocation11_spill]]  ;;  %v9822_v3 = vmov 0.0|0.0   ;;  %vm110_vm0 = vcmask 523264   ;;  %s12776_s2 = sld [smem:[#allocation10_spill]] }
  0x15   :  { %8791 = vmatprep.subr.bf16.mxu0 %v9822_v3 }
  0x1a   :  { %v77_v0 = vld [vmem:[%s12775_s27] sm:$0xff]  ;;  %v78_v1 = vld [vmem:[%s12775_s27 + $0x8] sm:$0xff]  ;;  %v79_v2 = vld [vmem:[%s12775_s27 + $0x10] sm:$0xff] }
  0x1b   :  { %v9969_v4 = vpack.c.bf16 %v78_v1, %v77_v0  ;;  %v80_v5 = vld [vmem:[%s12775_s27 + $0x18] sm:$0xff]  ;;  %v81_v7 = vld [vmem:[%s12775_s27 + $0x20] sm:$0xff]  ;;  %v82_v8 = vld [vmem:[%s12775_s27 + $0x28] sm:$0xff] }
  0x1c   :  { %v9975_v6 = vpack.c.bf16 %v80_v5, %v79_v2  ;;  %v9985_v9 = vpack.c.bf16 %v82_v8, %v81_v7  ;;  %v83_v10 = vld [vmem:[%s12775_s27 + $0x30] sm:$0xff]  ;;  %v84_v11 = vld [vmem:[%s12775_s27 + $0x38] sm:$0xff]  ;;  %v105_v12 = vld [vmem:[%s12776_s2 + $0x8] sm:$0xff] }
  0x1d   :  { %8793 = vmatpush1.bf16.msra.mxu0 %v9969_v4  ;;  %7362 = vmatprep.mubr.msk.f32.mxu0 %vm110_vm0, %v105_v12 }
  0x1e   :  { %8794 = vmatprep.subr.bf16.mxu0 %v9822_v3 }
  0x21   :  { %8796 = vmatpush1.bf16.msra.mxu0 %v9975_v6 }
  0x22   :  { %8797 = vmatprep.subr.bf16.mxu0 %v9822_v3 }
  0x23   :  { %32 = vsyncpa [#allocation7], 0  ;;  %v9999_v13 = vpack.c.bf16 %v84_v11, %v83_v10  ;;  %v85_v14 = vld [vmem:[%s12775_s27 + $0x40] sm:$0xff]  ;;  %v86_v15 = vld [vmem:[%s12775_s27 + $0x48] sm:$0xff]  ;;  %s12777_s3 = sld [smem:[#allocation12_spill]]  ;;  %vm208_vm1 = vcmask 516096  }
  0x24   :  { %v10009_v16 = vpack.c.bf16 %v86_v15, %v85_v14  ;;  %v87_v17 = vld [vmem:[%s12775_s27 + $0x50] sm:$0xff]  ;;  %v88_v18 = vld [vmem:[%s12775_s27 + $0x58] sm:$0xff]  ;;  %v89_v20 = vld [vmem:[%s12775_s27 + $0x60] sm:$0xff]  ;;  %s12778_s26 = sld [smem:[#allocation13_spill]]  ;;  %s12779_s29 = sld [smem:[#allocation14_spill]]  ;;  %vm9825_vm2 = vmmov 0  }
  0x25   :  { %8799 = vmatpush1.bf16.msra.mxu0 %v9985_v9  ;;  %v10019_v19 = vpack.c.bf16 %v88_v18, %v87_v17  ;;  %v90_v21 = vld [vmem:[%s12775_s27 + $0x68] sm:$0xff]  ;;  %v91_v23 = vld [vmem:[%s12775_s27 + $0x70] sm:$0xff]  ;;  %v92_v24 = vld [vmem:[%s12775_s27 + $0x78] sm:$0xff]  ;;  %s12780_s30 = sld [smem:[#allocation17_spill]]  ;;  %s12781_s4 = sld [smem:[#allocation15_spill]]  ;;  %vm449_vm3 = vcmask 130048  }
  0x26   :  { %8800 = vmatprep.subr.bf16.mxu0 %v9822_v3  ;;  %v10029_v22 = vpack.c.bf16 %v90_v21, %v89_v20  ;;  %v10039_v25 = vpack.c.bf16 %v92_v24, %v91_v23  ;;  %v93_v26 = vld [vmem:[%s12775_s27 + $0x80] sm:$0xff]  ;;  %v94_v27 = vld [vmem:[%s12775_s27 + $0x88] sm:$0xff]  ;;  %v95_v29 = vld [vmem:[%s12775_s27 + $0x90] sm:$0xff]  ;;  %s12783_s0 = sld [smem:[#allocation18_spill]]  ;;  %s12739_s7 = smov 64   ;;  %vm589_vm5 = vcmask 1040384  }
  0x27   :  { %v10049_v28 = vpack.c.bf16 %v94_v27, %v93_v26  ;;  %v96_v30 = vld [vmem:[%s12775_s27 + $0x98] sm:$0xff]  ;;  %v97_v32 = vld [vmem:[%s12775_s27 + $0xa0] sm:$0xff]  ;;  %v98_v33 = vld [vmem:[%s12775_s27 + $0xa8] sm:$0xff]  ;;  %vm545_vm6 = vcmask 138240   ;;  %vm552_vm7 = vcmask 131072   ;;  %s12741_s25 = smov 48  }
  0x28   :  { %v10059_v31 = vpack.c.bf16 %v96_v30, %v95_v29  ;;  %v10069_v34 = vpack.c.bf16 %v98_v33, %v97_v32  ;;  %v99_v35 = vld [vmem:[%s12775_s27 + $0xb0] sm:$0xff]  ;;  %v100_v36 = vld [vmem:[%s12775_s27 + $0xb8] sm:$0xff]  ;;  %v104_v38 = vld [vmem:[%s12776_s2] sm:$0xff]  ;;  %s12782_s27 = sld [smem:[#allocation16_spill]]  ;;  %s12743_s8 = smov 32   ;;  %vm675_vm8 = vcmask 122880  }
  0x29   :  { %8802 = vmatpush1.bf16.msra.mxu0 %v9999_v13  ;;  %v10079_v37 = vpack.c.bf16 %v100_v36, %v99_v35  ;;  %v107_v39 = vld [vmem:[%s12776_s2 + $0x18] sm:$0xff]  ;;  %v106_v40 = vld [vmem:[%s12776_s2 + $0x10] sm:$0xff]  ;;  %v109_v41 = vld [vmem:[%s12776_s2 + $0x28] sm:$0x1]  ;;  %s12737_s1 = smov 112   ;;  %s12735_s5 = smov 96  }
  0x2a   :  { %8803 = vmatprep.subr.bf16.mxu0 %v9822_v3  ;;  %v108_v42 = vld [vmem:[%s12776_s2 + $0x20] sm:$0x1]  ;;  %v102_v47 = vld [vmem:[%s12777_s3 + $0x8] sm:$0xff]  ;;  %v103_v52 = vld [vmem:[%s12777_s3 + $0x10] sm:$0x1]  ;;  %s12733_s28 = smov 80  }
  0x2b   :  { %v101_v43 = vld [vmem:[%s12777_s3] sm:$0xff]  ;;  %vm10247_vm4 = vmpackc.low %vm449_vm3, %vm449_vm3  ;;  %s12745_s6 = smov 16   ;;  %s12788_s23 = smov 16   ;;  %vm930_vm9 = vcmask 261248   ;;  %vm1186_vm10 = vcmask 392448   ;;  %vm1442_vm11 = vcmask 523648  }
  0x2c   :  { %v7365_v29 = vld [vmem:[%s12778_s26] ss:$0 sm:$0xff]  ;;  %vm933_vm12 = vcmask 254080   ;;  %vm1189_vm13 = vcmask 385280   ;;  %vm1445_vm14 = vcmask 516480   ;;  %vm7161_vm15 = vcmask 1041409  }
  0x2d   :  { %8805 = vmatpush1.bf16.msra.mxu0 %v10009_v16  ;;  %v7366_v32 = vld [vmem:[%s12779_s29] ss:$0 sm:$0xff] }
  0x2e   :  { %8806 = vmatprep.subr.bf16.mxu0 %v9822_v3 }
  0x31   :  { %8808 = vmatpush1.bf16.msra.mxu0 %v10019_v19 }
  0x32   :  { %8809 = vmatprep.subr.bf16.mxu0 %v9822_v3 }
  0x35   :  { %8811 = vmatpush1.bf16.msra.mxu0 %v10029_v22 }
  0x36   :  { %8812 = vmatprep.subr.bf16.mxu0 %v9822_v3 }
  0x39   :  { %8814 = vmatpush1.bf16.msra.mxu0 %v10039_v25 }
  0x3a   :  { %8815 = vmatprep.subr.bf16.mxu0 %v9822_v3 }
  0x3d   :  { %8817 = vmatpush1.bf16.msra.mxu0 %v10049_v28 }
  0x3e   :  { %8818 = vmatprep.subr.bf16.mxu0 %v9822_v3 }
  0x41   :  { %8820 = vmatpush1.bf16.msra.mxu0 %v10059_v31 }
  0x42   :  { %8821 = vmatprep.subr.bf16.mxu0 %v9822_v3 }
  0x45   :  { %8823 = vmatpush1.bf16.msra.mxu0 %v10069_v34 }
  0x46   :  { %8824 = vmatprep.subr.bf16.mxu0 %v9822_v3 }
  0x49   :  { %8826 = vmatpush1.bf16.msra.mxu0 %v10079_v37 }
  0x4a   :  { %8843 = vmatprep.subr.bf16.mxu0 %v9822_v3 }
  0x4c   :  { %185 = vmatmul.mubr.f32.vlgmr.msra.gmra.mrb[0].mxu0 %v104_v38 }
  0x4d   :  { %7363 = vmatprep.mubr.msk.f32.mxu0 %vm110_vm0, %v107_v39 }
  0x50   :  { %190 = vmatmul.mubr.f32.gmra.mrb[2].mxu0 %v106_v40 }
  0x51   :  { %7364 = vmatprep.mubr.msk.f32.mxu0 %vm110_vm0, %v109_v41 }
  0x54   :  { %195 = vmatmul.mubr.f32.gmra.mrb[4].mxu0 %v108_v42 }
 0x11f   :  { %v186_v44 = vpop.f32.mrb[0].mxu0 }
 0x120   :  { %v187_v45 = vadd.f32 %v186_v44, %v101_v43  ;;  %v188_v46 = vpop.f32.mrb[1].mxu0 }
 0x122   :  { %v202_v48 = vsel %vm110_vm0, %v187_v45, 0.0 }
 0x123   :  { %v191_v49 = vpop.f32.mrb[2].mxu0  ;;  %203 = vadd.xlane.f32.xlu0 %v202_v48 }
 0x124   :  { %v192_v50 = vadd.f32 %v191_v49, %v102_v47  ;;  %v193_v51 = vpop.f32.mrb[3].mxu0 }
 0x126   :  { %v205_v53 = vsel %vm110_vm0, %v192_v50, 0.0 }
 0x127   :  { %v196_v54 = vpop.f32.mrb[4].mxu0  ;;  %206 = vadd.xlane.f32.xlu0 %v205_v53 }
 0x128   :  { %v197_v55 = vadd.f32 %v196_v54, %v103_v52  ;;  %v198_v56 = vpop.f32.mrb[5].mxu0 }
 0x12a   :  { %v209_v57 = vsel %vm208_vm1, %v197_v55, 0.0 }
 0x12b   :  { %210 = vadd.xlane.f32.xlu1 %v209_v57 }
 0x1b0   :  { %v204_v58 = vpop.xlane.xlu0 %203 }
 0x1b1   :  { %v213_v59 = vmul.f32 0.015625, %v204_v58 }
 0x1b3   :  { %v216_v60 = vsub.f32 %v187_v45, %v213_v59 }
 0x1b4   :  { %v207_v61 = vpop.xlane.xlu0 %206 }
 0x1b5   :  { %v214_v62 = vmul.f32 0.015625, %v207_v61  ;;  %v219_v63 = vmul.f32 %v216_v60, %v216_v60 }
 0x1b7   :  { %v217_v0 = vsub.f32 %v192_v50, %v214_v62  ;;  %v222_v1 = vsel %vm110_vm0, %v219_v63, 0.0  ;;  %v321_v63 = vld [vmem:[%s12780_s30 + $0x8] sm:$0xff] }
 0x1b8   :  { %v211_v2 = vpop.xlane.xlu1 %210  ;;  %223 = vadd.xlane.f32.xlu1 %v222_v1 }
 0x1b9   :  { %v215_v5 = vmul.f32 0.015625, %v211_v2  ;;  %v220_v7 = vmul.f32 %v217_v0, %v217_v0  ;;  %v320_v2 = vld [vmem:[%s12780_s30] sm:$0xff] }
 0x1bb   :  { %v218_v8 = vsub.f32 %v197_v55, %v215_v5  ;;  %v225_v10 = vsel %vm110_vm0, %v220_v7, 0.0  ;;  %v322_v5 = vld [vmem:[%s12780_s30 + $0x10] sm:$0xff] }
 0x1bc   :  { %226 = vadd.xlane.f32.xlu0 %v225_v10  ;;  %v8829_v7 = vpack.c.bf16 %v322_v5, %v320_v2  ;;  %v327_v10 = vld [vmem:[%s12780_s30 + $0x38] sm:$0xff]  ;;  %v336_v5 = vld [vmem:[%s12783_s0] sm:$0x3] }
 0x1bd   :  { %v221_v11 = vmul.f32 %v218_v8, %v218_v8 }
 0x1bf   :  { %v228_v12 = vsel %vm208_vm1, %v221_v11, 0.0 }
 0x1c0   :  { %229 = vadd.xlane.f32.xlu1 %v228_v12  ;;  %v324_v12 = vld [vmem:[%s12780_s30 + $0x20] sm:$0xff] }
 0x245   :  { %v224_v14 = vpop.xlane.xlu1 %223 }
 0x246   :  { %v231_v15 = vmul.f32 0.015625, %v224_v14  ;;  %v326_v14 = vld [vmem:[%s12780_s30 + $0x30] sm:$0xff] }
 0x248   :  { %v234_v17 = vadd.f32 1e-05, %v231_v15  ;;  %v8833_v15 = vpack.c.bf16 %v326_v14, %v324_v12 }
 0x249   :  { %v227_v18 = vpop.xlane.xlu0 %226 }
 0x24a   :  { %9455 = vrsqrt.f32 %v234_v17  ;;  %v232_v20 = vmul.f32 0.015625, %v227_v18  ;;  %v329_v17 = vld [vmem:[%s12780_s30 + $0x48] sm:$0xff]  ;;  %v331_v18 = vld [vmem:[%s12780_s30 + $0x58] sm:$0xff] }
 0x24c   :  { %v235_v21 = vadd.f32 1e-05, %v232_v20  ;;  %v8835_v20 = vpack.c.bf16 %v331_v18, %v329_v17 }
 0x24d   :  { %v230_v23 = vpop.xlane.xlu1 %229 }
 0x24e   :  { %9457 = vrsqrt.f32 %v235_v21  ;;  %v233_v24 = vmul.f32 0.015625, %v230_v23  ;;  %v328_v21 = vld [vmem:[%s12780_s30 + $0x40] sm:$0xff]  ;;  %v330_v23 = vld [vmem:[%s12780_s30 + $0x50] sm:$0xff] }
 0x250   :  { %v236_v26 = vadd.f32 1e-05, %v233_v24  ;;  %v8837_v24 = vpack.c.bf16 %v330_v23, %v328_v21 }
 0x252   :  { %9459 = vrsqrt.f32 %v236_v26  ;;  %v333_v26 = vld [vmem:[%s12780_s30 + $0x68] sm:$0xff] }
 0x254   :  { %v9456_v27 = vpop.eup %9455 }
 0x255   :  { %v240_v30 = vmul.f32 %v9456_v27, %v216_v60  ;;  %v335_v27 = vld [vmem:[%s12780_s30 + $0x78] sm:$0xff] }
 0x257   :  { %v249_v33 = vmul.f32 %v7365_v29, %v240_v30  ;;  %v8839_v30 = vpack.c.bf16 %v335_v27, %v333_v26 }
 0x258   :  { %v9458_v35 = vpop.eup %9457 }
 0x259   :  { %v10122_v36 = vadd.f32 %v7366_v32, %v249_v33  ;;  %v241_v38 = vmul.f32 %v9458_v35, %v217_v0  ;;  %v323_v0 = vld [vmem:[%s12780_s30 + $0x18] sm:$0xff]  ;;  %v9823_v33 = vmov 0.0  }
 0x25a   :  { %v8827_v1 = vpack.c.bf16 %v323_v0, %v321_v63  ;;  %421 = vmatprep.mubr.f32.mxu1 %v9823_v33  ;;  %8187 = vmatprep.mubr.msk.f32.mxu0 %vm9825_vm2, %v9823_v33 }
 0x25b   :  { %v263_v39 = vsel %vm110_vm0, %v10122_v36, 0.0  ;;  %v250_v40 = vmul.f32 %v7365_v29, %v241_v38 }
 0x25c   :  { %v9460_v41 = vpop.eup %9459  ;;  %264 = vadd.xlane.f32.xlu0 %v263_v39  ;;  %8828 = vmatprep.subr.bf16.mxu1 %v8827_v1  ;;  %v338_v1 = vlaneseq }
 0x25d   :  { %v10126_v42 = vadd.f32 %v7366_v32, %v250_v40  ;;  %v242_v43 = vmul.f32 %v9460_v41, %v218_v8  ;;  %8830 = vmatpush1.bf16.msra.mxu1 %v8829_v7  ;;  %v325_v8 = vld [vmem:[%s12780_s30 + $0x28] sm:$0xff] }
 0x25e   :  { %v8831_v11 = vpack.c.bf16 %v327_v10, %v325_v8  ;;  %v339_v2 = vshrl.u32 %v338_v1, 7 }
 0x25f   :  { %v266_v44 = vsel %vm110_vm0, %v10126_v42, 0.0  ;;  %v251_v45 = vmul.f32 %v7365_v29, %v242_v43  ;;  %v332_v29 = vld [vmem:[%s12780_s30 + $0x60] sm:$0xff] }
 0x260   :  { %267 = vadd.xlane.f32.xlu1 %v266_v44  ;;  %8832 = vmatprep.subr.bf16.mxu1 %v8831_v11  ;;  %v10221_v7 = vsub.s32 1, %v339_v2 }
 0x261   :  { %v10130_v46 = vadd.f32 %v7366_v32, %v251_v45  ;;  %8834 = vmatpush1.bf16.msra.mxu1 %v8833_v15  ;;  %v334_v32 = vld [vmem:[%s12780_s30 + $0x70] sm:$0xff] }
 0x262   :  { %8836 = vmatprep.subr.bf16.mxu1 %v8835_v20  ;;  %v8841_v35 = vpack.c.bf16 %v334_v32, %v332_v29  ;;  %v345_v11 = vrot.slane %v336_v5, %v10221_v7 }
 0x263   :  { %v269_v47 = vsel %vm208_vm1, %v10130_v46, 0.0 }
 0x264   :  { %270 = vadd.xlane.f32.xlu0 %v269_v47 }
 0x265   :  { %8838 = vmatpush1.bf16.msra.mxu1 %v8837_v24 }
 0x266   :  { %8840 = vmatprep.subr.bf16.mxu1 %v8839_v30 }
 0x269   :  { %8842 = vmatpush1.bf16.msra.mxu1 %v8841_v35 }
 0x26a   :  { %9297 = vmatprep.subr.bf16.mxu1 %v9822_v3 }
 0x2e9   :  { %v265_v48 = vpop.xlane.xlu0 %264 }
 0x2ea   :  { %v272_v49 = vmul.f32 0.015625, %v265_v48 }
 0x2ec   :  { %v10135_v50 = vsub.f32 %v10122_v36, %v272_v49 }
 0x2ed   :  { %v268_v51 = vpop.xlane.xlu1 %267 }
 0x2ee   :  { %v273_v52 = vmul.f32 0.015625, %v268_v51  ;;  %v278_v53 = vmul.f32 %v10135_v50, %v10135_v50  ;;  %v7367_v51 = vld [vmem:[%s12781_s4] ss:$0 sm:$0xff] }
 0x2f0   :  { %v10140_v54 = vsub.f32 %v10126_v42, %v273_v52  ;;  %v281_v55 = vsel %vm110_vm0, %v278_v53, 0.0  ;;  %v7368_v53 = vld [vmem:[%s12782_s27] ss:$0 sm:$0xff] }
 0x2f1   :  { %282 = vadd.xlane.f32.xlu1 %v281_v55  ;;  %v271_v56 = vpop.xlane.xlu0 %270 }
 0x2f2   :  { %v274_v57 = vmul.f32 0.015625, %v271_v56  ;;  %v279_v58 = vmul.f32 %v10140_v54, %v10140_v54 }
 0x2f4   :  { %v10146_v59 = vsub.f32 %v10130_v46, %v274_v57  ;;  %v284_v60 = vsel %vm110_vm0, %v279_v58, 0.0 }
 0x2f5   :  { %285 = vadd.xlane.f32.xlu0 %v284_v60 }
 0x2f6   :  { %v280_v61 = vmul.f32 %v10146_v59, %v10146_v59 }
 0x2f8   :  { %v287_v62 = vsel %vm208_vm1, %v280_v61, 0.0 }
 0x2f9   :  { %288 = vadd.xlane.f32.xlu1 %v287_v62 }
 0x37e   :  { %v283_v38 = vpop.xlane.xlu1 %282 }
 0x37f   :  { %v290_v39 = vmul.f32 0.015625, %v283_v38 }
 0x381   :  { %v293_v40 = vadd.f32 1e-05, %v290_v39 }
 0x382   :  { %v286_v41 = vpop.xlane.xlu0 %285 }
 0x383   :  { %9461 = vrsqrt.f32 %v293_v40  ;;  %v291_v43 = vmul.f32 0.015625, %v286_v41 }
 0x385   :  { %v294_v44 = vadd.f32 1e-05, %v291_v43 }
 0x386   :  { %v289_v45 = vpop.xlane.xlu1 %288 }
 0x387   :  { %9463 = vrsqrt.f32 %v294_v44  ;;  %v292_v47 = vmul.f32 0.015625, %v289_v45 }
 0x389   :  { %v295_v48 = vadd.f32 1e-05, %v292_v47 }
 0x38b   :  { %9465 = vrsqrt.f32 %v295_v48 }
 0x38d   :  { %v9462_v49 = vpop.eup %9461 }
 0x38e   :  { %v299_v52 = vmul.f32 %v9462_v49, %v10135_v50 }
 0x390   :  { %v308_v55 = vmul.f32 %v7367_v51, %v299_v52 }
 0x391   :  { %v9464_v56 = vpop.eup %9463 }
 0x392   :  { %v317_v57 = vadd.f32 %v7368_v53, %v308_v55  ;;  %v300_v58 = vmul.f32 %v9464_v56, %v10140_v54  ;;  %v10216_v54 = vsub.s32 0, %v339_v2 }
 0x394   :  { %7369 = vmatmul.mubr.msk.f32.vlgmr.msra.gmra.mrb[0].mxu1 %vm110_vm0, %v317_v57  ;;  %v309_v60 = vmul.f32 %v7367_v51, %v300_v58 }
 0x395   :  { %v9466_v61 = vpop.eup %9465  ;;  %427 = vmatprep.mubr.f32.mxu1 %v9823_v33 }
 0x396   :  { %v318_v62 = vadd.f32 %v7368_v53, %v309_v60  ;;  %v301_v63 = vmul.f32 %v9466_v61, %v10146_v59  ;;  %v341_v59 = vrot.slane %v336_v5, %v10216_v54 }
 0x398   :  { %7370 = vmatmul.mubr.msk.f32.gmra.mrb[2].mxu1 %vm110_vm0, %v318_v62  ;;  %v310_v50 = vmul.f32 %v7367_v51, %v301_v63 }
 0x399   :  { %433 = vmatprep.mubr.f32.mxu1 %v9823_v33 }
 0x39a   :  { %v319_v0 = vadd.f32 %v7368_v53, %v310_v50 }
 0x39c   :  { %7371 = vmatmul.mubr.msk.f32.gmra.mrb[4].mxu1 %vm110_vm0, %v319_v0 }
 0x39d   :  { %8190 = vmatprep.mubr.msk.f32.mxu1 %vm9825_vm2, %v9823_v33 }
 0x467   :  { %v423_v8 = vpop.f32.mrb[0].mxu1 }
 0x468   :  { %v425_v10 = vpop.f32.mrb[1].mxu1  ;;  %v10225_v14 = vadd.f32 %v423_v8, %v341_v59 }
 0x469   :  { %v426_v18 = vadd.f32 %v425_v10, %v345_v11 }
 0x46b   :  { %v429_v12 = vpop.f32.mrb[2].mxu1 }
 0x46c   :  { %v10227_v15 = vadd.f32 %v429_v12, %v341_v59  ;;  %v431_v17 = vpop.f32.mrb[3].mxu1 }
 0x46d   :  { %v432_v20 = vadd.f32 %v431_v17, %v345_v11 }
 0x46e   :  { %v10231_v21 = vpack.i.bf16 %v10227_v15, %v10225_v14 }
 0x46f   :  { %v435_v23 = vpop.f32.mrb[4].mxu1  ;;  %v8848_v24 = vpack.c.bf16 %v432_v20, %v426_v18  ;;  %v10233_v26 = vpack.i.bf16 %v432_v20, %v426_v18 }
 0x470   :  { %v10235_v27 = vadd.f32 %v435_v23, %v341_v59  ;;  %v437_v29 = vpop.f32.mrb[5].mxu1  ;;  %9316 = vrot.lane.b32.xlu0 %v10231_v21, %s12739_s7 }
 0x471   :  { %v10270_v41 = vadd.f32 %v437_v29, %v345_v11 }
 0x472   :  { %447 = vrot.lane.b32.xlu1 %v10235_v27, %s12739_s7  ;;  %s12787_s7 = smov 48  }
 0x4e2   :  { %v9317_v30 = vpop.permute.xlu0 %9316 }
 0x4e3   :  { %v9319_v32 = vunpack.i.h.bf16 %v9317_v30  ;;  %v9318_v35 = vunpack.i.l.bf16 %v9317_v30 }
 0x4e4   :  { %v448_v40 = vpop.permute.xlu1 %447 }
 0x4e5   :  { %v8844_v39 = vpack.c.bf16 %v9319_v32, %v9318_v35 }
 0x4e7   :  { %8846 = vmatpush3.bf16.xpose.msk.msra.mxu0 %vm10247_vm4, %v8844_v39  ;;  %9299 = vmatpush3.bf16.xpose.msk.msra.mxu1 %vm10247_vm4, %v8844_v39 }
 0x4e8   :  { %8185 = vmatprep.subr.mxu0 %v9823_v33  ;;  %9298 = vmatprep.subr.mxu1 %v9823_v33 }
 0x4ef   :  { %8186 = vmatpush3.xpose.msk.msra.mxu0 %vm449_vm3, %v448_v40  ;;  %9300 = vmatpush3.xpose.msk.msra.mxu1 %vm449_vm3, %v448_v40 }
 0x4f0   :  { %8847 = vmatprep.subr.bf16.mxu1 %v9822_v3  ;;  %8854 = vmatprep.subr.bf16.mxu0 %v9822_v3 }
 0x4f2   :  { %8188 = vmatmul.mubr.msk.f32.vlgmr.msra.gmra.mrb[6].mxu0 %vm449_vm3, %v10225_v14  ;;  %8191 = vmatmul.mubr.msk.f32.vlgmr.msra.gmra.mrb[6].mxu1 %vm449_vm3, %v10227_v15 }
 0x4f3   :  { %8849 = vmatpush3.bf16.msra.mxu1 %v8848_v24  ;;  %8193 = vmatprep.mubr.msk.f32.mxu1 %vm9825_vm2, %v9823_v33 }
 0x4f4   :  { %8200 = vmatprep.subr.mxu1 %v9823_v33  ;;  %8232 = vmatprep.mubr.msk.f32.mxu0 %vm9825_vm2, %v9823_v33 }
 0x4f6   :  { %8194 = vmatmul.mubr.msk.f32.gmra.mrb[8].mxu1 %vm449_vm3, %v10235_v27 }
 0x4f7   :  { %8201 = vmatpush3.msk.msra.mxu1 %vm589_vm5, %v10270_v41  ;;  %8202 = vmatprep.mubr.msk.f32.mxu1 %vm9825_vm2, %v9823_v33 }
 0x4f8   :  { %8850 = vmatprep.subr.bf16.mxu1 %v9822_v3 }
 0x5c5   :  { %v528_v43 = vpop.f32.mrb[6].mxu0  ;;  %v533_v44 = vpop.f32.mrb[6].mxu1 }
 0x5c6   :  { %v542_v45 = vmul.f32 0.25, %v528_v43  ;;  %v543_v47 = vmul.f32 0.25, %v533_v44  ;;  %v8189_v48 = vpop.f32.mrb[7].mxu0  ;;  %v8192_v49 = vpop.f32.mrb[7].mxu1 }
 0x5c8   :  { %v549_v51 = vsel %vm545_vm6, %v543_v47, -inf  ;;  %v546_v52 = vsel %vm545_vm6, %v542_v45, -inf }
 0x5c9   :  { %550 = vmax.xlane.f32.xlu0 %v549_v51  ;;  %v538_v53 = vpop.f32.mrb[8].mxu1  ;;  %547 = vmax.xlane.f32.xlu1 %v546_v52 }
 0x5ca   :  { %v544_v55 = vmul.f32 0.25, %v538_v53  ;;  %v8195_v56 = vpop.f32.mrb[9].mxu1 }
 0x5cc   :  { %v553_v57 = vsel %vm552_vm7, %v544_v55, -inf }
 0x5cd   :  { %554 = vmax.xlane.f32.xlu0 %v553_v57 }
 0x656   :  { %v551_v58 = vpop.xlane.xlu0 %550  ;;  %v548_v60 = vpop.xlane.xlu1 %547 }
 0x657   :  { %v557_v61 = vsub.f32 %v543_v47, %v551_v58  ;;  %v556_v62 = vsub.f32 %v542_v45, %v548_v60 }
 0x659   :  { %v561_v63 = vmul.f32 1.442695, %v557_v61  ;;  %v559_v50 = vmul.f32 1.442695, %v556_v62 }
 0x65a   :  { %v555_v8 = vpop.xlane.xlu0 %554 }
 0x65b   :  { %9467 = vpow2.f32 %v561_v63  ;;  %v558_v59 = vsub.f32 %v544_v55, %v555_v8 }
 0x65c   :  { %9469 = vpow2.f32 %v559_v50 }
 0x65d   :  { %v563_v10 = vmul.f32 1.442695, %v558_v59 }
 0x65f   :  { %9471 = vpow2.f32 %v563_v10 }
 0x665   :  { %v9468_v0 = vpop.eup %9467 }
 0x666   :  { %v9470_v1 = vpop.eup %9469  ;;  %v568_v2 = vsel %vm545_vm6, %v9468_v0, 0.0 }
 0x667   :  { %569 = vadd.xlane.f32.xlu0 %v568_v2  ;;  %v565_v5 = vsel %vm545_vm6, %v9470_v1, 0.0 }
 0x668   :  { %566 = vadd.xlane.f32.xlu1 %v565_v5 }
 0x669   :  { %v9472_v11 = vpop.eup %9471 }
 0x66a   :  { %v571_v12 = vsel %vm552_vm7, %v9472_v11, 0.0 }
 0x679   :  { %687 = vrot.lane.b32.xlu1 %v10235_v27, %s12741_s25 }
 0x67d   :  { %9326 = vrot.lane.b32.xlu1 %v10231_v21, %s12743_s8  ;;  %9321 = vrot.lane.b32.xlu0 %v10231_v21, %s12741_s25  ;;  %s12786_s25 = smov 32  }
 0x681   :  { %679 = vrot.lane.b32.xlu0 %v10227_v15, %s12737_s1 }
 0x685   :  { %945 = vrot.lane.b32.xlu0 %v10235_v27, %s12743_s8  ;;  %s12789_s8 = smov 64  }
 0x689   :  { %935 = vrot.lane.b32.xlu0 %v10225_v14, %s12735_s5 }
 0x68d   :  { %939 = vrot.lane.b32.xlu0 %v10235_v27, %s12735_s5 }
 0x691   :  { %1191 = vrot.lane.b32.xlu0 %v10225_v14, %s12733_s28 }
 0x695   :  { %1195 = vrot.lane.b32.xlu0 %v10235_v27, %s12733_s28 }
 0x6a1   :  { %572 = vadd.xlane.f32.xlu1 %v571_v12 }
 0x6b2   :  { %677 = vrot.lane.b32.xlu1 %v10225_v14, %s12737_s1 }
 0x6b6   :  { %681 = vrot.lane.b32.xlu1 %v10235_v27, %s12737_s1 }
 0x6ba   :  { %9331 = vrot.lane.b32.xlu1 %v10231_v21, %s12745_s6 }
 0x6be   :  { %937 = vrot.lane.b32.xlu1 %v10227_v15, %s12735_s5 }
 0x6c2   :  { %1201 = vrot.lane.b32.xlu1 %v10235_v27, %s12745_s6 }
 0x6c6   :  { %1193 = vrot.lane.b32.xlu1 %v10227_v15, %s12733_s28 }
 0x6f4   :  { %v570_v17 = vpop.xlane.xlu0 %569 }
 0x6f5   :  { %v567_v18 = vpop.xlane.xlu1 %566 }
 0x6f6   :  { %9473 = vrcp.f32 %v567_v18 }
 0x6f7   :  { %9475 = vrcp.f32 %v570_v17 }
 0x6f8   :  { %v9322_v14 = vpop.permute.xlu0 %9321 }
 0x6f9   :  { %v9324_v20 = vunpack.i.h.bf16 %v9322_v14  ;;  %v9323_v23 = vunpack.i.l.bf16 %v9322_v14  ;;  %v688_v27 = vpop.permute.xlu1 %687 }
 0x6fb   :  { %v8851_v21 = vpack.c.bf16 %v9324_v20, %v9323_v23 }
 0x6fc   :  { %v680_v48 = vpop.permute.xlu0 %679 }
 0x6fd   :  { %v9327_v32 = vpop.permute.xlu1 %9326 }
 0x6fe   :  { %v9329_v44 = vunpack.i.h.bf16 %v9327_v32  ;;  %v9328_v45 = vunpack.i.l.bf16 %v9327_v32 }
 0x700   :  { %v9474_v24 = vpop.eup %9473  ;;  %v8858_v49 = vpack.c.bf16 %v9329_v44, %v9328_v45  ;;  %v946_v52 = vpop.permute.xlu0 %945 }
 0x701   :  { %v577_v29 = vmul.f32 %v9474_v24, %v9470_v1  ;;  %v9476_v30 = vpop.eup %9475 }
 0x702   :  { %v578_v15 = vmul.f32 %v9476_v30, %v9468_v0 }
 0x703   :  { %8203 = vmatmul.mubr.msk.f32.vlgmr.msra.gmra.mrb[10].mxu1 %vm545_vm6, %v577_v29 }
 0x704   :  { %8853 = vmatpush3.bf16.xpose.msk.msra.mxu1 %vm10247_vm4, %v8851_v21  ;;  %8205 = vmatprep.mubr.msk.f32.mxu1 %vm9825_vm2, %v9823_v33  ;;  %v936_v56 = vpop.permute.xlu0 %935 }
 0x705   :  { %8215 = vmatprep.subr.mxu1 %v9823_v33 }
 0x707   :  { %8206 = vmatmul.mubr.msk.f32.gmra.mrb[12].mxu1 %vm545_vm6, %v578_v15 }
 0x708   :  { %8208 = vmatprep.mubr.msk.f32.mxu1 %vm9825_vm2, %v9823_v33  ;;  %v940_v60 = vpop.permute.xlu0 %939 }
 0x70c   :  { %8216 = vmatpush3.xpose.msk.msra.mxu1 %vm449_vm3, %v688_v27  ;;  %v1192_v62 = vpop.permute.xlu0 %1191 }
 0x70d   :  { %8857 = vmatprep.subr.bf16.mxu1 %v9822_v3 }
 0x710   :  { %v1196_v50 = vpop.permute.xlu0 %1195 }
 0x72e   :  { %v573_v35 = vpop.xlane.xlu1 %572 }
 0x72f   :  { %9477 = vrcp.f32 %v573_v35 }
 0x732   :  { %v678_v39 = vpop.permute.xlu1 %677 }
 0x736   :  { %v682_v47 = vpop.permute.xlu1 %681 }
 0x739   :  { %v9478_v40 = vpop.eup %9477 }
 0x73a   :  { %v579_v43 = vmul.f32 %v9478_v40, %v9472_v11  ;;  %v9332_v51 = vpop.permute.xlu1 %9331 }
 0x73b   :  { %v9334_v53 = vunpack.i.h.bf16 %v9332_v51  ;;  %v9333_v55 = vunpack.i.l.bf16 %v9332_v51 }
 0x73c   :  { %8209 = vmatmul.mubr.msk.f32.gmra.mrb[14].mxu1 %vm545_vm6, %v579_v43 }
 0x73d   :  { %8217 = vmatprep.mubr.msk.f32.mxu1 %vm9825_vm2, %v9823_v33  ;;  %v8865_v57 = vpack.c.bf16 %v9334_v53, %v9333_v55 }
 0x73e   :  { %v938_v58 = vpop.permute.xlu1 %937 }
 0x740   :  { %8218 = vmatmul.mubr.msk.f32.vlgmr.msra.gmra.mrb[16].mxu1 %vm449_vm3, %v678_v39 }
 0x741   :  { %8860 = vmatpush3.bf16.xpose.msk.msra.mxu1 %vm10247_vm4, %v8858_v49  ;;  %8220 = vmatprep.mubr.msk.f32.mxu1 %vm9825_vm2, %v9823_v33 }
 0x742   :  { %8245 = vmatprep.subr.mxu1 %v9823_v33  ;;  %v1202_v61 = vpop.permute.xlu1 %1201 }
 0x744   :  { %8221 = vmatmul.mubr.msk.f32.gmra.mrb[18].mxu1 %vm449_vm3, %v680_v48 }
 0x745   :  { %8223 = vmatprep.mubr.msk.f32.mxu1 %vm9825_vm2, %v9823_v33 }
 0x746   :  { %v1194_v63 = vpop.permute.xlu1 %1193 }
 0x748   :  { %8224 = vmatmul.mubr.msk.f32.gmra.mrb[20].mxu1 %vm449_vm3, %v682_v47 }
 0x749   :  { %8246 = vmatpush3.xpose.msk.msra.mxu1 %vm449_vm3, %v946_v52  ;;  %8247 = vmatprep.mubr.msk.f32.mxu1 %vm9825_vm2, %v9823_v33 }
 0x74a   :  { %8864 = vmatprep.subr.bf16.mxu1 %v9822_v3 }
 0x74c   :  { %8248 = vmatmul.mubr.msk.f32.vlgmr.msra.gmra.mrb[22].mxu1 %vm449_vm3, %v936_v56 }
 0x74d   :  { %8867 = vmatpush3.bf16.xpose.msk.msra.mxu1 %vm10247_vm4, %v8865_v57  ;;  %8250 = vmatprep.mubr.msk.f32.mxu1 %vm9825_vm2, %v9823_v33 }
 0x74e   :  { %8275 = vmatprep.subr.mxu1 %v9823_v33 }
 0x750   :  { %8251 = vmatmul.mubr.msk.f32.gmra.mrb[24].mxu1 %vm449_vm3, %v938_v58 }
 0x751   :  { %8253 = vmatprep.mubr.msk.f32.mxu1 %vm9825_vm2, %v9823_v33 }
 0x754   :  { %8254 = vmatmul.mubr.msk.f32.gmra.mrb[26].mxu1 %vm449_vm3, %v940_v60 }
 0x755   :  { %8276 = vmatpush3.xpose.msk.msra.mxu1 %vm449_vm3, %v1202_v61  ;;  %8277 = vmatprep.mubr.msk.f32.mxu1 %vm9825_vm2, %v9823_v33 }
 0x756   :  { %8871 = vmatprep.subr.bf16.mxu1 %v9822_v3 }
 0x758   :  { %8278 = vmatmul.mubr.msk.f32.vlgmr.msra.gmra.mrb[28].mxu1 %vm449_vm3, %v1192_v62 }
 0x759   :  { %8280 = vmatprep.mubr.msk.f32.mxu1 %vm9825_vm2, %v9823_v33 }
 0x75c   :  { %8281 = vmatmul.mubr.msk.f32.gmra.mrb[30].mxu1 %vm449_vm3, %v1194_v63 }
 0x75d   :  { %8283 = vmatprep.mubr.msk.f32.mxu1 %vm9825_vm2, %v9823_v33 }
 0x760   :  { %8284 = vmatmul.mubr.msk.f32.gmra.mrb[32].mxu1 %vm449_vm3, %v1196_v50 }
 0x761   :  { %8317 = vmatprep.mubr.msk.f32.mxu1 %vm9825_vm2, %v9823_v33 }
 0x7d6   :  { %v659_v0 = vpop.f32.mrb[10].mxu1 }
 0x7d7   :  { %673 = vst.msk [vmem:[#allocation2] sm:$0xff] %vm449_vm3, %v659_v0  ;;  %v8204_v1 = vpop.f32.mrb[11].mxu1 }
 0x7da   :  { %v664_v2 = vpop.f32.mrb[12].mxu1 }
 0x7db   :  { %674 = vst.msk [vmem:[#allocation2 + $0x8] sm:$0xff] %vm449_vm3, %v664_v2  ;;  %v8207_v5 = vpop.f32.mrb[13].mxu1 }
 0x80f   :  { %v669_v8 = vpop.f32.mrb[14].mxu1 }
 0x810   :  { %676 = vst.msk [vmem:[#allocation2 + $0x10] sm:$0x1] %vm675_vm8, %v669_v8  ;;  %v8210_v59 = vpop.f32.mrb[15].mxu1 }
 0x813   :  { %v767_v10 = vpop.f32.mrb[16].mxu1 }
 0x814   :  { %v781_v11 = vmul.f32 0.25, %v767_v10  ;;  %v8219_v12 = vpop.f32.mrb[17].mxu1 }
 0x816   :  { %v784_v17 = vsel %vm545_vm6, %v781_v11, -inf }
 0x817   :  { %785 = vmax.xlane.f32.xlu1 %v784_v17  ;;  %v772_v18 = vpop.f32.mrb[18].mxu1 }
 0x818   :  { %v782_v14 = vmul.f32 0.25, %v772_v18  ;;  %v8222_v20 = vpop.f32.mrb[19].mxu1 }
 0x81a   :  { %v787_v23 = vsel %vm545_vm6, %v782_v14, -inf }
 0x81b   :  { %788 = vmax.xlane.f32.xlu0 %v787_v23  ;;  %v777_v24 = vpop.f32.mrb[20].mxu1 }
 0x81c   :  { %v783_v29 = vmul.f32 0.25, %v777_v24  ;;  %v8225_v30 = vpop.f32.mrb[21].mxu1 }
 0x81e   :  { %v790_v21 = vsel %vm552_vm7, %v783_v29, -inf }
 0x81f   :  { %791 = vmax.xlane.f32.xlu0 %v790_v21  ;;  %v1025_v15 = vpop.f32.mrb[22].mxu1 }
 0x820   :  { %v1039_v27 = vmul.f32 0.25, %v1025_v15  ;;  %v8249_v32 = vpop.f32.mrb[23].mxu1 }
 0x822   :  { %v1042_v35 = vsel %vm545_vm6, %v1039_v27, -inf }
 0x823   :  { %1043 = vmax.xlane.f32.xlu0 %v1042_v35  ;;  %v1030_v39 = vpop.f32.mrb[24].mxu1 }
 0x824   :  { %v1040_v40 = vmul.f32 0.25, %v1030_v39  ;;  %v8252_v43 = vpop.f32.mrb[25].mxu1 }
 0x826   :  { %v1045_v44 = vsel %vm545_vm6, %v1040_v40, -inf }
 0x827   :  { %1046 = vmax.xlane.f32.xlu1 %v1045_v44  ;;  %v1035_v45 = vpop.f32.mrb[26].mxu1 }
 0x828   :  { %v1041_v47 = vmul.f32 0.25, %v1035_v45  ;;  %v8255_v48 = vpop.f32.mrb[27].mxu1 }
 0x82a   :  { %v1048_v49 = vsel %vm552_vm7, %v1041_v47, -inf }
 0x82b   :  { %1049 = vmax.xlane.f32.xlu0 %v1048_v49  ;;  %v1281_v51 = vpop.f32.mrb[28].mxu1 }
 0x82c   :  { %v1295_v52 = vmul.f32 0.25, %v1281_v51  ;;  %v8279_v53 = vpop.f32.mrb[29].mxu1 }
 0x82e   :  { %v1298_v55 = vsel %vm545_vm6, %v1295_v52, -inf }
 0x82f   :  { %1299 = vmax.xlane.f32.xlu1 %v1298_v55  ;;  %v1286_v56 = vpop.f32.mrb[30].mxu1 }
 0x830   :  { %v1296_v57 = vmul.f32 0.25, %v1286_v56  ;;  %v8282_v58 = vpop.f32.mrb[31].mxu1 }
 0x832   :  { %v1301_v60 = vsel %vm545_vm6, %v1296_v57, -inf }
 0x833   :  { %1302 = vmax.xlane.f32.xlu0 %v1301_v60  ;;  %v1291_v61 = vpop.f32.mrb[32].mxu1 }
 0x834   :  { %v10377_v62 = vmul.f32 0.25, %v1291_v61  ;;  %v8285_v63 = vpop.f32.mrb[33].mxu1 }
 0x836   :  { %v1304_v50 = vsel %vm552_vm7, %v10377_v62, -inf }
 0x837   :  { %1305 = vmax.xlane.f32.xlu1 %v1304_v50 }
 0x848   :  { %9336 = vrot.lane.b32.xlu1 %v10233_v26, %s12737_s1 }
 0x849   :  { %823 = vrot.lane.b32.xlu0 %v10270_v41, %s12737_s1  ;;  %s12791_s1 = smov 96  }
 0x84d   :  { %9341 = vrot.lane.b32.xlu0 %v10233_v26, %s12735_s5 }
 0x8a4   :  { %v786_v0 = vpop.xlane.xlu1 %785 }
 0x8a5   :  { %v793_v1 = vsub.f32 %v781_v11, %v786_v0 }
 0x8a7   :  { %v796_v2 = vmul.f32 1.442695, %v793_v1 }
 0x8a8   :  { %v789_v5 = vpop.xlane.xlu0 %788 }
 0x8a9   :  { %9479 = vpow2.f32 %v796_v2  ;;  %v794_v8 = vsub.f32 %v782_v14, %v789_v5 }
 0x8ab   :  { %v798_v59 = vmul.f32 1.442695, %v794_v8 }
 0x8ac   :  { %v792_v10 = vpop.xlane.xlu0 %791 }
 0x8ad   :  { %9481 = vpow2.f32 %v798_v59  ;;  %v795_v12 = vsub.f32 %v783_v29, %v792_v10 }
 0x8af   :  { %v800_v17 = vmul.f32 1.442695, %v795_v12 }
 0x8b0   :  { %v1044_v18 = vpop.xlane.xlu0 %1043 }
 0x8b1   :  { %9483 = vpow2.f32 %v800_v17  ;;  %v1051_v20 = vsub.f32 %v1039_v27, %v1044_v18 }
 0x8b3   :  { %v10387_v23 = vpop.eup %9479  ;;  %v1054_v24 = vmul.f32 1.442695, %v1051_v20 }
 0x8b4   :  { %v1047_v30 = vpop.xlane.xlu1 %1046  ;;  %v802_v21 = vsel %vm545_vm6, %v10387_v23, 0.0 }
 0x8b5   :  { %9485 = vpow2.f32 %v1054_v24  ;;  %v1052_v11 = vsub.f32 %v1040_v40, %v1047_v30  ;;  %803 = vadd.xlane.f32.xlu0 %v802_v21 }
 0x8b7   :  { %v10391_v15 = vpop.eup %9481  ;;  %v1056_v14 = vmul.f32 1.442695, %v1052_v11 }
 0x8b8   :  { %v1050_v32 = vpop.xlane.xlu0 %1049  ;;  %v805_v29 = vsel %vm545_vm6, %v10391_v15, 0.0 }
 0x8b9   :  { %9487 = vpow2.f32 %v1056_v14  ;;  %v1053_v35 = vsub.f32 %v1041_v47, %v1050_v32  ;;  %806 = vadd.xlane.f32.xlu1 %v805_v29 }
 0x8bb   :  { %v10395_v27 = vpop.eup %9483  ;;  %v1058_v39 = vmul.f32 1.442695, %v1053_v35 }
 0x8bc   :  { %v1300_v43 = vpop.xlane.xlu1 %1299  ;;  %v808_v44 = vsel %vm552_vm7, %v10395_v27, 0.0 }
 0x8bd   :  { %9489 = vpow2.f32 %v1058_v39  ;;  %v1307_v40 = vsub.f32 %v1295_v52, %v1300_v43  ;;  %809 = vadd.xlane.f32.xlu0 %v808_v44 }
 0x8bf   :  { %v10399_v45 = vpop.eup %9485  ;;  %v1310_v48 = vmul.f32 1.442695, %v1307_v40 }
 0x8c0   :  { %v1303_v49 = vpop.xlane.xlu0 %1302  ;;  %v1060_v51 = vsel %vm545_vm6, %v10399_v45, 0.0 }
 0x8c1   :  { %9491 = vpow2.f32 %v1310_v48  ;;  %v1308_v47 = vsub.f32 %v1296_v57, %v1303_v49  ;;  %1061 = vadd.xlane.f32.xlu1 %v1060_v51 }
 0x8c3   :  { %v10403_v53 = vpop.eup %9487  ;;  %v1312_v55 = vmul.f32 1.442695, %v1308_v47 }
 0x8c4   :  { %v1306_v56 = vpop.xlane.xlu1 %1305  ;;  %v1063_v58 = vsel %vm545_vm6, %v10403_v53, 0.0  ;;  %v824_v8 = vpop.permute.xlu0 %823 }
 0x8c5   :  { %9493 = vpow2.f32 %v1312_v55  ;;  %1064 = vadd.xlane.f32.xlu0 %v1063_v58  ;;  %v1309_v59 = vsub.f32 %v10377_v62, %v1306_v56 }
 0x8c7   :  { %v10407_v52 = vpop.eup %9489  ;;  %v1314_v10 = vmul.f32 1.442695, %v1309_v59 }
 0x8c8   :  { %v9337_v60 = vpop.permute.xlu1 %9336  ;;  %v1066_v61 = vsel %vm552_vm7, %v10407_v52, 0.0  ;;  %v9342_v18 = vpop.permute.xlu0 %9341 }
 0x8c9   :  { %v9339_v63 = vunpack.i.h.bf16 %v9337_v60  ;;  %1067 = vadd.xlane.f32.xlu0 %v1066_v61  ;;  %v9338_v50 = vunpack.i.l.bf16 %v9337_v60  ;;  %9495 = vpow2.f32 %v1314_v10  ;;  %v9344_v30 = vunpack.i.h.bf16 %v9342_v18  ;;  %v1450_v10 = vld [vmem:[%s12708_s9] sm:$0xff] }
 0x8ca   :  { %v9343_v21 = vunpack.i.l.bf16 %v9342_v18 }
 0x8cb   :  { %v10411_v57 = vpop.eup %9491  ;;  %v8855_v0 = vpack.c.bf16 %v9339_v63, %v9338_v50 }
 0x8cc   :  { %v1316_v1 = vsel %vm545_vm6, %v10411_v57, 0.0  ;;  %v8862_v14 = vpack.c.bf16 %v9344_v30, %v9343_v21  ;;  %v1454_v21 = vld [vmem:[%s12708_s9 + $0x20] sm:$0xff] }
 0x8cd   :  { %1317 = vadd.xlane.f32.xlu0 %v1316_v1  ;;  %8856 = vmatpush3.bf16.msra.mxu0 %v8855_v0 }
 0x8ce   :  { %8230 = vmatprep.subr.mxu0 %v9823_v33 }
 0x8cf   :  { %v10415_v2 = vpop.eup %9493 }
 0x8d0   :  { %v1319_v5 = vsel %vm545_vm6, %v10415_v2, 0.0 }
 0x8d1   :  { %1320 = vadd.xlane.f32.xlu1 %v1319_v5  ;;  %8231 = vmatpush3.msk.msra.mxu0 %vm589_vm5, %v824_v8 }
 0x8d2   :  { %8861 = vmatprep.subr.bf16.mxu0 %v9822_v3 }
 0x8d3   :  { %v10429_v12 = vpop.eup %9495 }
 0x8d4   :  { %v1322_v17 = vsel %vm552_vm7, %v10429_v12, 0.0 }
 0x8e2   :  { %9346 = vrot.lane.b32.xlu1 %v10233_v26, %s12733_s28 }
 0x8e3   :  { %1079 = vrot.lane.b32.xlu0 %v10270_v41, %s12735_s5  ;;  %s12792_s5 = smov 80  }
 0x8e6   :  { %1335 = vrot.lane.b32.xlu1 %v10270_v41, %s12733_s28  ;;  %s12799_s28 = sld [smem:[#allocation24_spill]] }
 0x902   :  { %1323 = vadd.xlane.f32.xlu0 %v1322_v17 }
 0x942   :  { %v804_v20 = vpop.xlane.xlu0 %803 }
 0x943   :  { %9497 = vrcp.f32 %v804_v20 }
 0x946   :  { %v807_v26 = vpop.xlane.xlu1 %806 }
 0x947   :  { %9499 = vrcp.f32 %v807_v26  ;;  %v1452_v26 = vld [vmem:[%s12708_s9 + $0x10] sm:$0xff] }
 0x94a   :  { %v810_v24 = vpop.xlane.xlu0 %809 }
 0x94b   :  { %9501 = vrcp.f32 %v810_v24  ;;  %v1453_v24 = vld [vmem:[%s12708_s9 + $0x18] sm:$0xff] }
 0x94c   :  { %v8875_v30 = vpack.c.bf16 %v1453_v24, %v1452_v26 }
 0x94d   :  { %v9498_v41 = vpop.eup %9497 }
 0x94e   :  { %v1062_v11 = vpop.xlane.xlu1 %1061  ;;  %v814_v62 = vmul.f32 %v9498_v41, %v10387_v23  ;;  %v1455_v41 = vld [vmem:[%s12708_s9 + $0x28] sm:$0xff] }
 0x94f   :  { %9503 = vrcp.f32 %v1062_v11 }
 0x950   :  { %8233 = vmatmul.mubr.msk.f32.vlgmr.msra.gmra.mrb[8].mxu0 %vm545_vm6, %v814_v62  ;;  %v8878_v62 = vpack.c.bf16 %v1455_v41, %v1454_v21 }
 0x951   :  { %v9500_v32 = vpop.eup %9499  ;;  %8863 = vmatpush3.bf16.msra.mxu0 %v8862_v14  ;;  %8235 = vmatprep.mubr.msk.f32.mxu0 %vm9825_vm2, %v9823_v33 }
 0x952   :  { %v1065_v29 = vpop.xlane.xlu0 %1064  ;;  %v815_v35 = vmul.f32 %v9500_v32, %v10391_v15  ;;  %8260 = vmatprep.subr.mxu0 %v9823_v33  ;;  %v1456_v32 = vld [vmem:[%s12708_s9 + $0x30] sm:$0xff] }
 0x953   :  { %9505 = vrcp.f32 %v1065_v29  ;;  %v1457_v29 = vld [vmem:[%s12708_s9 + $0x38] sm:$0xff] }
 0x954   :  { %8236 = vmatmul.mubr.msk.f32.gmra.mrb[10].mxu0 %vm545_vm6, %v815_v35 }
 0x955   :  { %v9502_v39 = vpop.eup %9501  ;;  %8238 = vmatprep.mubr.msk.f32.mxu0 %vm9825_vm2, %v9823_v33 }
 0x956   :  { %v1068_v23 = vpop.xlane.xlu0 %1067  ;;  %v816_v43 = vmul.f32 %v9502_v39, %v10395_v27  ;;  %v8881_v39 = vpack.c.bf16 %v1457_v29, %v1456_v32 }
 0x957   :  { %9507 = vrcp.f32 %v1068_v23 }
 0x958   :  { %8239 = vmatmul.mubr.msk.f32.gmra.mrb[12].mxu0 %vm545_vm6, %v816_v43 }
 0x959   :  { %8262 = vmatprep.mubr.msk.f32.mxu0 %vm9825_vm2, %v9823_v33  ;;  %v9504_v15 = vpop.eup %9503 }
 0x95a   :  { %v1318_v44 = vpop.xlane.xlu0 %1317  ;;  %v1072_v40 = vmul.f32 %v9504_v15, %v10399_v45 }
 0x95b   :  { %9509 = vrcp.f32 %v1318_v44 }
 0x95d   :  { %v9506_v51 = vpop.eup %9505 }
 0x95e   :  { %v1080_v48 = vpop.permute.xlu0 %1079  ;;  %v1321_v49 = vpop.xlane.xlu1 %1320  ;;  %v1073_v47 = vmul.f32 %v9506_v51, %v10403_v53 }
 0x95f   :  { %8261 = vmatpush3.msk.msra.mxu0 %vm589_vm5, %v1080_v48  ;;  %9511 = vrcp.f32 %v1321_v49 }
 0x960   :  { %8263 = vmatmul.mubr.msk.f32.vlgmr.msra.gmra.mrb[14].mxu0 %vm545_vm6, %v1072_v40  ;;  %8868 = vmatprep.subr.bf16.mxu0 %v9822_v3 }
 0x961   :  { %8265 = vmatprep.mubr.msk.f32.mxu0 %vm9825_vm2, %v9823_v33  ;;  %v9508_v55 = vpop.eup %9507 }
 0x962   :  { %v9347_v27 = vpop.permute.xlu1 %9346  ;;  %v1074_v60 = vmul.f32 %v9508_v55, %v10407_v52 }
 0x963   :  { %v9349_v56 = vunpack.i.h.bf16 %v9347_v27  ;;  %v9348_v58 = vunpack.i.l.bf16 %v9347_v27 }
 0x964   :  { %8266 = vmatmul.mubr.msk.f32.gmra.mrb[16].mxu0 %vm545_vm6, %v1073_v47 }
 0x965   :  { %v8869_v45 = vpack.c.bf16 %v9349_v56, %v9348_v58  ;;  %8268 = vmatprep.mubr.msk.f32.mxu0 %vm9825_vm2, %v9823_v33  ;;  %v9510_v61 = vpop.eup %9509 }
 0x966   :  { %v1328_v53 = vmul.f32 %v9510_v61, %v10411_v57  ;;  %v1336_v63 = vpop.permute.xlu1 %1335 }
 0x967   :  { %8870 = vmatpush3.bf16.msra.mxu0 %v8869_v45 }
 0x968   :  { %8269 = vmatmul.mubr.msk.f32.gmra.mrb[18].mxu0 %vm545_vm6, %v1074_v60  ;;  %8290 = vmatprep.subr.mxu0 %v9823_v33 }
 0x969   :  { %8292 = vmatprep.mubr.msk.f32.mxu0 %vm9825_vm2, %v9823_v33  ;;  %v9512_v50 = vpop.eup %9511 }
 0x96a   :  { %v1329_v52 = vmul.f32 %v9512_v50, %v10415_v2 }
 0x96b   :  { %8291 = vmatpush3.msk.msra.mxu0 %vm589_vm5, %v1336_v63 }
 0x96c   :  { %8293 = vmatmul.mubr.msk.f32.vlgmr.msra.gmra.mrb[20].mxu0 %vm545_vm6, %v1328_v53 }
 0x96d   :  { %8295 = vmatprep.mubr.msk.f32.mxu0 %vm9825_vm2, %v9823_v33 }
 0x970   :  { %8296 = vmatmul.mubr.msk.f32.gmra.mrb[22].mxu0 %vm545_vm6, %v1329_v52 }
 0x971   :  { %8298 = vmatprep.mubr.msk.f32.mxu0 %vm9825_vm2, %v9823_v33 }
 0x98f   :  { %v1324_v0 = vpop.xlane.xlu0 %1323 }
 0x990   :  { %9513 = vrcp.f32 %v1324_v0 }
 0x99a   :  { %v9514_v1 = vpop.eup %9513 }
 0x99b   :  { %v1330_v57 = vmul.f32 %v9514_v1, %v10429_v12  ;;  %v1451_v12 = vld [vmem:[%s12708_s9 + $0x8] sm:$0xff] }
 0x99c   :  { %v8872_v18 = vpack.c.bf16 %v1451_v12, %v1450_v10 }
 0x99d   :  { %8299 = vmatmul.mubr.msk.f32.gmra.mrb[24].mxu0 %vm545_vm6, %v1330_v57  ;;  %v7415_v57 = vld [vmem:[%s12709_s10] ss:$0 sm:$0xff] }
 0x99e   :  { %1720 = vmatprep.mubr.f32.mxu0 %v9823_v33  ;;  %8873 = vmatpush3.bf16.msra.mxu1 %v8872_v18 }
 0x99f   :  { %8874 = vmatprep.subr.bf16.mxu1 %v9822_v3 }
 0x9a2   :  { %8876 = vmatpush3.bf16.msra.mxu1 %v8875_v30 }
 0x9a3   :  { %8877 = vmatprep.subr.bf16.mxu1 %v9822_v3 }
 0x9a6   :  { %8879 = vmatpush3.bf16.msra.mxu1 %v8878_v62 }
 0x9a7   :  { %8880 = vmatprep.subr.bf16.mxu1 %v9822_v3 }
 0x9aa   :  { %8882 = vmatpush3.bf16.msra.mxu1 %v8881_v39 }
 0xa23   :  { %v904_v5 = vpop.f32.mrb[8].mxu0 }
 0xa24   :  { %921 = vrot.lane.b32.xlu0 %v904_v5, %s12745_s6  ;;  %v8234_v8 = vpop.f32.mrb[9].mxu0 }
 0xa27   :  { %v909_v59 = vpop.f32.mrb[10].mxu0 }
 0xa28   :  { %923 = vrot.lane.b32.xlu1 %v909_v59, %s12745_s6  ;;  %v8237_v2 = vpop.f32.mrb[11].mxu0  ;;  %s12790_s6 = smov 112  }
 0xa2b   :  { %v914_v17 = vpop.f32.mrb[12].mxu0 }
 0xa2c   :  { %v8240_v20 = vpop.f32.mrb[13].mxu0 }
 0xa33   :  { %v1160_v11 = vpop.f32.mrb[14].mxu0 }
 0xa34   :  { %1177 = vrot.lane.b32.xlu1 %v1160_v11, %s12786_s25  ;;  %v8264_v14 = vpop.f32.mrb[15].mxu0 }
 0xa37   :  { %v1165_v35 = vpop.f32.mrb[16].mxu0 }
 0xa38   :  { %1179 = vrot.lane.b32.xlu1 %v1165_v35, %s12786_s25  ;;  %v8267_v23 = vpop.f32.mrb[17].mxu0 }
 0xa39   :  { %v1620_v23 = vld [vmem:[%s12712_s13 + $0x8] sm:$0xff] }
 0xa3b   :  { %v1170_v43 = vpop.f32.mrb[18].mxu0 }
 0xa3c   :  { %1181 = vrot.lane.b32.xlu0 %v1170_v43, %s12786_s25  ;;  %v8270_v44 = vpop.f32.mrb[19].mxu0  ;;  %v1622_v43 = vld [vmem:[%s12712_s13 + $0x18] sm:$0xff] }
 0xa3d   :  { %v8883_v44 = vpack.c.bf16 %v1622_v43, %v1620_v23 }
 0xa3f   :  { %v1416_v15 = vpop.f32.mrb[20].mxu0  ;;  %8884 = vmatprep.subr.bf16.mxu0 %v8883_v44 }
 0xa40   :  { %1433 = vrot.lane.b32.xlu1 %v1416_v15, %s12787_s7  ;;  %v8294_v40 = vpop.f32.mrb[21].mxu0  ;;  %v1619_v15 = vld [vmem:[%s12712_s13] sm:$0xff] }
 0xa41   :  { %v1621_v40 = vld [vmem:[%s12712_s13 + $0x10] sm:$0xff] }
 0xa43   :  { %v1421_v48 = vpop.f32.mrb[22].mxu0 }
 0xa44   :  { %1435 = vrot.lane.b32.xlu1 %v1421_v48, %s12787_s7  ;;  %v8297_v49 = vpop.f32.mrb[23].mxu0  ;;  %v8885_v48 = vpack.c.bf16 %v1621_v40, %v1619_v15 }
 0xa45   :  { %v1624_v49 = vld [vmem:[%s12712_s13 + $0x28] sm:$0xff] }
 0xa46   :  { %8886 = vmatpush1.bf16.msra.mxu0 %v8885_v48 }
 0xa48   :  { %925 = vrot.lane.b32.xlu1 %v914_v17, %s12788_s23 }
 0xa70   :  { %v1426_v51 = vpop.f32.mrb[24].mxu0 }
 0xa71   :  { %1437 = vrot.lane.b32.xlu1 %v1426_v51, %s12787_s7  ;;  %v8300_v27 = vpop.f32.mrb[25].mxu0  ;;  %v1626_v51 = vld [vmem:[%s12712_s13 + $0x38] sm:$0xff] }
 0xa72   :  { %v8887_v27 = vpack.c.bf16 %v1626_v51, %v1624_v49 }
 0xa74   :  { %8888 = vmatprep.subr.bf16.mxu0 %v8887_v27 }
 0xa96   :  { %v922_v47 = vpop.permute.xlu0 %921 }
 0xa97   :  { %931 = vst.msk [vmem:[#allocation2] sm:$0xff] %vm930_vm9, %v922_v47  ;;  %v1623_v47 = vld [vmem:[%s12712_s13 + $0x20] sm:$0xff] }
 0xa9a   :  { %v924_v55 = vpop.permute.xlu1 %923 }
 0xa9b   :  { %932 = vst.msk [vmem:[#allocation2 + $0x8] sm:$0xff] %vm930_vm9, %v924_v55  ;;  %v1625_v55 = vld [vmem:[%s12712_s13 + $0x30] sm:$0xff] }
 0xaa6   :  { %v1178_v56 = vpop.permute.xlu1 %1177 }
 0xaa7   :  { %1187 = vst.msk [vmem:[#allocation2] sm:$0xff] %vm1186_vm10, %v1178_v56  ;;  %v8889_v56 = vpack.c.bf16 %v1625_v55, %v1623_v47  ;;  %v1810_v47 = vld [vmem:[%s12714_s15 + $0x88] sm:$0xff] }
 0xaa9   :  { %8890 = vmatpush1.bf16.msra.mxu0 %v8889_v56  ;;  %v1793_v56 = vld [vmem:[%s12714_s15] sm:$0xff] }
 0xaaa   :  { %v1180_v58 = vpop.permute.xlu1 %1179 }
 0xaab   :  { %1188 = vst.msk [vmem:[#allocation2 + $0x8] sm:$0xff] %vm1186_vm10, %v1180_v58  ;;  %v1628_v58 = vld [vmem:[%s12712_s13 + $0x48] sm:$0xff] }
 0xaae   :  { %v1182_v63 = vpop.permute.xlu0 %1181 }
 0xab2   :  { %v1434_v45 = vpop.permute.xlu1 %1433 }
 0xab3   :  { %1443 = vst.msk [vmem:[#allocation2] sm:$0xff] %vm1442_vm11, %v1434_v45  ;;  %v1630_v45 = vld [vmem:[%s12712_s13 + $0x58] sm:$0xff] }
 0xab6   :  { %v1436_v60 = vpop.permute.xlu1 %1435 }
 0xab7   :  { %1444 = vst.msk [vmem:[#allocation2 + $0x8] sm:$0xff] %vm1442_vm11, %v1436_v60  ;;  %v8891_v60 = vpack.c.bf16 %v1630_v45, %v1628_v58  ;;  %v1794_v58 = vld [vmem:[%s12714_s15 + $0x8] sm:$0xff] }
 0xab8   :  { %v8901_v45 = vpack.c.bf16 %v1794_v58, %v1793_v56  ;;  %v1635_v58 = vld [vmem:[%s12713_s14] sm:$0x3] }
 0xab9   :  { %8892 = vmatprep.subr.bf16.mxu0 %v8891_v60  ;;  %v1811_v60 = vld [vmem:[%s12714_s15 + $0x90] sm:$0xff] }
 0xaba   :  { %v926_v61 = vpop.permute.xlu1 %925  ;;  %v1447_v53 = vld [vmem:[#allocation2] sm:$0xff] }
 0xabb   :  { %934 = vst.msk [vmem:[#allocation2 + $0x10] sm:$0x1] %vm933_vm12, %v926_v61  ;;  %8318 = vmatmul.mubr.msk.f32.vlgmr.msra.gmra.mrb[34].mxu1 %vm110_vm0, %v1447_v53  ;;  %v1627_v61 = vld [vmem:[%s12712_s13 + $0x40] sm:$0xff]  ;;  %v1629_v53 = vld [vmem:[%s12712_s13 + $0x50] sm:$0xff] }
 0xabc   :  { %8320 = vmatprep.mubr.msk.f32.mxu1 %vm9825_vm2, %v9823_v33  ;;  %1190 = vst.msk [vmem:[#allocation2 + $0x10] sm:$0x1] %vm1189_vm13, %v1182_v63  ;;  %v8893_v63 = vpack.c.bf16 %v1629_v53, %v1627_v61  ;;  %v1812_v61 = vld [vmem:[%s12714_s15 + $0x98] sm:$0xff] }
 0xabd   :  { %v8903_v53 = vpack.c.bf16 %v1812_v61, %v1811_v60  ;;  %v1644_v60 = vrot.slane %v1635_v58, %v10221_v7 }
 0xabe   :  { %v1448_v50 = vld [vmem:[#allocation2 + $0x8] sm:$0xff]  ;;  %8894 = vmatpush1.bf16.msra.mxu0 %v8893_v63  ;;  %v1795_v63 = vld [vmem:[%s12714_s15 + $0x10] sm:$0xff] }
 0xabf   :  { %8321 = vmatmul.mubr.msk.f32.gmra.mrb[36].mxu1 %vm110_vm0, %v1448_v50  ;;  %v1632_v50 = vld [vmem:[%s12712_s13 + $0x68] sm:$0xff] }
 0xac0   :  { %8323 = vmatprep.mubr.msk.f32.mxu1 %vm9825_vm2, %v9823_v33 }
 0xae3   :  { %v1438_v52 = vpop.permute.xlu1 %1437 }
 0xae4   :  { %1446 = vst.msk [vmem:[#allocation2 + $0x10] sm:$0x1] %vm1445_vm14, %v1438_v52  ;;  %v1634_v52 = vld [vmem:[%s12712_s13 + $0x78] sm:$0xff] }
 0xaeb   :  { %v1449_v0 = vld [vmem:[#allocation2 + $0x10] sm:$0x1] }
 0xaec   :  { %8324 = vmatmul.mubr.msk.f32.gmra.mrb[38].mxu1 %vm110_vm0, %v1449_v0  ;;  %v8895_v0 = vpack.c.bf16 %v1634_v52, %v1632_v50  ;;  %v1796_v50 = vld [vmem:[%s12714_s15 + $0x18] sm:$0xff] }
 0xaed   :  { %v8905_v52 = vpack.c.bf16 %v1796_v50, %v1795_v63 }
 0xaee   :  { %8896 = vmatprep.subr.bf16.mxu0 %v8895_v0  ;;  %v1813_v0 = vld [vmem:[%s12714_s15 + $0xa0] sm:$0xff] }
 0xb8e   :  { %v1533_v1 = vpop.f32.mrb[34].mxu1 }
 0xb8f   :  { %v1547_v5 = vadd.f32 %v1533_v1, %v10122_v36  ;;  %v8319_v8 = vpop.f32.mrb[35].mxu1  ;;  %v1631_v1 = vld [vmem:[%s12712_s13 + $0x60] sm:$0xff] }
 0xb91   :  { %v10529_v59 = vadd.f32 %v7415_v57, %v1547_v5 }
 0xb92   :  { %v1538_v2 = vpop.f32.mrb[36].mxu1 }
 0xb93   :  { %v1548_v10 = vadd.f32 %v1538_v2, %v10126_v42  ;;  %v8322_v12 = vpop.f32.mrb[37].mxu1  ;;  %v1562_v17 = vsel %vm110_vm0, %v10529_v59, 0.0 }
 0xb94   :  { %1563 = vadd.xlane.f32.xlu0 %v1562_v17 }
 0xb95   :  { %v10534_v18 = vadd.f32 %v7415_v57, %v1548_v10 }
 0xb97   :  { %v1565_v20 = vsel %vm110_vm0, %v10534_v18, 0.0 }
 0xb98   :  { %1566 = vadd.xlane.f32.xlu1 %v1565_v20 }
 0xbbf   :  { %v1543_v26 = vpop.f32.mrb[38].mxu1 }
 0xbc0   :  { %v1549_v36 = vadd.f32 %v1543_v26, %v10130_v46  ;;  %v8325_v24 = vpop.f32.mrb[39].mxu1 }
 0xbc2   :  { %v10539_v30 = vadd.f32 %v7415_v57, %v1549_v36  ;;  %v1633_v57 = vld [vmem:[%s12712_s13 + $0x70] sm:$0xff] }
 0xbc3   :  { %v8897_v5 = vpack.c.bf16 %v1633_v57, %v1631_v1  ;;  %v1814_v1 = vld [vmem:[%s12714_s15 + $0xa8] sm:$0xff] }
 0xbc4   :  { %v1568_v42 = vsel %vm208_vm1, %v10539_v30, 0.0  ;;  %v8907_v57 = vpack.c.bf16 %v1814_v1, %v1813_v0 }
 0xbc5   :  { %1569 = vadd.xlane.f32.xlu0 %v1568_v42  ;;  %8898 = vmatpush1.bf16.msra.mxu0 %v8897_v5  ;;  %v1797_v5 = vld [vmem:[%s12714_s15 + $0x20] sm:$0xff] }
 0xc21   :  { %v1564_v21 = vpop.xlane.xlu0 %1563 }
 0xc22   :  { %v1571_v41 = vmul.f32 0.015625, %v1564_v21 }
 0xc24   :  { %v1574_v11 = vsub.f32 %v10529_v59, %v1571_v41 }
 0xc25   :  { %v1567_v62 = vpop.xlane.xlu1 %1566 }
 0xc26   :  { %v1572_v14 = vmul.f32 0.015625, %v1567_v62  ;;  %v1577_v32 = vmul.f32 %v1574_v11, %v1574_v11  ;;  %v7416_v62 = vld [vmem:[%s12710_s11] ss:$0 sm:$0xff] }
 0xc28   :  { %v1575_v29 = vsub.f32 %v10534_v18, %v1572_v14  ;;  %v1580_v35 = vsel %vm110_vm0, %v1577_v32, 0.0  ;;  %v7417_v32 = vld [vmem:[%s12711_s12] ss:$0 sm:$0xff] }
 0xc29   :  { %1581 = vadd.xlane.f32.xlu0 %v1580_v35 }
 0xc2a   :  { %v1578_v46 = vmul.f32 %v1575_v29, %v1575_v29 }
 0xc2c   :  { %v1583_v39 = vsel %vm110_vm0, %v1578_v46, 0.0 }
 0xc2d   :  { %1584 = vadd.xlane.f32.xlu0 %v1583_v39 }
 0xc52   :  { %v1570_v8 = vpop.xlane.xlu0 %1569 }
 0xc53   :  { %v1573_v2 = vmul.f32 0.015625, %v1570_v8  ;;  %v1798_v8 = vld [vmem:[%s12714_s15 + $0x28] sm:$0xff] }
 0xc55   :  { %v1576_v10 = vsub.f32 %v10539_v30, %v1573_v2  ;;  %v8909_v2 = vpack.c.bf16 %v1798_v8, %v1797_v5 }
 0xc57   :  { %v1579_v12 = vmul.f32 %v1576_v10, %v1576_v10 }
 0xc59   :  { %v1586_v17 = vsel %vm208_vm1, %v1579_v12, 0.0  ;;  %v1816_v12 = vld [vmem:[%s12714_s15 + $0xb8] sm:$0xff] }
 0xc5a   :  { %1587 = vadd.xlane.f32.xlu1 %v1586_v17 }
 0xcb6   :  { %v1582_v20 = vpop.xlane.xlu0 %1581 }
 0xcb7   :  { %v1589_v26 = vmul.f32 0.015625, %v1582_v20  ;;  %v1799_v20 = vld [vmem:[%s12714_s15 + $0x30] sm:$0xff] }
 0xcb9   :  { %v1592_v36 = vadd.f32 1e-05, %v1589_v26  ;;  %v1800_v26 = vld [vmem:[%s12714_s15 + $0x38] sm:$0xff] }
 0xcba   :  { %v1585_v24 = vpop.xlane.xlu0 %1584 }
 0xcbb   :  { %9515 = vrsqrt.f32 %v1592_v36  ;;  %v1590_v42 = vmul.f32 0.015625, %v1585_v24  ;;  %v8913_v36 = vpack.c.bf16 %v1800_v26, %v1799_v20  ;;  %v1817_v24 = vld [vmem:[%s12714_s15 + $0xc0] sm:$0xff] }
 0xcbd   :  { %v1593_v21 = vadd.f32 1e-05, %v1590_v42  ;;  %v1818_v42 = vld [vmem:[%s12714_s15 + $0xc8] sm:$0xff] }
 0xcbf   :  { %9517 = vrsqrt.f32 %v1593_v21  ;;  %v8915_v21 = vpack.c.bf16 %v1818_v42, %v1817_v24 }
 0xcc5   :  { %v9516_v41 = vpop.eup %9515 }
 0xcc6   :  { %v1598_v14 = vmul.f32 %v9516_v41, %v1574_v11  ;;  %v1801_v41 = vld [vmem:[%s12714_s15 + $0x40] sm:$0xff] }
 0xcc8   :  { %v1607_v35 = vmul.f32 %v7416_v62, %v1598_v14 }
 0xcc9   :  { %v9518_v46 = vpop.eup %9517 }
 0xcca   :  { %v1616_v39 = vadd.f32 %v7417_v32, %v1607_v35  ;;  %v1599_v23 = vmul.f32 %v9518_v46, %v1575_v29  ;;  %v1809_v29 = vld [vmem:[%s12714_s15 + $0x80] sm:$0xff]  ;;  %v1820_v35 = vld [vmem:[%s12714_s15 + $0xd8] sm:$0xff] }
 0xccb   :  { %v8899_v55 = vpack.c.bf16 %v1810_v47, %v1809_v29  ;;  %v1807_v47 = vld [vmem:[%s12714_s15 + $0x70] sm:$0xff] }
 0xccc   :  { %7418 = vmatmul.mubr.msk.f32.vlgmr.msra.gmra.mrb[26].mxu0 %vm110_vm0, %v1616_v39  ;;  %v1608_v43 = vmul.f32 %v7416_v62, %v1599_v23  ;;  %v1803_v39 = vld [vmem:[%s12714_s15 + $0x50] sm:$0xff]  ;;  %v1804_v23 = vld [vmem:[%s12714_s15 + $0x58] sm:$0xff] }
 0xccd   :  { %1726 = vmatprep.mubr.f32.mxu0 %v9823_v33  ;;  %8900 = vmatprep.subr.bf16.mxu1 %v8899_v55  ;;  %v1808_v55 = vld [vmem:[%s12714_s15 + $0x78] sm:$0xff] }
 0xcce   :  { %v1617_v44 = vadd.f32 %v7417_v32, %v1608_v43  ;;  %8902 = vmatpush3.bf16.msra.mxu1 %v8901_v45  ;;  %v8921_v43 = vpack.c.bf16 %v1804_v23, %v1803_v39  ;;  %v8929_v56 = vpack.c.bf16 %v1808_v55, %v1807_v47  ;;  %v1640_v45 = vrot.slane %v1635_v58, %v10216_v54 }
 0xccf   :  { %8904 = vmatprep.subr.bf16.mxu1 %v8903_v53 }
 0xcd0   :  { %7419 = vmatmul.mubr.msk.f32.gmra.mrb[28].mxu0 %vm110_vm0, %v1617_v44  ;;  %v1821_v44 = vld [vmem:[%s12714_s15 + $0xe0] sm:$0xff] }
 0xcd1   :  { %1732 = vmatprep.mubr.f32.mxu0 %v9823_v33 }
 0xcd2   :  { %8906 = vmatpush3.bf16.msra.mxu1 %v8905_v52 }
 0xcd3   :  { %8908 = vmatprep.subr.bf16.mxu1 %v8907_v57 }
 0xcd6   :  { %8910 = vmatpush3.bf16.msra.mxu1 %v8909_v2 }
 0xce7   :  { %v1588_v15 = vpop.xlane.xlu1 %1587 }
 0xce8   :  { %v1591_v11 = vmul.f32 0.015625, %v1588_v15  ;;  %v1822_v15 = vld [vmem:[%s12714_s15 + $0xe8] sm:$0xff] }
 0xcea   :  { %v1594_v40 = vadd.f32 1e-05, %v1591_v11  ;;  %v8923_v11 = vpack.c.bf16 %v1822_v15, %v1821_v44 }
 0xcec   :  { %9519 = vrsqrt.f32 %v1594_v40  ;;  %v1805_v40 = vld [vmem:[%s12714_s15 + $0x60] sm:$0xff] }
 0xcf6   :  { %v9520_v48 = vpop.eup %9519 }
 0xcf7   :  { %v1600_v49 = vmul.f32 %v9520_v48, %v1576_v10  ;;  %v1815_v10 = vld [vmem:[%s12714_s15 + $0xb0] sm:$0xff]  ;;  %v1806_v48 = vld [vmem:[%s12714_s15 + $0x68] sm:$0xff] }
 0xcf8   :  { %v8911_v17 = vpack.c.bf16 %v1816_v12, %v1815_v10 }
 0xcf9   :  { %v1609_v51 = vmul.f32 %v7416_v62, %v1600_v49  ;;  %v1802_v62 = vld [vmem:[%s12714_s15 + $0x48] sm:$0xff]  ;;  %v8925_v49 = vpack.c.bf16 %v1806_v48, %v1805_v40 }
 0xcfa   :  { %8912 = vmatprep.subr.bf16.mxu1 %v8911_v17  ;;  %v8917_v14 = vpack.c.bf16 %v1802_v62, %v1801_v41 }
 0xcfb   :  { %v1618_v27 = vadd.f32 %v7417_v32, %v1609_v51  ;;  %8914 = vmatpush3.bf16.msra.mxu1 %v8913_v36  ;;  %v1819_v32 = vld [vmem:[%s12714_s15 + $0xd0] sm:$0xff] }
 0xcfc   :  { %8916 = vmatprep.subr.bf16.mxu1 %v8915_v21  ;;  %v8919_v46 = vpack.c.bf16 %v1820_v35, %v1819_v32  ;;  %v1823_v51 = vld [vmem:[%s12714_s15 + $0xf0] sm:$0xff] }
 0xcfd   :  { %7420 = vmatmul.mubr.msk.f32.gmra.mrb[30].mxu0 %vm110_vm0, %v1618_v27  ;;  %v1824_v27 = vld [vmem:[%s12714_s15 + $0xf8] sm:$0xff] }
 0xcfe   :  { %2082 = vmatprep.mubr.f32.mxu0 %v9823_v33  ;;  %v8927_v29 = vpack.c.bf16 %v1824_v27, %v1823_v51 }
 0xcff   :  { %8918 = vmatpush3.bf16.msra.mxu1 %v8917_v14 }
 0xd00   :  { %8920 = vmatprep.subr.bf16.mxu1 %v8919_v46 }
 0xd03   :  { %8922 = vmatpush3.bf16.msra.mxu1 %v8921_v43 }
 0xd04   :  { %8924 = vmatprep.subr.bf16.mxu1 %v8923_v11 }
 0xd07   :  { %8926 = vmatpush3.bf16.msra.mxu1 %v8925_v49 }
 0xd08   :  { %8928 = vmatprep.subr.bf16.mxu1 %v8927_v29 }
 0xd0b   :  { %8930 = vmatpush3.bf16.msra.mxu1 %v8929_v56 }
 0xd0c   :  { %8951 = vmatprep.subr.bf16.mxu1 %v9822_v3 }
 0xd9f   :  { %v1722_v61 = vpop.f32.mrb[26].mxu0 }
 0xda0   :  { %v1723_v53 = vadd.f32 %v1722_v61, %v1640_v45  ;;  %v1724_v63 = vpop.f32.mrb[27].mxu0 }
 0xda1   :  { %v1725_v50 = vadd.f32 %v1724_v63, %v1644_v60 }
 0xda2   :  { %v1739_v52 = vmul.f32 %v1723_v53, %v1723_v53 }
 0xda3   :  { %v1740_v0 = vmul.f32 %v1725_v50, %v1725_v50  ;;  %v1728_v1 = vpop.f32.mrb[28].mxu0 }
 0xda4   :  { %v1745_v57 = vmul.f32 %v1739_v52, %v1723_v53  ;;  %v1729_v5 = vadd.f32 %v1728_v1, %v1640_v45  ;;  %v1730_v8 = vpop.f32.mrb[29].mxu0 }
 0xda5   :  { %v1746_v2 = vmul.f32 %v1740_v0, %v1725_v50  ;;  %v1731_v10 = vadd.f32 %v1730_v8, %v1644_v60 }
 0xda6   :  { %v1751_v12 = vmul.f32 0.044715, %v1745_v57  ;;  %v1741_v17 = vmul.f32 %v1729_v5, %v1729_v5 }
 0xda7   :  { %v1752_v20 = vmul.f32 0.044715, %v1746_v2  ;;  %v1742_v26 = vmul.f32 %v1731_v10, %v1731_v10 }
 0xda8   :  { %v1757_v36 = vadd.f32 %v1751_v12, %v1723_v53  ;;  %v1747_v24 = vmul.f32 %v1741_v17, %v1729_v5 }
 0xda9   :  { %v1758_v42 = vadd.f32 %v1752_v20, %v1725_v50  ;;  %v1748_v21 = vmul.f32 %v1742_v26, %v1731_v10 }
 0xdaa   :  { %v1763_v41 = vmul.f32 0.7978846, %v1757_v36  ;;  %v1753_v62 = vmul.f32 0.044715, %v1747_v24 }
 0xdab   :  { %v1764_v14 = vmul.f32 0.7978846, %v1758_v42  ;;  %v1754_v32 = vmul.f32 0.044715, %v1748_v21 }
 0xdac   :  { %9521 = vtanh.f32 %v1763_v41  ;;  %v1759_v35 = vadd.f32 %v1753_v62, %v1729_v5 }
 0xdad   :  { %v1760_v46 = vadd.f32 %v1754_v32, %v1731_v10  ;;  %9523 = vtanh.f32 %v1764_v14 }
 0xdae   :  { %v1765_v39 = vmul.f32 0.7978846, %v1759_v35 }
 0xdaf   :  { %v1766_v23 = vmul.f32 0.7978846, %v1760_v46  ;;  %v7421_v46 = vld [vmem:[%s12715_s16] ss:$0 sm:$0xff] }
 0xdb0   :  { %9525 = vtanh.f32 %v1765_v39 }
 0xdb1   :  { %9527 = vtanh.f32 %v1766_v23 }
 0xdb6   :  { %v9522_v43 = vpop.eup %9521 }
 0xdb7   :  { %v9524_v44 = vpop.eup %9523  ;;  %v1775_v15 = vadd.f32 1.0, %v9522_v43 }
 0xdb8   :  { %v1776_v11 = vadd.f32 1.0, %v9524_v44 }
 0xdb9   :  { %v1781_v40 = vmul.f32 0.5, %v1775_v15 }
 0xdba   :  { %v9526_v48 = vpop.eup %9525  ;;  %v1782_v49 = vmul.f32 0.5, %v1776_v11 }
 0xdbb   :  { %v9528_v51 = vpop.eup %9527  ;;  %v1777_v27 = vadd.f32 1.0, %v9526_v48  ;;  %v1787_v55 = vmul.f32 %v1781_v40, %v1723_v53 }
 0xdbc   :  { %v1788_v29 = vmul.f32 %v1782_v49, %v1725_v50  ;;  %v1778_v47 = vadd.f32 1.0, %v9528_v51 }
 0xdbd   :  { %v1783_v56 = vmul.f32 0.5, %v1777_v27 }
 0xdbe   :  { %1889 = vmatprep.mubr.f32.mxu1 %v1788_v29  ;;  %v1784_v58 = vmul.f32 0.5, %v1778_v47 }
 0xdbf   :  { %1890 = vmatmul.mubr.f32.vlgmr.msra.gmra.mrb[40].mxu1 %v1787_v55  ;;  %v1789_v63 = vmul.f32 %v1783_v56, %v1729_v5 }
 0xdc0   :  { %v1790_v61 = vmul.f32 %v1784_v58, %v1731_v10 }
 0xdc2   :  { %1894 = vmatprep.mubr.f32.mxu1 %v1790_v61 }
 0xdc3   :  { %1895 = vmatmul.mubr.f32.gmra.mrb[42].mxu1 %v1789_v63 }
 0xdd0   :  { %v1734_v52 = vpop.f32.mrb[30].mxu0 }
 0xdd1   :  { %v1735_v0 = vadd.f32 %v1734_v52, %v1640_v45  ;;  %v1736_v1 = vpop.f32.mrb[31].mxu0 }
 0xdd2   :  { %v1737_v57 = vadd.f32 %v1736_v1, %v1644_v60 }
 0xdd3   :  { %v1743_v8 = vmul.f32 %v1735_v0, %v1735_v0 }
 0xdd4   :  { %v1744_v2 = vmul.f32 %v1737_v57, %v1737_v57 }
 0xdd5   :  { %v1749_v12 = vmul.f32 %v1743_v8, %v1735_v0  ;;  %v7427_v8 = vld [vmem:[%s12780_s30 + $0x88] sm:$0xff] }
 0xdd6   :  { %v1750_v17 = vmul.f32 %v1744_v2, %v1737_v57  ;;  %v7429_v2 = vld [vmem:[%s12780_s30 + $0x98] sm:$0xff] }
 0xdd7   :  { %v1755_v20 = vmul.f32 0.044715, %v1749_v12  ;;  %v8931_v12 = vpack.c.bf16 %v7429_v2, %v7427_v8 }
 0xdd8   :  { %v1756_v50 = vmul.f32 0.044715, %v1750_v17  ;;  %v7426_v17 = vld [vmem:[%s12780_s30 + $0x80] sm:$0xff] }
 0xdd9   :  { %v1761_v26 = vadd.f32 %v1755_v20, %v1735_v0  ;;  %v7428_v20 = vld [vmem:[%s12780_s30 + $0x90] sm:$0xff]  ;;  %8932 = vmatprep.subr.bf16.mxu0 %v8931_v12 }
 0xdda   :  { %v1762_v53 = vadd.f32 %v1756_v50, %v1737_v57  ;;  %v8933_v50 = vpack.c.bf16 %v7428_v20, %v7426_v17 }
 0xddb   :  { %v1767_v36 = vmul.f32 0.7978846, %v1761_v26  ;;  %v7431_v26 = vld [vmem:[%s12780_s30 + $0xa8] sm:$0xff] }
 0xddc   :  { %v1768_v24 = vmul.f32 0.7978846, %v1762_v53  ;;  %8934 = vmatpush1.bf16.msra.mxu0 %v8933_v50  ;;  %v7433_v53 = vld [vmem:[%s12780_s30 + $0xb8] sm:$0xff] }
 0xddd   :  { %9529 = vtanh.f32 %v1767_v36  ;;  %v8935_v36 = vpack.c.bf16 %v7433_v53, %v7431_v26 }
 0xdde   :  { %9531 = vtanh.f32 %v1768_v24  ;;  %v7430_v24 = vld [vmem:[%s12780_s30 + $0xa0] sm:$0xff] }
 0xddf   :  { %8936 = vmatprep.subr.bf16.mxu0 %v8935_v36 }
 0xde7   :  { %v9530_v10 = vpop.eup %9529 }
 0xde8   :  { %v9532_v5 = vpop.eup %9531  ;;  %v1779_v42 = vadd.f32 1.0, %v9530_v10  ;;  %v7432_v10 = vld [vmem:[%s12780_s30 + $0xb0] sm:$0xff] }
 0xde9   :  { %v1780_v21 = vadd.f32 1.0, %v9532_v5  ;;  %v8937_v5 = vpack.c.bf16 %v7432_v10, %v7430_v24 }
 0xdea   :  { %v1785_v41 = vmul.f32 0.5, %v1779_v42  ;;  %v7435_v42 = vld [vmem:[%s12780_s30 + $0xc8] sm:$0xff] }
 0xdeb   :  { %v1786_v45 = vmul.f32 0.5, %v1780_v21  ;;  %8938 = vmatpush1.bf16.msra.mxu0 %v8937_v5  ;;  %v7437_v21 = vld [vmem:[%s12780_s30 + $0xd8] sm:$0xff] }
 0xdec   :  { %v1791_v60 = vmul.f32 %v1785_v41, %v1735_v0  ;;  %v8939_v41 = vpack.c.bf16 %v7437_v21, %v7435_v42 }
 0xded   :  { %v1792_v62 = vmul.f32 %v1786_v45, %v1737_v57  ;;  %v7434_v45 = vld [vmem:[%s12780_s30 + $0xc0] sm:$0xff] }
 0xdee   :  { %8940 = vmatprep.subr.bf16.mxu0 %v8939_v41 }
 0xdef   :  { %1899 = vmatprep.mubr.f32.mxu1 %v1792_v62  ;;  %v7436_v62 = vld [vmem:[%s12780_s30 + $0xd0] sm:$0xff] }
 0xdf0   :  { %1900 = vmatmul.mubr.f32.gmra.mrb[44].mxu1 %v1791_v60  ;;  %v8941_v60 = vpack.c.bf16 %v7436_v62, %v7434_v45 }
 0xdf1   :  { %8347 = vmatprep.mubr.msk.f32.mxu1 %vm9825_vm2, %v9823_v33 }
 0xdf2   :  { %8942 = vmatpush1.bf16.msra.mxu0 %v8941_v60 }
 0xe92   :  { %v7858_v14 = vpop.f32.mrb[40].mxu1 }
 0xe93   :  { %v7859_v32 = vpop.f32.mrb[41].mxu1 }
 0xe94   :  { %v7860_v35 = vadd.f32 %v7859_v32, %v7858_v14  ;;  %v7439_v14 = vld [vmem:[%s12780_s30 + $0xe8] sm:$0xff]  ;;  %v7441_v32 = vld [vmem:[%s12780_s30 + $0xf8] sm:$0xff] }
 0xe96   :  { %v1905_v39 = vadd.f32 %v7860_v35, %v10529_v59  ;;  %v7861_v23 = vpop.f32.mrb[42].mxu1  ;;  %v8943_v35 = vpack.c.bf16 %v7441_v32, %v7439_v14 }
 0xe97   :  { %v7862_v43 = vpop.f32.mrb[43].mxu1 }
 0xe98   :  { %v10717_v44 = vadd.f32 %v7421_v46, %v1905_v39  ;;  %v7863_v15 = vadd.f32 %v7862_v43, %v7861_v23  ;;  %v7440_v39 = vld [vmem:[%s12780_s30 + $0xf0] sm:$0xff]  ;;  %8944 = vmatprep.subr.bf16.mxu0 %v8943_v35 }
 0xe9a   :  { %v1906_v11 = vadd.f32 %v7863_v15, %v10534_v18  ;;  %v1922_v40 = vsel %vm110_vm0, %v10717_v44, 0.0 }
 0xe9b   :  { %1923 = vadd.xlane.f32.xlu0 %v1922_v40 }
 0xe9c   :  { %v10722_v48 = vadd.f32 %v7421_v46, %v1906_v11 }
 0xe9e   :  { %v1925_v49 = vsel %vm110_vm0, %v10722_v48, 0.0 }
 0xe9f   :  { %1926 = vadd.xlane.f32.xlu1 %v1925_v49 }
 0xec3   :  { %v7864_v51 = vpop.f32.mrb[44].mxu1 }
 0xec4   :  { %v7865_v27 = vpop.f32.mrb[45].mxu1 }
 0xec5   :  { %v7866_v59 = vadd.f32 %v7865_v27, %v7864_v51 }
 0xec7   :  { %v1907_v29 = vadd.f32 %v7866_v59, %v10539_v30 }
 0xec9   :  { %v10727_v47 = vadd.f32 %v7421_v46, %v1907_v29  ;;  %v7438_v46 = vld [vmem:[%s12780_s30 + $0xe0] sm:$0xff] }
 0xeca   :  { %v8945_v23 = vpack.c.bf16 %v7440_v39, %v7438_v46 }
 0xecb   :  { %v1928_v18 = vsel %vm208_vm1, %v10727_v47, 0.0 }
 0xecc   :  { %1929 = vadd.xlane.f32.xlu0 %v1928_v18  ;;  %8946 = vmatpush1.bf16.msra.mxu0 %v8945_v23 }
 0xecd   :  { %8947 = vmatprep.subr.bf16.mxu0 %v9822_v3 }
 0xf28   :  { %v1924_v55 = vpop.xlane.xlu0 %1923 }
 0xf29   :  { %v1931_v56 = vmul.f32 0.015625, %v1924_v55 }
 0xf2b   :  { %v1934_v58 = vsub.f32 %v10717_v44, %v1931_v56 }
 0xf2c   :  { %v1927_v61 = vpop.xlane.xlu1 %1926 }
 0xf2d   :  { %v1932_v63 = vmul.f32 0.015625, %v1927_v61  ;;  %v1937_v52 = vmul.f32 %v1934_v58, %v1934_v58  ;;  %v7424_v61 = vld [vmem:[%s12781_s4 + $0x1] ss:$0 sm:$0xff] }
 0xf2f   :  { %v1935_v0 = vsub.f32 %v10722_v48, %v1932_v63  ;;  %v1940_v1 = vsel %vm110_vm0, %v1937_v52, 0.0  ;;  %v7425_v52 = vld [vmem:[%s12782_s27 + $0x1] ss:$0 sm:$0xff] }
 0xf30   :  { %1941 = vadd.xlane.f32.xlu1 %v1940_v1 }
 0xf31   :  { %v1938_v57 = vmul.f32 %v1935_v0, %v1935_v0 }
 0xf33   :  { %v1943_v30 = vsel %vm110_vm0, %v1938_v57, 0.0 }
 0xf34   :  { %1944 = vadd.xlane.f32.xlu0 %v1943_v30 }
 0xf59   :  { %v1930_v43 = vpop.xlane.xlu0 %1929 }
 0xf5a   :  { %v1933_v15 = vmul.f32 0.015625, %v1930_v43 }
 0xf5c   :  { %v1936_v11 = vsub.f32 %v10727_v47, %v1933_v15 }
 0xf5e   :  { %v1939_v40 = vmul.f32 %v1936_v11, %v1936_v11 }
 0xf60   :  { %v1946_v49 = vsel %vm208_vm1, %v1939_v40, 0.0 }
 0xf61   :  { %1947 = vadd.xlane.f32.xlu1 %v1946_v49 }
 0xfbd   :  { %v1942_v51 = vpop.xlane.xlu1 %1941 }
 0xfbe   :  { %v1949_v27 = vmul.f32 0.015625, %v1942_v51 }
 0xfc0   :  { %v1952_v59 = vadd.f32 1e-05, %v1949_v27 }
 0xfc1   :  { %v1945_v29 = vpop.xlane.xlu0 %1944 }
 0xfc2   :  { %9533 = vrsqrt.f32 %v1952_v59  ;;  %v1950_v18 = vmul.f32 0.015625, %v1945_v29 }
 0xfc4   :  { %v1953_v55 = vadd.f32 1e-05, %v1950_v18 }
 0xfc6   :  { %9535 = vrsqrt.f32 %v1953_v55 }
 0xfcc   :  { %v9534_v56 = vpop.eup %9533 }
 0xfcd   :  { %v1958_v63 = vmul.f32 %v9534_v56, %v1934_v58 }
 0xfcf   :  { %v1967_v1 = vmul.f32 %v7424_v61, %v1958_v63 }
 0xfd0   :  { %v9536_v57 = vpop.eup %9535 }
 0xfd1   :  { %v1976_v30 = vadd.f32 %v7425_v52, %v1967_v1  ;;  %v1959_v8 = vmul.f32 %v9536_v57, %v1935_v0  ;;  %v7442_v0 = vld [vmem:[%s12783_s0 + $0x2] sm:$0x3] }
 0xfd2   :  { %v2002_v10 = vrot.slane %v7442_v0, %v10216_v54  ;;  %v2006_v42 = vrot.slane %v7442_v0, %v10221_v7 }
 0xfd3   :  { %7443 = vmatmul.mubr.msk.f32.vlgmr.msra.gmra.mrb[32].mxu0 %vm110_vm0, %v1976_v30  ;;  %v1968_v2 = vmul.f32 %v7424_v61, %v1959_v8 }
 0xfd4   :  { %2088 = vmatprep.mubr.f32.mxu0 %v9823_v33 }
 0xfd5   :  { %v1977_v12 = vadd.f32 %v7425_v52, %v1968_v2 }
 0xfd7   :  { %7444 = vmatmul.mubr.msk.f32.gmra.mrb[34].mxu0 %vm110_vm0, %v1977_v12 }
 0xfd8   :  { %2094 = vmatprep.mubr.f32.mxu0 %v9823_v33 }
 0xfee   :  { %v1948_v17 = vpop.xlane.xlu1 %1947 }
 0xfef   :  { %v1951_v58 = vmul.f32 0.015625, %v1948_v17 }
 0xff1   :  { %v1954_v20 = vadd.f32 1e-05, %v1951_v58 }
 0xff3   :  { %9537 = vrsqrt.f32 %v1954_v20 }
 0xffd   :  { %v9538_v50 = vpop.eup %9537 }
 0xffe   :  { %v1960_v26 = vmul.f32 %v9538_v50, %v1936_v11 }
0x1000   :  { %v1969_v53 = vmul.f32 %v7424_v61, %v1960_v26 }
0x1002   :  { %v1978_v36 = vadd.f32 %v7425_v52, %v1969_v53 }
0x1004   :  { %7445 = vmatmul.mubr.msk.f32.gmra.mrb[36].mxu0 %vm110_vm0, %v1978_v36 }
0x1005   :  { %8332 = vmatprep.mubr.msk.f32.mxu0 %vm9825_vm2, %v9823_v33 }
0x10a6   :  { %v2084_v24 = vpop.f32.mrb[32].mxu0 }
0x10a7   :  { %v2086_v5 = vpop.f32.mrb[33].mxu0  ;;  %v2085_v41 = vadd.f32 %v2084_v24, %v2002_v10 }
0x10a8   :  { %v2087_v60 = vadd.f32 %v2086_v5, %v2006_v42 }
0x10aa   :  { %v2090_v21 = vpop.f32.mrb[34].mxu0 }
0x10ab   :  { %v2091_v45 = vadd.f32 %v2090_v21, %v2002_v10  ;;  %v2092_v62 = vpop.f32.mrb[35].mxu0 }
0x10ac   :  { %v2093_v14 = vadd.f32 %v2092_v62, %v2006_v42 }
0x10ad   :  { %v9350_v32 = vpack.i.bf16 %v2091_v45, %v2085_v41 }
0x10ae   :  { %v8952_v35 = vpack.c.bf16 %v2093_v14, %v2087_v60  ;;  %v10804_v46 = vpack.i.bf16 %v2093_v14, %v2087_v60 }
0x10af   :  { %9351 = vrot.lane.b32.xlu0 %v9350_v32, %s12789_s8 }
0x10b0   :  { %8953 = vmatpush3.bf16.msra.mxu1 %v8952_v35 }
0x10b1   :  { %8345 = vmatprep.subr.mxu1 %v9823_v33 }
0x10b3   :  { %9361 = vrot.lane.b32.xlu0 %v9350_v32, %s12786_s25 }
0x10b7   :  { %2335 = vrot.lane.b32.xlu0 %v2091_v45, %s12790_s6 }
0x10d7   :  { %v2096_v39 = vpop.f32.mrb[36].mxu0 }
0x10d8   :  { %v2097_v23 = vadd.f32 %v2096_v39, %v2002_v10  ;;  %v2098_v43 = vpop.f32.mrb[37].mxu0 }
0x10d9   :  { %v10810_v15 = vadd.f32 %v2098_v43, %v2006_v42 }
0x10da   :  { %2108 = vrot.lane.b32.xlu1 %v2097_v23, %s12789_s8  ;;  %2599 = vrot.lane.b32.xlu0 %v2097_v23, %s12786_s25 }
0x10db   :  { %8346 = vmatpush3.msk.msra.mxu1 %vm589_vm5, %v10810_v15 }
0x10dc   :  { %8958 = vmatprep.subr.bf16.mxu1 %v9822_v3 }
0x10de   :  { %9356 = vrot.lane.b32.xlu1 %v9350_v32, %s12787_s7  ;;  %2589 = vrot.lane.b32.xlu0 %v2085_v41, %s12791_s1 }
0x10e2   :  { %2343 = vrot.lane.b32.xlu1 %v2097_v23, %s12787_s7  ;;  %2593 = vrot.lane.b32.xlu0 %v2097_v23, %s12791_s1 }
0x10e6   :  { %2333 = vrot.lane.b32.xlu1 %v2085_v41, %s12790_s6  ;;  %2843 = vrot.lane.b32.xlu0 %v2085_v41, %s12792_s5 }
0x10ea   :  { %2337 = vrot.lane.b32.xlu1 %v2097_v23, %s12790_s6  ;;  %2847 = vrot.lane.b32.xlu0 %v2097_v23, %s12792_s5 }
0x10ee   :  { %9366 = vrot.lane.b32.xlu1 %v9350_v32, %s12788_s23 }
0x10f2   :  { %2591 = vrot.lane.b32.xlu1 %v2091_v45, %s12791_s1 }
0x10f6   :  { %2853 = vrot.lane.b32.xlu1 %v2097_v23, %s12788_s23 }
0x10fa   :  { %2845 = vrot.lane.b32.xlu1 %v2091_v45, %s12792_s5 }
0x1121   :  { %v9352_v11 = vpop.permute.xlu0 %9351 }
0x1122   :  { %v9354_v40 = vunpack.i.h.bf16 %v9352_v11  ;;  %v9353_v49 = vunpack.i.l.bf16 %v9352_v11 }
0x1124   :  { %v8948_v51 = vpack.c.bf16 %v9354_v40, %v9353_v49 }
0x1125   :  { %v9362_v61 = vpop.permute.xlu0 %9361 }
0x1126   :  { %8950 = vmatpush3.bf16.xpose.msk.msra.mxu0 %vm10247_vm4, %v8948_v51  ;;  %v9364_v52 = vunpack.i.h.bf16 %v9362_v61  ;;  %v9363_v1 = vunpack.i.l.bf16 %v9362_v61 }
0x1127   :  { %8330 = vmatprep.subr.mxu0 %v9823_v33 }
0x1128   :  { %v8962_v30 = vpack.c.bf16 %v9364_v52, %v9363_v1 }
0x1129   :  { %v2336_v8 = vpop.permute.xlu0 %2335 }
0x114c   :  { %v2109_v27 = vpop.permute.xlu1 %2108  ;;  %v2600_v12 = vpop.permute.xlu0 %2599 }
0x114d   :  { %8331 = vmatpush3.xpose.msk.msra.mxu0 %vm449_vm3, %v2109_v27 }
0x114e   :  { %8954 = vmatprep.subr.bf16.mxu0 %v9822_v3 }
0x1150   :  { %v9357_v59 = vpop.permute.xlu1 %9356  ;;  %8333 = vmatmul.mubr.msk.f32.vlgmr.msra.gmra.mrb[38].mxu0 %vm449_vm3, %v2085_v41  ;;  %v2590_v20 = vpop.permute.xlu0 %2589 }
0x1151   :  { %v9359_v29 = vunpack.i.h.bf16 %v9357_v59  ;;  %v9358_v18 = vunpack.i.l.bf16 %v9357_v59  ;;  %8335 = vmatprep.mubr.msk.f32.mxu0 %vm9825_vm2, %v9823_v33 }
0x1153   :  { %v8955_v55 = vpack.c.bf16 %v9359_v29, %v9358_v18 }
0x1154   :  { %v2344_v56 = vpop.permute.xlu1 %2343  ;;  %8336 = vmatmul.mubr.msk.f32.gmra.mrb[40].mxu0 %vm449_vm3, %v2091_v45  ;;  %v2594_v53 = vpop.permute.xlu0 %2593 }
0x1155   :  { %8957 = vmatpush3.bf16.xpose.msk.msra.mxu0 %vm10247_vm4, %v8955_v55  ;;  %8338 = vmatprep.mubr.msk.f32.mxu0 %vm9825_vm2, %v9823_v33 }
0x1156   :  { %8360 = vmatprep.subr.mxu0 %v9823_v33 }
0x1158   :  { %v2334_v63 = vpop.permute.xlu1 %2333  ;;  %8339 = vmatmul.mubr.msk.f32.gmra.mrb[42].mxu0 %vm449_vm3, %v2097_v23  ;;  %v2844_v0 = vpop.permute.xlu0 %2843 }
0x1159   :  { %8362 = vmatprep.mubr.msk.f32.mxu0 %vm9825_vm2, %v9823_v33 }
0x115c   :  { %v2338_v57 = vpop.permute.xlu1 %2337  ;;  %v2848_v10 = vpop.permute.xlu0 %2847 }
0x115d   :  { %8361 = vmatpush3.xpose.msk.msra.mxu0 %vm449_vm3, %v2344_v56 }
0x115e   :  { %8961 = vmatprep.subr.bf16.mxu0 %v9822_v3 }
0x1160   :  { %8363 = vmatmul.mubr.msk.f32.vlgmr.msra.gmra.mrb[44].mxu0 %vm449_vm3, %v2334_v63  ;;  %v9367_v2 = vpop.permute.xlu1 %9366 }
0x1161   :  { %8964 = vmatpush3.bf16.xpose.msk.msra.mxu0 %vm10247_vm4, %v8962_v30  ;;  %8365 = vmatprep.mubr.msk.f32.mxu0 %vm9825_vm2, %v9823_v33  ;;  %v9369_v17 = vunpack.i.h.bf16 %v9367_v2  ;;  %v9368_v58 = vunpack.i.l.bf16 %v9367_v2 }
0x1162   :  { %8390 = vmatprep.subr.mxu0 %v9823_v33 }
0x1163   :  { %v8969_v50 = vpack.c.bf16 %v9369_v17, %v9368_v58 }
0x1164   :  { %8366 = vmatmul.mubr.msk.f32.gmra.mrb[46].mxu0 %vm449_vm3, %v2336_v8  ;;  %v2592_v26 = vpop.permute.xlu1 %2591 }
0x1165   :  { %8368 = vmatprep.mubr.msk.f32.mxu0 %vm9825_vm2, %v9823_v33 }
0x1168   :  { %8369 = vmatmul.mubr.msk.f32.gmra.mrb[48].mxu0 %vm449_vm3, %v2338_v57  ;;  %v2854_v36 = vpop.permute.xlu1 %2853 }
0x1169   :  { %8391 = vmatpush3.xpose.msk.msra.mxu0 %vm449_vm3, %v2600_v12  ;;  %8392 = vmatprep.mubr.msk.f32.mxu0 %vm9825_vm2, %v9823_v33 }
0x116a   :  { %8968 = vmatprep.subr.bf16.mxu0 %v9822_v3 }
0x116c   :  { %8393 = vmatmul.mubr.msk.f32.vlgmr.msra.gmra.mrb[50].mxu0 %vm449_vm3, %v2590_v20  ;;  %v2846_v24 = vpop.permute.xlu1 %2845 }
0x116d   :  { %8971 = vmatpush3.bf16.xpose.msk.msra.mxu0 %vm10247_vm4, %v8969_v50  ;;  %8395 = vmatprep.mubr.msk.f32.mxu0 %vm9825_vm2, %v9823_v33 }
0x116e   :  { %8420 = vmatprep.subr.mxu0 %v9823_v33 }
0x1170   :  { %8396 = vmatmul.mubr.msk.f32.gmra.mrb[52].mxu0 %vm449_vm3, %v2592_v26 }
0x1171   :  { %8398 = vmatprep.mubr.msk.f32.mxu0 %vm9825_vm2, %v9823_v33 }
0x1174   :  { %8399 = vmatmul.mubr.msk.f32.gmra.mrb[54].mxu0 %vm449_vm3, %v2594_v53 }
0x1175   :  { %8421 = vmatpush3.xpose.msk.msra.mxu0 %vm449_vm3, %v2854_v36  ;;  %8422 = vmatprep.mubr.msk.f32.mxu0 %vm9825_vm2, %v9823_v33 }
0x1176   :  { %8975 = vmatprep.subr.bf16.mxu0 %v9822_v3 }
0x1178   :  { %8423 = vmatmul.mubr.msk.f32.vlgmr.msra.gmra.mrb[56].mxu0 %vm449_vm3, %v2844_v0 }
0x1179   :  { %8425 = vmatprep.mubr.msk.f32.mxu0 %vm9825_vm2, %v9823_v33 }
0x117c   :  { %8426 = vmatmul.mubr.msk.f32.gmra.mrb[58].mxu0 %vm449_vm3, %v2846_v24 }
0x117d   :  { %8428 = vmatprep.mubr.msk.f32.mxu0 %vm9825_vm2, %v9823_v33 }
0x1180   :  { %8429 = vmatmul.mubr.msk.f32.gmra.mrb[60].mxu0 %vm449_vm3, %v2848_v10 }
0x1181   :  { %8462 = vmatprep.mubr.msk.f32.mxu0 %vm9825_vm2, %v9823_v33 }
0x1223   :  { %v2188_v5 = vpop.f32.mrb[38].mxu0 }
0x1224   :  { %v2202_v42 = vmul.f32 0.25, %v2188_v5  ;;  %v8334_v21 = vpop.f32.mrb[39].mxu0 }
0x1226   :  { %v2205_v41 = vsel %vm545_vm6, %v2202_v42, -inf }
0x1227   :  { %2206 = vmax.xlane.f32.xlu1 %v2205_v41  ;;  %v2193_v45 = vpop.f32.mrb[40].mxu0 }
0x1228   :  { %v2203_v62 = vmul.f32 0.25, %v2193_v45  ;;  %v8337_v60 = vpop.f32.mrb[41].mxu0 }
0x122a   :  { %v2208_v14 = vsel %vm545_vm6, %v2203_v62, -inf }
0x122b   :  { %2209 = vmax.xlane.f32.xlu0 %v2208_v14  ;;  %v2198_v32 = vpop.f32.mrb[42].mxu0 }
0x122c   :  { %v2204_v35 = vmul.f32 0.25, %v2198_v32  ;;  %v8340_v39 = vpop.f32.mrb[43].mxu0 }
0x122e   :  { %v2211_v23 = vsel %vm552_vm7, %v2204_v35, -inf }
0x122f   :  { %2212 = vmax.xlane.f32.xlu0 %v2211_v23 }
0x1233   :  { %v2423_v43 = vpop.f32.mrb[44].mxu0 }
0x1234   :  { %v10888_v11 = vmul.f32 0.25, %v2423_v43  ;;  %v8364_v40 = vpop.f32.mrb[45].mxu0 }
0x1236   :  { %v2440_v49 = vsel %vm545_vm6, %v10888_v11, -inf }
0x1237   :  { %2441 = vmax.xlane.f32.xlu0 %v2440_v49  ;;  %v2428_v51 = vpop.f32.mrb[46].mxu0 }
0x1238   :  { %v10892_v27 = vmul.f32 0.25, %v2428_v51  ;;  %v8367_v59 = vpop.f32.mrb[47].mxu0 }
0x123a   :  { %v2443_v29 = vsel %vm545_vm6, %v10892_v27, -inf }
0x123b   :  { %2444 = vmax.xlane.f32.xlu1 %v2443_v29  ;;  %v2433_v18 = vpop.f32.mrb[48].mxu0 }
0x123c   :  { %v10896_v55 = vmul.f32 0.25, %v2433_v18  ;;  %v8370_v56 = vpop.f32.mrb[49].mxu0 }
0x123e   :  { %v2446_v61 = vsel %vm552_vm7, %v10896_v55, -inf }
0x123f   :  { %2447 = vmax.xlane.f32.xlu0 %v2446_v61  ;;  %v2679_v63 = vpop.f32.mrb[50].mxu0 }
0x1240   :  { %v10900_v52 = vmul.f32 0.25, %v2679_v63  ;;  %v8394_v1 = vpop.f32.mrb[51].mxu0 }
0x1242   :  { %v2696_v57 = vsel %vm545_vm6, %v10900_v52, -inf }
0x1243   :  { %2697 = vmax.xlane.f32.xlu1 %v2696_v57  ;;  %v2684_v30 = vpop.f32.mrb[52].mxu0 }
0x1244   :  { %v10904_v8 = vmul.f32 0.25, %v2684_v30  ;;  %v8397_v2 = vpop.f32.mrb[53].mxu0 }
0x1246   :  { %v2699_v12 = vsel %vm545_vm6, %v10904_v8, -inf }
0x1247   :  { %2700 = vmax.xlane.f32.xlu0 %v2699_v12  ;;  %v2689_v17 = vpop.f32.mrb[54].mxu0 }
0x1248   :  { %v10908_v58 = vmul.f32 0.25, %v2689_v17  ;;  %v8400_v20 = vpop.f32.mrb[55].mxu0 }
0x124a   :  { %v2702_v50 = vsel %vm552_vm7, %v10908_v58, -inf }
0x124b   :  { %2703 = vmax.xlane.f32.xlu1 %v2702_v50  ;;  %v2933_v26 = vpop.f32.mrb[56].mxu0 }
0x124c   :  { %v10912_v53 = vmul.f32 0.25, %v2933_v26  ;;  %v8424_v36 = vpop.f32.mrb[57].mxu0 }
0x124e   :  { %v2950_v0 = vsel %vm545_vm6, %v10912_v53, -inf }
0x124f   :  { %2951 = vmax.xlane.f32.xlu0 %v2950_v0  ;;  %v2938_v24 = vpop.f32.mrb[58].mxu0 }
0x1250   :  { %v10916_v10 = vmul.f32 0.25, %v2938_v24  ;;  %v8427_v5 = vpop.f32.mrb[59].mxu0 }
0x1252   :  { %v2953_v21 = vsel %vm545_vm6, %v10916_v10, -inf }
0x1253   :  { %2954 = vmax.xlane.f32.xlu1 %v2953_v21  ;;  %v2943_v41 = vpop.f32.mrb[60].mxu0 }
0x1254   :  { %v10920_v45 = vmul.f32 0.25, %v2943_v41  ;;  %v8430_v60 = vpop.f32.mrb[61].mxu0 }
0x1256   :  { %v2956_v14 = vsel %vm552_vm7, %v10920_v45, -inf }
0x1257   :  { %2957 = vmax.xlane.f32.xlu0 %v2956_v14 }
0x1264   :  { %9371 = vrot.lane.b32.xlu1 %v10804_v46, %s12790_s6 }
0x12b4   :  { %v2207_v32 = vpop.xlane.xlu1 %2206 }
0x12b5   :  { %v2214_v39 = vsub.f32 %v2202_v42, %v2207_v32 }
0x12b7   :  { %v2217_v23 = vmul.f32 1.442695, %v2214_v39 }
0x12b8   :  { %v2210_v43 = vpop.xlane.xlu0 %2209 }
0x12b9   :  { %9539 = vpow2.f32 %v2217_v23  ;;  %v2215_v40 = vsub.f32 %v2203_v62, %v2210_v43 }
0x12bb   :  { %v2219_v49 = vmul.f32 1.442695, %v2215_v40 }
0x12bc   :  { %v2213_v51 = vpop.xlane.xlu0 %2212 }
0x12bd   :  { %9541 = vpow2.f32 %v2219_v49  ;;  %v2216_v59 = vsub.f32 %v2204_v35, %v2213_v51 }
0x12bf   :  { %v2221_v29 = vmul.f32 1.442695, %v2216_v59 }
0x12c1   :  { %9543 = vpow2.f32 %v2221_v29 }
0x12c3   :  { %v10926_v18 = vpop.eup %9539 }
0x12c4   :  { %v2442_v56 = vpop.xlane.xlu0 %2441  ;;  %v2223_v61 = vsel %vm545_vm6, %v10926_v18, 0.0 }
0x12c5   :  { %v2449_v63 = vsub.f32 %v10888_v11, %v2442_v56  ;;  %2224 = vadd.xlane.f32.xlu1 %v2223_v61 }
0x12c7   :  { %v10931_v42 = vpop.eup %9541  ;;  %v2452_v1 = vmul.f32 1.442695, %v2449_v63 }
0x12c8   :  { %v2445_v57 = vpop.xlane.xlu1 %2444  ;;  %v2226_v62 = vsel %vm545_vm6, %v10931_v42, 0.0 }
0x12c9   :  { %9545 = vpow2.f32 %v2452_v1  ;;  %v2450_v35 = vsub.f32 %v10892_v27, %v2445_v57  ;;  %2227 = vadd.xlane.f32.xlu0 %v2226_v62 }
0x12cb   :  { %v10936_v30 = vpop.eup %9543  ;;  %v2454_v2 = vmul.f32 1.442695, %v2450_v35 }
0x12cc   :  { %v2448_v12 = vpop.xlane.xlu0 %2447  ;;  %v2229_v17 = vsel %vm552_vm7, %v10936_v30, 0.0 }
0x12cd   :  { %9547 = vpow2.f32 %v2454_v2  ;;  %v2451_v11 = vsub.f32 %v10896_v55, %v2448_v12  ;;  %2230 = vadd.xlane.f32.xlu1 %v2229_v17 }
0x12cf   :  { %v2456_v20 = vmul.f32 1.442695, %v2451_v11 }
0x12d0   :  { %v2698_v50 = vpop.xlane.xlu1 %2697 }
0x12d1   :  { %9549 = vpow2.f32 %v2456_v20  ;;  %v2705_v26 = vsub.f32 %v10900_v52, %v2698_v50 }
0x12d3   :  { %v10942_v36 = vpop.eup %9545  ;;  %v2708_v27 = vmul.f32 1.442695, %v2705_v26 }
0x12d4   :  { %v2701_v0 = vpop.xlane.xlu0 %2700  ;;  %v2458_v24 = vsel %vm545_vm6, %v10942_v36, 0.0 }
0x12d5   :  { %9551 = vpow2.f32 %v2708_v27  ;;  %v2706_v5 = vsub.f32 %v10904_v8, %v2701_v0  ;;  %2459 = vadd.xlane.f32.xlu0 %v2458_v24 }
0x12d7   :  { %v10947_v21 = vpop.eup %9547  ;;  %v2710_v55 = vmul.f32 1.442695, %v2706_v5 }
0x12d8   :  { %v2704_v41 = vpop.xlane.xlu1 %2703  ;;  %v2461_v60 = vsel %vm545_vm6, %v10947_v21, 0.0 }
0x12d9   :  { %9553 = vpow2.f32 %v2710_v55  ;;  %v2707_v52 = vsub.f32 %v10908_v58, %v2704_v41  ;;  %2462 = vadd.xlane.f32.xlu1 %v2461_v60 }
0x12db   :  { %v10952_v14 = vpop.eup %9549  ;;  %v2712_v32 = vmul.f32 1.442695, %v2707_v52 }
0x12dc   :  { %v2952_v39 = vpop.xlane.xlu0 %2951  ;;  %v2464_v23 = vsel %vm552_vm7, %v10952_v14, 0.0 }
0x12dd   :  { %9555 = vpow2.f32 %v2712_v32  ;;  %v2959_v8 = vsub.f32 %v10912_v53, %v2952_v39  ;;  %2465 = vadd.xlane.f32.xlu0 %v2464_v23 }
0x12df   :  { %v10957_v43 = vpop.eup %9551  ;;  %v2962_v40 = vmul.f32 1.442695, %v2959_v8 }
0x12e0   :  { %v2714_v49 = vsel %vm545_vm6, %v10957_v43, 0.0  ;;  %v2955_v61 = vpop.xlane.xlu1 %2954 }
0x12e1   :  { %9557 = vpow2.f32 %v2962_v40  ;;  %2715 = vadd.xlane.f32.xlu1 %v2714_v49  ;;  %v2960_v1 = vsub.f32 %v10916_v10, %v2955_v61 }
0x12e3   :  { %v10961_v58 = vpop.eup %9553  ;;  %v2964_v62 = vmul.f32 1.442695, %v2960_v1 }
0x12e4   :  { %v2717_v51 = vsel %vm545_vm6, %v10961_v58, 0.0  ;;  %v2958_v63 = vpop.xlane.xlu0 %2957  ;;  %v9372_v17 = vpop.permute.xlu1 %9371 }
0x12e5   :  { %2718 = vadd.xlane.f32.xlu0 %v2717_v51  ;;  %v2961_v57 = vsub.f32 %v10920_v45, %v2958_v63  ;;  %9559 = vpow2.f32 %v2964_v62  ;;  %v9374_v20 = vunpack.i.h.bf16 %v9372_v17  ;;  %v9373_v50 = vunpack.i.l.bf16 %v9372_v17 }
0x12e7   :  { %v10965_v59 = vpop.eup %9555  ;;  %v2966_v35 = vmul.f32 1.442695, %v2961_v57  ;;  %v8959_v0 = vpack.c.bf16 %v9374_v20, %v9373_v50 }
0x12e8   :  { %v2720_v53 = vsel %vm552_vm7, %v10965_v59, 0.0 }
0x12e9   :  { %2721 = vadd.xlane.f32.xlu0 %v2720_v53  ;;  %9561 = vpow2.f32 %v2966_v35 }
0x12eb   :  { %v10969_v29 = vpop.eup %9557 }
0x12ec   :  { %v2968_v56 = vsel %vm545_vm6, %v10969_v29, 0.0 }
0x12ed   :  { %2969 = vadd.xlane.f32.xlu0 %v2968_v56 }
0x12ef   :  { %v10985_v2 = vpop.eup %9559 }
0x12f2   :  { %9376 = vrot.lane.b32.xlu1 %v10804_v46, %s12791_s1 }
0x12f3   :  { %v10987_v12 = vpop.eup %9561 }
0x12f6   :  { %2733 = vrot.lane.b32.xlu1 %v10810_v15, %s12791_s1 }
0x12fa   :  { %9381 = vrot.lane.b32.xlu1 %v10804_v46, %s12792_s5  ;;  %v2971_v46 = vsel %vm545_vm6, %v10985_v2, 0.0 }
0x12fe   :  { %2987 = vrot.lane.b32.xlu1 %v10810_v15, %s12792_s5 }
0x1303   :  { %2479 = vrot.lane.b32.xlu0 %v10810_v15, %s12790_s6  ;;  %v2974_v15 = vsel %vm552_vm7, %v10987_v12, 0.0 }
0x1322   :  { %2972 = vadd.xlane.f32.xlu1 %v2971_v46  ;;  %2975 = vadd.xlane.f32.xlu0 %v2974_v15 }
0x1352   :  { %v2225_v10 = vpop.xlane.xlu1 %2224 }
0x1353   :  { %9563 = vrcp.f32 %v2225_v10 }
0x1356   :  { %v2228_v45 = vpop.xlane.xlu0 %2227 }
0x1357   :  { %9565 = vrcp.f32 %v2228_v45 }
0x135a   :  { %v2231_v11 = vpop.xlane.xlu1 %2230 }
0x135b   :  { %9567 = vrcp.f32 %v2231_v11 }
0x135d   :  { %v9564_v26 = vpop.eup %9563 }
0x135e   :  { %v2235_v27 = vmul.f32 %v9564_v26, %v10926_v18 }
0x1360   :  { %8348 = vmatmul.mubr.msk.f32.vlgmr.msra.gmra.mrb[46].mxu1 %vm545_vm6, %v2235_v27 }
0x1361   :  { %v9566_v24 = vpop.eup %9565  ;;  %8960 = vmatpush3.bf16.msra.mxu1 %v8959_v0  ;;  %8350 = vmatprep.mubr.msk.f32.mxu1 %vm9825_vm2, %v9823_v33 }
0x1362   :  { %v2236_v5 = vmul.f32 %v9566_v24, %v10931_v42  ;;  %8375 = vmatprep.subr.mxu1 %v9823_v33  ;;  %v2460_v41 = vpop.xlane.xlu0 %2459 }
0x1363   :  { %9569 = vrcp.f32 %v2460_v41 }
0x1364   :  { %8351 = vmatmul.mubr.msk.f32.gmra.mrb[48].mxu1 %vm545_vm6, %v2236_v5 }
0x1365   :  { %v9568_v55 = vpop.eup %9567  ;;  %8353 = vmatprep.mubr.msk.f32.mxu1 %vm9825_vm2, %v9823_v33 }
0x1366   :  { %v2237_v18 = vmul.f32 %v9568_v55, %v10936_v30  ;;  %v2463_v60 = vpop.xlane.xlu1 %2462 }
0x1367   :  { %9571 = vrcp.f32 %v2463_v60 }
0x1368   :  { %8354 = vmatmul.mubr.msk.f32.gmra.mrb[50].mxu1 %vm545_vm6, %v2237_v18 }
0x1369   :  { %8377 = vmatprep.mubr.msk.f32.mxu1 %vm9825_vm2, %v9823_v33 }
0x136a   :  { %v2466_v52 = vpop.xlane.xlu0 %2465 }
0x136b   :  { %9573 = vrcp.f32 %v2466_v52  ;;  %v7487_v52 = vld [vmem:[%s12708_s9 + $0x48] sm:$0xff] }
0x136d   :  { %v9570_v40 = vpop.eup %9569 }
0x136e   :  { %v2716_v42 = vpop.xlane.xlu1 %2715  ;;  %v2470_v30 = vmul.f32 %v9570_v40, %v10942_v36 }
0x136f   :  { %9575 = vrcp.f32 %v2716_v42  ;;  %v7488_v42 = vld [vmem:[%s12708_s9 + $0x50] sm:$0xff] }
0x1371   :  { %v9572_v61 = vpop.eup %9571 }
0x1372   :  { %v2719_v32 = vpop.xlane.xlu0 %2718  ;;  %v9377_v23 = vpop.permute.xlu1 %9376  ;;  %v2471_v1 = vmul.f32 %v9572_v61, %v10947_v21 }
0x1373   :  { %v9379_v49 = vunpack.i.h.bf16 %v9377_v23  ;;  %v9378_v51 = vunpack.i.l.bf16 %v9377_v23  ;;  %9577 = vrcp.f32 %v2719_v32  ;;  %v7489_v23 = vld [vmem:[%s12708_s9 + $0x58] sm:$0xff] }
0x1375   :  { %v8966_v63 = vpack.c.bf16 %v9379_v49, %v9378_v51  ;;  %v9574_v36 = vpop.eup %9573 }
0x1376   :  { %v2722_v39 = vpop.xlane.xlu0 %2721  ;;  %v2734_v53 = vpop.permute.xlu1 %2733  ;;  %v2472_v62 = vmul.f32 %v9574_v36, %v10952_v14  ;;  %v7492_v36 = vld [vmem:[%s12708_s9 + $0x70] sm:$0xff] }
0x1377   :  { %9579 = vrcp.f32 %v2722_v39 }
0x1379   :  { %v9576_v35 = vpop.eup %9575 }
0x137a   :  { %v2970_v8 = vpop.xlane.xlu0 %2969  ;;  %v9382_v57 = vpop.permute.xlu1 %9381  ;;  %v2726_v21 = vmul.f32 %v9576_v35, %v10957_v43 }
0x137b   :  { %v9384_v46 = vunpack.i.h.bf16 %v9382_v57  ;;  %v9383_v15 = vunpack.i.l.bf16 %v9382_v57  ;;  %9581 = vrcp.f32 %v2970_v8  ;;  %v8979_v8 = vpack.c.bf16 %v7489_v23, %v7488_v42  ;;  %v7493_v57 = vld [vmem:[%s12708_s9 + $0x78] sm:$0xff] }
0x137c   :  { %v8985_v35 = vpack.c.bf16 %v7493_v57, %v7492_v36  ;;  %v7506_v36 = vld [vmem:[%s12712_s13 + $0x98] sm:$0xff] }
0x137d   :  { %v9578_v17 = vpop.eup %9577  ;;  %v8973_v10 = vpack.c.bf16 %v9384_v46, %v9383_v15 }
0x137e   :  { %v2480_v56 = vpop.permute.xlu0 %2479  ;;  %v2727_v14 = vmul.f32 %v9578_v17, %v10961_v58  ;;  %v2988_v11 = vpop.permute.xlu1 %2987 }
0x137f   :  { %8376 = vmatpush3.msk.msra.mxu1 %vm589_vm5, %v2480_v56  ;;  %v7491_v56 = vld [vmem:[%s12708_s9 + $0x68] sm:$0xff] }
0x1380   :  { %8378 = vmatmul.mubr.msk.f32.vlgmr.msra.gmra.mrb[52].mxu1 %vm545_vm6, %v2470_v30  ;;  %8965 = vmatprep.subr.bf16.mxu1 %v9822_v3 }
0x1381   :  { %8967 = vmatpush3.bf16.msra.mxu1 %v8966_v63  ;;  %8380 = vmatprep.mubr.msk.f32.mxu1 %vm9825_vm2, %v9823_v33  ;;  %v9580_v45 = vpop.eup %9579 }
0x1382   :  { %8405 = vmatprep.subr.mxu1 %v9823_v33  ;;  %v2728_v43 = vmul.f32 %v9580_v45, %v10965_v59 }
0x1384   :  { %8381 = vmatmul.mubr.msk.f32.gmra.mrb[54].mxu1 %vm545_vm6, %v2471_v1 }
0x1385   :  { %8406 = vmatpush3.msk.msra.mxu1 %vm589_vm5, %v2734_v53  ;;  %8383 = vmatprep.mubr.msk.f32.mxu1 %vm9825_vm2, %v9823_v33  ;;  %v9582_v20 = vpop.eup %9581  ;;  %v7490_v53 = vld [vmem:[%s12708_s9 + $0x60] sm:$0xff] }
0x1386   :  { %8972 = vmatprep.subr.bf16.mxu1 %v9822_v3  ;;  %v2980_v50 = vmul.f32 %v9582_v20, %v10969_v29  ;;  %v8982_v63 = vpack.c.bf16 %v7491_v56, %v7490_v53 }
0x1388   :  { %8384 = vmatmul.mubr.msk.f32.gmra.mrb[56].mxu1 %vm545_vm6, %v2472_v62 }
0x1389   :  { %8407 = vmatprep.mubr.msk.f32.mxu1 %vm9825_vm2, %v9823_v33 }
0x138c   :  { %8408 = vmatmul.mubr.msk.f32.vlgmr.msra.gmra.mrb[58].mxu1 %vm545_vm6, %v2726_v21 }
0x138d   :  { %8974 = vmatpush3.bf16.msra.mxu1 %v8973_v10  ;;  %8410 = vmatprep.mubr.msk.f32.mxu1 %vm9825_vm2, %v9823_v33 }
0x138e   :  { %8435 = vmatprep.subr.mxu1 %v9823_v33 }
0x1390   :  { %8411 = vmatmul.mubr.msk.f32.gmra.mrb[60].mxu1 %vm545_vm6, %v2727_v14 }
0x1391   :  { %8436 = vmatpush3.msk.msra.mxu1 %vm589_vm5, %v2988_v11  ;;  %8413 = vmatprep.mubr.msk.f32.mxu1 %vm9825_vm2, %v9823_v33 }
0x1394   :  { %8414 = vmatmul.mubr.msk.f32.gmra.mrb[62].mxu1 %vm545_vm6, %v2728_v43 }
0x1395   :  { %8437 = vmatprep.mubr.msk.f32.mxu1 %vm9825_vm2, %v9823_v33 }
0x1398   :  { %8438 = vmatmul.mubr.msk.f32.vlgmr.msra.gmra.mrb[64].mxu1 %vm545_vm6, %v2980_v50 }
0x1399   :  { %8440 = vmatprep.mubr.msk.f32.mxu1 %vm9825_vm2, %v9823_v33 }
0x13af   :  { %v2973_v58 = vpop.xlane.xlu1 %2972  ;;  %v2976_v26 = vpop.xlane.xlu0 %2975 }
0x13b0   :  { %9583 = vrcp.f32 %v2973_v58 }
0x13b1   :  { %9585 = vrcp.f32 %v2976_v26 }
0x13ba   :  { %v9584_v27 = vpop.eup %9583 }
0x13bb   :  { %v2981_v59 = vmul.f32 %v9584_v27, %v10985_v2  ;;  %v9586_v0 = vpop.eup %9585 }
0x13bc   :  { %v2982_v29 = vmul.f32 %v9586_v0, %v10987_v12  ;;  %v7486_v12 = vld [vmem:[%s12708_s9 + $0x40] sm:$0xff] }
0x13bd   :  { %8441 = vmatmul.mubr.msk.f32.gmra.mrb[66].mxu1 %vm545_vm6, %v2981_v59  ;;  %v8976_v39 = vpack.c.bf16 %v7487_v52, %v7486_v12 }
0x13be   :  { %8443 = vmatprep.mubr.msk.f32.mxu1 %vm9825_vm2, %v9823_v33 }
0x13bf   :  { %8977 = vmatpush3.bf16.msra.mxu0 %v8976_v39 }
0x13c0   :  { %8978 = vmatprep.subr.bf16.mxu0 %v9822_v3 }
0x13c1   :  { %8444 = vmatmul.mubr.msk.f32.gmra.mrb[68].mxu1 %vm545_vm6, %v2982_v29 }
0x13c2   :  { %3376 = vmatprep.mubr.f32.mxu1 %v9823_v33 }
0x13c3   :  { %8980 = vmatpush3.bf16.msra.mxu0 %v8979_v8 }
0x13c4   :  { %8981 = vmatprep.subr.bf16.mxu0 %v9822_v3 }
0x13c7   :  { %8983 = vmatpush3.bf16.msra.mxu0 %v8982_v63 }
0x13c8   :  { %8984 = vmatprep.subr.bf16.mxu0 %v9822_v3 }
0x13cb   :  { %8986 = vmatpush3.bf16.msra.mxu0 %v8985_v35  ;;  %v7505_v35 = vld [vmem:[%s12712_s13 + $0x90] sm:$0xff] }
0x1433   :  { %v2316_v24 = vpop.f32.mrb[46].mxu1 }
0x1434   :  { %2330 = vst.msk [vmem:[#allocation2] sm:$0xff] %vm449_vm3, %v2316_v24  ;;  %v8349_v5 = vpop.f32.mrb[47].mxu1 }
0x1437   :  { %v2321_v55 = vpop.f32.mrb[48].mxu1 }
0x1438   :  { %2331 = vst.msk [vmem:[#allocation2 + $0x8] sm:$0xff] %vm449_vm3, %v2321_v55  ;;  %v8352_v2 = vpop.f32.mrb[49].mxu1 }
0x143b   :  { %v2326_v18 = vpop.f32.mrb[50].mxu1 }
0x143c   :  { %2332 = vst.msk [vmem:[#allocation2 + $0x10] sm:$0x1] %vm675_vm8, %v2326_v18  ;;  %v8355_v41 = vpop.f32.mrb[51].mxu1 }
0x143d   :  { %v7498_v41 = vld [vmem:[%s12709_s10 + $0x1] ss:$0 sm:$0xff] }
0x1453   :  { %v2560_v60 = vpop.f32.mrb[52].mxu1 }
0x1454   :  { %2577 = vrot.lane.b32.xlu0 %v2560_v60, %s12788_s23  ;;  %v8379_v32 = vpop.f32.mrb[53].mxu1 }
0x1457   :  { %v2565_v40 = vpop.f32.mrb[54].mxu1 }
0x1458   :  { %2579 = vrot.lane.b32.xlu0 %v2565_v40, %s12788_s23  ;;  %v8382_v49 = vpop.f32.mrb[55].mxu1 }
0x145b   :  { %v2570_v51 = vpop.f32.mrb[56].mxu1 }
0x145c   :  { %v8385_v30 = vpop.f32.mrb[57].mxu1 }
0x145f   :  { %v2814_v61 = vpop.f32.mrb[58].mxu1 }
0x1460   :  { %2831 = vrot.lane.b32.xlu1 %v2814_v61, %s12786_s25  ;;  %v8409_v1 = vpop.f32.mrb[59].mxu1 }
0x1463   :  { %v2819_v62 = vpop.f32.mrb[60].mxu1 }
0x1464   :  { %v8412_v46 = vpop.f32.mrb[61].mxu1 }
0x1467   :  { %v2824_v15 = vpop.f32.mrb[62].mxu1 }
0x1468   :  { %v8415_v21 = vpop.f32.mrb[63].mxu1 }
0x1469   :  { %v7510_v21 = vld [vmem:[%s12712_s13 + $0xb8] sm:$0xff] }
0x146b   :  { %v3068_v17 = vpop.f32.mrb[64].mxu1 }
0x146c   :  { %3085 = vrot.lane.b32.xlu1 %v3068_v17, %s12787_s7  ;;  %v8439_v10 = vpop.f32.mrb[65].mxu1 }
0x146d   :  { %v7507_v10 = vld [vmem:[%s12712_s13 + $0xa0] sm:$0xff] }
0x1470   :  { %2833 = vrot.lane.b32.xlu1 %v2819_v62, %s12786_s25  ;;  %v7503_v62 = vld [vmem:[%s12712_s13 + $0x80] sm:$0xff] }
0x1471   :  { %v8989_v46 = vpack.c.bf16 %v7505_v35, %v7503_v62 }
0x1474   :  { %2581 = vrot.lane.b32.xlu1 %v2570_v51, %s12788_s23 }
0x1490   :  { %v3073_v14 = vpop.f32.mrb[66].mxu1 }
0x1491   :  { %3087 = vrot.lane.b32.xlu0 %v3073_v14, %s12787_s7  ;;  %v8442_v45 = vpop.f32.mrb[67].mxu1  ;;  %v7509_v14 = vld [vmem:[%s12712_s13 + $0xb0] sm:$0xff] }
0x1492   :  { %v8993_v45 = vpack.c.bf16 %v7509_v14, %v7507_v10  ;;  %v7523_v14 = vld [vmem:[%s12714_s15 + $0x100] sm:$0xff] }
0x1494   :  { %v3078_v11 = vpop.f32.mrb[68].mxu1 }
0x1495   :  { %2835 = vrot.lane.b32.xlu0 %v2824_v15, %s12786_s25  ;;  %3089 = vrot.lane.b32.xlu1 %v3078_v11, %s12787_s7  ;;  %v8445_v43 = vpop.f32.mrb[69].mxu1  ;;  %v7508_v15 = vld [vmem:[%s12712_s13 + $0xa8] sm:$0xff] }
0x1496   :  { %v8991_v17 = vpack.c.bf16 %v7510_v21, %v7508_v15  ;;  %v7512_v11 = vld [vmem:[%s12712_s13 + $0xc8] sm:$0xff]  ;;  %v7514_v43 = vld [vmem:[%s12712_s13 + $0xd8] sm:$0xff]  ;;  %v7563_v15 = vld [vmem:[%s12776_s2 + $0x50] sm:$0x1] }
0x1497   :  { %v7539_v21 = vld [vmem:[%s12714_s15 + $0x180] sm:$0xff] }
0x14c6   :  { %v2578_v20 = vpop.permute.xlu0 %2577 }
0x14c7   :  { %2586 = vst.msk [vmem:[#allocation2] sm:$0xff] %vm930_vm9, %v2578_v20  ;;  %v8995_v20 = vpack.c.bf16 %v7514_v43, %v7512_v11  ;;  %v7541_v43 = vld [vmem:[%s12714_s15 + $0x190] sm:$0xff] }
0x14ca   :  { %v2580_v50 = vpop.permute.xlu0 %2579 }
0x14cb   :  { %2587 = vst.msk [vmem:[#allocation2 + $0x8] sm:$0xff] %vm930_vm9, %v2580_v50  ;;  %v7511_v50 = vld [vmem:[%s12712_s13 + $0xc0] sm:$0xff] }
0x14d2   :  { %v2832_v58 = vpop.permute.xlu1 %2831 }
0x14d3   :  { %2840 = vst.msk [vmem:[#allocation2] sm:$0xff] %vm1186_vm10, %v2832_v58  ;;  %v7513_v58 = vld [vmem:[%s12712_s13 + $0xd0] sm:$0xff] }
0x14de   :  { %v3086_v26 = vpop.permute.xlu1 %3085 }
0x14df   :  { %3094 = vst.msk [vmem:[#allocation2] sm:$0xff] %vm1442_vm11, %v3086_v26  ;;  %v8997_v26 = vpack.c.bf16 %v7513_v58, %v7511_v50  ;;  %v7525_v58 = vld [vmem:[%s12714_s15 + $0x110] sm:$0xff] }
0x14e2   :  { %v2834_v27 = vpop.permute.xlu1 %2833 }
0x14e3   :  { %2841 = vst.msk [vmem:[#allocation2 + $0x8] sm:$0xff] %vm1186_vm10, %v2834_v27  ;;  %v7516_v27 = vld [vmem:[%s12712_s13 + $0xe8] sm:$0xff] }
0x14e6   :  { %v2582_v59 = vpop.permute.xlu1 %2581  ;;  %v3097_v0 = vld [vmem:[#allocation2] sm:$0xff] }
0x14e7   :  { %2588 = vst.msk [vmem:[#allocation2 + $0x10] sm:$0x1] %vm933_vm12, %v2582_v59  ;;  %8463 = vmatmul.mubr.msk.f32.vlgmr.msra.gmra.mrb[62].mxu0 %vm110_vm0, %v3097_v0  ;;  %v7518_v59 = vld [vmem:[%s12712_s13 + $0xf8] sm:$0xff] }
0x14e8   :  { %8465 = vmatprep.mubr.msk.f32.mxu0 %vm9825_vm2, %v9823_v33 }
0x1503   :  { %v3088_v29 = vpop.permute.xlu0 %3087 }
0x1504   :  { %3095 = vst.msk [vmem:[#allocation2 + $0x8] sm:$0xff] %vm1442_vm11, %v3088_v29  ;;  %v8999_v29 = vpack.c.bf16 %v7518_v59, %v7516_v27  ;;  %v7543_v59 = vld [vmem:[%s12714_s15 + $0x1a0] sm:$0xff] }
0x1507   :  { %v3090_v24 = vpop.permute.xlu1 %3089  ;;  %v2836_v5 = vpop.permute.xlu0 %2835 }
0x1508   :  { %2842 = vst.msk [vmem:[#allocation2 + $0x10] sm:$0x1] %vm1189_vm13, %v2836_v5  ;;  %v7517_v5 = vld [vmem:[%s12712_s13 + $0xf0] sm:$0xff] }
0x1509   :  { %3096 = vst.msk [vmem:[#allocation2 + $0x10] sm:$0x1] %vm1445_vm14, %v3090_v24  ;;  %v7515_v24 = vld [vmem:[%s12712_s13 + $0xe0] sm:$0xff] }
0x150b   :  { %v3098_v55 = vld [vmem:[#allocation2 + $0x8] sm:$0xff] }
0x150c   :  { %8466 = vmatmul.mubr.msk.f32.gmra.mrb[64].mxu0 %vm110_vm0, %v3098_v55 }
0x150d   :  { %8468 = vmatprep.mubr.msk.f32.mxu0 %vm9825_vm2, %v9823_v33 }
0x1510   :  { %v3099_v2 = vld [vmem:[#allocation2 + $0x10] sm:$0x1] }
0x1511   :  { %8469 = vmatmul.mubr.msk.f32.gmra.mrb[66].mxu0 %vm110_vm0, %v3099_v2  ;;  %v9001_v2 = vpack.c.bf16 %v7517_v5, %v7515_v24  ;;  %v7527_v24 = vld [vmem:[%s12714_s15 + $0x120] sm:$0xff]  ;;  %v7528_v5 = vld [vmem:[%s12714_s15 + $0x128] sm:$0xff] }
0x15ba   :  { %v3184_v18 = vpop.f32.mrb[62].mxu0 }
0x15bb   :  { %v3198_v60 = vadd.f32 %v3184_v18, %v10717_v44  ;;  %v8464_v12 = vpop.f32.mrb[63].mxu0 }
0x15bd   :  { %v11107_v52 = vadd.f32 %v7498_v41, %v3198_v60 }
0x15bf   :  { %v3216_v42 = vsel %vm110_vm0, %v11107_v52, 0.0 }
0x15c0   :  { %3217 = vadd.xlane.f32.xlu0 %v3216_v42 }
0x15df   :  { %v3189_v32 = vpop.f32.mrb[64].mxu0 }
0x15e0   :  { %v3199_v39 = vadd.f32 %v3189_v32, %v10722_v48  ;;  %v8467_v23 = vpop.f32.mrb[65].mxu0 }
0x15e2   :  { %v11112_v8 = vadd.f32 %v7498_v41, %v3199_v39 }
0x15e4   :  { %v3194_v40 = vpop.f32.mrb[66].mxu0  ;;  %v3219_v49 = vsel %vm110_vm0, %v11112_v8, 0.0 }
0x15e5   :  { %v3200_v51 = vadd.f32 %v3194_v40, %v10727_v47  ;;  %3220 = vadd.xlane.f32.xlu1 %v3219_v49  ;;  %v8470_v44 = vpop.f32.mrb[67].mxu0  ;;  %v7504_v47 = vld [vmem:[%s12712_s13 + $0x88] sm:$0xff] }
0x15e6   :  { %v8987_v57 = vpack.c.bf16 %v7506_v36, %v7504_v47 }
0x15e7   :  { %v11117_v30 = vadd.f32 %v7498_v41, %v3200_v51 }
0x15e8   :  { %8988 = vmatprep.subr.bf16.mxu1 %v8987_v57 }
0x15e9   :  { %v3222_v53 = vsel %vm208_vm1, %v11117_v30, 0.0  ;;  %8990 = vmatpush1.bf16.msra.mxu1 %v8989_v46  ;;  %v7562_v46 = vld [vmem:[%s12776_s2 + $0x48] sm:$0xff] }
0x15ea   :  { %3223 = vadd.xlane.f32.xlu0 %v3222_v53  ;;  %8992 = vmatprep.subr.bf16.mxu1 %v8991_v17  ;;  %v7501_v53 = vld [vmem:[%s12710_s11 + $0x1] ss:$0 sm:$0xff]  ;;  %v7540_v17 = vld [vmem:[%s12714_s15 + $0x188] sm:$0xff] }
0x15eb   :  { %v9003_v10 = vpack.c.bf16 %v7540_v17, %v7539_v21 }
0x15ed   :  { %8994 = vmatpush1.bf16.msra.mxu1 %v8993_v45  ;;  %v7524_v45 = vld [vmem:[%s12714_s15 + $0x108] sm:$0xff]  ;;  %9004 = vmatprep.subr.bf16.mxu0 %v9003_v10 }
0x15ee   :  { %8996 = vmatprep.subr.bf16.mxu1 %v8995_v20  ;;  %v9005_v11 = vpack.c.bf16 %v7524_v45, %v7523_v14  ;;  %v7542_v20 = vld [vmem:[%s12714_s15 + $0x198] sm:$0xff] }
0x15ef   :  { %v9007_v50 = vpack.c.bf16 %v7542_v20, %v7541_v43 }
0x15f0   :  { %9006 = vmatpush3.bf16.msra.mxu0 %v9005_v11 }
0x15f1   :  { %8998 = vmatpush1.bf16.msra.mxu1 %v8997_v26  ;;  %v7526_v26 = vld [vmem:[%s12714_s15 + $0x118] sm:$0xff]  ;;  %9008 = vmatprep.subr.bf16.mxu0 %v9007_v50 }
0x15f2   :  { %9000 = vmatprep.subr.bf16.mxu1 %v8999_v29  ;;  %v9009_v27 = vpack.c.bf16 %v7526_v26, %v7525_v58 }
0x15f4   :  { %9010 = vmatpush3.bf16.msra.mxu0 %v9009_v27 }
0x15f5   :  { %9002 = vmatpush1.bf16.msra.mxu1 %v9001_v2  ;;  %v7545_v2 = vld [vmem:[%s12714_s15 + $0x1b0] sm:$0xff] }
0x15f6   :  { %9035 = vmatprep.subr.bf16.mxu1 %v9822_v3 }
0x164d   :  { %v3218_v56 = vpop.xlane.xlu0 %3217 }
0x164e   :  { %v3225_v61 = vmul.f32 0.015625, %v3218_v56 }
0x1650   :  { %v3228_v48 = vsub.f32 %v11107_v52, %v3225_v61  ;;  %v7502_v61 = vld [vmem:[%s12711_s12 + $0x1] ss:$0 sm:$0xff] }
0x1652   :  { %v3231_v63 = vmul.f32 %v3228_v48, %v3228_v48 }
0x1654   :  { %v3234_v1 = vsel %vm110_vm0, %v3231_v63, 0.0 }
0x1655   :  { %3235 = vadd.xlane.f32.xlu0 %v3234_v1 }
0x1672   :  { %v3221_v0 = vpop.xlane.xlu1 %3220 }
0x1673   :  { %v3226_v55 = vmul.f32 0.015625, %v3221_v0  ;;  %v7544_v0 = vld [vmem:[%s12714_s15 + $0x1a8] sm:$0xff] }
0x1674   :  { %v9011_v29 = vpack.c.bf16 %v7544_v0, %v7543_v59 }
0x1675   :  { %v3229_v18 = vsub.f32 %v11112_v8, %v3226_v55  ;;  %v9013_v55 = vpack.c.bf16 %v7528_v5, %v7527_v24 }
0x1676   :  { %9012 = vmatprep.subr.bf16.mxu0 %v9011_v29 }
0x1677   :  { %v3224_v41 = vpop.xlane.xlu0 %3223  ;;  %v3232_v60 = vmul.f32 %v3229_v18, %v3229_v18  ;;  %9014 = vmatpush3.bf16.msra.mxu0 %v9013_v55 }
0x1678   :  { %v3227_v12 = vmul.f32 0.015625, %v3224_v41 }
0x1679   :  { %v3237_v42 = vsel %vm110_vm0, %v3232_v60, 0.0  ;;  %v7529_v60 = vld [vmem:[%s12714_s15 + $0x130] sm:$0xff] }
0x167a   :  { %v3230_v32 = vsub.f32 %v11117_v30, %v3227_v12  ;;  %3238 = vadd.xlane.f32.xlu0 %v3237_v42  ;;  %v7530_v12 = vld [vmem:[%s12714_s15 + $0x138] sm:$0xff] }
0x167b   :  { %v9017_v42 = vpack.c.bf16 %v7530_v12, %v7529_v60 }
0x167c   :  { %v3233_v39 = vmul.f32 %v3230_v32, %v3230_v32 }
0x167e   :  { %v3240_v23 = vsel %vm208_vm1, %v3233_v39, 0.0  ;;  %v7548_v39 = vld [vmem:[%s12714_s15 + $0x1c8] sm:$0xff] }
0x167f   :  { %3241 = vadd.xlane.f32.xlu1 %v3240_v23 }
0x16e2   :  { %v3236_v40 = vpop.xlane.xlu0 %3235 }
0x16e3   :  { %v3243_v49 = vmul.f32 0.015625, %v3236_v40  ;;  %v7531_v40 = vld [vmem:[%s12714_s15 + $0x140] sm:$0xff] }
0x16e5   :  { %v3246_v51 = vadd.f32 1e-05, %v3243_v49  ;;  %v7532_v49 = vld [vmem:[%s12714_s15 + $0x148] sm:$0xff] }
0x16e7   :  { %9587 = vrsqrt.f32 %v3246_v51  ;;  %v9021_v51 = vpack.c.bf16 %v7532_v49, %v7531_v40 }
0x16f1   :  { %v9588_v44 = vpop.eup %9587 }
0x16f2   :  { %v3252_v56 = vmul.f32 %v9588_v44, %v3228_v48  ;;  %v7549_v44 = vld [vmem:[%s12714_s15 + $0x1d0] sm:$0xff] }
0x16f4   :  { %v3261_v63 = vmul.f32 %v7501_v53, %v3252_v56 }
0x16f6   :  { %v3270_v1 = vadd.f32 %v7502_v61, %v3261_v63  ;;  %v7534_v63 = vld [vmem:[%s12714_s15 + $0x158] sm:$0xff] }
0x16f8   :  { %7520 = vmatmul.mubr.msk.f32.vlgmr.msra.gmra.mrb[70].mxu1 %vm110_vm0, %v3270_v1 }
0x16f9   :  { %9037 = vmatpush1.bf16.msra.mxu1 %v9969_v4  ;;  %3382 = vmatprep.mubr.f32.mxu1 %v9823_v33 }
0x16fa   :  { %9038 = vmatprep.subr.bf16.mxu1 %v9822_v3 }
0x16fd   :  { %9040 = vmatpush1.bf16.msra.mxu1 %v9975_v6 }
0x16fe   :  { %9041 = vmatprep.subr.bf16.mxu1 %v9822_v3 }
0x1701   :  { %9043 = vmatpush1.bf16.msra.mxu1 %v9985_v9 }
0x1702   :  { %9044 = vmatprep.subr.bf16.mxu1 %v9822_v3 }
0x1705   :  { %9046 = vmatpush1.bf16.msra.mxu1 %v9999_v13 }
0x1706   :  { %9047 = vmatprep.subr.bf16.mxu1 %v9822_v3 }
0x1707   :  { %v3239_v48 = vpop.xlane.xlu0 %3238 }
0x1708   :  { %v3244_v47 = vmul.f32 0.015625, %v3239_v48  ;;  %v7551_v48 = vld [vmem:[%s12714_s15 + $0x1e0] sm:$0xff] }
0x1709   :  { %9049 = vmatpush1.bf16.msra.mxu1 %v10009_v16 }
0x170a   :  { %v3247_v4 = vadd.f32 1e-05, %v3244_v47  ;;  %9050 = vmatprep.subr.bf16.mxu1 %v9822_v3  ;;  %v7552_v47 = vld [vmem:[%s12714_s15 + $0x1e8] sm:$0xff] }
0x170c   :  { %9589 = vrsqrt.f32 %v3247_v4  ;;  %v3242_v36 = vpop.xlane.xlu1 %3241  ;;  %v9027_v4 = vpack.c.bf16 %v7552_v47, %v7551_v48 }
0x170d   :  { %v3245_v6 = vmul.f32 0.015625, %v3242_v36  ;;  %9052 = vmatpush1.bf16.msra.mxu1 %v10019_v19  ;;  %v7535_v36 = vld [vmem:[%s12714_s15 + $0x160] sm:$0xff] }
0x170e   :  { %9053 = vmatprep.subr.bf16.mxu1 %v9822_v3 }
0x170f   :  { %v3248_v9 = vadd.f32 1e-05, %v3245_v6  ;;  %v7536_v6 = vld [vmem:[%s12714_s15 + $0x168] sm:$0xff] }
0x1711   :  { %9591 = vrsqrt.f32 %v3248_v9  ;;  %9055 = vmatpush1.bf16.msra.mxu1 %v10029_v22  ;;  %v9029_v9 = vpack.c.bf16 %v7536_v6, %v7535_v36  ;;  %v9771_v6 = vld [vmem:[%s12777_s3] sm:$0xff] }
0x1712   :  { %9056 = vmatprep.subr.bf16.mxu1 %v9822_v3 }
0x1715   :  { %9058 = vmatpush1.bf16.msra.mxu1 %v10039_v25 }
0x1716   :  { %v9590_v13 = vpop.eup %9589  ;;  %9059 = vmatprep.subr.bf16.mxu1 %v9822_v3 }
0x1717   :  { %v3253_v16 = vmul.f32 %v9590_v13, %v3229_v18  ;;  %v7546_v18 = vld [vmem:[%s12714_s15 + $0x1b8] sm:$0xff]  ;;  %v7553_v13 = vld [vmem:[%s12714_s15 + $0x1f0] sm:$0xff] }
0x1718   :  { %v9015_v41 = vpack.c.bf16 %v7546_v18, %v7545_v2 }
0x1719   :  { %9061 = vmatpush1.bf16.msra.mxu1 %v10049_v28  ;;  %v3262_v57 = vmul.f32 %v7501_v53, %v3253_v16  ;;  %v7560_v28 = vld [vmem:[%s12776_s2 + $0x38] sm:$0xff] }
0x171a   :  { %9062 = vmatprep.subr.bf16.mxu1 %v9822_v3  ;;  %9016 = vmatprep.subr.bf16.mxu0 %v9015_v41  ;;  %v7554_v16 = vld [vmem:[%s12714_s15 + $0x1f8] sm:$0xff] }
0x171b   :  { %v9592_v19 = vpop.eup %9591  ;;  %v3271_v62 = vadd.f32 %v7502_v61, %v3262_v57  ;;  %9018 = vmatpush3.bf16.msra.mxu0 %v9017_v42  ;;  %v9031_v57 = vpack.c.bf16 %v7554_v16, %v7553_v13 }
0x171c   :  { %v3254_v35 = vmul.f32 %v9592_v19, %v3230_v32  ;;  %v7547_v32 = vld [vmem:[%s12714_s15 + $0x1c0] sm:$0xff]  ;;  %v7537_v19 = vld [vmem:[%s12714_s15 + $0x170] sm:$0xff] }
0x171d   :  { %9064 = vmatpush1.bf16.msra.mxu1 %v10059_v31  ;;  %v7559_v31 = vld [vmem:[%s12776_s2 + $0x30] sm:$0xff]  ;;  %v9019_v23 = vpack.c.bf16 %v7548_v39, %v7547_v32 }
0x171e   :  { %7521 = vmatmul.mubr.msk.f32.gmra.mrb[72].mxu1 %vm110_vm0, %v3271_v62  ;;  %9065 = vmatprep.subr.bf16.mxu1 %v9822_v3  ;;  %v3263_v22 = vmul.f32 %v7501_v53, %v3254_v35  ;;  %v7550_v53 = vld [vmem:[%s12714_s15 + $0x1d8] sm:$0xff] }
0x171f   :  { %3388 = vmatprep.mubr.f32.mxu1 %v9823_v33  ;;  %9020 = vmatprep.subr.bf16.mxu0 %v9019_v23  ;;  %v9023_v56 = vpack.c.bf16 %v7550_v53, %v7549_v44  ;;  %v7538_v62 = vld [vmem:[%s12714_s15 + $0x178] sm:$0xff] }
0x1720   :  { %v3272_v25 = vadd.f32 %v7502_v61, %v3263_v22  ;;  %9022 = vmatpush3.bf16.msra.mxu0 %v9021_v51  ;;  %v7533_v61 = vld [vmem:[%s12714_s15 + $0x150] sm:$0xff]  ;;  %v9033_v35 = vpack.c.bf16 %v7538_v62, %v7537_v19  ;;  %v7519_v22 = vld [vmem:[%s12713_s14 + $0x2] sm:$0x3] }
0x1721   :  { %9067 = vmatpush1.bf16.msra.mxu1 %v10069_v34  ;;  %v7561_v34 = vld [vmem:[%s12776_s2 + $0x40] sm:$0xff]  ;;  %v9025_v1 = vpack.c.bf16 %v7534_v63, %v7533_v61  ;;  %9024 = vmatprep.subr.bf16.mxu0 %v9023_v56 }
0x1722   :  { %7522 = vmatmul.mubr.msk.f32.gmra.mrb[74].mxu1 %vm110_vm0, %v3272_v25  ;;  %9068 = vmatprep.subr.bf16.mxu1 %v9822_v3  ;;  %v3296_v25 = vrot.slane %v7519_v22, %v10216_v54 }
0x1723   :  { %7565 = vmatprep.mubr.msk.f32.mxu1 %vm110_vm0, %v7560_v28  ;;  %v3300_v28 = vrot.slane %v7519_v22, %v10221_v7 }
0x1724   :  { %9026 = vmatpush3.bf16.msra.mxu0 %v9025_v1 }
0x1725   :  { %9070 = vmatpush1.bf16.msra.mxu1 %v10079_v37  ;;  %v7564_v37 = vld [vmem:[%s12776_s2 + $0x58] sm:$0x1]  ;;  %9028 = vmatprep.subr.bf16.mxu0 %v9027_v4 }
0x1726   :  { %9091 = vmatprep.subr.bf16.mxu1 %v9822_v3 }
0x1728   :  { %3719 = vmatmul.mubr.f32.vlgmr.msra.gmra.mrb[76].mxu1 %v7559_v31  ;;  %9030 = vmatpush3.bf16.msra.mxu0 %v9029_v9 }
0x1729   :  { %7566 = vmatprep.mubr.msk.f32.mxu1 %vm110_vm0, %v7562_v46  ;;  %9032 = vmatprep.subr.bf16.mxu0 %v9031_v57 }
0x172c   :  { %3724 = vmatmul.mubr.f32.gmra.mrb[78].mxu1 %v7561_v34  ;;  %9034 = vmatpush3.bf16.msra.mxu0 %v9033_v35 }
0x172d   :  { %7567 = vmatprep.mubr.msk.f32.mxu1 %vm110_vm0, %v7564_v37 }
0x1730   :  { %3729 = vmatmul.mubr.f32.gmra.mrb[80].mxu1 %v7563_v15 }
0x1731   :  { %8492 = vmatprep.mubr.msk.f32.mxu1 %vm9825_vm2, %v9823_v33 }
0x17cb   :  { %v3378_v31 = vpop.f32.mrb[70].mxu1 }
0x17cc   :  { %v3379_v46 = vadd.f32 %v3378_v31, %v3296_v25  ;;  %v3380_v34 = vpop.f32.mrb[71].mxu1 }
0x17cd   :  { %v3381_v37 = vadd.f32 %v3380_v34, %v3300_v28 }
0x17ce   :  { %v3395_v15 = vmul.f32 %v3379_v46, %v3379_v46 }
0x17cf   :  { %v3396_v21 = vmul.f32 %v3381_v37, %v3381_v37 }
0x17d0   :  { %v3401_v17 = vmul.f32 %v3395_v15, %v3379_v46 }
0x17d1   :  { %v3402_v10 = vmul.f32 %v3396_v21, %v3381_v37  ;;  %v9773_v21 = vld [vmem:[%s12777_s3 + $0x10] sm:$0x1] }
0x17d2   :  { %v3407_v14 = vmul.f32 0.044715, %v3401_v17 }
0x17d3   :  { %v3408_v45 = vmul.f32 0.044715, %v3402_v10 }
0x17d4   :  { %v3413_v11 = vadd.f32 %v3407_v14, %v3379_v46 }
0x17d5   :  { %v3414_v43 = vadd.f32 %v3408_v45, %v3381_v37 }
0x17d6   :  { %v3419_v20 = vmul.f32 0.7978846, %v3413_v11 }
0x17d7   :  { %v3420_v50 = vmul.f32 0.7978846, %v3414_v43 }
0x17d8   :  { %9593 = vtanh.f32 %v3419_v20 }
0x17d9   :  { %9595 = vtanh.f32 %v3420_v50 }
0x17e2   :  { %v9594_v58 = vpop.eup %9593 }
0x17e3   :  { %v9596_v26 = vpop.eup %9595  ;;  %v3431_v27 = vadd.f32 1.0, %v9594_v58 }
0x17e4   :  { %v3432_v59 = vadd.f32 1.0, %v9596_v26 }
0x17e5   :  { %v3437_v0 = vmul.f32 0.5, %v3431_v27 }
0x17e6   :  { %v3438_v29 = vmul.f32 0.5, %v3432_v59 }
0x17e7   :  { %v3443_v5 = vmul.f32 %v3437_v0, %v3379_v46 }
0x17e8   :  { %v3444_v24 = vmul.f32 %v3438_v29, %v3381_v37 }
0x17ea   :  { %3546 = vmatprep.mubr.f32.mxu0 %v3444_v24 }
0x17eb   :  { %3547 = vmatmul.mubr.f32.vlgmr.msra.gmra.mrb[68].mxu0 %v3443_v5 }
0x17f1   :  { %v3384_v55 = vpop.f32.mrb[72].mxu1 }
0x17f2   :  { %v3385_v2 = vadd.f32 %v3384_v55, %v3296_v25  ;;  %v3386_v18 = vpop.f32.mrb[73].mxu1 }
0x17f3   :  { %v3387_v41 = vadd.f32 %v3386_v18, %v3300_v28 }
0x17f4   :  { %v3397_v60 = vmul.f32 %v3385_v2, %v3385_v2 }
0x17f5   :  { %v3398_v12 = vmul.f32 %v3387_v41, %v3387_v41  ;;  %v3390_v42 = vpop.f32.mrb[74].mxu1 }
0x17f6   :  { %v3403_v32 = vmul.f32 %v3397_v60, %v3385_v2  ;;  %v3391_v39 = vadd.f32 %v3390_v42, %v3296_v25  ;;  %v3392_v23 = vpop.f32.mrb[75].mxu1 }
0x17f7   :  { %v3404_v40 = vmul.f32 %v3398_v12, %v3387_v41  ;;  %v3393_v49 = vadd.f32 %v3392_v23, %v3300_v28  ;;  %v9772_v28 = vld [vmem:[%s12777_s3 + $0x8] sm:$0xff]  ;;  %s12795_s3 = sld [smem:[#allocation21_spill]] }
0x17f8   :  { %v3409_v51 = vmul.f32 0.044715, %v3403_v32  ;;  %v3399_v44 = vmul.f32 %v3391_v39, %v3391_v39 }
0x17f9   :  { %v3410_v53 = vmul.f32 0.044715, %v3404_v40  ;;  %v3400_v56 = vmul.f32 %v3393_v49, %v3393_v49 }
0x17fa   :  { %v3415_v61 = vadd.f32 %v3409_v51, %v3385_v2  ;;  %v3405_v63 = vmul.f32 %v3399_v44, %v3391_v39 }
0x17fb   :  { %v3416_v1 = vadd.f32 %v3410_v53, %v3387_v41  ;;  %v3406_v48 = vmul.f32 %v3400_v56, %v3393_v49  ;;  %v3720_v47 = vpop.f32.mrb[76].mxu1 }
0x17fc   :  { %v3421_v4 = vmul.f32 0.7978846, %v3415_v61  ;;  %v3411_v36 = vmul.f32 0.044715, %v3405_v63  ;;  %v3721_v9 = vadd.f32 %v9771_v6, %v3720_v47  ;;  %v3722_v13 = vpop.f32.mrb[77].mxu1 }
0x17fd   :  { %v3422_v16 = vmul.f32 0.7978846, %v3416_v1  ;;  %v3412_v57 = vmul.f32 0.044715, %v3406_v48 }
0x17fe   :  { %v3417_v19 = vadd.f32 %v3411_v36, %v3391_v39  ;;  %v3736_v62 = vsel %vm110_vm0, %v3721_v9, 0.0  ;;  %9597 = vtanh.f32 %v3421_v4 }
0x17ff   :  { %v3418_v35 = vadd.f32 %v3412_v57, %v3393_v49  ;;  %v3725_v22 = vpop.f32.mrb[78].mxu1  ;;  %3737 = vadd.xlane.f32.xlu0 %v3736_v62  ;;  %9599 = vtanh.f32 %v3422_v16 }
0x1800   :  { %v3423_v25 = vmul.f32 0.7978846, %v3417_v19  ;;  %v3726_v31 = vadd.f32 %v9772_v28, %v3725_v22  ;;  %v3727_v46 = vpop.f32.mrb[79].mxu1 }
0x1801   :  { %v3424_v34 = vmul.f32 0.7978846, %v3418_v35 }
0x1802   :  { %v3739_v37 = vsel %vm110_vm0, %v3726_v31, 0.0  ;;  %9601 = vtanh.f32 %v3423_v25 }
0x1803   :  { %v3730_v15 = vpop.f32.mrb[80].mxu1  ;;  %3740 = vadd.xlane.f32.xlu1 %v3739_v37  ;;  %9603 = vtanh.f32 %v3424_v34  ;;  %v7568_v37 = vld [vmem:[%s12778_s26] ss:$0 sm:$0xff]  ;;  %s12793_s26 = sld [smem:[#allocation19_spill]] }
0x1804   :  { %v3731_v17 = vadd.f32 %v9773_v21, %v3730_v15  ;;  %v3732_v10 = vpop.f32.mrb[81].mxu1  ;;  %v7569_v21 = vld [vmem:[%s12779_s29] ss:$0 sm:$0xff]  ;;  %s12794_s29 = sld [smem:[#allocation20_spill]] }
0x1806   :  { %v3742_v14 = vsel %vm208_vm1, %v3731_v17, 0.0 }
0x1807   :  { %3743 = vadd.xlane.f32.xlu0 %v3742_v14 }
0x1808   :  { %v9598_v45 = vpop.eup %9597 }
0x1809   :  { %v9600_v11 = vpop.eup %9599  ;;  %v3433_v43 = vadd.f32 1.0, %v9598_v45 }
0x180a   :  { %v3434_v20 = vadd.f32 1.0, %v9600_v11 }
0x180b   :  { %v3439_v50 = vmul.f32 0.5, %v3433_v43 }
0x180c   :  { %v9602_v58 = vpop.eup %9601  ;;  %v3440_v26 = vmul.f32 0.5, %v3434_v20 }
0x180d   :  { %v9604_v27 = vpop.eup %9603  ;;  %v3435_v59 = vadd.f32 1.0, %v9602_v58  ;;  %v3445_v24 = vmul.f32 %v3439_v50, %v3385_v2 }
0x180e   :  { %v3446_v0 = vmul.f32 %v3440_v26, %v3387_v41  ;;  %v3436_v29 = vadd.f32 1.0, %v9604_v27 }
0x180f   :  { %v3441_v5 = vmul.f32 0.5, %v3435_v59 }
0x1810   :  { %3551 = vmatprep.mubr.f32.mxu0 %v3446_v0  ;;  %v3442_v55 = vmul.f32 0.5, %v3436_v29 }
0x1811   :  { %3552 = vmatmul.mubr.f32.gmra.mrb[70].mxu0 %v3445_v24  ;;  %v3447_v60 = vmul.f32 %v3441_v5, %v3391_v39 }
0x1812   :  { %v3448_v18 = vmul.f32 %v3442_v55, %v3393_v49 }
0x1814   :  { %3556 = vmatprep.mubr.f32.mxu0 %v3448_v18 }
0x1815   :  { %3557 = vmatmul.mubr.f32.gmra.mrb[72].mxu0 %v3447_v60 }
0x1816   :  { %3953 = vmatprep.mubr.f32.mxu0 %v9823_v33 }
0x188c   :  { %v3738_v12 = vpop.xlane.xlu0 %3737 }
0x188d   :  { %v3745_v42 = vmul.f32 0.015625, %v3738_v12 }
0x188f   :  { %v3748_v32 = vsub.f32 %v3721_v9, %v3745_v42 }
0x1890   :  { %v3741_v23 = vpop.xlane.xlu1 %3740 }
0x1891   :  { %v3746_v40 = vmul.f32 0.015625, %v3741_v23  ;;  %v3751_v51 = vmul.f32 %v3748_v32, %v3748_v32 }
0x1893   :  { %v3749_v44 = vsub.f32 %v3726_v31, %v3746_v40  ;;  %v3754_v41 = vsel %vm110_vm0, %v3751_v51, 0.0 }
0x1894   :  { %3755 = vadd.xlane.f32.xlu1 %v3754_v41  ;;  %v3744_v2 = vpop.xlane.xlu0 %3743 }
0x1895   :  { %v3747_v53 = vmul.f32 0.015625, %v3744_v2  ;;  %v3752_v56 = vmul.f32 %v3749_v44, %v3749_v44 }
0x1897   :  { %v3750_v61 = vsub.f32 %v3731_v17, %v3747_v53  ;;  %v3757_v39 = vsel %vm110_vm0, %v3752_v56, 0.0  ;;  %v3853_v53 = vld [vmem:[%s12780_s30 + $0x8] sm:$0xff]  ;;  %v3855_v56 = vld [vmem:[%s12780_s30 + $0x18] sm:$0xff] }
0x1898   :  { %3758 = vadd.xlane.f32.xlu0 %v3757_v39  ;;  %v3852_v39 = vld [vmem:[%s12780_s30] sm:$0xff] }
0x1899   :  { %v3753_v49 = vmul.f32 %v3750_v61, %v3750_v61 }
0x189b   :  { %v3760_v63 = vsel %vm208_vm1, %v3753_v49, 0.0  ;;  %v3854_v49 = vld [vmem:[%s12780_s30 + $0x10] sm:$0xff] }
0x189c   :  { %3761 = vadd.xlane.f32.xlu1 %v3760_v63  ;;  %v9073_v63 = vpack.c.bf16 %v3854_v49, %v3852_v39 }
0x18be   :  { %v7958_v1 = vpop.f32.mrb[68].mxu0 }
0x18bf   :  { %v7959_v48 = vpop.f32.mrb[69].mxu0 }
0x18c0   :  { %v11351_v47 = vadd.f32 %v7959_v48, %v7958_v1  ;;  %v3857_v1 = vld [vmem:[%s12780_s30 + $0x28] sm:$0xff]  ;;  %v3859_v48 = vld [vmem:[%s12780_s30 + $0x38] sm:$0xff] }
0x18e4   :  { %v7961_v4 = vpop.f32.mrb[70].mxu0 }
0x18e5   :  { %v7962_v36 = vpop.f32.mrb[71].mxu0 }
0x18e6   :  { %v11353_v6 = vadd.f32 %v7962_v36, %v7961_v4  ;;  %v9075_v4 = vpack.c.bf16 %v3859_v48, %v3857_v1  ;;  %v3856_v36 = vld [vmem:[%s12780_s30 + $0x20] sm:$0xff] }
0x18e8   :  { %v7964_v9 = vpop.f32.mrb[72].mxu0 }
0x18e9   :  { %v7965_v13 = vpop.f32.mrb[73].mxu0 }
0x18ea   :  { %v11355_v16 = vadd.f32 %v7965_v13, %v7964_v9  ;;  %v3858_v9 = vld [vmem:[%s12780_s30 + $0x30] sm:$0xff] }
0x18eb   :  { %v9077_v13 = vpack.c.bf16 %v3858_v9, %v3856_v36 }
0x1921   :  { %v3756_v57 = vpop.xlane.xlu1 %3755 }
0x1922   :  { %v3763_v19 = vmul.f32 0.015625, %v3756_v57  ;;  %v3861_v57 = vld [vmem:[%s12780_s30 + $0x48] sm:$0xff] }
0x1924   :  { %v3766_v62 = vadd.f32 1e-05, %v3763_v19  ;;  %v3863_v19 = vld [vmem:[%s12780_s30 + $0x58] sm:$0xff] }
0x1925   :  { %v3759_v35 = vpop.xlane.xlu0 %3758 }
0x1926   :  { %9605 = vrsqrt.f32 %v3766_v62  ;;  %v3764_v22 = vmul.f32 0.015625, %v3759_v35  ;;  %v9079_v62 = vpack.c.bf16 %v3863_v19, %v3861_v57  ;;  %v3860_v35 = vld [vmem:[%s12780_s30 + $0x40] sm:$0xff] }
0x1928   :  { %v3767_v25 = vadd.f32 1e-05, %v3764_v22  ;;  %v3862_v22 = vld [vmem:[%s12780_s30 + $0x50] sm:$0xff] }
0x1929   :  { %v3762_v28 = vpop.xlane.xlu1 %3761 }
0x192a   :  { %9607 = vrsqrt.f32 %v3767_v25  ;;  %v3765_v31 = vmul.f32 0.015625, %v3762_v28  ;;  %v9081_v25 = vpack.c.bf16 %v3862_v22, %v3860_v35  ;;  %v3865_v28 = vld [vmem:[%s12780_s30 + $0x68] sm:$0xff] }
0x192c   :  { %v3768_v46 = vadd.f32 1e-05, %v3765_v31  ;;  %v3867_v31 = vld [vmem:[%s12780_s30 + $0x78] sm:$0xff] }
0x192e   :  { %9609 = vrsqrt.f32 %v3768_v46  ;;  %v9083_v46 = vpack.c.bf16 %v3867_v31, %v3865_v28 }
0x1930   :  { %v9606_v34 = vpop.eup %9605 }
0x1931   :  { %v3772_v15 = vmul.f32 %v9606_v34, %v3748_v32  ;;  %v3864_v34 = vld [vmem:[%s12780_s30 + $0x60] sm:$0xff] }
0x1933   :  { %v3781_v17 = vmul.f32 %v7568_v37, %v3772_v15 }
0x1934   :  { %v9608_v10 = vpop.eup %9607 }
0x1935   :  { %v11363_v14 = vadd.f32 %v7569_v21, %v3781_v17  ;;  %v3773_v45 = vmul.f32 %v9608_v10, %v3749_v44 }
0x1937   :  { %v3795_v11 = vsel %vm110_vm0, %v11363_v14, 0.0  ;;  %v3782_v43 = vmul.f32 %v7568_v37, %v3773_v45 }
0x1938   :  { %v9610_v20 = vpop.eup %9609  ;;  %3796 = vadd.xlane.f32.xlu0 %v3795_v11 }
0x1939   :  { %v11367_v50 = vadd.f32 %v7569_v21, %v3782_v43  ;;  %v3774_v58 = vmul.f32 %v9610_v20, %v3750_v61  ;;  %v9071_v61 = vpack.c.bf16 %v3855_v56, %v3853_v53 }
0x193b   :  { %v3798_v26 = vsel %vm110_vm0, %v11367_v50, 0.0  ;;  %v3783_v27 = vmul.f32 %v7568_v37, %v3774_v58  ;;  %9072 = vmatprep.subr.bf16.mxu0 %v9071_v61  ;;  %v3866_v37 = vld [vmem:[%s12780_s30 + $0x70] sm:$0xff] }
0x193c   :  { %3799 = vadd.xlane.f32.xlu1 %v3798_v26  ;;  %9074 = vmatpush1.bf16.msra.mxu0 %v9073_v63  ;;  %v9085_v15 = vpack.c.bf16 %v3866_v37, %v3864_v34 }
0x193d   :  { %v11371_v59 = vadd.f32 %v7569_v21, %v3783_v27  ;;  %9076 = vmatprep.subr.bf16.mxu0 %v9075_v4 }
0x193f   :  { %v3801_v0 = vsel %vm208_vm1, %v11371_v59, 0.0 }
0x1940   :  { %3802 = vadd.xlane.f32.xlu0 %v3801_v0  ;;  %9078 = vmatpush1.bf16.msra.mxu0 %v9077_v13  ;;  %v7570_v0 = vld [vmem:[%s12781_s4] ss:$0 sm:$0xff] }
0x1941   :  { %9080 = vmatprep.subr.bf16.mxu0 %v9079_v62 }
0x1944   :  { %9082 = vmatpush1.bf16.msra.mxu0 %v9081_v25 }
0x1945   :  { %9084 = vmatprep.subr.bf16.mxu0 %v9083_v46 }
0x1948   :  { %9086 = vmatpush1.bf16.msra.mxu0 %v9085_v15 }
0x1949   :  { %9087 = vmatprep.subr.bf16.mxu0 %v9822_v3 }
0x19c5   :  { %v3797_v29 = vpop.xlane.xlu0 %3796 }
0x19c6   :  { %v3804_v24 = vmul.f32 0.015625, %v3797_v29 }
0x19c8   :  { %v11376_v5 = vsub.f32 %v11363_v14, %v3804_v24  ;;  %v7571_v24 = vld [vmem:[%s12782_s27] ss:$0 sm:$0xff] }
0x19c9   :  { %v3800_v55 = vpop.xlane.xlu1 %3799 }
0x19ca   :  { %v3805_v18 = vmul.f32 0.015625, %v3800_v55  ;;  %v3810_v60 = vmul.f32 %v11376_v5, %v11376_v5 }
0x19cc   :  { %v11381_v12 = vsub.f32 %v11367_v50, %v3805_v18  ;;  %v3813_v42 = vsel %vm110_vm0, %v3810_v60, 0.0 }
0x19cd   :  { %3814 = vadd.xlane.f32.xlu1 %v3813_v42  ;;  %v3803_v32 = vpop.xlane.xlu0 %3802 }
0x19ce   :  { %v3806_v23 = vmul.f32 0.015625, %v3803_v32  ;;  %v3811_v40 = vmul.f32 %v11381_v12, %v11381_v12 }
0x19d0   :  { %v11387_v51 = vsub.f32 %v11371_v59, %v3806_v23  ;;  %v3816_v44 = vsel %vm110_vm0, %v3811_v40, 0.0 }
0x19d1   :  { %3817 = vadd.xlane.f32.xlu0 %v3816_v44 }
0x19d2   :  { %v3812_v41 = vmul.f32 %v11387_v51, %v11387_v51 }
0x19d4   :  { %v3819_v2 = vsel %vm208_vm1, %v3812_v41, 0.0 }
0x19d5   :  { %3820 = vadd.xlane.f32.xlu1 %v3819_v2 }
0x1a5a   :  { %v3815_v21 = vpop.xlane.xlu1 %3814 }
0x1a5b   :  { %v3822_v17 = vmul.f32 0.015625, %v3815_v21 }
0x1a5d   :  { %v3825_v10 = vadd.f32 1e-05, %v3822_v17 }
0x1a5e   :  { %v3818_v45 = vpop.xlane.xlu0 %3817 }
0x1a5f   :  { %9611 = vrsqrt.f32 %v3825_v10  ;;  %v3823_v11 = vmul.f32 0.015625, %v3818_v45 }
0x1a61   :  { %v3826_v43 = vadd.f32 1e-05, %v3823_v11 }
0x1a62   :  { %v3821_v20 = vpop.xlane.xlu1 %3820 }
0x1a63   :  { %9613 = vrsqrt.f32 %v3826_v43  ;;  %v3824_v58 = vmul.f32 0.015625, %v3821_v20 }
0x1a65   :  { %v3827_v26 = vadd.f32 1e-05, %v3824_v58 }
0x1a67   :  { %9615 = vrsqrt.f32 %v3827_v26 }
0x1a69   :  { %v9612_v27 = vpop.eup %9611 }
0x1a6a   :  { %v3831_v29 = vmul.f32 %v9612_v27, %v11376_v5 }
0x1a6c   :  { %v3840_v55 = vmul.f32 %v7570_v0, %v3831_v29 }
0x1a6d   :  { %v9614_v18 = vpop.eup %9613 }
0x1a6e   :  { %v3849_v60 = vadd.f32 %v7571_v24, %v3840_v55  ;;  %v3832_v42 = vmul.f32 %v9614_v18, %v11381_v12  ;;  %v3868_v12 = vld [vmem:[%s12783_s0] sm:$0x3] }
0x1a6f   :  { %v3873_v53 = vrot.slane %v3868_v12, %v10216_v54 }
0x1a70   :  { %7572 = vmatmul.mubr.msk.f32.vlgmr.msra.gmra.mrb[74].mxu0 %vm110_vm0, %v3849_v60  ;;  %v3841_v32 = vmul.f32 %v7570_v0, %v3832_v42 }
0x1a71   :  { %v9616_v23 = vpop.eup %9615  ;;  %3959 = vmatprep.mubr.f32.mxu0 %v9823_v33 }
0x1a72   :  { %v3850_v40 = vadd.f32 %v7571_v24, %v3841_v32  ;;  %v3833_v44 = vmul.f32 %v9616_v23, %v11387_v51  ;;  %v3877_v51 = vrot.slane %v3868_v12, %v10221_v7 }
0x1a74   :  { %7573 = vmatmul.mubr.msk.f32.gmra.mrb[76].mxu0 %vm110_vm0, %v3850_v40  ;;  %v3842_v5 = vmul.f32 %v7570_v0, %v3833_v44 }
0x1a75   :  { %3965 = vmatprep.mubr.f32.mxu0 %v9823_v33 }
0x1a76   :  { %v3851_v41 = vadd.f32 %v7571_v24, %v3842_v5 }
0x1a78   :  { %7574 = vmatmul.mubr.msk.f32.gmra.mrb[78].mxu0 %vm110_vm0, %v3851_v41 }
0x1a79   :  { %8477 = vmatprep.mubr.msk.f32.mxu0 %vm9825_vm2, %v9823_v33 }
0x1b43   :  { %v3955_v2 = vpop.f32.mrb[74].mxu0 }
0x1b44   :  { %v3957_v56 = vpop.f32.mrb[75].mxu0  ;;  %v3956_v39 = vadd.f32 %v3955_v2, %v3873_v53 }
0x1b45   :  { %v3958_v1 = vadd.f32 %v3957_v56, %v3877_v51 }
0x1b47   :  { %v3961_v61 = vpop.f32.mrb[76].mxu0 }
0x1b48   :  { %v3962_v49 = vadd.f32 %v3961_v61, %v3873_v53  ;;  %v3963_v63 = vpop.f32.mrb[77].mxu0 }
0x1b49   :  { %v3964_v48 = vadd.f32 %v3963_v63, %v3877_v51 }
0x1b4a   :  { %v9385_v4 = vpack.i.bf16 %v3962_v49, %v3956_v39 }
0x1b4b   :  { %v3967_v36 = vpop.f32.mrb[78].mxu0  ;;  %v9092_v9 = vpack.c.bf16 %v3964_v48, %v3958_v1  ;;  %v11463_v13 = vpack.i.bf16 %v3964_v48, %v3958_v1 }
0x1b4c   :  { %v3968_v57 = vadd.f32 %v3967_v36, %v3873_v53  ;;  %v3969_v19 = vpop.f32.mrb[79].mxu0  ;;  %9386 = vrot.lane.b32.xlu0 %v9385_v4, %s12789_s8 }
0x1b4d   :  { %9093 = vmatpush3.bf16.msra.mxu1 %v9092_v9  ;;  %v11468_v62 = vadd.f32 %v3969_v19, %v3877_v51 }
0x1b4e   :  { %3979 = vrot.lane.b32.xlu1 %v3968_v57, %s12789_s8  ;;  %8490 = vmatprep.subr.mxu1 %v9823_v33 }
0x1b50   :  { %9396 = vrot.lane.b32.xlu0 %v9385_v4, %s12786_s25 }
0x1b51   :  { %8491 = vmatpush3.msk.msra.mxu1 %vm589_vm5, %v11468_v62 }
0x1b52   :  { %9391 = vrot.lane.b32.xlu1 %v9385_v4, %s12787_s7  ;;  %9098 = vmatprep.subr.bf16.mxu1 %v9822_v3 }
0x1b54   :  { %4206 = vrot.lane.b32.xlu0 %v3962_v49, %s12790_s6 }
0x1b56   :  { %4214 = vrot.lane.b32.xlu1 %v3968_v57, %s12787_s7 }
0x1b58   :  { %4470 = vrot.lane.b32.xlu0 %v3968_v57, %s12786_s25 }
0x1b5a   :  { %4204 = vrot.lane.b32.xlu1 %v3956_v39, %s12790_s6 }
0x1b5c   :  { %4460 = vrot.lane.b32.xlu0 %v3956_v39, %s12791_s1 }
0x1b5e   :  { %4208 = vrot.lane.b32.xlu1 %v3968_v57, %s12790_s6 }
0x1b60   :  { %4464 = vrot.lane.b32.xlu0 %v3968_v57, %s12791_s1 }
0x1b62   :  { %9401 = vrot.lane.b32.xlu1 %v9385_v4, %s12788_s23 }
0x1b64   :  { %4714 = vrot.lane.b32.xlu0 %v3956_v39, %s12792_s5 }
0x1b66   :  { %4462 = vrot.lane.b32.xlu1 %v3962_v49, %s12791_s1 }
0x1b68   :  { %4718 = vrot.lane.b32.xlu0 %v3968_v57, %s12792_s5 }
0x1b6a   :  { %4724 = vrot.lane.b32.xlu1 %v3968_v57, %s12788_s23 }
0x1b6e   :  { %4716 = vrot.lane.b32.xlu1 %v3962_v49, %s12792_s5 }
0x1bbe   :  { %v9387_v35 = vpop.permute.xlu0 %9386 }
0x1bbf   :  { %v9389_v22 = vunpack.i.h.bf16 %v9387_v35  ;;  %v9388_v25 = vunpack.i.l.bf16 %v9387_v35 }
0x1bc0   :  { %v3980_v28 = vpop.permute.xlu1 %3979 }
0x1bc1   :  { %v9088_v31 = vpack.c.bf16 %v9389_v22, %v9388_v25 }
0x1bc2   :  { %v9397_v17 = vpop.permute.xlu0 %9396 }
0x1bc3   :  { %9090 = vmatpush3.bf16.xpose.msk.msra.mxu0 %vm10247_vm4, %v9088_v31  ;;  %v9399_v45 = vunpack.i.h.bf16 %v9397_v17  ;;  %v9398_v11 = vunpack.i.l.bf16 %v9397_v17 }
0x1bc4   :  { %8475 = vmatprep.subr.mxu0 %v9823_v33  ;;  %v9392_v46 = vpop.permute.xlu1 %9391 }
0x1bc5   :  { %v9394_v34 = vunpack.i.h.bf16 %v9392_v46  ;;  %v9393_v37 = vunpack.i.l.bf16 %v9392_v46  ;;  %v9102_v20 = vpack.c.bf16 %v9399_v45, %v9398_v11 }
0x1bc6   :  { %v4207_v58 = vpop.permute.xlu0 %4206 }
0x1bc7   :  { %v9095_v21 = vpack.c.bf16 %v9394_v34, %v9393_v37 }
0x1bc8   :  { %v4215_v15 = vpop.permute.xlu1 %4214 }
0x1bca   :  { %v4471_v27 = vpop.permute.xlu0 %4470 }
0x1bcb   :  { %8476 = vmatpush3.xpose.msk.msra.mxu0 %vm449_vm3, %v3980_v28 }
0x1bcc   :  { %9094 = vmatprep.subr.bf16.mxu0 %v9822_v3  ;;  %v4205_v10 = vpop.permute.xlu1 %4204 }
0x1bce   :  { %8478 = vmatmul.mubr.msk.f32.vlgmr.msra.gmra.mrb[80].mxu0 %vm449_vm3, %v3956_v39  ;;  %v4461_v24 = vpop.permute.xlu0 %4460 }
0x1bcf   :  { %9097 = vmatpush3.bf16.xpose.msk.msra.mxu0 %vm10247_vm4, %v9095_v21  ;;  %8480 = vmatprep.mubr.msk.f32.mxu0 %vm9825_vm2, %v9823_v33 }
0x1bd0   :  { %8505 = vmatprep.subr.mxu0 %v9823_v33  ;;  %v4209_v43 = vpop.permute.xlu1 %4208 }
0x1bd2   :  { %8481 = vmatmul.mubr.msk.f32.gmra.mrb[82].mxu0 %vm449_vm3, %v3962_v49  ;;  %v4465_v60 = vpop.permute.xlu0 %4464 }
0x1bd3   :  { %8483 = vmatprep.mubr.msk.f32.mxu0 %vm9825_vm2, %v9823_v33 }
0x1bd4   :  { %v9402_v26 = vpop.permute.xlu1 %9401 }
0x1bd5   :  { %v9404_v0 = vunpack.i.h.bf16 %v9402_v26  ;;  %v9403_v29 = vunpack.i.l.bf16 %v9402_v26 }
0x1bd6   :  { %8484 = vmatmul.mubr.msk.f32.gmra.mrb[84].mxu0 %vm449_vm3, %v3968_v57  ;;  %v4715_v32 = vpop.permute.xlu0 %4714 }
0x1bd7   :  { %8506 = vmatpush3.xpose.msk.msra.mxu0 %vm449_vm3, %v4215_v15  ;;  %8507 = vmatprep.mubr.msk.f32.mxu0 %vm9825_vm2, %v9823_v33  ;;  %v9109_v55 = vpack.c.bf16 %v9404_v0, %v9403_v29 }
0x1bd8   :  { %9101 = vmatprep.subr.bf16.mxu0 %v9822_v3  ;;  %v4463_v18 = vpop.permute.xlu1 %4462 }
0x1bda   :  { %8508 = vmatmul.mubr.msk.f32.vlgmr.msra.gmra.mrb[86].mxu0 %vm449_vm3, %v4205_v10  ;;  %v4719_v40 = vpop.permute.xlu0 %4718 }
0x1bdb   :  { %9104 = vmatpush3.bf16.xpose.msk.msra.mxu0 %vm10247_vm4, %v9102_v20  ;;  %8510 = vmatprep.mubr.msk.f32.mxu0 %vm9825_vm2, %v9823_v33 }
0x1bdc   :  { %8535 = vmatprep.subr.mxu0 %v9823_v33  ;;  %v4725_v42 = vpop.permute.xlu1 %4724 }
0x1bde   :  { %8511 = vmatmul.mubr.msk.f32.gmra.mrb[88].mxu0 %vm449_vm3, %v4207_v58 }
0x1bdf   :  { %8513 = vmatprep.mubr.msk.f32.mxu0 %vm9825_vm2, %v9823_v33 }
0x1be0   :  { %v4717_v23 = vpop.permute.xlu1 %4716 }
0x1be2   :  { %8514 = vmatmul.mubr.msk.f32.gmra.mrb[90].mxu0 %vm449_vm3, %v4209_v43 }
0x1be3   :  { %8536 = vmatpush3.xpose.msk.msra.mxu0 %vm449_vm3, %v4471_v27  ;;  %8537 = vmatprep.mubr.msk.f32.mxu0 %vm9825_vm2, %v9823_v33 }
0x1be4   :  { %9108 = vmatprep.subr.bf16.mxu0 %v9822_v3 }
0x1be6   :  { %8538 = vmatmul.mubr.msk.f32.vlgmr.msra.gmra.mrb[92].mxu0 %vm449_vm3, %v4461_v24 }
0x1be7   :  { %9111 = vmatpush3.bf16.xpose.msk.msra.mxu0 %vm10247_vm4, %v9109_v55  ;;  %8540 = vmatprep.mubr.msk.f32.mxu0 %vm9825_vm2, %v9823_v33 }
0x1be8   :  { %8565 = vmatprep.subr.mxu0 %v9823_v33 }
0x1bea   :  { %8541 = vmatmul.mubr.msk.f32.gmra.mrb[94].mxu0 %vm449_vm3, %v4463_v18 }
0x1beb   :  { %8543 = vmatprep.mubr.msk.f32.mxu0 %vm9825_vm2, %v9823_v33 }
0x1bee   :  { %8544 = vmatmul.mubr.msk.f32.gmra.mrb[96].mxu0 %vm449_vm3, %v4465_v60 }
0x1bef   :  { %8566 = vmatpush3.xpose.msk.msra.mxu0 %vm449_vm3, %v4725_v42  ;;  %8567 = vmatprep.mubr.msk.f32.mxu0 %vm9825_vm2, %v9823_v33 }
0x1bf0   :  { %9115 = vmatprep.subr.bf16.mxu0 %v9822_v3 }
0x1bf2   :  { %8568 = vmatmul.mubr.msk.f32.vlgmr.msra.gmra.mrb[98].mxu0 %vm449_vm3, %v4715_v32 }
0x1bf3   :  { %8570 = vmatprep.mubr.msk.f32.mxu0 %vm9825_vm2, %v9823_v33 }
0x1bf6   :  { %8571 = vmatmul.mubr.msk.f32.gmra.mrb[100].mxu0 %vm449_vm3, %v4717_v23 }
0x1bf7   :  { %8573 = vmatprep.mubr.msk.f32.mxu0 %vm9825_vm2, %v9823_v33 }
0x1bfa   :  { %8574 = vmatmul.mubr.msk.f32.gmra.mrb[102].mxu0 %vm449_vm3, %v4719_v40 }
0x1bfb   :  { %8607 = vmatprep.mubr.msk.f32.mxu0 %vm9825_vm2, %v9823_v33 }
0x1ca1   :  { %v4059_v44 = vpop.f32.mrb[80].mxu0 }
0x1ca2   :  { %v11544_v5 = vmul.f32 0.25, %v4059_v44  ;;  %v8479_v41 = vpop.f32.mrb[81].mxu0 }
0x1ca4   :  { %v4076_v12 = vsel %vm545_vm6, %v11544_v5, -inf }
0x1ca5   :  { %4077 = vmax.xlane.f32.xlu1 %v4076_v12  ;;  %v4064_v2 = vpop.f32.mrb[82].mxu0 }
0x1ca6   :  { %v4074_v53 = vmul.f32 0.25, %v4064_v2  ;;  %v8482_v56 = vpop.f32.mrb[83].mxu0 }
0x1ca8   :  { %v4079_v51 = vsel %vm545_vm6, %v4074_v53, -inf }
0x1ca9   :  { %4080 = vmax.xlane.f32.xlu0 %v4079_v51  ;;  %v4069_v61 = vpop.f32.mrb[84].mxu0 }
0x1caa   :  { %v11549_v39 = vmul.f32 0.25, %v4069_v61  ;;  %v8485_v49 = vpop.f32.mrb[85].mxu0 }
0x1cac   :  { %v4082_v63 = vsel %vm552_vm7, %v11549_v39, -inf }
0x1cad   :  { %4083 = vmax.xlane.f32.xlu0 %v4082_v63  ;;  %v4294_v1 = vpop.f32.mrb[86].mxu0 }
0x1cae   :  { %v4308_v48 = vmul.f32 0.25, %v4294_v1  ;;  %v8509_v4 = vpop.f32.mrb[87].mxu0 }
0x1cb0   :  { %v4311_v36 = vsel %vm545_vm6, %v4308_v48, -inf }
0x1cb1   :  { %4312 = vmax.xlane.f32.xlu0 %v4311_v36  ;;  %v4299_v9 = vpop.f32.mrb[88].mxu0 }
0x1cb2   :  { %v11554_v57 = vmul.f32 0.25, %v4299_v9  ;;  %v8512_v19 = vpop.f32.mrb[89].mxu0 }
0x1cb4   :  { %v4314_v35 = vsel %vm545_vm6, %v11554_v57, -inf }
0x1cb5   :  { %4315 = vmax.xlane.f32.xlu1 %v4314_v35  ;;  %v4304_v22 = vpop.f32.mrb[90].mxu0 }
0x1cb6   :  { %v4310_v25 = vmul.f32 0.25, %v4304_v22  ;;  %v8515_v28 = vpop.f32.mrb[91].mxu0 }
0x1cb8   :  { %v4317_v31 = vsel %vm552_vm7, %v4310_v25, -inf }
0x1cb9   :  { %4318 = vmax.xlane.f32.xlu0 %v4317_v31  ;;  %v4550_v46 = vpop.f32.mrb[92].mxu0 }
0x1cba   :  { %v11559_v34 = vmul.f32 0.25, %v4550_v46  ;;  %v8539_v37 = vpop.f32.mrb[93].mxu0 }
0x1cbc   :  { %v4567_v15 = vsel %vm545_vm6, %v11559_v34, -inf }
0x1cbd   :  { %4568 = vmax.xlane.f32.xlu1 %v4567_v15  ;;  %v4555_v21 = vpop.f32.mrb[94].mxu0 }
0x1cbe   :  { %v4565_v17 = vmul.f32 0.25, %v4555_v21  ;;  %v8542_v10 = vpop.f32.mrb[95].mxu0 }
0x1cc0   :  { %v4570_v45 = vsel %vm545_vm6, %v4565_v17, -inf }
0x1cc1   :  { %4571 = vmax.xlane.f32.xlu0 %v4570_v45  ;;  %v4560_v11 = vpop.f32.mrb[96].mxu0 }
0x1cc2   :  { %v4566_v43 = vmul.f32 0.25, %v4560_v11  ;;  %v8545_v20 = vpop.f32.mrb[97].mxu0 }
0x1cc4   :  { %v4573_v58 = vsel %vm552_vm7, %v4566_v43, -inf }
0x1cc5   :  { %4574 = vmax.xlane.f32.xlu1 %v4573_v58  ;;  %v4804_v26 = vpop.f32.mrb[98].mxu0 }
0x1cc6   :  { %v4818_v27 = vmul.f32 0.25, %v4804_v26  ;;  %v8569_v0 = vpop.f32.mrb[99].mxu0 }
0x1cc8   :  { %v4821_v29 = vsel %vm545_vm6, %v4818_v27, -inf }
0x1cc9   :  { %4822 = vmax.xlane.f32.xlu0 %v4821_v29  ;;  %v4809_v24 = vpop.f32.mrb[100].mxu0 }
0x1cca   :  { %v11566_v55 = vmul.f32 0.25, %v4809_v24  ;;  %v8572_v18 = vpop.f32.mrb[101].mxu0 }
0x1ccc   :  { %v4824_v60 = vsel %vm545_vm6, %v11566_v55, -inf }
0x1ccd   :  { %4825 = vmax.xlane.f32.xlu1 %v4824_v60  ;;  %v4814_v42 = vpop.f32.mrb[102].mxu0 }
0x1cce   :  { %v11570_v32 = vmul.f32 0.25, %v4814_v42  ;;  %v8575_v23 = vpop.f32.mrb[103].mxu0 }
0x1cd0   :  { %v4827_v40 = vsel %vm552_vm7, %v11570_v32, -inf }
0x1cd1   :  { %4828 = vmax.xlane.f32.xlu0 %v4827_v40 }
0x1ce7   :  { %4350 = vrot.lane.b32.xlu0 %v11468_v62, %s12790_s6 }
0x1ceb   :  { %9411 = vrot.lane.b32.xlu0 %v11463_v13, %s12791_s1 }
0x1d32   :  { %v4078_v44 = vpop.xlane.xlu1 %4077 }
0x1d33   :  { %v4085_v41 = vsub.f32 %v11544_v5, %v4078_v44 }
0x1d35   :  { %v4088_v12 = vmul.f32 1.442695, %v4085_v41 }
0x1d36   :  { %v4081_v2 = vpop.xlane.xlu0 %4080 }
0x1d37   :  { %9617 = vpow2.f32 %v4088_v12  ;;  %v4086_v56 = vsub.f32 %v4074_v53, %v4081_v2 }
0x1d39   :  { %v4090_v51 = vmul.f32 1.442695, %v4086_v56 }
0x1d3a   :  { %v4084_v61 = vpop.xlane.xlu0 %4083 }
0x1d3b   :  { %9619 = vpow2.f32 %v4090_v51  ;;  %v4087_v29 = vsub.f32 %v11549_v39, %v4084_v61 }
0x1d3e   :  { %v4313_v49 = vpop.xlane.xlu0 %4312 }
0x1d3f   :  { %v4320_v63 = vsub.f32 %v4308_v48, %v4313_v49 }
0x1d41   :  { %v11579_v1 = vpop.eup %9617  ;;  %v4323_v4 = vmul.f32 1.442695, %v4320_v63 }
0x1d42   :  { %v4094_v36 = vsel %vm545_vm6, %v11579_v1, 0.0  ;;  %v4316_v22 = vpop.xlane.xlu1 %4315 }
0x1d43   :  { %9621 = vpow2.f32 %v4323_v4  ;;  %4095 = vadd.xlane.f32.xlu1 %v4094_v36  ;;  %v4321_v60 = vsub.f32 %v11554_v57, %v4316_v22 }
0x1d45   :  { %v11583_v9 = vpop.eup %9619  ;;  %v4325_v23 = vmul.f32 1.442695, %v4321_v60 }
0x1d46   :  { %v4319_v5 = vpop.xlane.xlu0 %4318  ;;  %v4097_v19 = vsel %vm545_vm6, %v11583_v9, 0.0 }
0x1d47   :  { %v4322_v53 = vsub.f32 %v4310_v25, %v4319_v5  ;;  %4098 = vadd.xlane.f32.xlu0 %v4097_v19 }
0x1d49   :  { %v4327_v35 = vmul.f32 1.442695, %v4322_v53 }
0x1d4a   :  { %v4569_v28 = vpop.xlane.xlu1 %4568 }
0x1d4b   :  { %9623 = vpow2.f32 %v4327_v35  ;;  %v4576_v40 = vsub.f32 %v11559_v34, %v4569_v28 }
0x1d4d   :  { %v11587_v48 = vpop.eup %9621  ;;  %v4579_v39 = vmul.f32 1.442695, %v4576_v40 }
0x1d4e   :  { %v4572_v31 = vpop.xlane.xlu0 %4571  ;;  %v4329_v46 = vsel %vm545_vm6, %v11587_v48, 0.0 }
0x1d4f   :  { %v4577_v37 = vsub.f32 %v4565_v17, %v4572_v31  ;;  %4330 = vadd.xlane.f32.xlu0 %v4329_v46 }
0x1d51   :  { %v4581_v15 = vmul.f32 1.442695, %v4577_v37 }
0x1d52   :  { %v4575_v21 = vpop.xlane.xlu1 %4574 }
0x1d53   :  { %9625 = vpow2.f32 %v4581_v15  ;;  %v4578_v10 = vsub.f32 %v4566_v43, %v4575_v21 }
0x1d54   :  { %9406 = vrot.lane.b32.xlu1 %v11463_v13, %s12790_s6 }
0x1d55   :  { %v11593_v25 = vpop.eup %9623  ;;  %v4583_v45 = vmul.f32 1.442695, %v4578_v10 }
0x1d56   :  { %v4823_v11 = vpop.xlane.xlu0 %4822  ;;  %v4335_v20 = vsel %vm552_vm7, %v11593_v25, 0.0 }
0x1d57   :  { %9627 = vpow2.f32 %v4583_v45  ;;  %v4830_v58 = vsub.f32 %v4818_v27, %v4823_v11  ;;  %4336 = vadd.xlane.f32.xlu0 %v4335_v20  ;;  %v4092_v27 = vmul.f32 1.442695, %v4087_v29 }
0x1d59   :  { %v4833_v26 = vmul.f32 1.442695, %v4830_v58 }
0x1d5a   :  { %v4826_v44 = vpop.xlane.xlu1 %4825 }
0x1d5b   :  { %9629 = vpow2.f32 %v4833_v26  ;;  %v4831_v41 = vsub.f32 %v11566_v55, %v4826_v44 }
0x1d5c   :  { %9631 = vpow2.f32 %v4092_v27 }
0x1d5d   :  { %v11597_v17 = vpop.eup %9625  ;;  %9633 = vpow2.f32 %v4325_v23  ;;  %v4835_v12 = vmul.f32 1.442695, %v4831_v41 }
0x1d5e   :  { %v4588_v43 = vsel %vm545_vm6, %v11597_v17, 0.0  ;;  %9635 = vpow2.f32 %v4579_v39  ;;  %v4829_v49 = vpop.xlane.xlu0 %4828 }
0x1d5f   :  { %4589 = vadd.xlane.f32.xlu0 %v4588_v43  ;;  %9637 = vpow2.f32 %v4835_v12  ;;  %v4832_v4 = vsub.f32 %v11570_v32, %v4829_v49 }
0x1d61   :  { %v11601_v0 = vpop.eup %9627  ;;  %v4837_v36 = vmul.f32 1.442695, %v4832_v4 }
0x1d62   :  { %v4591_v24 = vsel %vm552_vm7, %v11601_v0, 0.0  ;;  %v4351_v53 = vpop.permute.xlu0 %4350 }
0x1d63   :  { %4592 = vadd.xlane.f32.xlu0 %v4591_v24  ;;  %9639 = vpow2.f32 %v4837_v36 }
0x1d65   :  { %v11606_v18 = vpop.eup %9629 }
0x1d66   :  { %v4839_v42 = vsel %vm545_vm6, %v11606_v18, 0.0  ;;  %v9632_v2 = vpop.eup %9631  ;;  %v9412_v35 = vpop.permute.xlu0 %9411 }
0x1d67   :  { %4840 = vadd.xlane.f32.xlu0 %v4839_v42  ;;  %v4100_v56 = vsel %vm552_vm7, %v9632_v2, 0.0  ;;  %v11614_v57 = vpop.eup %9633  ;;  %v9414_v24 = vunpack.i.h.bf16 %v9412_v35  ;;  %v9413_v27 = vunpack.i.l.bf16 %v9412_v35 }
0x1d68   :  { %v4332_v51 = vsel %vm545_vm6, %v11614_v57, 0.0  ;;  %v11618_v61 = vpop.eup %9635 }
0x1d69   :  { %v4585_v34 = vsel %vm545_vm6, %v11618_v61, 0.0  ;;  %v11624_v55 = vpop.eup %9637  ;;  %v9106_v44 = vpack.c.bf16 %v9414_v24, %v9413_v27 }
0x1d6a   :  { %v4842_v63 = vsel %vm545_vm6, %v11624_v55, 0.0 }
0x1d6d   :  { %v11631_v5 = vpop.eup %9639 }
0x1d6e   :  { %v4845_v19 = vsel %vm552_vm7, %v11631_v5, 0.0 }
0x1d78   :  { %4101 = vadd.xlane.f32.xlu1 %v4100_v56 }
0x1d7c   :  { %4333 = vadd.xlane.f32.xlu1 %v4332_v51 }
0x1d7d   :  { %4604 = vrot.lane.b32.xlu0 %v11468_v62, %s12791_s1 }
0x1d80   :  { %4586 = vadd.xlane.f32.xlu1 %v4585_v34 }
0x1d84   :  { %4843 = vadd.xlane.f32.xlu1 %v4842_v63 }
0x1d95   :  { %9416 = vrot.lane.b32.xlu1 %v11463_v13, %s12792_s5 }
0x1d99   :  { %4858 = vrot.lane.b32.xlu1 %v11468_v62, %s12792_s5 }
0x1d9c   :  { %4846 = vadd.xlane.f32.xlu0 %v4845_v19 }
0x1dd0   :  { %v4096_v22 = vpop.xlane.xlu1 %4095 }
0x1dd1   :  { %9641 = vrcp.f32 %v4096_v22 }
0x1dd4   :  { %v4099_v28 = vpop.xlane.xlu0 %4098  ;;  %v9407_v32 = vpop.permute.xlu1 %9406 }
0x1dd5   :  { %9643 = vrcp.f32 %v4099_v28  ;;  %v9409_v31 = vunpack.i.h.bf16 %v9407_v32  ;;  %v9408_v46 = vunpack.i.l.bf16 %v9407_v32 }
0x1dd7   :  { %v9099_v15 = vpack.c.bf16 %v9409_v31, %v9408_v46 }
0x1ddb   :  { %v9642_v37 = vpop.eup %9641 }
0x1ddc   :  { %v4106_v13 = vmul.f32 %v9642_v37, %v11579_v1  ;;  %v4331_v1 = vpop.xlane.xlu0 %4330 }
0x1dde   :  { %8493 = vmatmul.mubr.msk.f32.vlgmr.msra.gmra.mrb[82].mxu1 %vm545_vm6, %v4106_v13 }
0x1ddf   :  { %v9644_v62 = vpop.eup %9643  ;;  %9100 = vmatpush3.bf16.msra.mxu1 %v9099_v15  ;;  %8495 = vmatprep.mubr.msk.f32.mxu1 %vm9825_vm2, %v9823_v33  ;;  %v4971_v15 = vld [vmem:[%s12708_s9] sm:$0xff] }
0x1de0   :  { %8520 = vmatprep.subr.mxu1 %v9823_v33  ;;  %v4107_v21 = vmul.f32 %v9644_v62, %v11583_v9  ;;  %v4972_v62 = vld [vmem:[%s12708_s9 + $0x8] sm:$0xff] }
0x1de2   :  { %8496 = vmatmul.mubr.msk.f32.gmra.mrb[84].mxu1 %vm545_vm6, %v4107_v21 }
0x1de3   :  { %8521 = vmatpush3.msk.msra.mxu1 %vm589_vm5, %v4351_v53  ;;  %8498 = vmatprep.mubr.msk.f32.mxu1 %vm9825_vm2, %v9823_v33 }
0x1de4   :  { %9105 = vmatprep.subr.bf16.mxu1 %v9822_v3  ;;  %v4337_v10 = vpop.xlane.xlu0 %4336 }
0x1dec   :  { %v4590_v11 = vpop.xlane.xlu0 %4589 }
0x1df0   :  { %v4593_v58 = vpop.xlane.xlu0 %4592 }
0x1df4   :  { %v4841_v42 = vpop.xlane.xlu0 %4840 }
0x1df8   :  { %v4605_v12 = vpop.permute.xlu0 %4604 }
0x1e05   :  { %v4102_v45 = vpop.xlane.xlu1 %4101 }
0x1e06   :  { %9645 = vrcp.f32 %v4102_v45  ;;  %v4973_v45 = vld [vmem:[%s12708_s9 + $0x10] sm:$0xff] }
0x1e07   :  { %9647 = vrcp.f32 %v4331_v1  ;;  %v9116_v1 = vpack.c.bf16 %v4972_v62, %v4971_v15 }
0x1e09   :  { %v4334_v20 = vpop.xlane.xlu1 %4333  ;;  %9117 = vmatpush3.bf16.msra.mxu0 %v9116_v1 }
0x1e0a   :  { %9649 = vrcp.f32 %v4334_v20  ;;  %9118 = vmatprep.subr.bf16.mxu0 %v9822_v3 }
0x1e0b   :  { %9651 = vrcp.f32 %v4337_v10 }
0x1e0d   :  { %v4587_v26 = vpop.xlane.xlu1 %4586 }
0x1e0e   :  { %9653 = vrcp.f32 %v4587_v26 }
0x1e0f   :  { %9655 = vrcp.f32 %v4590_v11  ;;  %v4974_v11 = vld [vmem:[%s12708_s9 + $0x18] sm:$0xff] }
0x1e10   :  { %v9646_v9 = vpop.eup %9645  ;;  %9657 = vrcp.f32 %v4593_v58  ;;  %v9119_v58 = vpack.c.bf16 %v4974_v11, %v4973_v45 }
0x1e11   :  { %v4108_v43 = vmul.f32 %v9646_v9, %v9632_v2  ;;  %v9648_v29 = vpop.eup %9647  ;;  %v4844_v23 = vpop.xlane.xlu1 %4843  ;;  %9659 = vrcp.f32 %v4841_v42  ;;  %v4975_v9 = vld [vmem:[%s12708_s9 + $0x20] sm:$0xff]  ;;  %v4978_v42 = vld [vmem:[%s12708_s9 + $0x38] sm:$0xff] }
0x1e12   :  { %v4341_v60 = vmul.f32 %v9648_v29, %v11587_v48  ;;  %9661 = vrcp.f32 %v4844_v23  ;;  %9120 = vmatpush3.bf16.msra.mxu0 %v9119_v58 }
0x1e13   :  { %8499 = vmatmul.mubr.msk.f32.gmra.mrb[86].mxu1 %vm545_vm6, %v4108_v43  ;;  %9121 = vmatprep.subr.bf16.mxu0 %v9822_v3  ;;  %v4976_v43 = vld [vmem:[%s12708_s9 + $0x28] sm:$0xff] }
0x1e14   :  { %8522 = vmatprep.mubr.msk.f32.mxu1 %vm9825_vm2, %v9823_v33  ;;  %v9650_v40 = vpop.eup %9649  ;;  %v9122_v24 = vpack.c.bf16 %v4976_v43, %v4975_v9 }
0x1e15   :  { %v4342_v39 = vmul.f32 %v9650_v40, %v11614_v57  ;;  %v9652_v41 = vpop.eup %9651  ;;  %v9417_v2 = vpop.permute.xlu1 %9416 }
0x1e16   :  { %v4343_v48 = vmul.f32 %v9652_v41, %v11593_v25  ;;  %v9419_v51 = vunpack.i.h.bf16 %v9417_v2  ;;  %v9418_v34 = vunpack.i.l.bf16 %v9417_v2  ;;  %9123 = vmatpush3.bf16.msra.mxu0 %v9122_v24 }
0x1e17   :  { %8523 = vmatmul.mubr.msk.f32.vlgmr.msra.gmra.mrb[88].mxu1 %vm545_vm6, %v4341_v60  ;;  %9124 = vmatprep.subr.bf16.mxu0 %v9822_v3  ;;  %v4977_v60 = vld [vmem:[%s12708_s9 + $0x30] sm:$0xff] }
0x1e18   :  { %9107 = vmatpush3.bf16.msra.mxu1 %v9106_v44  ;;  %8525 = vmatprep.mubr.msk.f32.mxu1 %vm9825_vm2, %v9823_v33  ;;  %v9654_v56 = vpop.eup %9653  ;;  %v9113_v63 = vpack.c.bf16 %v9419_v51, %v9418_v34  ;;  %v9125_v40 = vpack.c.bf16 %v4978_v42, %v4977_v60 }
0x1e19   :  { %8550 = vmatprep.subr.mxu1 %v9823_v33  ;;  %v4597_v57 = vmul.f32 %v9654_v56, %v11618_v61  ;;  %v9656_v49 = vpop.eup %9655  ;;  %v4859_v36 = vpop.permute.xlu1 %4858 }
0x1e1a   :  { %v4598_v25 = vmul.f32 %v9656_v49, %v11597_v17  ;;  %v9658_v4 = vpop.eup %9657  ;;  %9126 = vmatpush3.bf16.msra.mxu0 %v9125_v40  ;;  %v5141_v40 = vld [vmem:[%s12712_s13 + $0x8] sm:$0xff] }
0x1e1b   :  { %8526 = vmatmul.mubr.msk.f32.gmra.mrb[90].mxu1 %vm545_vm6, %v4342_v39  ;;  %v4599_v19 = vmul.f32 %v9658_v4, %v11601_v0  ;;  %v9660_v53 = vpop.eup %9659 }
0x1e1c   :  { %8551 = vmatpush3.msk.msra.mxu1 %vm589_vm5, %v4605_v12  ;;  %8528 = vmatprep.mubr.msk.f32.mxu1 %vm9825_vm2, %v9823_v33  ;;  %v4851_v17 = vmul.f32 %v9660_v53, %v11606_v18  ;;  %v9662_v35 = vpop.eup %9661 }
0x1e1d   :  { %9112 = vmatprep.subr.bf16.mxu1 %v9822_v3  ;;  %v4852_v22 = vmul.f32 %v9662_v35, %v11624_v55 }
0x1e1f   :  { %8529 = vmatmul.mubr.msk.f32.gmra.mrb[92].mxu1 %vm545_vm6, %v4343_v48 }
0x1e20   :  { %8552 = vmatprep.mubr.msk.f32.mxu1 %vm9825_vm2, %v9823_v33 }
0x1e23   :  { %8553 = vmatmul.mubr.msk.f32.vlgmr.msra.gmra.mrb[94].mxu1 %vm545_vm6, %v4597_v57 }
0x1e24   :  { %9114 = vmatpush3.bf16.msra.mxu1 %v9113_v63  ;;  %8555 = vmatprep.mubr.msk.f32.mxu1 %vm9825_vm2, %v9823_v33 }
0x1e25   :  { %8580 = vmatprep.subr.mxu1 %v9823_v33 }
0x1e27   :  { %8556 = vmatmul.mubr.msk.f32.gmra.mrb[96].mxu1 %vm545_vm6, %v4598_v25 }
0x1e28   :  { %8581 = vmatpush3.msk.msra.mxu1 %vm589_vm5, %v4859_v36  ;;  %8558 = vmatprep.mubr.msk.f32.mxu1 %vm9825_vm2, %v9823_v33 }
0x1e29   :  { %v4847_v61 = vpop.xlane.xlu0 %4846 }
0x1e2a   :  { %9663 = vrcp.f32 %v4847_v61 }
0x1e2b   :  { %8559 = vmatmul.mubr.msk.f32.gmra.mrb[98].mxu1 %vm545_vm6, %v4599_v19 }
0x1e2c   :  { %8582 = vmatprep.mubr.msk.f32.mxu1 %vm9825_vm2, %v9823_v33 }
0x1e2f   :  { %8583 = vmatmul.mubr.msk.f32.vlgmr.msra.gmra.mrb[100].mxu1 %vm545_vm6, %v4851_v17 }
0x1e30   :  { %8585 = vmatprep.mubr.msk.f32.mxu1 %vm9825_vm2, %v9823_v33 }
0x1e33   :  { %8586 = vmatmul.mubr.msk.f32.gmra.mrb[102].mxu1 %vm545_vm6, %v4852_v22 }
0x1e34   :  { %v9664_v0 = vpop.eup %9663  ;;  %8588 = vmatprep.mubr.msk.f32.mxu1 %vm9825_vm2, %v9823_v33 }
0x1e35   :  { %v4853_v28 = vmul.f32 %v9664_v0, %v11631_v5 }
0x1e37   :  { %8589 = vmatmul.mubr.msk.f32.gmra.mrb[104].mxu1 %vm545_vm6, %v4853_v28  ;;  %v7618_v28 = vld [vmem:[%s12793_s26] ss:$0 sm:$0xff] }
0x1e38   :  { %5241 = vmatprep.mubr.f32.mxu1 %v9823_v33 }
0x1eb1   :  { %v4187_v18 = vpop.f32.mrb[82].mxu1 }
0x1eb2   :  { %4201 = vst.msk [vmem:[#allocation2] sm:$0xff] %vm449_vm3, %v4187_v18  ;;  %v8494_v32 = vpop.f32.mrb[83].mxu1 }
0x1eb5   :  { %v4192_v31 = vpop.f32.mrb[84].mxu1 }
0x1eb6   :  { %4202 = vst.msk [vmem:[#allocation2 + $0x8] sm:$0xff] %vm449_vm3, %v4192_v31  ;;  %v8497_v55 = vpop.f32.mrb[85].mxu1 }
0x1ee6   :  { %v4197_v46 = vpop.f32.mrb[86].mxu1 }
0x1ee7   :  { %4203 = vst.msk [vmem:[#allocation2 + $0x10] sm:$0x1] %vm675_vm8, %v4197_v46  ;;  %v8500_v37 = vpop.f32.mrb[87].mxu1 }
0x1eea   :  { %v4431_v13 = vpop.f32.mrb[88].mxu1 }
0x1eeb   :  { %4448 = vrot.lane.b32.xlu0 %v4431_v13, %s12788_s23  ;;  %v8524_v5 = vpop.f32.mrb[89].mxu1 }
0x1eee   :  { %v4436_v21 = vpop.f32.mrb[90].mxu1 }
0x1eef   :  { %4450 = vrot.lane.b32.xlu1 %v4436_v21, %s12788_s23  ;;  %v8527_v10 = vpop.f32.mrb[91].mxu1 }
0x1ef2   :  { %v4441_v20 = vpop.f32.mrb[92].mxu1 }
0x1ef3   :  { %v8530_v26 = vpop.f32.mrb[93].mxu1 }
0x1ef6   :  { %v4685_v29 = vpop.f32.mrb[94].mxu1 }
0x1ef7   :  { %4702 = vrot.lane.b32.xlu1 %v4685_v29, %s12786_s25  ;;  %v8554_v27 = vpop.f32.mrb[95].mxu1 }
0x1efa   :  { %v4690_v23 = vpop.f32.mrb[96].mxu1 }
0x1efb   :  { %4704 = vrot.lane.b32.xlu1 %v4690_v23, %s12786_s25  ;;  %v8557_v44 = vpop.f32.mrb[97].mxu1 }
0x1efc   :  { %v5143_v44 = vld [vmem:[%s12712_s13 + $0x18] sm:$0xff] }
0x1efe   :  { %v4695_v39 = vpop.f32.mrb[98].mxu1 }
0x1eff   :  { %4706 = vrot.lane.b32.xlu0 %v4695_v39, %s12786_s25  ;;  %v8560_v41 = vpop.f32.mrb[99].mxu1  ;;  %v9127_v39 = vpack.c.bf16 %v5143_v44, %v5141_v40  ;;  %v5314_v44 = vld [vmem:[%s12714_s15] sm:$0xff] }
0x1f00   :  { %v5140_v41 = vld [vmem:[%s12712_s13] sm:$0xff] }
0x1f01   :  { %9128 = vmatprep.subr.bf16.mxu1 %v9127_v39 }
0x1f02   :  { %v4939_v12 = vpop.f32.mrb[100].mxu1 }
0x1f03   :  { %4956 = vrot.lane.b32.xlu1 %v4939_v12, %s12787_s7  ;;  %v8584_v2 = vpop.f32.mrb[101].mxu1  ;;  %v5142_v12 = vld [vmem:[%s12712_s13 + $0x10] sm:$0xff] }
0x1f04   :  { %v9129_v2 = vpack.c.bf16 %v5142_v12, %v5140_v41  ;;  %v5332_v41 = vld [vmem:[%s12714_s15 + $0x90] sm:$0xff]  ;;  %v5333_v12 = vld [vmem:[%s12714_s15 + $0x98] sm:$0xff] }
0x1f06   :  { %v4944_v48 = vpop.f32.mrb[102].mxu1  ;;  %9130 = vmatpush1.bf16.msra.mxu1 %v9129_v2  ;;  %v9147_v2 = vpack.c.bf16 %v5333_v12, %v5332_v41 }
0x1f07   :  { %4958 = vrot.lane.b32.xlu1 %v4944_v48, %s12787_s7  ;;  %v8587_v56 = vpop.f32.mrb[103].mxu1  ;;  %v5145_v48 = vld [vmem:[%s12712_s13 + $0x28] sm:$0xff] }
0x1f08   :  { %v5147_v56 = vld [vmem:[%s12712_s13 + $0x38] sm:$0xff] }
0x1f0a   :  { %v4949_v51 = vpop.f32.mrb[104].mxu1 }
0x1f0b   :  { %4452 = vrot.lane.b32.xlu1 %v4441_v20, %s12788_s23  ;;  %v8590_v34 = vpop.f32.mrb[105].mxu1 }
0x1f0c   :  { %v5144_v34 = vld [vmem:[%s12712_s13 + $0x20] sm:$0xff] }
0x1f0f   :  { %4960 = vrot.lane.b32.xlu1 %v4949_v51, %s12787_s7  ;;  %v9131_v51 = vpack.c.bf16 %v5147_v56, %v5145_v48  ;;  %v5316_v48 = vld [vmem:[%s12714_s15 + $0x10] sm:$0xff]  ;;  %v5317_v56 = vld [vmem:[%s12714_s15 + $0x18] sm:$0xff] }
0x1f11   :  { %9132 = vmatprep.subr.bf16.mxu1 %v9131_v51  ;;  %v9149_v51 = vpack.c.bf16 %v5317_v56, %v5316_v48 }
0x1f5d   :  { %v4449_v57 = vpop.permute.xlu0 %4448 }
0x1f5e   :  { %4457 = vst.msk [vmem:[#allocation2] sm:$0xff] %vm930_vm9, %v4449_v57  ;;  %v5146_v57 = vld [vmem:[%s12712_s13 + $0x30] sm:$0xff] }
0x1f61   :  { %v4451_v49 = vpop.permute.xlu1 %4450 }
0x1f62   :  { %4458 = vst.msk [vmem:[#allocation2 + $0x8] sm:$0xff] %vm930_vm9, %v4451_v49  ;;  %v9133_v49 = vpack.c.bf16 %v5146_v57, %v5144_v34  ;;  %v5334_v34 = vld [vmem:[%s12714_s15 + $0xa0] sm:$0xff]  ;;  %v5335_v57 = vld [vmem:[%s12714_s15 + $0xa8] sm:$0xff] }
0x1f64   :  { %9134 = vmatpush1.bf16.msra.mxu1 %v9133_v49  ;;  %v9151_v49 = vpack.c.bf16 %v5335_v57, %v5334_v34 }
0x1f69   :  { %v4703_v63 = vpop.permute.xlu1 %4702 }
0x1f6a   :  { %4711 = vst.msk [vmem:[#allocation2] sm:$0xff] %vm1186_vm10, %v4703_v63  ;;  %v5149_v63 = vld [vmem:[%s12712_s13 + $0x48] sm:$0xff] }
0x1f6d   :  { %v4705_v25 = vpop.permute.xlu1 %4704 }
0x1f6e   :  { %4712 = vst.msk [vmem:[#allocation2 + $0x8] sm:$0xff] %vm1186_vm10, %v4705_v25  ;;  %v5151_v25 = vld [vmem:[%s12712_s13 + $0x58] sm:$0xff] }
0x1f71   :  { %v4707_v53 = vpop.permute.xlu0 %4706 }
0x1f75   :  { %v4957_v4 = vpop.permute.xlu1 %4956 }
0x1f76   :  { %4965 = vst.msk [vmem:[#allocation2] sm:$0xff] %vm1442_vm11, %v4957_v4  ;;  %v9135_v4 = vpack.c.bf16 %v5151_v25, %v5149_v63  ;;  %v5318_v63 = vld [vmem:[%s12714_s15 + $0x20] sm:$0xff]  ;;  %v5319_v25 = vld [vmem:[%s12714_s15 + $0x28] sm:$0xff] }
0x1f78   :  { %9136 = vmatprep.subr.bf16.mxu1 %v9135_v4  ;;  %v9153_v4 = vpack.c.bf16 %v5319_v25, %v5318_v63 }
0x1f79   :  { %v4959_v36 = vpop.permute.xlu1 %4958 }
0x1f7a   :  { %4966 = vst.msk [vmem:[#allocation2 + $0x8] sm:$0xff] %vm1442_vm11, %v4959_v36  ;;  %v5148_v36 = vld [vmem:[%s12712_s13 + $0x40] sm:$0xff] }
0x1f7d   :  { %v4453_v61 = vpop.permute.xlu1 %4452  ;;  %v4968_v19 = vld [vmem:[#allocation2] sm:$0xff] }
0x1f7e   :  { %4459 = vst.msk [vmem:[#allocation2 + $0x10] sm:$0x1] %vm933_vm12, %v4453_v61  ;;  %8608 = vmatmul.mubr.msk.f32.vlgmr.msra.gmra.mrb[104].mxu0 %vm110_vm0, %v4968_v19  ;;  %v5150_v61 = vld [vmem:[%s12712_s13 + $0x50] sm:$0xff] }
0x1f7f   :  { %4713 = vst.msk [vmem:[#allocation2 + $0x10] sm:$0x1] %vm1189_vm13, %v4707_v53  ;;  %8610 = vmatprep.mubr.msk.f32.mxu0 %vm9825_vm2, %v9823_v33  ;;  %v9137_v19 = vpack.c.bf16 %v5150_v61, %v5148_v36  ;;  %v5153_v53 = vld [vmem:[%s12712_s13 + $0x68] sm:$0xff]  ;;  %v5336_v36 = vld [vmem:[%s12714_s15 + $0xb0] sm:$0xff]  ;;  %v5337_v61 = vld [vmem:[%s12714_s15 + $0xb8] sm:$0xff] }
0x1f81   :  { %v4961_v17 = vpop.permute.xlu1 %4960  ;;  %v4969_v35 = vld [vmem:[#allocation2 + $0x8] sm:$0xff]  ;;  %9138 = vmatpush1.bf16.msra.mxu1 %v9137_v19  ;;  %v9155_v19 = vpack.c.bf16 %v5337_v61, %v5336_v36 }
0x1f82   :  { %4967 = vst.msk [vmem:[#allocation2 + $0x10] sm:$0x1] %vm1445_vm14, %v4961_v17  ;;  %8611 = vmatmul.mubr.msk.f32.gmra.mrb[106].mxu0 %vm110_vm0, %v4969_v35  ;;  %v5155_v17 = vld [vmem:[%s12712_s13 + $0x78] sm:$0xff] }
0x1f83   :  { %8613 = vmatprep.mubr.msk.f32.mxu0 %vm9825_vm2, %v9823_v33  ;;  %v9139_v35 = vpack.c.bf16 %v5155_v17, %v5153_v53  ;;  %v5320_v53 = vld [vmem:[%s12714_s15 + $0x30] sm:$0xff]  ;;  %v5321_v17 = vld [vmem:[%s12714_s15 + $0x38] sm:$0xff] }
0x1f85   :  { %9140 = vmatprep.subr.bf16.mxu1 %v9139_v35  ;;  %v9157_v35 = vpack.c.bf16 %v5321_v17, %v5320_v53 }
0x1f89   :  { %v4970_v22 = vld [vmem:[#allocation2 + $0x10] sm:$0x1] }
0x1f8a   :  { %8614 = vmatmul.mubr.msk.f32.gmra.mrb[108].mxu0 %vm110_vm0, %v4970_v22  ;;  %v5152_v22 = vld [vmem:[%s12712_s13 + $0x60] sm:$0xff] }
0x2051   :  { %v5054_v0 = vpop.f32.mrb[104].mxu0 }
0x2052   :  { %v5068_v18 = vadd.f32 %v5054_v0, %v11363_v14  ;;  %v8609_v32 = vpop.f32.mrb[105].mxu0  ;;  %v5154_v0 = vld [vmem:[%s12712_s13 + $0x70] sm:$0xff] }
0x2054   :  { %v11750_v31 = vadd.f32 %v7618_v28, %v5068_v18 }
0x2055   :  { %v5059_v55 = vpop.f32.mrb[106].mxu0 }
0x2056   :  { %v5069_v46 = vadd.f32 %v5059_v55, %v11367_v50  ;;  %v8612_v37 = vpop.f32.mrb[107].mxu0  ;;  %v5083_v13 = vsel %vm110_vm0, %v11750_v31, 0.0 }
0x2057   :  { %5084 = vadd.xlane.f32.xlu0 %v5083_v13 }
0x2058   :  { %v11755_v5 = vadd.f32 %v7618_v28, %v5069_v46 }
0x205a   :  { %v5086_v15 = vsel %vm110_vm0, %v11755_v5, 0.0 }
0x205b   :  { %5087 = vadd.xlane.f32.xlu1 %v5086_v15 }
0x205d   :  { %v5064_v62 = vpop.f32.mrb[108].mxu0 }
0x205e   :  { %v5070_v14 = vadd.f32 %v5064_v62, %v11371_v59  ;;  %v8615_v21 = vpop.f32.mrb[109].mxu0 }
0x205f   :  { %v7619_v21 = vld [vmem:[%s12710_s11] ss:$0 sm:$0xff] }
0x2060   :  { %v11760_v1 = vadd.f32 %v7618_v28, %v5070_v14  ;;  %v9141_v28 = vpack.c.bf16 %v5154_v0, %v5152_v22  ;;  %v5338_v22 = vld [vmem:[%s12714_s15 + $0xc0] sm:$0xff]  ;;  %v5339_v0 = vld [vmem:[%s12714_s15 + $0xc8] sm:$0xff] }
0x2062   :  { %v5089_v50 = vsel %vm208_vm1, %v11760_v1, 0.0  ;;  %9142 = vmatpush1.bf16.msra.mxu1 %v9141_v28  ;;  %v9159_v28 = vpack.c.bf16 %v5339_v0, %v5338_v22 }
0x2063   :  { %5090 = vadd.xlane.f32.xlu0 %v5089_v50 }
0x20e4   :  { %v5085_v10 = vpop.xlane.xlu0 %5084 }
0x20e5   :  { %v5092_v45 = vmul.f32 0.015625, %v5085_v10 }
0x20e7   :  { %v5095_v11 = vsub.f32 %v11750_v31, %v5092_v45  ;;  %v7620_v45 = vld [vmem:[%s12711_s12] ss:$0 sm:$0xff] }
0x20e8   :  { %v5088_v20 = vpop.xlane.xlu1 %5087 }
0x20e9   :  { %v5093_v58 = vmul.f32 0.015625, %v5088_v20  ;;  %v5098_v26 = vmul.f32 %v5095_v11, %v5095_v11 }
0x20eb   :  { %v11766_v9 = vsub.f32 %v11755_v5, %v5093_v58  ;;  %v5101_v43 = vsel %vm110_vm0, %v5098_v26, 0.0 }
0x20ec   :  { %5102 = vadd.xlane.f32.xlu0 %v5101_v43 }
0x20ed   :  { %v5099_v59 = vmul.f32 %v11766_v9, %v11766_v9 }
0x20ef   :  { %v5104_v29 = vsel %vm110_vm0, %v5099_v59, 0.0 }
0x20f0   :  { %5105 = vadd.xlane.f32.xlu0 %v5104_v29  ;;  %v5091_v24 = vpop.xlane.xlu0 %5090 }
0x20f1   :  { %v5094_v27 = vmul.f32 0.015625, %v5091_v24 }
0x20f3   :  { %v11773_v60 = vsub.f32 %v11760_v1, %v5094_v27 }
0x20f5   :  { %v5100_v42 = vmul.f32 %v11773_v60, %v11773_v60 }
0x20f7   :  { %v5107_v23 = vsel %vm208_vm1, %v5100_v42, 0.0 }
0x20f8   :  { %5108 = vadd.xlane.f32.xlu1 %v5107_v23  ;;  %v5331_v23 = vld [vmem:[%s12714_s15 + $0x88] sm:$0xff] }
0x2179   :  { %v5103_v18 = vpop.xlane.xlu0 %5102 }
0x217a   :  { %v5110_v32 = vmul.f32 0.015625, %v5103_v18  ;;  %v5322_v18 = vld [vmem:[%s12714_s15 + $0x40] sm:$0xff] }
0x217c   :  { %v5113_v55 = vadd.f32 1e-05, %v5110_v32  ;;  %v5323_v32 = vld [vmem:[%s12714_s15 + $0x48] sm:$0xff] }
0x217d   :  { %v5106_v46 = vpop.xlane.xlu0 %5105 }
0x217e   :  { %9665 = vrsqrt.f32 %v5113_v55  ;;  %v5111_v37 = vmul.f32 0.015625, %v5106_v46  ;;  %v9161_v55 = vpack.c.bf16 %v5323_v32, %v5322_v18  ;;  %v5340_v46 = vld [vmem:[%s12714_s15 + $0xd0] sm:$0xff] }
0x2180   :  { %v5114_v13 = vadd.f32 1e-05, %v5111_v37  ;;  %v5341_v37 = vld [vmem:[%s12714_s15 + $0xd8] sm:$0xff] }
0x2182   :  { %9667 = vrsqrt.f32 %v5114_v13  ;;  %v9163_v13 = vpack.c.bf16 %v5341_v37, %v5340_v46 }
0x2185   :  { %v5109_v15 = vpop.xlane.xlu1 %5108 }
0x2186   :  { %v5112_v62 = vmul.f32 0.015625, %v5109_v15  ;;  %v5324_v15 = vld [vmem:[%s12714_s15 + $0x50] sm:$0xff] }
0x2188   :  { %v9666_v14 = vpop.eup %9665  ;;  %v5115_v50 = vadd.f32 1e-05, %v5112_v62  ;;  %v5325_v62 = vld [vmem:[%s12714_s15 + $0x58] sm:$0xff] }
0x2189   :  { %v5119_v10 = vmul.f32 %v9666_v14, %v5095_v11  ;;  %v9165_v14 = vpack.c.bf16 %v5325_v62, %v5324_v15 }
0x218a   :  { %9669 = vrsqrt.f32 %v5115_v50  ;;  %v5343_v50 = vld [vmem:[%s12714_s15 + $0xe8] sm:$0xff] }
0x218b   :  { %v5128_v20 = vmul.f32 %v7619_v21, %v5119_v10 }
0x218c   :  { %v9668_v58 = vpop.eup %9667 }
0x218d   :  { %v5137_v26 = vadd.f32 %v7620_v45, %v5128_v20  ;;  %v5120_v43 = vmul.f32 %v9668_v58, %v11766_v9  ;;  %v5330_v9 = vld [vmem:[%s12714_s15 + $0x80] sm:$0xff]  ;;  %v5327_v20 = vld [vmem:[%s12714_s15 + $0x68] sm:$0xff] }
0x218e   :  { %v9143_v40 = vpack.c.bf16 %v5331_v23, %v5330_v9 }
0x218f   :  { %7621 = vmatmul.mubr.msk.f32.vlgmr.msra.gmra.mrb[106].mxu1 %vm110_vm0, %v5137_v26  ;;  %v5129_v59 = vmul.f32 %v7619_v21, %v5120_v43  ;;  %v5344_v26 = vld [vmem:[%s12714_s15 + $0xf0] sm:$0xff]  ;;  %v5345_v43 = vld [vmem:[%s12714_s15 + $0xf8] sm:$0xff] }
0x2190   :  { %5247 = vmatprep.mubr.f32.mxu1 %v9823_v33  ;;  %9144 = vmatprep.subr.bf16.mxu0 %v9143_v40 }
0x2191   :  { %v5138_v29 = vadd.f32 %v7620_v45, %v5129_v59  ;;  %v9171_v59 = vpack.c.bf16 %v5345_v43, %v5344_v26 }
0x2193   :  { %7622 = vmatmul.mubr.msk.f32.gmra.mrb[108].mxu1 %vm110_vm0, %v5138_v29  ;;  %v5328_v29 = vld [vmem:[%s12714_s15 + $0x70] sm:$0xff] }
0x2194   :  { %v9670_v24 = vpop.eup %9669  ;;  %5253 = vmatprep.mubr.f32.mxu1 %v9823_v33 }
0x2195   :  { %v5121_v11 = vmul.f32 %v9670_v24, %v11773_v60  ;;  %v5315_v60 = vld [vmem:[%s12714_s15 + $0x8] sm:$0xff]  ;;  %v5329_v24 = vld [vmem:[%s12714_s15 + $0x78] sm:$0xff] }
0x2196   :  { %v9145_v39 = vpack.c.bf16 %v5315_v60, %v5314_v44 }
0x2197   :  { %v5130_v27 = vmul.f32 %v7619_v21, %v5121_v11  ;;  %v5342_v21 = vld [vmem:[%s12714_s15 + $0xe0] sm:$0xff]  ;;  %v9173_v11 = vpack.c.bf16 %v5329_v24, %v5328_v29 }
0x2198   :  { %9146 = vmatpush3.bf16.msra.mxu0 %v9145_v39  ;;  %v9167_v10 = vpack.c.bf16 %v5343_v50, %v5342_v21 }
0x2199   :  { %v5139_v42 = vadd.f32 %v7620_v45, %v5130_v27  ;;  %9148 = vmatprep.subr.bf16.mxu0 %v9147_v2  ;;  %v5326_v45 = vld [vmem:[%s12714_s15 + $0x60] sm:$0xff] }
0x219a   :  { %v9169_v58 = vpack.c.bf16 %v5327_v20, %v5326_v45  ;;  %v5156_v27 = vld [vmem:[%s12713_s14] sm:$0x3] }
0x219b   :  { %7623 = vmatmul.mubr.msk.f32.gmra.mrb[110].mxu1 %vm110_vm0, %v5139_v42  ;;  %v5161_v42 = vrot.slane %v5156_v27, %v10216_v54  ;;  %v5165_v9 = vrot.slane %v5156_v27, %v10221_v7 }
0x219c   :  { %5599 = vmatprep.mubr.f32.mxu1 %v9823_v33  ;;  %9150 = vmatpush3.bf16.msra.mxu0 %v9149_v51 }
0x219d   :  { %9152 = vmatprep.subr.bf16.mxu0 %v9151_v49 }
0x21a0   :  { %9154 = vmatpush3.bf16.msra.mxu0 %v9153_v4 }
0x21a1   :  { %9156 = vmatprep.subr.bf16.mxu0 %v9155_v19 }
0x21a4   :  { %9158 = vmatpush3.bf16.msra.mxu0 %v9157_v35 }
0x21a5   :  { %9160 = vmatprep.subr.bf16.mxu0 %v9159_v28 }
0x21a8   :  { %9162 = vmatpush3.bf16.msra.mxu0 %v9161_v55 }
0x21a9   :  { %9164 = vmatprep.subr.bf16.mxu0 %v9163_v13 }
0x21ac   :  { %9166 = vmatpush3.bf16.msra.mxu0 %v9165_v14 }
0x21ad   :  { %9168 = vmatprep.subr.bf16.mxu0 %v9167_v10 }
0x21b0   :  { %9170 = vmatpush3.bf16.msra.mxu0 %v9169_v58 }
0x21b1   :  { %9172 = vmatprep.subr.bf16.mxu0 %v9171_v59 }
0x21b4   :  { %9174 = vmatpush3.bf16.msra.mxu0 %v9173_v11 }
0x21b5   :  { %9195 = vmatprep.subr.bf16.mxu0 %v9822_v3 }
0x2262   :  { %v5243_v23 = vpop.f32.mrb[106].mxu1 }
0x2263   :  { %v5244_v40 = vadd.f32 %v5243_v23, %v5161_v42  ;;  %v5245_v44 = vpop.f32.mrb[107].mxu1 }
0x2264   :  { %v5246_v60 = vadd.f32 %v5245_v44, %v5165_v9 }
0x2265   :  { %v5260_v39 = vmul.f32 %v5244_v40, %v5244_v40 }
0x2266   :  { %v5261_v41 = vmul.f32 %v5246_v60, %v5246_v60  ;;  %v5249_v12 = vpop.f32.mrb[108].mxu1 }
0x2267   :  { %v5266_v2 = vmul.f32 %v5260_v39, %v5244_v40  ;;  %v5250_v48 = vadd.f32 %v5249_v12, %v5161_v42  ;;  %v5251_v56 = vpop.f32.mrb[109].mxu1 }
0x2268   :  { %v5267_v51 = vmul.f32 %v5261_v41, %v5246_v60  ;;  %v5252_v34 = vadd.f32 %v5251_v56, %v5165_v9 }
0x2269   :  { %v5272_v57 = vmul.f32 0.044715, %v5266_v2  ;;  %v5262_v49 = vmul.f32 %v5250_v48, %v5250_v48 }
0x226a   :  { %v5273_v63 = vmul.f32 0.044715, %v5267_v51  ;;  %v5263_v25 = vmul.f32 %v5252_v34, %v5252_v34 }
0x226b   :  { %v5278_v4 = vadd.f32 %v5272_v57, %v5244_v40  ;;  %v5268_v36 = vmul.f32 %v5262_v49, %v5250_v48 }
0x226c   :  { %v5279_v61 = vadd.f32 %v5273_v63, %v5246_v60  ;;  %v5269_v19 = vmul.f32 %v5263_v25, %v5252_v34 }
0x226d   :  { %v5284_v53 = vmul.f32 0.7978846, %v5278_v4  ;;  %v5274_v17 = vmul.f32 0.044715, %v5268_v36 }
0x226e   :  { %v5285_v35 = vmul.f32 0.7978846, %v5279_v61  ;;  %v5275_v22 = vmul.f32 0.044715, %v5269_v19  ;;  %v5255_v0 = vpop.f32.mrb[110].mxu1 }
0x226f   :  { %9671 = vtanh.f32 %v5284_v53  ;;  %v5280_v28 = vadd.f32 %v5274_v17, %v5250_v48  ;;  %v5256_v18 = vadd.f32 %v5255_v0, %v5161_v42  ;;  %v5257_v32 = vpop.f32.mrb[111].mxu1 }
0x2270   :  { %v5281_v55 = vadd.f32 %v5275_v22, %v5252_v34  ;;  %v5258_v46 = vadd.f32 %v5257_v32, %v5165_v9  ;;  %9673 = vtanh.f32 %v5285_v35 }
0x2271   :  { %v5286_v37 = vmul.f32 0.7978846, %v5280_v28  ;;  %v5264_v13 = vmul.f32 %v5256_v18, %v5256_v18 }
0x2272   :  { %v5287_v15 = vmul.f32 0.7978846, %v5281_v55  ;;  %v5265_v62 = vmul.f32 %v5258_v46, %v5258_v46 }
0x2273   :  { %v5270_v14 = vmul.f32 %v5264_v13, %v5256_v18  ;;  %9675 = vtanh.f32 %v5286_v37 }
0x2274   :  { %v5271_v21 = vmul.f32 %v5265_v62, %v5258_v46  ;;  %9677 = vtanh.f32 %v5287_v15 }
0x2275   :  { %v5276_v50 = vmul.f32 0.044715, %v5270_v14 }
0x2276   :  { %v5277_v10 = vmul.f32 0.044715, %v5271_v21 }
0x2277   :  { %v5282_v45 = vadd.f32 %v5276_v50, %v5256_v18 }
0x2278   :  { %v5283_v20 = vadd.f32 %v5277_v10, %v5258_v46 }
0x2279   :  { %v9672_v58 = vpop.eup %9671  ;;  %v5288_v26 = vmul.f32 0.7978846, %v5282_v45 }
0x227a   :  { %v9674_v43 = vpop.eup %9673  ;;  %v5296_v59 = vadd.f32 1.0, %v9672_v58  ;;  %v5289_v29 = vmul.f32 0.7978846, %v5283_v20 }
0x227b   :  { %v5297_v24 = vadd.f32 1.0, %v9674_v43  ;;  %9679 = vtanh.f32 %v5288_v26 }
0x227c   :  { %v5302_v11 = vmul.f32 0.5, %v5296_v59  ;;  %9681 = vtanh.f32 %v5289_v29 }
0x227d   :  { %v9676_v27 = vpop.eup %9675  ;;  %v5303_v42 = vmul.f32 0.5, %v5297_v24 }
0x227e   :  { %v9678_v9 = vpop.eup %9677  ;;  %v5298_v23 = vadd.f32 1.0, %v9676_v27  ;;  %v5308_v41 = vmul.f32 %v5302_v11, %v5244_v40  ;;  %v7630_v27 = vld [vmem:[%s12780_s30 + $0x88] sm:$0xff] }
0x227f   :  { %v5309_v44 = vmul.f32 %v5303_v42, %v5246_v60  ;;  %v5299_v39 = vadd.f32 1.0, %v9678_v9  ;;  %v7632_v42 = vld [vmem:[%s12780_s30 + $0x98] sm:$0xff] }
0x2280   :  { %v5304_v12 = vmul.f32 0.5, %v5298_v23  ;;  %v9175_v9 = vpack.c.bf16 %v7632_v42, %v7630_v27  ;;  %v7629_v23 = vld [vmem:[%s12780_s30 + $0x80] sm:$0xff] }
0x2281   :  { %5410 = vmatprep.mubr.f32.mxu0 %v5309_v44  ;;  %v5305_v2 = vmul.f32 0.5, %v5299_v39  ;;  %v7631_v44 = vld [vmem:[%s12780_s30 + $0x90] sm:$0xff] }
0x2282   :  { %5411 = vmatmul.mubr.f32.vlgmr.msra.gmra.mrb[110].mxu0 %v5308_v41  ;;  %v5310_v51 = vmul.f32 %v5304_v12, %v5250_v48  ;;  %v7624_v48 = vld [vmem:[%s12794_s29] ss:$0 sm:$0xff]  ;;  %v9177_v39 = vpack.c.bf16 %v7631_v44, %v7629_v23  ;;  %9176 = vmatprep.subr.bf16.mxu1 %v9175_v9  ;;  %v7634_v41 = vld [vmem:[%s12780_s30 + $0xa8] sm:$0xff]  ;;  %v7636_v12 = vld [vmem:[%s12780_s30 + $0xb8] sm:$0xff] }
0x2283   :  { %v5311_v56 = vmul.f32 %v5305_v2, %v5252_v34  ;;  %v9179_v2 = vpack.c.bf16 %v7636_v12, %v7634_v41 }
0x2284   :  { %9178 = vmatpush1.bf16.msra.mxu1 %v9177_v39 }
0x2285   :  { %v9680_v57 = vpop.eup %9679  ;;  %5415 = vmatprep.mubr.f32.mxu0 %v5311_v56  ;;  %v7633_v56 = vld [vmem:[%s12780_s30 + $0xa0] sm:$0xff]  ;;  %9180 = vmatprep.subr.bf16.mxu1 %v9179_v2 }
0x2286   :  { %v9682_v49 = vpop.eup %9681  ;;  %5416 = vmatmul.mubr.f32.gmra.mrb[112].mxu0 %v5310_v51  ;;  %v5300_v63 = vadd.f32 1.0, %v9680_v57  ;;  %v7635_v51 = vld [vmem:[%s12780_s30 + $0xb0] sm:$0xff] }
0x2287   :  { %v5301_v25 = vadd.f32 1.0, %v9682_v49  ;;  %v9181_v57 = vpack.c.bf16 %v7635_v51, %v7633_v56  ;;  %v7638_v49 = vld [vmem:[%s12780_s30 + $0xc8] sm:$0xff] }
0x2288   :  { %v5306_v4 = vmul.f32 0.5, %v5300_v63  ;;  %v7640_v63 = vld [vmem:[%s12780_s30 + $0xd8] sm:$0xff] }
0x2289   :  { %v5307_v36 = vmul.f32 0.5, %v5301_v25  ;;  %9182 = vmatpush1.bf16.msra.mxu1 %v9181_v57  ;;  %v9183_v25 = vpack.c.bf16 %v7640_v63, %v7638_v49 }
0x228a   :  { %v5312_v19 = vmul.f32 %v5306_v4, %v5256_v18  ;;  %v7637_v4 = vld [vmem:[%s12780_s30 + $0xc0] sm:$0xff] }
0x228b   :  { %v5313_v61 = vmul.f32 %v5307_v36, %v5258_v46  ;;  %v7639_v36 = vld [vmem:[%s12780_s30 + $0xd0] sm:$0xff]  ;;  %9184 = vmatprep.subr.bf16.mxu1 %v9183_v25 }
0x228d   :  { %5420 = vmatprep.mubr.f32.mxu0 %v5313_v61  ;;  %v9185_v61 = vpack.c.bf16 %v7639_v36, %v7637_v4 }
0x228e   :  { %5421 = vmatmul.mubr.f32.gmra.mrb[114].mxu0 %v5312_v19  ;;  %v7642_v19 = vld [vmem:[%s12780_s30 + $0xe8] sm:$0xff] }
0x228f   :  { %8637 = vmatprep.mubr.msk.f32.mxu0 %vm9825_vm2, %v9823_v33  ;;  %9186 = vmatpush1.bf16.msra.mxu1 %v9185_v61 }
0x2355   :  { %v8058_v40 = vpop.f32.mrb[110].mxu0 }
0x2356   :  { %v8059_v60 = vpop.f32.mrb[111].mxu0 }
0x2357   :  { %v8060_v53 = vadd.f32 %v8059_v60, %v8058_v40  ;;  %v7644_v40 = vld [vmem:[%s12780_s30 + $0xf8] sm:$0xff] }
0x2358   :  { %v9187_v60 = vpack.c.bf16 %v7644_v40, %v7642_v19 }
0x2359   :  { %v5426_v34 = vadd.f32 %v8060_v53, %v11750_v31  ;;  %v8061_v17 = vpop.f32.mrb[112].mxu0  ;;  %v7641_v53 = vld [vmem:[%s12780_s30 + $0xe0] sm:$0xff] }
0x235a   :  { %v8062_v35 = vpop.f32.mrb[113].mxu0  ;;  %9188 = vmatprep.subr.bf16.mxu1 %v9187_v60 }
0x235b   :  { %v11948_v22 = vadd.f32 %v7624_v48, %v5426_v34  ;;  %v8063_v0 = vadd.f32 %v8062_v35, %v8061_v17 }
0x235d   :  { %v5427_v28 = vadd.f32 %v8063_v0, %v11755_v5  ;;  %v5441_v18 = vsel %vm110_vm0, %v11948_v22, 0.0 }
0x235e   :  { %5442 = vadd.xlane.f32.xlu0 %v5441_v18 }
0x235f   :  { %v11953_v32 = vadd.f32 %v7624_v48, %v5427_v28 }
0x2361   :  { %v8064_v55 = vpop.f32.mrb[114].mxu0  ;;  %v5444_v46 = vsel %vm110_vm0, %v11953_v32, 0.0 }
0x2362   :  { %v8065_v37 = vpop.f32.mrb[115].mxu0  ;;  %5445 = vadd.xlane.f32.xlu1 %v5444_v46 }
0x2363   :  { %v8066_v31 = vadd.f32 %v8065_v37, %v8064_v55 }
0x2365   :  { %v5428_v13 = vadd.f32 %v8066_v31, %v11760_v1 }
0x2367   :  { %v11958_v15 = vadd.f32 %v7624_v48, %v5428_v13  ;;  %v7643_v48 = vld [vmem:[%s12780_s30 + $0xf0] sm:$0xff]  ;;  %v7627_v13 = vld [vmem:[%s12781_s4 + $0x1] ss:$0 sm:$0xff]  ;;  %s12796_s30 = sld [smem:[#allocation22_spill]]  ;;  %s12797_s4 = sld [smem:[#allocation26_spill]] }
0x2368   :  { %v9189_v34 = vpack.c.bf16 %v7643_v48, %v7641_v53 }
0x2369   :  { %v5447_v5 = vsel %vm208_vm1, %v11958_v15, 0.0 }
0x236a   :  { %5448 = vadd.xlane.f32.xlu0 %v5447_v5  ;;  %9190 = vmatpush1.bf16.msra.mxu1 %v9189_v34 }
0x236b   :  { %9191 = vmatprep.subr.bf16.mxu1 %v9822_v3 }
0x23eb   :  { %v5443_v62 = vpop.xlane.xlu0 %5442 }
0x23ec   :  { %v5450_v14 = vmul.f32 0.015625, %v5443_v62 }
0x23ee   :  { %v5453_v21 = vsub.f32 %v11948_v22, %v5450_v14  ;;  %v7628_v14 = vld [vmem:[%s12782_s27 + $0x1] ss:$0 sm:$0xff] }
0x23ef   :  { %v5446_v50 = vpop.xlane.xlu1 %5445 }
0x23f0   :  { %v5451_v10 = vmul.f32 0.015625, %v5446_v50  ;;  %v5456_v45 = vmul.f32 %v5453_v21, %v5453_v21 }
0x23f2   :  { %v11964_v20 = vsub.f32 %v11953_v32, %v5451_v10  ;;  %v5459_v58 = vsel %vm110_vm0, %v5456_v45, 0.0 }
0x23f3   :  { %5460 = vadd.xlane.f32.xlu1 %v5459_v58 }
0x23f4   :  { %v5457_v1 = vmul.f32 %v11964_v20, %v11964_v20 }
0x23f6   :  { %v5462_v26 = vsel %vm110_vm0, %v5457_v1, 0.0 }
0x23f7   :  { %5463 = vadd.xlane.f32.xlu0 %v5462_v26  ;;  %v5449_v43 = vpop.xlane.xlu0 %5448 }
0x23f8   :  { %v5452_v59 = vmul.f32 0.015625, %v5449_v43 }
0x23fa   :  { %v11971_v29 = vsub.f32 %v11958_v15, %v5452_v59 }
0x23fc   :  { %v5458_v24 = vmul.f32 %v11971_v29, %v11971_v29 }
0x23fe   :  { %v5465_v11 = vsel %vm208_vm1, %v5458_v24, 0.0 }
0x23ff   :  { %5466 = vadd.xlane.f32.xlu1 %v5465_v11 }
0x2480   :  { %v5461_v17 = vpop.xlane.xlu1 %5460 }
0x2481   :  { %v5468_v35 = vmul.f32 0.015625, %v5461_v17 }
0x2483   :  { %v5471_v0 = vadd.f32 1e-05, %v5468_v35 }
0x2484   :  { %v5464_v28 = vpop.xlane.xlu0 %5463 }
0x2485   :  { %9683 = vrsqrt.f32 %v5471_v0  ;;  %v5469_v18 = vmul.f32 0.015625, %v5464_v28 }
0x2487   :  { %v5472_v55 = vadd.f32 1e-05, %v5469_v18 }
0x2489   :  { %9685 = vrsqrt.f32 %v5472_v55 }
0x248c   :  { %v5467_v46 = vpop.xlane.xlu1 %5466 }
0x248d   :  { %v5470_v37 = vmul.f32 0.015625, %v5467_v46 }
0x248f   :  { %v9684_v31 = vpop.eup %9683  ;;  %v5473_v5 = vadd.f32 1e-05, %v5470_v37 }
0x2490   :  { %v5477_v62 = vmul.f32 %v9684_v31, %v5453_v21 }
0x2491   :  { %9687 = vrsqrt.f32 %v5473_v5 }
0x2492   :  { %v5486_v50 = vmul.f32 %v7627_v13, %v5477_v62 }
0x2493   :  { %v9686_v10 = vpop.eup %9685 }
0x2494   :  { %v5495_v45 = vadd.f32 %v7628_v14, %v5486_v50  ;;  %v5478_v58 = vmul.f32 %v9686_v10, %v11964_v20  ;;  %v7645_v20 = vld [vmem:[%s12783_s0 + $0x2] sm:$0x3] }
0x2495   :  { %v5519_v27 = vrot.slane %v7645_v20, %v10216_v54  ;;  %v5523_v9 = vrot.slane %v7645_v20, %v10221_v7 }
0x2496   :  { %7646 = vmatmul.mubr.msk.f32.vlgmr.msra.gmra.mrb[112].mxu1 %vm110_vm0, %v5495_v45  ;;  %v5487_v1 = vmul.f32 %v7627_v13, %v5478_v58 }
0x2497   :  { %5605 = vmatprep.mubr.f32.mxu1 %v9823_v33 }
0x2498   :  { %v5496_v26 = vadd.f32 %v7628_v14, %v5487_v1 }
0x249a   :  { %7647 = vmatmul.mubr.msk.f32.gmra.mrb[114].mxu1 %vm110_vm0, %v5496_v26 }
0x249b   :  { %v9688_v43 = vpop.eup %9687  ;;  %5611 = vmatprep.mubr.f32.mxu1 %v9823_v33 }
0x249c   :  { %v5479_v21 = vmul.f32 %v9688_v43, %v11971_v29 }
0x249e   :  { %v5488_v59 = vmul.f32 %v7627_v13, %v5479_v21 }
0x24a0   :  { %v5497_v24 = vadd.f32 %v7628_v14, %v5488_v59 }
0x24a2   :  { %7648 = vmatmul.mubr.msk.f32.gmra.mrb[116].mxu1 %vm110_vm0, %v5497_v24 }
0x24a3   :  { %8622 = vmatprep.mubr.msk.f32.mxu1 %vm9825_vm2, %v9823_v33 }
0x2569   :  { %v5601_v11 = vpop.f32.mrb[112].mxu1 }
0x256a   :  { %v5603_v42 = vpop.f32.mrb[113].mxu1  ;;  %v5602_v44 = vadd.f32 %v5601_v11, %v5519_v27 }
0x256b   :  { %v5604_v41 = vadd.f32 %v5603_v42, %v5523_v9 }
0x256d   :  { %v5607_v23 = vpop.f32.mrb[114].mxu1 }
0x256e   :  { %v12045_v29 = vadd.f32 %v5607_v23, %v5519_v27  ;;  %v5609_v39 = vpop.f32.mrb[115].mxu1 }
0x256f   :  { %v5610_v12 = vadd.f32 %v5609_v39, %v5523_v9 }
0x2570   :  { %v9420_v2 = vpack.i.bf16 %v12045_v29, %v5602_v44 }
0x2571   :  { %v9196_v56 = vpack.c.bf16 %v5610_v12, %v5604_v41  ;;  %v12048_v51 = vpack.i.bf16 %v5610_v12, %v5604_v41 }
0x2572   :  { %9421 = vrot.lane.b32.xlu0 %v9420_v2, %s12789_s8 }
0x2573   :  { %9197 = vmatpush3.bf16.msra.mxu0 %v9196_v56 }
0x2574   :  { %8635 = vmatprep.subr.mxu0 %v9823_v33 }
0x2575   :  { %v5613_v57 = vpop.f32.mrb[116].mxu1 }
0x2576   :  { %v12052_v49 = vadd.f32 %v5613_v57, %v5519_v27  ;;  %v5615_v63 = vpop.f32.mrb[117].mxu1  ;;  %9431 = vrot.lane.b32.xlu0 %v9420_v2, %s12786_s25 }
0x2577   :  { %v12055_v25 = vadd.f32 %v5615_v63, %v5523_v9 }
0x2578   :  { %5625 = vrot.lane.b32.xlu1 %v12052_v49, %s12789_s8  ;;  %s12798_s8 = sld [smem:[#allocation23_spill]] }
0x2579   :  { %8636 = vmatpush3.msk.msra.mxu0 %vm589_vm5, %v12055_v25 }
0x257a   :  { %5852 = vrot.lane.b32.xlu0 %v12045_v29, %s12790_s6  ;;  %9202 = vmatprep.subr.bf16.mxu0 %v9822_v3 }
0x257c   :  { %9426 = vrot.lane.b32.xlu1 %v9420_v2, %s12787_s7 }
0x257e   :  { %6116 = vrot.lane.b32.xlu0 %v12052_v49, %s12786_s25 }
0x2580   :  { %5860 = vrot.lane.b32.xlu1 %v12052_v49, %s12787_s7 }
0x2582   :  { %6106 = vrot.lane.b32.xlu0 %v5602_v44, %s12791_s1 }
0x2584   :  { %5850 = vrot.lane.b32.xlu1 %v5602_v44, %s12790_s6 }
0x2586   :  { %6110 = vrot.lane.b32.xlu0 %v12052_v49, %s12791_s1 }
0x2588   :  { %5854 = vrot.lane.b32.xlu1 %v12052_v49, %s12790_s6 }
0x258a   :  { %6360 = vrot.lane.b32.xlu0 %v5602_v44, %s12792_s5 }
0x258c   :  { %9436 = vrot.lane.b32.xlu1 %v9420_v2, %s12788_s23 }
0x2590   :  { %6108 = vrot.lane.b32.xlu1 %v12045_v29, %s12791_s1 }
0x2594   :  { %6370 = vrot.lane.b32.xlu1 %v12052_v49, %s12788_s23 }
0x25e4   :  { %v9422_v4 = vpop.permute.xlu0 %9421 }
0x25e5   :  { %v9424_v36 = vunpack.i.h.bf16 %v9422_v4  ;;  %v9423_v61 = vunpack.i.l.bf16 %v9422_v4 }
0x25e7   :  { %v9192_v19 = vpack.c.bf16 %v9424_v36, %v9423_v61 }
0x25e8   :  { %v9432_v35 = vpop.permute.xlu0 %9431 }
0x25e9   :  { %9194 = vmatpush3.bf16.xpose.msk.msra.mxu1 %vm10247_vm4, %v9192_v19  ;;  %v9434_v28 = vunpack.i.h.bf16 %v9432_v35  ;;  %v9433_v18 = vunpack.i.l.bf16 %v9432_v35 }
0x25ea   :  { %v5626_v40 = vpop.permute.xlu1 %5625  ;;  %8620 = vmatprep.subr.mxu1 %v9823_v33 }
0x25eb   :  { %v9206_v46 = vpack.c.bf16 %v9434_v28, %v9433_v18 }
0x25ec   :  { %v5853_v37 = vpop.permute.xlu0 %5852 }
0x25ee   :  { %v9427_v60 = vpop.permute.xlu1 %9426 }
0x25ef   :  { %v9429_v53 = vunpack.i.h.bf16 %v9427_v60  ;;  %v9428_v48 = vunpack.i.l.bf16 %v9427_v60 }
0x25f0   :  { %v6117_v13 = vpop.permute.xlu0 %6116 }
0x25f1   :  { %8621 = vmatpush3.xpose.msk.msra.mxu1 %vm449_vm3, %v5626_v40  ;;  %v9199_v17 = vpack.c.bf16 %v9429_v53, %v9428_v48 }
0x25f2   :  { %v5861_v34 = vpop.permute.xlu1 %5860  ;;  %9198 = vmatprep.subr.bf16.mxu1 %v9822_v3 }
0x25f4   :  { %8623 = vmatmul.mubr.msk.f32.vlgmr.msra.gmra.mrb[118].mxu1 %vm449_vm3, %v5602_v44  ;;  %v6107_v14 = vpop.permute.xlu0 %6106 }
0x25f5   :  { %9201 = vmatpush3.bf16.xpose.msk.msra.mxu1 %vm10247_vm4, %v9199_v17  ;;  %8625 = vmatprep.mubr.msk.f32.mxu1 %vm9825_vm2, %v9823_v33 }
0x25f6   :  { %8650 = vmatprep.subr.mxu1 %v9823_v33  ;;  %v5851_v0 = vpop.permute.xlu1 %5850 }
0x25f8   :  { %8626 = vmatmul.mubr.msk.f32.gmra.mrb[120].mxu1 %vm449_vm3, %v12045_v29  ;;  %v6111_v45 = vpop.permute.xlu0 %6110 }
0x25f9   :  { %8628 = vmatprep.mubr.msk.f32.mxu1 %vm9825_vm2, %v9823_v33 }
0x25fa   :  { %v5855_v55 = vpop.permute.xlu1 %5854 }
0x25fc   :  { %8629 = vmatmul.mubr.msk.f32.gmra.mrb[122].mxu1 %vm449_vm3, %v12052_v49  ;;  %v6361_v38 = vpop.permute.xlu0 %6360 }
0x25fd   :  { %8651 = vmatpush3.xpose.msk.msra.mxu1 %vm449_vm3, %v5861_v34  ;;  %8652 = vmatprep.mubr.msk.f32.mxu1 %vm9825_vm2, %v9823_v33 }
0x25fe   :  { %9205 = vmatprep.subr.bf16.mxu1 %v9822_v3  ;;  %v9437_v31 = vpop.permute.xlu1 %9436 }
0x25ff   :  { %v9439_v5 = vunpack.i.h.bf16 %v9437_v31  ;;  %v9438_v62 = vunpack.i.l.bf16 %v9437_v31 }
0x2600   :  { %8653 = vmatmul.mubr.msk.f32.vlgmr.msra.gmra.mrb[124].mxu1 %vm449_vm3, %v5851_v0 }
0x2601   :  { %9208 = vmatpush3.bf16.xpose.msk.msra.mxu1 %vm10247_vm4, %v9206_v46  ;;  %8655 = vmatprep.mubr.msk.f32.mxu1 %vm9825_vm2, %v9823_v33  ;;  %v9213_v50 = vpack.c.bf16 %v9439_v5, %v9438_v62 }
0x2602   :  { %8680 = vmatprep.subr.mxu1 %v9823_v33  ;;  %v6109_v10 = vpop.permute.xlu1 %6108 }
0x2604   :  { %8656 = vmatmul.mubr.msk.f32.gmra.mrb[126].mxu1 %vm449_vm3, %v5853_v37 }
0x2605   :  { %8658 = vmatprep.mubr.msk.f32.mxu1 %vm9825_vm2, %v9823_v33 }
0x2606   :  { %v6371_v58 = vpop.permute.xlu1 %6370 }
0x2608   :  { %8659 = vmatmul.mubr.msk.f32.gmra.mrb[128].mxu1 %vm449_vm3, %v5855_v55 }
0x2609   :  { %8681 = vmatpush3.xpose.msk.msra.mxu1 %vm449_vm3, %v6117_v13  ;;  %8682 = vmatprep.mubr.msk.f32.mxu1 %vm9825_vm2, %v9823_v33 }
0x260a   :  { %9212 = vmatprep.subr.bf16.mxu1 %v9822_v3 }
0x260c   :  { %8683 = vmatmul.mubr.msk.f32.vlgmr.msra.gmra.mrb[130].mxu1 %vm449_vm3, %v6107_v14 }
0x260d   :  { %9215 = vmatpush3.bf16.xpose.msk.msra.mxu1 %vm10247_vm4, %v9213_v50  ;;  %8685 = vmatprep.mubr.msk.f32.mxu1 %vm9825_vm2, %v9823_v33 }
0x260e   :  { %8710 = vmatprep.subr.mxu1 %v9823_v33 }
0x2610   :  { %8686 = vmatmul.mubr.msk.f32.gmra.mrb[132].mxu1 %vm449_vm3, %v6109_v10 }
0x2611   :  { %8688 = vmatprep.mubr.msk.f32.mxu1 %vm9825_vm2, %v9823_v33 }
0x2614   :  { %8689 = vmatmul.mubr.msk.f32.gmra.mrb[134].mxu1 %vm449_vm3, %v6111_v45 }
0x2615   :  { %8711 = vmatpush3.xpose.msk.msra.mxu1 %vm449_vm3, %v6371_v58  ;;  %8712 = vmatprep.mubr.msk.f32.mxu1 %vm9825_vm2, %v9823_v33 }
0x2616   :  { %9219 = vmatprep.subr.bf16.mxu1 %v9822_v3 }
0x2618   :  { %8713 = vmatmul.mubr.msk.f32.vlgmr.msra.gmra.mrb[136].mxu1 %vm449_vm3, %v6361_v38 }
0x2619   :  { %8715 = vmatprep.mubr.msk.f32.mxu1 %vm9825_vm2, %v9823_v33 }
0x26c7   :  { %v5705_v1 = vpop.f32.mrb[118].mxu1 }
0x26c8   :  { %v5719_v26 = vmul.f32 0.25, %v5705_v1  ;;  %v8624_v43 = vpop.f32.mrb[119].mxu1 }
0x26ca   :  { %v5722_v21 = vsel %vm545_vm6, %v5719_v26, -inf }
0x26cb   :  { %5723 = vmax.xlane.f32.xlu1 %v5722_v21  ;;  %v5710_v59 = vpop.f32.mrb[120].mxu1 }
0x26cc   :  { %v5720_v24 = vmul.f32 0.25, %v5710_v59  ;;  %v8627_v20 = vpop.f32.mrb[121].mxu1 }
0x26ce   :  { %v5725_v11 = vsel %vm545_vm6, %v5720_v24, -inf }
0x26cf   :  { %5726 = vmax.xlane.f32.xlu0 %v5725_v11  ;;  %v5715_v27 = vpop.f32.mrb[122].mxu1 }
0x26d0   :  { %v5721_v42 = vmul.f32 0.25, %v5715_v27  ;;  %v8630_v9 = vpop.f32.mrb[123].mxu1 }
0x26d2   :  { %v5728_v23 = vsel %vm552_vm7, %v5721_v42, -inf }
0x26d3   :  { %5729 = vmax.xlane.f32.xlu0 %v5728_v23  ;;  %v5940_v44 = vpop.f32.mrb[124].mxu1 }
0x26d4   :  { %v5954_v39 = vmul.f32 0.25, %v5940_v44  ;;  %v8654_v41 = vpop.f32.mrb[125].mxu1 }
0x26d6   :  { %v5957_v12 = vsel %vm545_vm6, %v5954_v39, -inf }
0x26d7   :  { %5958 = vmax.xlane.f32.xlu0 %v5957_v12  ;;  %v5945_v2 = vpop.f32.mrb[126].mxu1 }
0x26d8   :  { %v5955_v56 = vmul.f32 0.25, %v5945_v2  ;;  %v8657_v57 = vpop.f32.mrb[127].mxu1 }
0x26da   :  { %v5960_v63 = vsel %vm545_vm6, %v5955_v56, -inf }
0x26db   :  { %5961 = vmax.xlane.f32.xlu1 %v5960_v63  ;;  %v5950_v4 = vpop.f32.mrb[128].mxu1 }
0x26dc   :  { %v5956_v36 = vmul.f32 0.25, %v5950_v4  ;;  %v8660_v61 = vpop.f32.mrb[129].mxu1 }
0x26de   :  { %v5963_v19 = vsel %vm552_vm7, %v5956_v36, -inf }
0x26df   :  { %5964 = vmax.xlane.f32.xlu0 %v5963_v19  ;;  %v6196_v40 = vpop.f32.mrb[130].mxu1 }
0x26e0   :  { %v6210_v60 = vmul.f32 0.25, %v6196_v40  ;;  %v8684_v53 = vpop.f32.mrb[131].mxu1 }
0x26e2   :  { %v6213_v48 = vsel %vm545_vm6, %v6210_v60, -inf }
0x26e3   :  { %6214 = vmax.xlane.f32.xlu1 %v6213_v48  ;;  %v6201_v34 = vpop.f32.mrb[132].mxu1 }
0x26e4   :  { %v6211_v17 = vmul.f32 0.25, %v6201_v34  ;;  %v8687_v35 = vpop.f32.mrb[133].mxu1 }
0x26e6   :  { %v6216_v0 = vsel %vm545_vm6, %v6211_v17, -inf }
0x26e7   :  { %6217 = vmax.xlane.f32.xlu0 %v6216_v0  ;;  %v6206_v28 = vpop.f32.mrb[134].mxu1 }
0x26e8   :  { %v6212_v18 = vmul.f32 0.25, %v6206_v28  ;;  %v8690_v55 = vpop.f32.mrb[135].mxu1 }
0x26ea   :  { %v6219_v46 = vsel %vm552_vm7, %v6212_v18, -inf }
0x26eb   :  { %6220 = vmax.xlane.f32.xlu1 %v6219_v46  ;;  %v6450_v37 = vpop.f32.mrb[136].mxu1 }
0x26ec   :  { %v6464_v31 = vmul.f32 0.25, %v6450_v37  ;;  %v8714_v13 = vpop.f32.mrb[137].mxu1 }
0x26ee   :  { %v6467_v5 = vsel %vm545_vm6, %v6464_v31, -inf }
0x26ef   :  { %6468 = vmax.xlane.f32.xlu0 %v6467_v5 }
0x26fc   :  { %9441 = vrot.lane.b32.xlu1 %v12048_v51, %s12790_s6 }
0x2758   :  { %v5724_v62 = vpop.xlane.xlu1 %5723 }
0x2759   :  { %v5731_v14 = vsub.f32 %v5719_v26, %v5724_v62 }
0x275b   :  { %v5734_v50 = vmul.f32 1.442695, %v5731_v14 }
0x275c   :  { %v5727_v10 = vpop.xlane.xlu0 %5726 }
0x275d   :  { %9689 = vpow2.f32 %v5734_v50  ;;  %v5732_v45 = vsub.f32 %v5720_v24, %v5727_v10 }
0x275f   :  { %v5736_v58 = vmul.f32 1.442695, %v5732_v45 }
0x2760   :  { %v5730_v38 = vpop.xlane.xlu0 %5729 }
0x2761   :  { %9691 = vpow2.f32 %v5736_v58  ;;  %v5733_v1 = vsub.f32 %v5721_v42, %v5730_v38 }
0x2763   :  { %v5738_v43 = vmul.f32 1.442695, %v5733_v1 }
0x2764   :  { %v5959_v21 = vpop.xlane.xlu0 %5958 }
0x2765   :  { %9693 = vpow2.f32 %v5738_v43  ;;  %v5966_v59 = vsub.f32 %v5954_v39, %v5959_v21 }
0x2767   :  { %v12145_v20 = vpop.eup %9689  ;;  %v5969_v11 = vmul.f32 1.442695, %v5966_v59 }
0x2768   :  { %v5962_v27 = vpop.xlane.xlu1 %5961  ;;  %v5740_v9 = vsel %vm545_vm6, %v12145_v20, 0.0 }
0x2769   :  { %9695 = vpow2.f32 %v5969_v11  ;;  %v5967_v26 = vsub.f32 %v5955_v56, %v5962_v27  ;;  %5741 = vadd.xlane.f32.xlu1 %v5740_v9 }
0x276b   :  { %v12149_v23 = vpop.eup %9691  ;;  %v5971_v24 = vmul.f32 1.442695, %v5967_v26 }
0x276c   :  { %v5965_v44 = vpop.xlane.xlu0 %5964  ;;  %v5743_v42 = vsel %vm545_vm6, %v12149_v23, 0.0 }
0x276d   :  { %9697 = vpow2.f32 %v5971_v24  ;;  %v5968_v41 = vsub.f32 %v5956_v36, %v5965_v44  ;;  %5744 = vadd.xlane.f32.xlu0 %v5743_v42 }
0x276f   :  { %v12153_v39 = vpop.eup %9693  ;;  %v5973_v12 = vmul.f32 1.442695, %v5968_v41 }
0x2770   :  { %v6215_v2 = vpop.xlane.xlu1 %6214  ;;  %v5746_v57 = vsel %vm552_vm7, %v12153_v39, 0.0 }
0x2771   :  { %9699 = vpow2.f32 %v5973_v12  ;;  %v6222_v56 = vsub.f32 %v6210_v60, %v6215_v2  ;;  %5747 = vadd.xlane.f32.xlu1 %v5746_v57 }
0x2773   :  { %v12157_v63 = vpop.eup %9695  ;;  %v6225_v4 = vmul.f32 1.442695, %v6222_v56 }
0x2774   :  { %v6218_v61 = vpop.xlane.xlu0 %6217  ;;  %v5975_v19 = vsel %vm545_vm6, %v12157_v63, 0.0 }
0x2775   :  { %9701 = vpow2.f32 %v6225_v4  ;;  %v6223_v36 = vsub.f32 %v6211_v17, %v6218_v61  ;;  %5976 = vadd.xlane.f32.xlu0 %v5975_v19 }
0x2777   :  { %v12161_v40 = vpop.eup %9697  ;;  %v6227_v53 = vmul.f32 1.442695, %v6223_v36 }
0x2778   :  { %v6221_v48 = vpop.xlane.xlu1 %6220  ;;  %v5978_v34 = vsel %vm545_vm6, %v12161_v40, 0.0 }
0x2779   :  { %9703 = vpow2.f32 %v6227_v53  ;;  %v6224_v60 = vsub.f32 %v6212_v18, %v6221_v48  ;;  %5979 = vadd.xlane.f32.xlu1 %v5978_v34 }
0x277b   :  { %v12165_v35 = vpop.eup %9699  ;;  %v6229_v0 = vmul.f32 1.442695, %v6224_v60 }
0x277c   :  { %v6469_v28 = vpop.xlane.xlu0 %6468  ;;  %v5981_v55 = vsel %vm552_vm7, %v12165_v35, 0.0  ;;  %v9442_v10 = vpop.permute.xlu1 %9441 }
0x277d   :  { %9705 = vpow2.f32 %v6229_v0  ;;  %v6476_v17 = vsub.f32 %v6464_v31, %v6469_v28  ;;  %5982 = vadd.xlane.f32.xlu0 %v5981_v55  ;;  %v9444_v1 = vunpack.i.h.bf16 %v9442_v10 }
0x277f   :  { %v12169_v46 = vpop.eup %9701  ;;  %v6479_v37 = vmul.f32 1.442695, %v6476_v17 }
0x2780   :  { %v6231_v13 = vsel %vm545_vm6, %v12169_v46, 0.0 }
0x2781   :  { %9707 = vpow2.f32 %v6479_v37  ;;  %6232 = vadd.xlane.f32.xlu1 %v6231_v13 }
0x2783   :  { %v12173_v18 = vpop.eup %9703 }
0x2784   :  { %v6234_v5 = vsel %vm545_vm6, %v12173_v18, 0.0 }
0x2785   :  { %6235 = vadd.xlane.f32.xlu0 %v6234_v5 }
0x2787   :  { %v12177_v62 = vpop.eup %9705 }
0x2788   :  { %v6237_v31 = vsel %vm552_vm7, %v12177_v62, 0.0 }
0x2789   :  { %6238 = vadd.xlane.f32.xlu0 %v6237_v31 }
0x278b   :  { %v12181_v14 = vpop.eup %9707 }
0x278c   :  { %v6485_v50 = vsel %vm545_vm6, %v12181_v14, 0.0 }
0x278d   :  { %6486 = vadd.xlane.f32.xlu0 %v6485_v50 }
0x2792   :  { %9446 = vrot.lane.b32.xlu1 %v12048_v51, %s12791_s1 }
0x2796   :  { %6250 = vrot.lane.b32.xlu1 %v12055_v25, %s12791_s1 }
0x279a   :  { %9451 = vrot.lane.b32.xlu1 %v12048_v51, %s12792_s5  ;;  %v9443_v51 = vunpack.i.l.bf16 %v9442_v10 }
0x279c   :  { %v9203_v59 = vpack.c.bf16 %v9444_v1, %v9443_v51  ;;  %v7690_v1 = vld [vmem:[%s12708_s9 + $0x48] sm:$0xff]  ;;  %v7691_v51 = vld [vmem:[%s12708_s9 + $0x50] sm:$0xff] }
0x279e   :  { %6504 = vrot.lane.b32.xlu1 %v12055_v25, %s12792_s5 }
0x27a2   :  { %6362 = vrot.lane.b32.xlu1 %v12045_v29, %s12792_s5 }
0x27a3   :  { %5996 = vrot.lane.b32.xlu0 %v12055_v25, %s12790_s6 }
0x27a7   :  { %6364 = vrot.lane.b32.xlu0 %v12052_v49, %s12792_s5  ;;  %s9832_s5 = smov [#allocation4]  }
0x27a8   :  { %s7338_s2 = sshll.u32 %s9832_s5, 4  ;;  %s7339_s2 = int_to_ptr.vmem [resolvable:$true] %s7338_s2 }
0x27a9   :  { %p9779_p1 = scmp.lt.s32.totalorder %s7339_s2, %s7339_s2 }
0x27f6   :  { %v5742_v45 = vpop.xlane.xlu1 %5741 }
0x27f7   :  { %9709 = vrcp.f32 %v5742_v45 }
0x27fa   :  { %v5745_v58 = vpop.xlane.xlu0 %5744 }
0x27fb   :  { %9711 = vrcp.f32 %v5745_v58 }
0x27fe   :  { %v5748_v38 = vpop.xlane.xlu1 %5747 }
0x27ff   :  { %9713 = vrcp.f32 %v5748_v38 }
0x2801   :  { %v9710_v43 = vpop.eup %9709 }
0x2802   :  { %v5752_v21 = vmul.f32 %v9710_v43, %v12145_v20  ;;  %v5977_v11 = vpop.xlane.xlu0 %5976 }
0x2803   :  { %9715 = vrcp.f32 %v5977_v11 }
0x2804   :  { %8638 = vmatmul.mubr.msk.f32.vlgmr.msra.gmra.mrb[116].mxu0 %vm545_vm6, %v5752_v21 }
0x2805   :  { %v9712_v29 = vpop.eup %9711  ;;  %9204 = vmatpush3.bf16.msra.mxu0 %v9203_v59  ;;  %8640 = vmatprep.mubr.msk.f32.mxu0 %vm9825_vm2, %v9823_v33  ;;  %v7692_v59 = vld [vmem:[%s12708_s9 + $0x58] sm:$0xff] }
0x2806   :  { %v5753_v49 = vmul.f32 %v9712_v29, %v12149_v23  ;;  %8665 = vmatprep.subr.mxu0 %v9823_v33  ;;  %v5980_v20 = vpop.xlane.xlu1 %5979 }
0x2807   :  { %9717 = vrcp.f32 %v5980_v20 }
0x2808   :  { %8641 = vmatmul.mubr.msk.f32.gmra.mrb[118].mxu0 %vm545_vm6, %v5753_v49  ;;  %v9223_v49 = vpack.c.bf16 %v7692_v59, %v7691_v51 }
0x2809   :  { %v9714_v25 = vpop.eup %9713  ;;  %8643 = vmatprep.mubr.msk.f32.mxu0 %vm9825_vm2, %v9823_v33 }
0x280a   :  { %v5754_v27 = vmul.f32 %v9714_v25, %v12153_v39  ;;  %v5983_v9 = vpop.xlane.xlu0 %5982 }
0x280b   :  { %9719 = vrcp.f32 %v5983_v9 }
0x280c   :  { %8644 = vmatmul.mubr.msk.f32.gmra.mrb[120].mxu0 %vm545_vm6, %v5754_v27 }
0x280d   :  { %8667 = vmatprep.mubr.msk.f32.mxu0 %vm9825_vm2, %v9823_v33  ;;  %v9716_v2 = vpop.eup %9715 }
0x280e   :  { %v6233_v26 = vpop.xlane.xlu1 %6232  ;;  %v5987_v39 = vmul.f32 %v9716_v2, %v12157_v63  ;;  %v7696_v2 = vld [vmem:[%s12708_s9 + $0x78] sm:$0xff] }
0x280f   :  { %9721 = vrcp.f32 %v6233_v26 }
0x2811   :  { %v9718_v19 = vpop.eup %9717 }
0x2812   :  { %v9447_v23 = vpop.permute.xlu1 %9446  ;;  %v6236_v24 = vpop.xlane.xlu0 %6235  ;;  %v5988_v48 = vmul.f32 %v9718_v19, %v12161_v40 }
0x2813   :  { %v9449_v57 = vunpack.i.h.bf16 %v9447_v23  ;;  %v9448_v56 = vunpack.i.l.bf16 %v9447_v23  ;;  %9723 = vrcp.f32 %v6236_v24  ;;  %v7693_v24 = vld [vmem:[%s12708_s9 + $0x60] sm:$0xff] }
0x2815   :  { %v9210_v36 = vpack.c.bf16 %v9449_v57, %v9448_v56  ;;  %v9720_v63 = vpop.eup %9719 }
0x2816   :  { %v6251_v44 = vpop.permute.xlu1 %6250  ;;  %v6239_v42 = vpop.xlane.xlu0 %6238  ;;  %v5989_v60 = vmul.f32 %v9720_v63, %v12165_v35 }
0x2817   :  { %9725 = vrcp.f32 %v6239_v42 }
0x2819   :  { %v9722_v40 = vpop.eup %9721 }
0x281a   :  { %v9452_v41 = vpop.permute.xlu1 %9451  ;;  %v6487_v12 = vpop.xlane.xlu0 %6486  ;;  %v6243_v55 = vmul.f32 %v9722_v40, %v12169_v46 }
0x281b   :  { %v9454_v0 = vunpack.i.h.bf16 %v9452_v41  ;;  %v9453_v28 = vunpack.i.l.bf16 %v9452_v41  ;;  %9727 = vrcp.f32 %v6487_v12  ;;  %v7695_v12 = vld [vmem:[%s12708_s9 + $0x70] sm:$0xff] }
0x281c   :  { %v9229_v56 = vpack.c.bf16 %v7696_v2, %v7695_v12  ;;  %v7711_v2 = vld [vmem:[%s12712_s13 + $0xa8] sm:$0xff] }
0x281d   :  { %v9724_v17 = vpop.eup %9723  ;;  %v9217_v35 = vpack.c.bf16 %v9454_v0, %v9453_v28 }
0x281e   :  { %v6505_v4 = vpop.permute.xlu1 %6504  ;;  %v5997_v61 = vpop.permute.xlu0 %5996  ;;  %v6244_v37 = vmul.f32 %v9724_v17, %v12173_v18 }
0x281f   :  { %8666 = vmatpush3.msk.msra.mxu0 %vm589_vm5, %v5997_v61 }
0x2820   :  { %8668 = vmatmul.mubr.msk.f32.vlgmr.msra.gmra.mrb[122].mxu0 %vm545_vm6, %v5987_v39  ;;  %9209 = vmatprep.subr.bf16.mxu0 %v9822_v3 }
0x2821   :  { %9211 = vmatpush3.bf16.msra.mxu0 %v9210_v36  ;;  %8670 = vmatprep.mubr.msk.f32.mxu0 %vm9825_vm2, %v9823_v33  ;;  %v9726_v13 = vpop.eup %9725 }
0x2822   :  { %v6363_v53 = vpop.permute.xlu1 %6362  ;;  %8695 = vmatprep.subr.mxu0 %v9823_v33  ;;  %v6365_v34 = vpop.permute.xlu0 %6364  ;;  %v6245_v46 = vmul.f32 %v9726_v13, %v12177_v62 }
0x2823   :  { %8716 = vmatmul.mubr.msk.f32.gmra.mrb[138].mxu1 %vm449_vm3, %v6363_v53 }
0x2824   :  { %8671 = vmatmul.mubr.msk.f32.gmra.mrb[124].mxu0 %vm545_vm6, %v5988_v48  ;;  %8718 = vmatprep.mubr.msk.f32.mxu1 %vm9825_vm2, %v9823_v33 }
0x2825   :  { %8696 = vmatpush3.msk.msra.mxu0 %vm589_vm5, %v6251_v44  ;;  %8673 = vmatprep.mubr.msk.f32.mxu0 %vm9825_vm2, %v9823_v33  ;;  %v9728_v5 = vpop.eup %9727  ;;  %v7694_v44 = vld [vmem:[%s12708_s9 + $0x68] sm:$0xff] }
0x2826   :  { %9216 = vmatprep.subr.bf16.mxu0 %v9822_v3  ;;  %v6497_v31 = vmul.f32 %v9728_v5, %v12181_v14  ;;  %v7689_v14 = vld [vmem:[%s12708_s9 + $0x40] sm:$0xff]  ;;  %v9226_v41 = vpack.c.bf16 %v7694_v44, %v7693_v24  ;;  %v7709_v24 = vld [vmem:[%s12712_s13 + $0x98] sm:$0xff] }
0x2827   :  { %8719 = vmatmul.mubr.msk.f32.gmra.mrb[140].mxu1 %vm449_vm3, %v6365_v34  ;;  %v9220_v21 = vpack.c.bf16 %v7690_v1, %v7689_v14  ;;  %v12308_v14 = vld [vmem:[%s12793_s26 + $0x1] ss:$0 sm:$0xff] }
0x2828   :  { %8674 = vmatmul.mubr.msk.f32.gmra.mrb[126].mxu0 %vm545_vm6, %v5989_v60  ;;  %8752 = vmatprep.mubr.msk.f32.mxu1 %vm9825_vm2, %v9823_v33 }
0x2829   :  { %8697 = vmatprep.mubr.msk.f32.mxu0 %vm9825_vm2, %v9823_v33  ;;  %9221 = vmatpush3.bf16.msra.mxu1 %v9220_v21 }
0x282a   :  { %9222 = vmatprep.subr.bf16.mxu1 %v9822_v3 }
0x282c   :  { %8698 = vmatmul.mubr.msk.f32.vlgmr.msra.gmra.mrb[128].mxu0 %vm545_vm6, %v6243_v55 }
0x282d   :  { %9218 = vmatpush3.bf16.msra.mxu0 %v9217_v35  ;;  %8700 = vmatprep.mubr.msk.f32.mxu0 %vm9825_vm2, %v9823_v33 }
0x282e   :  { %8725 = vmatprep.subr.mxu0 %v9823_v33  ;;  %9224 = vmatpush3.bf16.msra.mxu1 %v9223_v49 }
0x282f   :  { %9225 = vmatprep.subr.bf16.mxu1 %v9822_v3 }
0x2830   :  { %8701 = vmatmul.mubr.msk.f32.gmra.mrb[130].mxu0 %vm545_vm6, %v6244_v37 }
0x2831   :  { %8726 = vmatpush3.msk.msra.mxu0 %vm589_vm5, %v6505_v4  ;;  %8703 = vmatprep.mubr.msk.f32.mxu0 %vm9825_vm2, %v9823_v33 }
0x2832   :  { %9227 = vmatpush3.bf16.msra.mxu1 %v9226_v41  ;;  %v7708_v41 = vld [vmem:[%s12712_s13 + $0x90] sm:$0xff] }
0x2833   :  { %9228 = vmatprep.subr.bf16.mxu1 %v9822_v3 }
0x2834   :  { %8704 = vmatmul.mubr.msk.f32.gmra.mrb[132].mxu0 %vm545_vm6, %v6245_v46 }
0x2835   :  { %8727 = vmatprep.mubr.msk.f32.mxu0 %vm9825_vm2, %v9823_v33 }
0x2836   :  { %9230 = vmatpush3.bf16.msra.mxu1 %v9229_v56 }
0x2838   :  { %8728 = vmatmul.mubr.msk.f32.vlgmr.msra.gmra.mrb[134].mxu0 %vm545_vm6, %v6497_v31 }
0x2839   :  { %8730 = vmatprep.mubr.msk.f32.mxu0 %vm9825_vm2, %v9823_v33 }
0x28d7   :  { %v5833_v18 = vpop.f32.mrb[116].mxu0 }
0x28d8   :  { %5847 = vst.msk [vmem:[#allocation2] sm:$0xff] %vm449_vm3, %v5833_v18  ;;  %v8639_v50 = vpop.f32.mrb[117].mxu0 }
0x28db   :  { %v5838_v10 = vpop.f32.mrb[118].mxu0 }
0x28dc   :  { %5848 = vst.msk [vmem:[#allocation2 + $0x8] sm:$0xff] %vm449_vm3, %v5838_v10  ;;  %v8642_v62 = vpop.f32.mrb[119].mxu0  ;;  %vm7236_vm3 = vcmask 254976  }
0x28df   :  { %v5843_v45 = vpop.f32.mrb[120].mxu0 }
0x28e0   :  { %5849 = vst.msk [vmem:[#allocation2 + $0x10] sm:$0x1] %vm675_vm8, %v5843_v45  ;;  %v8645_v58 = vpop.f32.mrb[121].mxu0 }
0x28f3   :  { %v6077_v38 = vpop.f32.mrb[122].mxu0 }
0x28f4   :  { %6094 = vrot.lane.b32.xlu1 %v6077_v38, %s12788_s23  ;;  %v8669_v43 = vpop.f32.mrb[123].mxu0 }
0x28f6   :  { %v6455_v29 = vpop.f32.mrb[138].mxu1 }
0x28f7   :  { %v12269_v25 = vpop.f32.mrb[124].mxu0  ;;  %v8717_v11 = vpop.f32.mrb[139].mxu1  ;;  %v6465_v48 = vmul.f32 0.25, %v6455_v29 }
0x28f8   :  { %v8672_v20 = vpop.f32.mrb[125].mxu0 }
0x28f9   :  { %v6470_v63 = vsel %vm545_vm6, %v6465_v48, -inf }
0x28fa   :  { %v6460_v27 = vpop.f32.mrb[140].mxu1 }
0x28fb   :  { %v12272_v9 = vpop.f32.mrb[126].mxu0  ;;  %v8720_v26 = vpop.f32.mrb[141].mxu1  ;;  %v6466_v34 = vmul.f32 0.25, %v6460_v27 }
0x28fc   :  { %v8675_v23 = vpop.f32.mrb[127].mxu0 }
0x28fd   :  { %v6473_v60 = vsel %vm552_vm7, %v6466_v34, -inf }
0x28ff   :  { %v6331_v42 = vpop.f32.mrb[128].mxu0 }
0x2900   :  { %6348 = vrot.lane.b32.xlu0 %v6331_v42, %s12786_s25  ;;  %v8699_v57 = vpop.f32.mrb[129].mxu0  ;;  %v7706_v42 = vld [vmem:[%s12712_s13 + $0x80] sm:$0xff] }
0x2901   :  { %v9233_v12 = vpack.c.bf16 %v7708_v41, %v7706_v42  ;;  %v7713_v57 = vld [vmem:[%s12712_s13 + $0xb8] sm:$0xff]  ;;  %v7728_v42 = vld [vmem:[%s12714_s15 + $0x110] sm:$0xff] }
0x2902   :  { %v9235_v56 = vpack.c.bf16 %v7713_v57, %v7711_v2  ;;  %v7729_v41 = vld [vmem:[%s12714_s15 + $0x118] sm:$0xff]  ;;  %v7746_v2 = vld [vmem:[%s12714_s15 + $0x1a0] sm:$0xff]  ;;  %v7747_v57 = vld [vmem:[%s12714_s15 + $0x1a8] sm:$0xff] }
0x2903   :  { %v12289_v39 = vpop.f32.mrb[130].mxu0 }
0x2904   :  { %v8702_v4 = vpop.f32.mrb[131].mxu0 }
0x2905   :  { %v7712_v4 = vld [vmem:[%s12712_s13 + $0xb0] sm:$0xff] }
0x2907   :  { %v6341_v61 = vpop.f32.mrb[132].mxu0 }
0x2908   :  { %v8705_v19 = vpop.f32.mrb[133].mxu0 }
0x2909   :  { %v7715_v19 = vld [vmem:[%s12712_s13 + $0xc8] sm:$0xff] }
0x290b   :  { %v6585_v36 = vpop.f32.mrb[134].mxu0 }
0x290c   :  { %6602 = vrot.lane.b32.xlu1 %v6585_v36, %s12787_s7  ;;  %v8729_v53 = vpop.f32.mrb[135].mxu0  ;;  %v7717_v36 = vld [vmem:[%s12712_s13 + $0xd8] sm:$0xff] }
0x290d   :  { %v9239_v53 = vpack.c.bf16 %v7717_v36, %v7715_v19  ;;  %v7748_v19 = vld [vmem:[%s12714_s15 + $0x1b0] sm:$0xff]  ;;  %v7749_v36 = vld [vmem:[%s12714_s15 + $0x1b8] sm:$0xff] }
0x291f   :  { %6471 = vmax.xlane.f32.xlu0 %v6470_v63  ;;  %v7716_v63 = vld [vmem:[%s12712_s13 + $0xd0] sm:$0xff] }
0x2930   :  { %6474 = vmax.xlane.f32.xlu1 %v6473_v60  ;;  %v7719_v60 = vld [vmem:[%s12712_s13 + $0xe8] sm:$0xff] }
0x2966   :  { %v6095_v40 = vpop.permute.xlu1 %6094 }
0x2967   :  { %6103 = vst.msk [vmem:[#allocation2] sm:$0xff] %vm930_vm9, %v6095_v40  ;;  %v7721_v40 = vld [vmem:[%s12712_s13 + $0xf8] sm:$0xff] }
0x2972   :  { %v6349_v0 = vpop.permute.xlu0 %6348 }
0x2973   :  { %6357 = vst.msk [vmem:[#allocation2] sm:$0xff] %vm1186_vm10, %v6349_v0  ;;  %v9243_v0 = vpack.c.bf16 %v7721_v40, %v7719_v60  ;;  %v7750_v60 = vld [vmem:[%s12714_s15 + $0x1c0] sm:$0xff]  ;;  %v7751_v40 = vld [vmem:[%s12714_s15 + $0x1c8] sm:$0xff] }
0x297e   :  { %v6603_v28 = vpop.permute.xlu1 %6602 }
0x297f   :  { %6611 = vst.msk [vmem:[#allocation2] sm:$0xff] %vm1442_vm11, %v6603_v28  ;;  %v7718_v28 = vld [vmem:[%s12712_s13 + $0xe0] sm:$0xff] }
0x2986   :  { %v6614_v55 = vld [vmem:[#allocation2] sm:$0xff] }
0x2987   :  { %8753 = vmatmul.mubr.msk.f32.vlgmr.msra.gmra.mrb[142].mxu1 %vm110_vm0, %v6614_v55  ;;  %v7720_v55 = vld [vmem:[%s12712_s13 + $0xf0] sm:$0xff] }
0x2988   :  { %8755 = vmatprep.mubr.msk.f32.mxu1 %vm9825_vm2, %v9823_v33 }
0x29ac   :  { %v6472_v17 = vpop.xlane.xlu0 %6471 }
0x29ad   :  { %v6477_v35 = vsub.f32 %v6465_v48, %v6472_v17  ;;  %v7714_v48 = vld [vmem:[%s12712_s13 + $0xc0] sm:$0xff]  ;;  %v9245_v17 = vpack.c.bf16 %v7720_v55, %v7718_v28  ;;  %v7735_v55 = vld [vmem:[%s12714_s15 + $0x148] sm:$0xff] }
0x29ae   :  { %v7734_v28 = vld [vmem:[%s12714_s15 + $0x140] sm:$0xff] }
0x29af   :  { %v6481_v37 = vmul.f32 1.442695, %v6477_v35 }
0x29b1   :  { %9729 = vpow2.f32 %v6481_v37 }
0x29bb   :  { %v9730_v13 = vpop.eup %9729 }
0x29bc   :  { %v6488_v46 = vsel %vm545_vm6, %v9730_v13, 0.0 }
0x29bd   :  { %6489 = vadd.xlane.f32.xlu0 %v6488_v46  ;;  %v6475_v5 = vpop.xlane.xlu1 %6474 }
0x29be   :  { %v6478_v31 = vsub.f32 %v6466_v34, %v6475_v5  ;;  %v9241_v34 = vpack.c.bf16 %v7716_v63, %v7714_v48  ;;  %v7732_v48 = vld [vmem:[%s12714_s15 + $0x130] sm:$0xff]  ;;  %v7733_v63 = vld [vmem:[%s12714_s15 + $0x138] sm:$0xff] }
0x29c0   :  { %v6483_v18 = vmul.f32 1.442695, %v6478_v31 }
0x29c2   :  { %9731 = vpow2.f32 %v6483_v18 }
0x29cc   :  { %v9732_v50 = vpop.eup %9731 }
0x29cd   :  { %v6491_v10 = vsel %vm552_vm7, %v9732_v50, 0.0 }
0x29ce   :  { %6492 = vadd.xlane.f32.xlu0 %v6491_v10 }
0x2a4a   :  { %v6490_v62 = vpop.xlane.xlu0 %6489 }
0x2a4b   :  { %9733 = vrcp.f32 %v6490_v62  ;;  %v12383_v62 = vld [vmem:[%s12710_s11 + $0x1] ss:$0 sm:$0xff] }
0x2a55   :  { %v9734_v45 = vpop.eup %9733 }
0x2a56   :  { %v6498_v58 = vmul.f32 %v9734_v45, %v9730_v13 }
0x2a58   :  { %8731 = vmatmul.mubr.msk.f32.gmra.mrb[136].mxu0 %vm545_vm6, %v6498_v58 }
0x2a59   :  { %8733 = vmatprep.mubr.msk.f32.mxu0 %vm9825_vm2, %v9823_v33 }
0x2a5a   :  { %v6700_v38 = vpop.f32.mrb[142].mxu1 }
0x2a5b   :  { %v6714_v1 = vadd.f32 %v6700_v38, %v11948_v22  ;;  %v6493_v51 = vpop.xlane.xlu0 %6492  ;;  %v8754_v43 = vpop.f32.mrb[143].mxu1 }
0x2a5c   :  { %9735 = vrcp.f32 %v6493_v51 }
0x2a5d   :  { %v12312_v21 = vadd.f32 %v12308_v14, %v6714_v1 }
0x2a5f   :  { %v6729_v59 = vsel %vm110_vm0, %v12312_v21, 0.0 }
0x2a60   :  { %6730 = vadd.xlane.f32.xlu0 %v6729_v59 }
0x2a66   :  { %v9736_v29 = vpop.eup %9735 }
0x2a67   :  { %v6499_v49 = vmul.f32 %v9736_v29, %v9732_v50 }
0x2a69   :  { %8734 = vmatmul.mubr.msk.f32.gmra.mrb[138].mxu0 %vm545_vm6, %v6499_v49 }
0x2a6a   :  { %6887 = vmatprep.mubr.f32.mxu0 %v9823_v33 }
0x2a76   :  { %6096 = vrot.lane.b32.xlu0 %v12269_v25, %s12788_s23  ;;  %v7707_v25 = vld [vmem:[%s12712_s13 + $0x88] sm:$0xff] }
0x2a77   :  { %v9231_v44 = vpack.c.bf16 %v7709_v24, %v7707_v25  ;;  %v7744_v25 = vld [vmem:[%s12714_s15 + $0x190] sm:$0xff]  ;;  %v7745_v24 = vld [vmem:[%s12714_s15 + $0x198] sm:$0xff] }
0x2a79   :  { %9232 = vmatprep.subr.bf16.mxu0 %v9231_v44  ;;  %v9251_v44 = vpack.c.bf16 %v7745_v24, %v7744_v25 }
0x2a7a   :  { %6352 = vrot.lane.b32.xlu0 %v6341_v61, %s12786_s25  ;;  %9234 = vmatpush1.bf16.msra.mxu0 %v9233_v12  ;;  %v9253_v12 = vpack.c.bf16 %v7729_v41, %v7728_v42 }
0x2a7b   :  { %9236 = vmatprep.subr.bf16.mxu0 %v9235_v56  ;;  %v9255_v56 = vpack.c.bf16 %v7747_v57, %v7746_v2 }
0x2aed   :  { %v6731_v22 = vpop.xlane.xlu0 %6730 }
0x2aee   :  { %v6738_v11 = vmul.f32 0.015625, %v6731_v22  ;;  %v7742_v22 = vld [vmem:[%s12714_s15 + $0x180] sm:$0xff] }
0x2af0   :  { %v6741_v20 = vsub.f32 %v12312_v21, %v6738_v11  ;;  %v7743_v11 = vld [vmem:[%s12714_s15 + $0x188] sm:$0xff] }
0x2af1   :  { %v6097_v27 = vpop.permute.xlu0 %6096 }
0x2af2   :  { %6104 = vst.msk [vmem:[#allocation2 + $0x8] sm:$0xff] %vm930_vm9, %v6097_v27  ;;  %v6744_v26 = vmul.f32 %v6741_v20, %v6741_v20  ;;  %v7726_v27 = vld [vmem:[%s12714_s15 + $0x100] sm:$0xff] }
0x2af4   :  { %v6747_v23 = vsel %vm110_vm0, %v6744_v26, 0.0  ;;  %v7727_v26 = vld [vmem:[%s12714_s15 + $0x108] sm:$0xff] }
0x2af5   :  { %6748 = vadd.xlane.f32.xlu1 %v6747_v23  ;;  %v6353_v43 = vpop.permute.xlu0 %6352  ;;  %v9249_v23 = vpack.c.bf16 %v7727_v26, %v7726_v27 }
0x2b06   :  { %6350 = vrot.lane.b32.xlu1 %v12289_v39, %s12786_s25  ;;  %v7710_v39 = vld [vmem:[%s12712_s13 + $0xa0] sm:$0xff]  ;;  %s12800_s13 = sld [smem:[#allocation25_spill]] }
0x2b07   :  { %v9237_v61 = vpack.c.bf16 %v7712_v4, %v7710_v39  ;;  %v7730_v39 = vld [vmem:[%s12714_s15 + $0x120] sm:$0xff]  ;;  %v7731_v4 = vld [vmem:[%s12714_s15 + $0x128] sm:$0xff] }
0x2b09   :  { %9238 = vmatpush1.bf16.msra.mxu0 %v9237_v61  ;;  %v9257_v61 = vpack.c.bf16 %v7731_v4, %v7730_v39 }
0x2b0a   :  { %9240 = vmatprep.subr.bf16.mxu0 %v9239_v53  ;;  %v9259_v53 = vpack.c.bf16 %v7749_v36, %v7748_v19 }
0x2b0d   :  { %9242 = vmatpush1.bf16.msra.mxu0 %v9241_v34  ;;  %v9261_v34 = vpack.c.bf16 %v7733_v63, %v7732_v48 }
0x2b0e   :  { %9244 = vmatprep.subr.bf16.mxu0 %v9243_v0  ;;  %v9263_v0 = vpack.c.bf16 %v7751_v40, %v7750_v60 }
0x2b11   :  { %9246 = vmatpush1.bf16.msra.mxu0 %v9245_v17  ;;  %v9265_v17 = vpack.c.bf16 %v7735_v55, %v7734_v28 }
0x2b12   :  { %9279 = vmatprep.subr.bf16.mxu0 %v9822_v3 }
0x2b2b   :  { %v6590_v35 = vpop.f32.mrb[136].mxu0 }
0x2b2c   :  { %v8732_v37 = vpop.f32.mrb[137].mxu0  ;;  %6604 = vrot.lane.b32.xlu1 %v6590_v35, %s12787_s7  ;;  %v7752_v35 = vld [vmem:[%s12714_s15 + $0x1d0] sm:$0xff] }
0x2b2d   :  { %v7753_v37 = vld [vmem:[%s12714_s15 + $0x1d8] sm:$0xff] }
0x2b30   :  { %6098 = vrot.lane.b32.xlu1 %v12272_v9, %s12788_s23  ;;  %v12388_v9 = vld [vmem:[%s12711_s12 + $0x1] ss:$0 sm:$0xff]  ;;  %s9774_s23 = scalar_lea.vmem %s7339_s2, 32 }
0x2b31   :  { %p9775_p0 = scmp.ne.s32.totalorder %s7339_s2, %s9774_s23  ;;  %p9780_p2 = scmp.lt.s32.totalorder %s9774_s23, %s9774_s23 }
0x2b33   :  { %p9781_p3 = por %p9780_p2, %p9779_p1 }
0x2b35   :  { %p9782_p4 = pnand %p9781_p3, %p9775_p0 }
0x2b3c   :  { %v6595_v13 = vpop.f32.mrb[138].mxu0 }
0x2b3d   :  { %v8735_v46 = vpop.f32.mrb[139].mxu0  ;;  %6606 = vrot.lane.b32.xlu1 %v6595_v13, %s12787_s7  ;;  %v9267_v13 = vpack.c.bf16 %v7753_v37, %v7752_v35  ;;  %v12521_v37 = vld [vmem:[%s12794_s29 + $0x1] ss:$0 sm:$0xff] }
0x2b3e   :  { %v7736_v46 = vld [vmem:[%s12714_s15 + $0x150] sm:$0xff] }
0x2b82   :  { %v6749_v5 = vpop.xlane.xlu1 %6748 }
0x2b83   :  { %v6756_v31 = vmul.f32 0.015625, %v6749_v5  ;;  %v7737_v5 = vld [vmem:[%s12714_s15 + $0x158] sm:$0xff] }
0x2b85   :  { %v6759_v18 = vadd.f32 1e-05, %v6756_v31  ;;  %v9269_v31 = vpack.c.bf16 %v7737_v5, %v7736_v46 }
0x2b86   :  { %v6351_v50 = vpop.permute.xlu1 %6350 }
0x2b87   :  { %9737 = vrsqrt.f32 %v6759_v18  ;;  %6358 = vst.msk [vmem:[#allocation2 + $0x8] sm:$0xff] %vm1186_vm10, %v6351_v50  ;;  %v7754_v18 = vld [vmem:[%s12714_s15 + $0x1e0] sm:$0xff]  ;;  %v7755_v50 = vld [vmem:[%s12714_s15 + $0x1e8] sm:$0xff] }
0x2b91   :  { %v9738_v10 = vpop.eup %9737 }
0x2b92   :  { %v6765_v45 = vmul.f32 %v9738_v10, %v6741_v20  ;;  %v9247_v20 = vpack.c.bf16 %v7743_v11, %v7742_v22  ;;  %v9271_v10 = vpack.c.bf16 %v7755_v50, %v7754_v18  ;;  %v7722_v22 = vld [vmem:[%s12713_s14 + $0x2] sm:$0x3] }
0x2b93   :  { %v12502_v11 = vrot.slane %v7722_v22, %v10216_v54 }
0x2b94   :  { %v6774_v58 = vmul.f32 %v12383_v62, %v6765_v45  ;;  %9248 = vmatprep.subr.bf16.mxu1 %v9247_v20  ;;  %v7738_v45 = vld [vmem:[%s12714_s15 + $0x160] sm:$0xff]  ;;  %v12505_v20 = vrot.slane %v7722_v22, %v10221_v7 }
0x2b95   :  { %9250 = vmatpush3.bf16.msra.mxu1 %v9249_v23 }
0x2b96   :  { %v6783_v38 = vadd.f32 %v12388_v9, %v6774_v58  ;;  %9252 = vmatprep.subr.bf16.mxu1 %v9251_v44  ;;  %v7739_v58 = vld [vmem:[%s12714_s15 + $0x168] sm:$0xff] }
0x2b98   :  { %7723 = vmatmul.mubr.msk.f32.vlgmr.msra.gmra.mrb[140].mxu0 %vm110_vm0, %v6783_v38  ;;  %v9273_v38 = vpack.c.bf16 %v7739_v58, %v7738_v45 }
0x2b99   :  { %6893 = vmatprep.mubr.f32.mxu0 %v9823_v33  ;;  %9254 = vmatpush3.bf16.msra.mxu1 %v9253_v12 }
0x2b9a   :  { %9256 = vmatprep.subr.bf16.mxu1 %v9255_v56 }
0x2b9d   :  { %9258 = vmatpush3.bf16.msra.mxu1 %v9257_v61 }
0x2b9e   :  { %v6605_v1 = vpop.permute.xlu1 %6604  ;;  %9260 = vmatprep.subr.bf16.mxu1 %v9259_v53 }
0x2b9f   :  { %6612 = vst.msk [vmem:[#allocation2 + $0x8] sm:$0xff] %vm1442_vm11, %v6605_v1  ;;  %v7756_v1 = vld [vmem:[%s12714_s15 + $0x1f0] sm:$0xff] }
0x2ba1   :  { %9262 = vmatpush3.bf16.msra.mxu1 %v9261_v34 }
0x2ba2   :  { %v6099_v51 = vpop.permute.xlu1 %6098  ;;  %9264 = vmatprep.subr.bf16.mxu1 %v9263_v0 }
0x2ba3   :  { %6105 = vst.msk [vmem:[#allocation2 + $0x10] sm:$0x1] %vm933_vm12, %v6099_v51  ;;  %v7757_v51 = vld [vmem:[%s12714_s15 + $0x1f8] sm:$0xff] }
0x2ba4   :  { %6359 = vst.msk [vmem:[#allocation2 + $0x10] sm:$0x1] %vm1189_vm13, %v6353_v43  ;;  %v9275_v43 = vpack.c.bf16 %v7757_v51, %v7756_v1  ;;  %v3563_v51 = vadd.f32 %v11353_v6, %v11112_v8 }
0x2ba5   :  { %9266 = vmatpush3.bf16.msra.mxu1 %v9265_v17 }
0x2ba6   :  { %v6615_v59 = vld [vmem:[#allocation2 + $0x8] sm:$0xff]  ;;  %9268 = vmatprep.subr.bf16.mxu1 %v9267_v13  ;;  %v12538_v22 = vadd.f32 %v12521_v37, %v3563_v51 }
0x2ba7   :  { %8756 = vmatmul.mubr.msk.f32.gmra.mrb[144].mxu1 %vm110_vm0, %v6615_v59  ;;  %v7740_v59 = vld [vmem:[%s12714_s15 + $0x170] sm:$0xff] }
0x2ba8   :  { %8758 = vmatprep.mubr.msk.f32.mxu1 %vm9825_vm2, %v9823_v33 }
0x2ba9   :  { %9270 = vmatpush3.bf16.msra.mxu1 %v9269_v31 }
0x2baa   :  { %9272 = vmatprep.subr.bf16.mxu1 %v9271_v10 }
0x2bad   :  { %9274 = vmatpush3.bf16.msra.mxu1 %v9273_v38 }
0x2bae   :  { %9276 = vmatprep.subr.bf16.mxu1 %v9275_v43 }
0x2baf   :  { %v6607_v29 = vpop.permute.xlu1 %6606 }
0x2bb0   :  { %6613 = vst.msk [vmem:[#allocation2 + $0x10] sm:$0x1] %vm1445_vm14, %v6607_v29  ;;  %v7741_v29 = vld [vmem:[%s12714_s15 + $0x178] sm:$0xff] }
0x2bb7   :  { %v6616_v49 = vld [vmem:[#allocation2 + $0x10] sm:$0x1] }
0x2bb8   :  { %8759 = vmatmul.mubr.msk.f32.gmra.mrb[146].mxu1 %vm110_vm0, %v6616_v49  ;;  %v9277_v49 = vpack.c.bf16 %v7741_v29, %v7740_v59 }
0x2bba   :  { %9278 = vmatpush3.bf16.msra.mxu1 %v9277_v49 }
0x2c6b   :  { %v6889_v27 = vpop.f32.mrb[140].mxu0 }
0x2c6c   :  { %v6890_v26 = vadd.f32 %v6889_v27, %v12502_v11  ;;  %v6891_v23 = vpop.f32.mrb[141].mxu0  ;;  %v3581_v27 = vsel %vm110_vm0, %v12538_v22, 0.0 }
0x2c6d   :  { %v6892_v25 = vadd.f32 %v6891_v23, %v12505_v20 }
0x2c6e   :  { %v6906_v24 = vmul.f32 %v6890_v26, %v6890_v26 }
0x2c6f   :  { %v6907_v44 = vmul.f32 %v6892_v25, %v6892_v25 }
0x2c70   :  { %v6912_v42 = vmul.f32 %v6906_v24, %v6890_v26 }
0x2c71   :  { %v6913_v41 = vmul.f32 %v6907_v44, %v6892_v25 }
0x2c72   :  { %v6918_v12 = vmul.f32 0.044715, %v6912_v42 }
0x2c73   :  { %v6919_v2 = vmul.f32 0.044715, %v6913_v41 }
0x2c74   :  { %v6924_v57 = vadd.f32 %v6918_v12, %v6890_v26 }
0x2c75   :  { %v6925_v56 = vadd.f32 %v6919_v2, %v6892_v25 }
0x2c76   :  { %v6930_v39 = vmul.f32 0.7978846, %v6924_v57 }
0x2c77   :  { %v6931_v54 = vmul.f32 0.7978846, %v6925_v56 }
0x2c78   :  { %9739 = vtanh.f32 %v6930_v39 }
0x2c79   :  { %9741 = vtanh.f32 %v6931_v54 }
0x2c7a   :  { %v6705_v7 = vpop.f32.mrb[144].mxu1 }
0x2c7b   :  { %v6715_v4 = vadd.f32 %v6705_v7, %v11953_v32  ;;  %v8757_v61 = vpop.f32.mrb[145].mxu1  ;;  %v3562_v32 = vadd.f32 %v11351_v47, %v11107_v52 }
0x2c7d   :  { %v12511_v19 = vadd.f32 %v12308_v14, %v6715_v4  ;;  %v3573_v5 = vadd.f32 %v12521_v37, %v3562_v32 }
0x2c7f   :  { %v6732_v36 = vsel %vm110_vm0, %v12511_v19, 0.0  ;;  %v3578_v31 = vsel %vm110_vm0, %v3573_v5, 0.0 }
0x2c80   :  { %6733 = vadd.xlane.f32.xlu0 %v6732_v36 }
0x2c82   :  { %v9740_v53 = vpop.eup %9739 }
0x2c83   :  { %v9742_v48 = vpop.eup %9741  ;;  %v6942_v63 = vadd.f32 1.0, %v9740_v53 }
0x2c84   :  { %v6943_v34 = vadd.f32 1.0, %v9742_v48 }
0x2c85   :  { %v6948_v60 = vmul.f32 0.5, %v6942_v63 }
0x2c86   :  { %v6949_v40 = vmul.f32 0.5, %v6943_v34  ;;  %v12553_v34 = vld [vmem:[%s12795_s3] ss:$0 sm:$0xff] }
0x2c87   :  { %v6954_v28 = vmul.f32 %v6948_v60, %v6890_v26 }
0x2c88   :  { %v6955_v0 = vmul.f32 %v6949_v40, %v6892_v25 }
0x2c8a   :  { %7056 = vmatprep.mubr.f32.mxu1 %v6955_v0  ;;  %v12559_v0 = vld [vmem:[%s12796_s30] ss:$0 sm:$0xff] }
0x2c8b   :  { %v6710_v55 = vpop.f32.mrb[146].mxu1  ;;  %7057 = vmatmul.mubr.f32.vlgmr.msra.gmra.mrb[148].mxu1 %v6954_v28 }
0x2c8c   :  { %v6716_v17 = vadd.f32 %v6710_v55, %v11958_v15  ;;  %v8760_v35 = vpop.f32.mrb[147].mxu1 }
0x2c8e   :  { %v12524_v13 = vadd.f32 %v12308_v14, %v6716_v17 }
0x2c90   :  { %v6735_v46 = vsel %vm208_vm1, %v12524_v13, 0.0 }
0x2c91   :  { %6736 = vadd.xlane.f32.xlu1 %v6735_v46  ;;  %v7150_v46 = vld [vmem:[%s12798_s8] sm:$0xff] }
0x2c95   :  { %3579 = vadd.xlane.f32.xlu1 %v3578_v31 }
0x2d0d   :  { %v6734_v52 = vpop.xlane.xlu0 %6733 }
0x2d0e   :  { %v6739_v47 = vmul.f32 0.015625, %v6734_v52  ;;  %v7152_v52 = vld [vmem:[%s12798_s8 + $0x10] sm:$0xff] }
0x2d10   :  { %v6742_v15 = vsub.f32 %v12511_v19, %v6739_v47  ;;  %v7153_v47 = vld [vmem:[%s12798_s8 + $0x18] sm:$0xff] }
0x2d12   :  { %v6745_v18 = vmul.f32 %v6742_v15, %v6742_v15 }
0x2d14   :  { %v6750_v50 = vsel %vm110_vm0, %v6745_v18, 0.0  ;;  %v7154_v18 = vld [vmem:[%s12798_s8 + $0x20] sm:$0xff] }
0x2d15   :  { %6751 = vadd.xlane.f32.xlu0 %v6750_v50  ;;  %v7155_v50 = vld [vmem:[%s12798_s8 + $0x28] sm:$0xff] }
0x2d1e   :  { %v6737_v10 = vpop.xlane.xlu1 %6736 }
0x2d1f   :  { %v6740_v14 = vmul.f32 0.015625, %v6737_v10  ;;  %v9286_v10 = vpack.c.bf16 %v7155_v50, %v7154_v18 }
0x2d21   :  { %v6743_v45 = vsub.f32 %v12524_v13, %v6740_v14  ;;  %v7156_v14 = vld [vmem:[%s12798_s8 + $0x30] sm:$0xff] }
0x2d22   :  { %v3580_v58 = vpop.xlane.xlu1 %3579 }
0x2d23   :  { %v3587_v38 = vmul.f32 0.015625, %v3580_v58  ;;  %v6746_v1 = vmul.f32 %v6743_v45, %v6743_v45 }
0x2d25   :  { %v3590_v43 = vsub.f32 %v3573_v5, %v3587_v38  ;;  %v6753_v59 = vsel %vm208_vm1, %v6746_v1, 0.0  ;;  %v7151_v5 = vld [vmem:[%s12798_s8 + $0x8] sm:$0xff] }
0x2d26   :  { %6754 = vadd.xlane.f32.xlu0 %v6753_v59  ;;  %v9280_v31 = vpack.c.bf16 %v7151_v5, %v7150_v46 }
0x2d27   :  { %v3593_v29 = vmul.f32 %v3590_v43, %v3590_v43 }
0x2d28   :  { %9281 = vmatpush3.bf16.msra.mxu0 %v9280_v31 }
0x2d29   :  { %v3596_v49 = vsel %vm110_vm0, %v3593_v29, 0.0  ;;  %9282 = vmatprep.subr.bf16.mxu0 %v9822_v3 }
0x2d2a   :  { %3597 = vadd.xlane.f32.xlu1 %v3596_v49 }
0x2d2e   :  { %3582 = vadd.xlane.f32.xlu1 %v3581_v27 }
0x2d5e   :  { %v8158_v26 = vpop.f32.mrb[148].mxu1 }
0x2d5f   :  { %v8159_v23 = vpop.f32.mrb[149].mxu1 }
0x2d60   :  { %v8160_v25 = vadd.f32 %v8159_v23, %v8158_v26 }
0x2d62   :  { %v7072_v8 = vadd.f32 %v8160_v25, %v12312_v21 }
0x2d64   :  { %v7082_v6 = vadd.f32 %v12521_v37, %v7072_v8 }
0x2d66   :  { %v7087_v24 = vsel %vm110_vm0, %v7082_v6, 0.0 }
0x2d67   :  { %7088 = vadd.xlane.f32.xlu0 %v7087_v24 }
0x2da2   :  { %v6752_v44 = vpop.xlane.xlu0 %6751 }
0x2da3   :  { %v6757_v42 = vmul.f32 0.015625, %v6752_v44 }
0x2da5   :  { %v6760_v41 = vadd.f32 1e-05, %v6757_v42 }
0x2da7   :  { %9743 = vrsqrt.f32 %v6760_v41 }
0x2db1   :  { %v9744_v12 = vpop.eup %9743 }
0x2db2   :  { %v6766_v2 = vmul.f32 %v9744_v12, %v6742_v15  ;;  %v9283_v15 = vpack.c.bf16 %v7153_v47, %v7152_v52 }
0x2db3   :  { %v6755_v57 = vpop.xlane.xlu0 %6754 }
0x2db4   :  { %v6758_v56 = vmul.f32 0.015625, %v6755_v57  ;;  %v6775_v39 = vmul.f32 %v12383_v62, %v6766_v2  ;;  %9284 = vmatpush3.bf16.msra.mxu0 %v9283_v15 }
0x2db5   :  { %9285 = vmatprep.subr.bf16.mxu0 %v9822_v3 }
0x2db6   :  { %v6761_v54 = vadd.f32 1e-05, %v6758_v56  ;;  %v6784_v7 = vadd.f32 %v12388_v9, %v6775_v39 }
0x2db7   :  { %v3598_v4 = vpop.xlane.xlu1 %3597 }
0x2db8   :  { %9745 = vrsqrt.f32 %v6761_v54  ;;  %v3605_v21 = vmul.f32 0.015625, %v3598_v4  ;;  %7724 = vmatmul.mubr.msk.f32.gmra.mrb[142].mxu0 %vm110_vm0, %v6784_v7 }
0x2db9   :  { %6899 = vmatprep.mubr.f32.mxu0 %v9823_v33  ;;  %9287 = vmatpush3.bf16.msra.mxu0 %v9286_v10 }
0x2dba   :  { %v3608_v61 = vadd.f32 1e-05, %v3605_v21  ;;  %9288 = vmatprep.subr.bf16.mxu0 %v9822_v3 }
0x2dbc   :  { %9747 = vrsqrt.f32 %v3608_v61 }
0x2dc2   :  { %v9746_v36 = vpop.eup %9745 }
0x2dc3   :  { %v6767_v53 = vmul.f32 %v9746_v36, %v6743_v45  ;;  %v7157_v45 = vld [vmem:[%s12798_s8 + $0x38] sm:$0xff] }
0x2dc4   :  { %v9289_v58 = vpack.c.bf16 %v7157_v45, %v7156_v14 }
0x2dc5   :  { %v6776_v48 = vmul.f32 %v12383_v62, %v6767_v53 }
0x2dc6   :  { %v9748_v63 = vpop.eup %9747  ;;  %9290 = vmatpush3.bf16.msra.mxu0 %v9289_v58 }
0x2dc7   :  { %v3614_v60 = vmul.f32 %v9748_v63, %v3590_v43  ;;  %v6785_v40 = vadd.f32 %v12388_v9, %v6776_v48  ;;  %9291 = vmatprep.subr.bf16.mxu0 %v9822_v3 }
0x2dc9   :  { %v3623_v28 = vmul.f32 %v12553_v34, %v3614_v60  ;;  %7725 = vmatmul.mubr.msk.f32.gmra.mrb[144].mxu0 %vm110_vm0, %v6785_v40 }
0x2dca   :  { %8777 = vmatprep.mubr.msk.f32.mxu0 %vm9825_vm2, %v9823_v33 }
0x2dcb   :  { %v3632_v62 = vadd.f32 %v12559_v0, %v3623_v28 }
0x2dcd   :  { %3635 = vst.msk [vmem:[%s12797_s4] sm:$0xff] %vm110_vm0, %v3632_v62 }
0x2dd4   :  { %v7148_v31 = vld [vmem:[%s12797_s4] sm:$0xff] }
0x2df4   :  { %v7089_v9 = vpop.xlane.xlu0 %7088 }
0x2df5   :  { %v7096_v55 = vmul.f32 0.015625, %v7089_v9 }
0x2df7   :  { %v7099_v32 = vsub.f32 %v7082_v6, %v7096_v55 }
0x2df9   :  { %v7102_v17 = vmul.f32 %v7099_v32, %v7099_v32 }
0x2dfb   :  { %v7105_v35 = vsel %vm110_vm0, %v7102_v17, 0.0 }
0x2dfc   :  { %7106 = vadd.xlane.f32.xlu0 %v7105_v35 }
0x2e89   :  { %v7107_v38 = vpop.xlane.xlu0 %7106 }
0x2e8a   :  { %v7114_v1 = vmul.f32 0.015625, %v7107_v38 }
0x2e8b   :  { %v6895_v51 = vpop.f32.mrb[142].mxu0 }
0x2e8c   :  { %v7117_v43 = vadd.f32 1e-05, %v7114_v1  ;;  %v6896_v59 = vadd.f32 %v6895_v51, %v12502_v11  ;;  %v6897_v29 = vpop.f32.mrb[143].mxu0  ;;  %v3583_v1 = vpop.xlane.xlu1 %3582  ;;  %v3564_v51 = vadd.f32 %v11355_v16, %v11117_v30 }
0x2e8d   :  { %v6898_v49 = vadd.f32 %v6897_v29, %v12505_v20 }
0x2e8e   :  { %9749 = vrsqrt.f32 %v7117_v43  ;;  %v6908_v27 = vmul.f32 %v6896_v59, %v6896_v59 }
0x2e8f   :  { %v6909_v26 = vmul.f32 %v6898_v49, %v6898_v49 }
0x2e90   :  { %v6914_v23 = vmul.f32 %v6908_v27, %v6896_v59 }
0x2e91   :  { %v6915_v25 = vmul.f32 %v6909_v26, %v6898_v49 }
0x2e92   :  { %v6920_v8 = vmul.f32 0.044715, %v6914_v23 }
0x2e93   :  { %v6921_v6 = vmul.f32 0.044715, %v6915_v25  ;;  %v3575_v25 = vadd.f32 %v12521_v37, %v3564_v51 }
0x2e94   :  { %v6926_v24 = vadd.f32 %v6920_v8, %v6896_v59 }
0x2e95   :  { %v6927_v44 = vadd.f32 %v6921_v6, %v6898_v49 }
0x2e96   :  { %v6932_v42 = vmul.f32 0.7978846, %v6926_v24  ;;  %v3584_v24 = vsel %vm208_vm1, %v3575_v25, 0.0 }
0x2e97   :  { %v6933_v41 = vmul.f32 0.7978846, %v6927_v44 }
0x2e98   :  { %v9750_v12 = vpop.eup %9749  ;;  %9751 = vtanh.f32 %v6932_v42 }
0x2e99   :  { %v7123_v2 = vmul.f32 %v9750_v12, %v7099_v32  ;;  %9753 = vtanh.f32 %v6933_v41 }
0x2e9b   :  { %v7132_v57 = vmul.f32 %v12553_v34, %v7123_v2 }
0x2e9c   :  { %v6901_v56 = vpop.f32.mrb[144].mxu0 }
0x2e9d   :  { %v7141_v39 = vadd.f32 %v12559_v0, %v7132_v57  ;;  %v6902_v54 = vadd.f32 %v6901_v56, %v12502_v11  ;;  %v6903_v7 = vpop.f32.mrb[145].mxu0 }
0x2e9e   :  { %v6904_v4 = vadd.f32 %v6903_v7, %v12505_v20  ;;  %v7251_v7 = vld [vmem:[%s12799_s28 + $0x18] sm:$0xff] }
0x2e9f   :  { %7762 = vst.msk [vmem:[%s12797_s4 + $0x18] sm:$0xff] %vm110_vm0, %v7141_v39  ;;  %v6910_v21 = vmul.f32 %v6902_v54, %v6902_v54 }
0x2ea0   :  { %v6911_v61 = vmul.f32 %v6904_v4, %v6904_v4 }
0x2ea1   :  { %v6916_v36 = vmul.f32 %v6910_v21, %v6902_v54 }
0x2ea2   :  { %v9752_v53 = vpop.eup %9751  ;;  %v6917_v48 = vmul.f32 %v6911_v61, %v6904_v4 }
0x2ea3   :  { %v9754_v63 = vpop.eup %9753  ;;  %v6922_v60 = vmul.f32 0.044715, %v6916_v36  ;;  %v6944_v40 = vadd.f32 1.0, %v9752_v53 }
0x2ea4   :  { %v6923_v28 = vmul.f32 0.044715, %v6917_v48  ;;  %v6945_v62 = vadd.f32 1.0, %v9754_v63 }
0x2ea5   :  { %v6928_v9 = vadd.f32 %v6922_v60, %v6902_v54  ;;  %v6950_v11 = vmul.f32 0.5, %v6944_v40 }
0x2ea6   :  { %v6929_v55 = vadd.f32 %v6923_v28, %v6904_v4  ;;  %v6951_v32 = vmul.f32 0.5, %v6945_v62  ;;  %v7149_v20 = vld [vmem:[%s12797_s4 + $0x18] sm:$0xff] }
0x2ea7   :  { %v6934_v17 = vmul.f32 0.7978846, %v6928_v9  ;;  %v7160_v35 = vrot.slane %v7149_v20, 7  ;;  %v6956_v47 = vmul.f32 %v6950_v11, %v6896_v59  ;;  %v3588_v59 = vmul.f32 0.015625, %v3583_v1 }
0x2ea8   :  { %v6935_v46 = vmul.f32 0.7978846, %v6929_v55  ;;  %v6957_v5 = vmul.f32 %v6951_v32, %v6898_v49 }
0x2ea9   :  { %v7162_v52 = vsel %vm7161_vm15, %v7160_v35, %v7148_v31  ;;  %9755 = vtanh.f32 %v6934_v17  ;;  %v3591_v8 = vsub.f32 %v12538_v22, %v3588_v59  ;;  %v7249_v22 = vld [vmem:[%s12799_s28 + $0x8] sm:$0xff] }
0x2eaa   :  { %7061 = vmatprep.mubr.f32.mxu1 %v6957_v5  ;;  %8778 = vmatmul.mubr.msk.f32.vlgmr.msra.gmra.mrb[146].mxu0 %vm110_vm0, %v7162_v52  ;;  %9757 = vtanh.f32 %v6935_v46 }
0x2eab   :  { %7062 = vmatmul.mubr.f32.gmra.mrb[150].mxu1 %v6956_v47  ;;  %8788 = vmatprep.mubr.msk.f32.mxu0 %vm9825_vm2, %v9823_v33  ;;  %v3594_v44 = vmul.f32 %v3591_v8, %v3591_v8  ;;  %vm7252_vm2 = vcmask 261120  }
0x2ead   :  { %v3599_v42 = vsel %vm110_vm0, %v3594_v44, 0.0 }
0x2eb3   :  { %v9756_v15 = vpop.eup %9755 }
0x2eb4   :  { %v9758_v18 = vpop.eup %9757  ;;  %v6946_v50 = vadd.f32 1.0, %v9756_v15 }
0x2eb5   :  { %v6947_v10 = vadd.f32 1.0, %v9758_v18  ;;  %v7244_v18 = vstv %s12800_s13 }
0x2eb6   :  { %v6952_v14 = vmul.f32 0.5, %v6946_v50  ;;  %v7245_v50 = vmul.f32 1.442695, %v7244_v18 }
0x2eb7   :  { %v6953_v45 = vmul.f32 0.5, %v6947_v10 }
0x2eb8   :  { %v6958_v38 = vmul.f32 %v6952_v14, %v6902_v54 }
0x2eb9   :  { %v6959_v58 = vmul.f32 %v6953_v45, %v6904_v4 }
0x2ebb   :  { %7066 = vmatprep.mubr.f32.mxu1 %v6959_v58 }
0x2ebc   :  { %7067 = vmatmul.mubr.f32.gmra.mrb[152].mxu1 %v6958_v38 }
0x2f7d   :  { %v7231_v43 = vpop.f32.mrb[146].mxu0 }
0x2f7e   :  { %v7235_v29 = vmul.f32 %v7231_v43, %v7231_v43  ;;  %v8161_v49 = vpop.f32.mrb[150].mxu1  ;;  %v8779_v33 = vpop.f32.mrb[147].mxu0 }
0x2f7f   :  { %v8162_v27 = vpop.f32.mrb[151].mxu1 }
0x2f80   :  { %v8163_v26 = vadd.f32 %v8162_v27, %v8161_v49  ;;  %v7237_v23 = vsel %vm7236_vm3, %v7235_v29, 0.0 }
0x2f81   :  { %7238 = vadd.xlane.f32.xlu0 %v7237_v23 }
0x2f82   :  { %v7073_v6 = vadd.f32 %v8163_v26, %v12511_v19  ;;  %v7248_v19 = vld [vmem:[%s12799_s28] sm:$0xff] }
0x2f83   :  { %v9292_v56 = vpack.c.bf16 %v7249_v22, %v7248_v19 }
0x2f84   :  { %v7083_v30 = vadd.f32 %v12521_v37, %v7073_v6 }
0x2f85   :  { %3585 = vadd.xlane.f32.xlu0 %v3584_v24  ;;  %9293 = vmatpush3.bf16.msra.mxu0 %v9292_v56 }
0x2f86   :  { %v7090_v16 = vsel %vm110_vm0, %v7083_v30, 0.0  ;;  %9294 = vmatprep.subr.bf16.mxu0 %v9822_v3 }
0x2f87   :  { %7091 = vadd.xlane.f32.xlu1 %v7090_v16 }
0x2f8b   :  { %3600 = vadd.xlane.f32.xlu1 %v3599_v42 }
0x2f8f   :  { %v8164_v41 = vpop.f32.mrb[152].mxu1 }
0x2f90   :  { %v8165_v12 = vpop.f32.mrb[153].mxu1 }
0x2f91   :  { %v8166_v2 = vadd.f32 %v8165_v12, %v8164_v41 }
0x2f93   :  { %v7074_v57 = vadd.f32 %v8166_v2, %v12524_v13  ;;  %v7250_v13 = vld [vmem:[%s12799_s28 + $0x10] sm:$0xff] }
0x2f94   :  { %v9295_v4 = vpack.c.bf16 %v7251_v7, %v7250_v13 }
0x2f95   :  { %v7084_v39 = vadd.f32 %v12521_v37, %v7074_v57 }
0x2f96   :  { %9296 = vmatpush3.bf16.msra.mxu0 %v9295_v4 }
0x2f97   :  { %v7093_v54 = vsel %vm208_vm1, %v7084_v39, 0.0 }
0x2f98   :  { %7094 = vadd.xlane.f32.xlu0 %v7093_v54 }
0x300e   :  { %v7239_v21 = vpop.xlane.xlu0 %7238 }
0x300f   :  { %9759 = vrsqrt.f32 %v7239_v21 }
0x3012   :  { %v3586_v61 = vpop.xlane.xlu0 %3585 }
0x3013   :  { %v3589_v37 = vmul.f32 0.015625, %v3586_v61 }
0x3014   :  { %v7092_v36 = vpop.xlane.xlu1 %7091 }
0x3015   :  { %v3592_v53 = vsub.f32 %v3575_v25, %v3589_v37  ;;  %v7097_v48 = vmul.f32 0.015625, %v7092_v36 }
0x3017   :  { %v7100_v63 = vsub.f32 %v7083_v30, %v7097_v48  ;;  %v3595_v3 = vmul.f32 %v3592_v53, %v3592_v53 }
0x3018   :  { %v3601_v60 = vpop.xlane.xlu1 %3600 }
0x3019   :  { %v9760_v40 = vpop.eup %9759  ;;  %v3606_v28 = vmul.f32 0.015625, %v3601_v60  ;;  %v3602_v62 = vsel %vm208_vm1, %v3595_v3, 0.0  ;;  %v7103_v9 = vmul.f32 %v7100_v63, %v7100_v63 }
0x301a   :  { %v7241_v11 = vmul.f32 %v9760_v40, %v7231_v43  ;;  %3603 = vadd.xlane.f32.xlu0 %v3602_v62 }
0x301b   :  { %v3609_v55 = vadd.f32 1e-05, %v3606_v28  ;;  %v7108_v32 = vsel %vm110_vm0, %v7103_v9, 0.0 }
0x301c   :  { %7242 = vst.msk [vmem:[#allocation4] sm:$0x3] %vm7236_vm3, %v7241_v11  ;;  %8789 = vmatmul.mubr.msk.f32.vlgmr.msra.gmra.mrb[148].mxu0 %vm7252_vm2, %v7241_v11  ;;  %7109 = vadd.xlane.f32.xlu1 %v7108_v32 }
0x301d   :  { %9761 = vrsqrt.f32 %v3609_v55 }
0x301e   :  { %9763 = vpow2.f32 %v7245_v50 }
0x3025   :  { %v7095_v20 = vpop.xlane.xlu0 %7094 }
0x3026   :  { %v7098_v17 = vmul.f32 0.015625, %v7095_v20 }
0x3027   :  { %v9762_v35 = vpop.eup %9761 }
0x3028   :  { %v3615_v46 = vmul.f32 %v9762_v35, %v3591_v8  ;;  %v7101_v5 = vsub.f32 %v7084_v39, %v7098_v17  ;;  %v9764_v10 = vpop.eup %9763 }
0x3029   :  { %9301 = vpush %v9764_v10 }
0x302a   :  { %v3624_v31 = vmul.f32 %v12553_v34, %v3615_v46  ;;  %v7104_v52 = vmul.f32 %v7101_v5, %v7101_v5 }
0x302c   :  { %v3633_v47 = vadd.f32 %v12559_v0, %v3624_v31  ;;  %v7111_v15 = vsel %vm208_vm1, %v7104_v52, 0.0 }
0x302d   :  { %7112 = vadd.xlane.f32.xlu0 %v7111_v15 }
0x302e   :  { %3636 = vst.msk [vmem:[%s12797_s4 + $0x8] sm:$0xff] %vm110_vm0, %v3633_v47 }
0x302f   :  { %9785 = shalt.err (!%p9782_p4)
}
0x3030   :  { %s12801_s7 = sld [smem:[#allocation27_spill]] }
0x3036   :  { %s9786_s20 = scalar_lea.hbm %s12801_s7, 32 }
0x3037   :  { %p9787_p5 = scmp.ne.s32.totalorder %s12801_s7, %s9786_s20  ;;  %p9790_p6 = scmp.lt.u32.totalorder %s9786_s20, %s12801_s7 }
0x3039   :  { %p9792_p7 = pnand %p9790_p6, %p9787_p5 }
0x303b   :  { %9795 = shalt.err (!%p9792_p7)
}
0x303c   :  { %7341 = dma.vmem_to_hbm [thread:$0]  %s7339_s2, 32, %s12801_s7, [#allocation5]   ;;  %vm7328_vm4 = vcmask 33792  }
0x303d   :  { %s9833_s30 = smov [#allocation6]  }
0x303e   :  { %s7348_s26 = sshll.u32 %s9833_s30, 4  ;;  %s7349_s26 = int_to_ptr.vmem [resolvable:$true] %s7348_s26 }
0x303f   :  { %s9796_s24 = scalar_lea.vmem %s7349_s26, 32  ;;  %p9801_p9 = scmp.lt.s32.totalorder %s7349_s26, %s7349_s26 }
0x3040   :  { %p9797_p8 = scmp.ne.s32.totalorder %s7349_s26, %s9796_s24  ;;  %p9802_p10 = scmp.lt.s32.totalorder %s9796_s24, %s9796_s24 }
0x3042   :  { %p9803_p11 = por %p9802_p10, %p9801_p9 }
0x3044   :  { %p9804_p12 = pnand %p9803_p11, %p9797_p8 }
0x305a   :  { %s9302_s9 = spop %9301 }
0x305b   :  { %v7326_v42 = vstv %s9302_s9 }
0x30a7   :  { %v3604_v14 = vpop.xlane.xlu0 %3603 }
0x30a8   :  { %v3607_v45 = vmul.f32 0.015625, %v3604_v14 }
0x30a9   :  { %v7110_v58 = vpop.xlane.xlu1 %7109 }
0x30aa   :  { %v3610_v38 = vadd.f32 1e-05, %v3607_v45  ;;  %v7115_v1 = vmul.f32 0.015625, %v7110_v58 }
0x30ac   :  { %9765 = vrsqrt.f32 %v3610_v38  ;;  %v7118_v51 = vadd.f32 1e-05, %v7115_v1 }
0x30ae   :  { %9767 = vrsqrt.f32 %v7118_v51 }
0x30b6   :  { %v9766_v43 = vpop.eup %9765 }
0x30b7   :  { %v3616_v59 = vmul.f32 %v9766_v43, %v3592_v53 }
0x30b8   :  { %v9768_v29 = vpop.eup %9767 }
0x30b9   :  { %v3625_v49 = vmul.f32 %v12553_v34, %v3616_v59  ;;  %v7124_v33 = vmul.f32 %v9768_v29, %v7100_v63 }
0x30ba   :  { %v7113_v27 = vpop.xlane.xlu0 %7112 }
0x30bb   :  { %v3634_v26 = vadd.f32 %v12559_v0, %v3625_v49  ;;  %v7133_v23 = vmul.f32 %v12553_v34, %v7124_v33  ;;  %v7116_v25 = vmul.f32 0.015625, %v7113_v27 }
0x30bd   :  { %3637 = vst.msk [vmem:[%s12797_s4 + $0x10] sm:$0x1] %vm208_vm1, %v3634_v26  ;;  %v7142_v8 = vadd.f32 %v12559_v0, %v7133_v23  ;;  %v7119_v6 = vadd.f32 1e-05, %v7116_v25 }
0x30bf   :  { %7763 = vst.msk [vmem:[%s12797_s4 + $0x20] sm:$0xff] %vm110_vm0, %v7142_v8  ;;  %9769 = vrsqrt.f32 %v7119_v6 }
0x30c9   :  { %v9770_v24 = vpop.eup %9769 }
0x30ca   :  { %v7125_v30 = vmul.f32 %v9770_v24, %v7101_v5 }
0x30cc   :  { %v7134_v16 = vmul.f32 %v12553_v34, %v7125_v30 }
0x30ce   :  { %v7143_v44 = vadd.f32 %v12559_v0, %v7134_v16 }
0x30d0   :  { %7764 = vst.msk [vmem:[%s12797_s4 + $0x28] sm:$0x1] %vm208_vm1, %v7143_v44 }
0x30ef   :  { %v7322_v41 = vpop.f32.mrb[148].mxu0 }
0x30f0   :  { %v7327_v12 = vmul.f32 %v7326_v42, %v7322_v41  ;;  %v8790_v2 = vpop.f32.mrb[149].mxu0 }
0x30f2   :  { %7329 = vst.msk [vmem:[#allocation6] sm:$0x3] %vm7328_vm4, %v7327_v12 }
0x30f3   :  { %9807 = shalt.err (!%p9804_p12)
}
0x30f4   :  { %s12802_s4 = sld [smem:[#allocation28_spill]] }
0x30fa   :  { %s9808_s8 = scalar_lea.hbm %s12802_s4, 32 }
0x30fb   :  { %p9809_p13 = scmp.ne.s32.totalorder %s12802_s4, %s9808_s8  ;;  %p9812_p0 = scmp.lt.u32.totalorder %s9808_s8, %s12802_s4 }
0x30fd   :  { %p9814_p1 = pnand %p9812_p0, %p9809_p13 }
0x30ff   :  { %9817 = shalt.err (!%p9814_p1)
}
0x3100   :  { %7351 = dma.vmem_to_hbm [thread:$0]  %s7349_s26, 32, %s12802_s4, [#allocation7]  }
0x3101   :  { %9818 = dma.done.wait [#allocation5], 32  }
0x3102   :  { %9819 = vsyncadd [#allocation5], 4294967264 }
0x3103   :  { %9820 = dma.done.wait [#allocation7], 32  }
0x3104   :  { %9821 = vsyncadd [#allocation7], 4294967264 }
0x3105   :  { %7360 = vsyncpa [#allocation5], 1 }
0x3106   :  { %7361 = vsyncpa [#allocation7], 1 }

</bundles_post_ra>
